<compile_context>
chip_gen: v7x
topology: tpu7x:2x2x1
jax: 0.10.0
libtpu: 0.0.40
codegen_flags: <defaults>
</compile_context>

<pallas_src>
import jax
import jax.numpy as jnp
from jax.experimental import pallas as pl
from jax.experimental.pallas import tpu as pltpu


# ----------------------------- Pallas plumbing -----------------------------

def _full_spec(shape):
    nd = len(shape)
    return pl.BlockSpec(shape, lambda i, _nd=nd: (0,) * _nd)


# ------------------------------ fused kernel -------------------------------

def _lenet_fused_kernel(patches_ref, w1_ref, b1_ref, w2_ref, b2_ref,
                        wf1_ref, bf1_ref, wf2_ref, bf2_ref, wf3_ref, bf3_ref,
                        o_ref):
    f32 = jnp.float32
    bf16 = jnp.bfloat16
    B = o_ref.shape[0]
    PB = 49 * B                      # rows per conv1 pooling phase (7x7 grid)

    # ---- conv1: one im2col GEMM covering all 16 pooling phases (+bias+ReLU).
    # Row order of `patches_ref`: (phase_y, phase_x, u, v, b), i.e. conv1
    # output position (4u + phase_y, 4v + phase_x).
    h = jnp.dot(patches_ref[...], w1_ref[...], preferred_element_type=f32)
    h = jnp.maximum(h + b1_ref[...], 0.0)                    # (16*49*B, 6)

    def phase(py, px):               # conv1+ReLU at positions (4u+py, 4v+px)
        k = py * 4 + px
        return h[k * PB:(k + 1) * PB, :]                     # (49*B, 6)

    # ---- max-pool #1, fused: P1[r][s] rows (u, v, b) == pool1[b, 2u+r, 2v+s, :]
    p1 = [[None, None], [None, None]]
    for r in range(2):
        for s in range(2):
            p1[r][s] = jnp.maximum(
                jnp.maximum(phase(2 * r, 2 * s), phase(2 * r, 2 * s + 1)),
                jnp.maximum(phase(2 * r + 1, 2 * s),
                            phase(2 * r + 1, 2 * s + 1)))

    # ---- conv2: in-kernel im2col -> one GEMM per pool-2 phase;
    #      bias + ReLU + max-pool #2 fused as elementwise max over phases.
    pooled2 = None
    for dy in range(2):
        for dx in range(2):
            tap_cols = []
            for i in range(5):
                for j in range(5):
                    yy, xx = dy + i, dx + j
                    src = p1[yy % 2][xx % 2]                 # (49*B, 6)
                    u0, v0 = yy // 2, xx // 2
                    # 5 contiguous row runs of the 5x5 output window
                    runs = [src[((u0 + yo) * 7 + v0) * B:
                                ((u0 + yo) * 7 + v0 + 5) * B, :]
                            for yo in range(5)]
                    tap_cols.append(jnp.concatenate(runs, axis=0))  # (25*B, 6)
            pat = jnp.concatenate(tap_cols, axis=-1).astype(bf16)   # (25*B,150)
            z = jnp.dot(pat, w2_ref[...], preferred_element_type=f32)
            z = jnp.maximum(z + b2_ref[...], 0.0)                   # (25*B, 16)
            pooled2 = z if pooled2 is None else jnp.maximum(pooled2, z)

    # ---- flatten: rows of pooled2 are (spatial p, batch b); torch's
    #      (c, y, x) flatten order is folded into the pre-reordered fc1 weight.
    x_fc = jnp.concatenate(
        [pooled2[p * B:(p + 1) * B, :] for p in range(25)], axis=-1)  # (B,400)

    # ---- fc1 -> fc2 -> fc3 (no activations, as in the reference nn.Sequential)
    h1 = jnp.dot(x_fc.astype(bf16), wf1_ref[...],
                 preferred_element_type=f32) + bf1_ref[...]
    h2 = jnp.dot(h1.astype(bf16), wf2_ref[...],
                 preferred_element_type=f32) + bf2_ref[...]
    o_ref[...] = jnp.dot(h2.astype(bf16), wf3_ref[...],
                         preferred_element_type=f32) + bf3_ref[...]


# ------------------------------- glue (JAX) --------------------------------

def _conv1_phase_patches(x_nchw):
    """im2col patches for conv1 with rows ordered (phase_y, phase_x, u, v, b).

    Row (py, px, u, v, b), col (i*3+j)*Ci+ci == x_pad[b, 4u+py+i, 4v+px+j, ci],
    so the 16 phase blocks are the conv1 outputs needed to fuse the 2x2 pool
    (and the following pool's parity split) without any strided in-kernel ops.
    """
    B, Ci, H, W = x_nchw.shape                               # H == W == 28
    x = jnp.transpose(x_nchw, (0, 2, 3, 1))                  # NHWC
    xp = jnp.pad(x, ((0, 0), (1, 1), (1, 1), (0, 0)))        # (B, 30, 30, Ci)
    taps = [xp[:, i:i + H, j:j + W, :] for i in range(3) for j in range(3)]
    t = jnp.stack(taps, axis=-2)                             # (B, 28, 28, 9, Ci)
    t = t.reshape(B, H // 4, 4, W // 4, 4, 9 * Ci)           # (B, u, py, v, px, K)
    t = jnp.transpose(t, (2, 4, 1, 3, 0, 5))                 # (py, px, u, v, B, K)
    return t.reshape(16 * (H // 4) * (W // 4) * B, 9 * Ci)   # (784*B, 9*Ci)


@jax.jit
def cnn_forward(x_nchw, prep):
    B = x_nchw.shape[0]
    n_class = prep["bf3"].shape[-1]
    patches = _conv1_phase_patches(x_nchw).astype(jnp.bfloat16)
    args = (patches, prep["w1"], prep["b1"], prep["w2"], prep["b2"],
            prep["wf1"], prep["bf1"], prep["wf2"], prep["bf2"],
            prep["wf3"], prep["bf3"])
    out_shape = jax.ShapeDtypeStruct((B, n_class), jnp.float32)
    # Note: at B=2 the whole working set is <1 MiB, so a single grid step with
    # whole-array blocks is right; for large batches, tile the conv-GEMM M
    # dimension with a grid and mark it "parallel" (v7x megacore).
    return pl.pallas_call(
        _lenet_fused_kernel,
        grid=(1,),
        in_specs=[_full_spec(a.shape) for a in args],
        out_specs=_full_spec(out_shape.shape),
        out_shape=out_shape,
        compiler_params=pltpu.CompilerParams(
            dimension_semantics=("arbitrary",)),
    )(*args)


# --------------------------- parameters / layouts ---------------------------

def init_params(in_dim, n_class, key):
    """Deterministic torch-layout parameters (Conv2d / Linear layouts)."""
    ks = jax.random.split(key, 10)

    def unif(k, shape, fan_in):
        bound = 1.0 / (fan_in ** 0.5)
        return jax.random.uniform(k, shape, jnp.float32, -bound, bound)

    return {
        "w_c1": unif(ks[0], (6, in_dim, 3, 3), in_dim * 9),
        "b_c1": unif(ks[1], (6,), in_dim * 9),
        "w_c2": unif(ks[2], (16, 6, 5, 5), 6 * 25),
        "b_c2": unif(ks[3], (16,), 6 * 25),
        "w_f1": unif(ks[4], (120, 400), 400),
        "b_f1": unif(ks[5], (120,), 400),
        "w_f2": unif(ks[6], (84, 120), 120),
        "b_f2": unif(ks[7], (84,), 120),
        "w_f3": unif(ks[8], (n_class, 84), 84),
        "b_f3": unif(ks[9], (n_class,), 84),
    }


def prepare_params(params):
    """One-time weight layout / dtype prep (no per-call transposes)."""
    n_class = params["w_f3"].shape[0]
    # conv weights -> im2col matrices, rows ordered (i, j, ci), cols = out ch.
    w1 = jnp.transpose(params["w_c1"], (2, 3, 1, 0)).reshape(-1, 6)
    w2 = jnp.transpose(params["w_c2"], (2, 3, 1, 0)).reshape(-1, 16)
    # fc1 weight reordered so the kernel's (y, x, c)-ordered features match
    # torch's (c, y, x) flatten of the (B, 16, 5, 5) conv output.
    wf1 = jnp.transpose(params["w_f1"].reshape(120, 16, 25),
                        (2, 1, 0)).reshape(400, 120)
    wf2 = params["w_f2"].T
    wf3 = params["w_f3"].T
    bf16 = jnp.bfloat16
    return {
        "w1": w1.astype(bf16), "b1": params["b_c1"].reshape(1, 6),
        "w2": w2.astype(bf16), "b2": params["b_c2"].reshape(1, 16),
        "wf1": wf1.astype(bf16), "bf1": params["b_f1"].reshape(1, 120),
        "wf2": wf2.astype(bf16), "bf2": params["b_f2"].reshape(1, 84),
        "wf3": wf3.astype(bf16), "bf3": params["b_f3"].reshape(1, n_class),
    }


# ---------------------------------- main ------------------------------------

if __name__ == "__main__":
    in_dim, n_class, batch = 1, 10, 2

    key = jax.random.PRNGKey(0)
    k_x, k_p = jax.random.split(key)
    x = jax.random.normal(k_x, (batch, in_dim, 28, 28), dtype=jnp.float32)
    params = init_params(in_dim, n_class, k_p)
    prep = prepare_params(params)        # one-time weight layout/dtype prep

    out = cnn_forward(x, prep)
    out = jax.block_until_ready(out)
    assert out.shape == (batch, n_class), out.shape
    assert out.dtype == jnp.float32
    print("KERNEL_OK")
</pallas_src>

<mosaic_0001>
module attributes {stable_mosaic.version = 11 : i64} {
  func.func @_lenet_fused_kernel(%arg0: i32, %arg1: memref<1568x9xbf16, #tpu.memory_space<vmem>>, %arg2: memref<9x6xbf16, #tpu.memory_space<vmem>>, %arg3: memref<1x6xf32, #tpu.memory_space<vmem>>, %arg4: memref<150x16xbf16, #tpu.memory_space<vmem>>, %arg5: memref<1x16xf32, #tpu.memory_space<vmem>>, %arg6: memref<400x120xbf16, #tpu.memory_space<vmem>>, %arg7: memref<1x120xf32, #tpu.memory_space<vmem>>, %arg8: memref<120x84xbf16, #tpu.memory_space<vmem>>, %arg9: memref<1x84xf32, #tpu.memory_space<vmem>>, %arg10: memref<84x10xbf16, #tpu.memory_space<vmem>>, %arg11: memref<1x10xf32, #tpu.memory_space<vmem>>, %arg12: memref<2x10xf32, #tpu.memory_space<vmem>>) attributes {dimension_semantics = [#tpu.dimension_semantics<arbitrary>], iteration_bounds = array<i64: 1>, scalar_prefetch = 0 : i64, scratch_operands = 0 : i64, tpu.core_type = #tpu.core_type<tc>, window_params = [{pipeline_mode = #tpu.pipeline_mode<synchronous>, transform_indices = @transform_0, window_bounds = array<i64: 1568, 9>}, {pipeline_mode = #tpu.pipeline_mode<synchronous>, transform_indices = @transform_1, window_bounds = array<i64: 9, 6>}, {pipeline_mode = #tpu.pipeline_mode<synchronous>, transform_indices = @transform_2, window_bounds = array<i64: 1, 6>}, {pipeline_mode = #tpu.pipeline_mode<synchronous>, transform_indices = @transform_3, window_bounds = array<i64: 150, 16>}, {pipeline_mode = #tpu.pipeline_mode<synchronous>, transform_indices = @transform_4, window_bounds = array<i64: 1, 16>}, {pipeline_mode = #tpu.pipeline_mode<synchronous>, transform_indices = @transform_5, window_bounds = array<i64: 400, 120>}, {pipeline_mode = #tpu.pipeline_mode<synchronous>, transform_indices = @transform_6, window_bounds = array<i64: 1, 120>}, {pipeline_mode = #tpu.pipeline_mode<synchronous>, transform_indices = @transform_7, window_bounds = array<i64: 120, 84>}, {pipeline_mode = #tpu.pipeline_mode<synchronous>, transform_indices = @transform_8, window_bounds = array<i64: 1, 84>}, {pipeline_mode = #tpu.pipeline_mode<synchronous>, transform_indices = @transform_9, window_bounds = array<i64: 84, 10>}, {pipeline_mode = #tpu.pipeline_mode<synchronous>, transform_indices = @transform_10, window_bounds = array<i64: 1, 10>}, {pipeline_mode = #tpu.pipeline_mode<synchronous>, transform_indices = @transform_11, window_bounds = array<i64: 2, 10>}]} {
    %c0 = arith.constant 0 : index
    %c0_0 = arith.constant 0 : index
    %0 = vector.load %arg1[%c0, %c0_0] : memref<1568x9xbf16, #tpu.memory_space<vmem>>, vector<1568x9xbf16>
    %c0_1 = arith.constant 0 : index
    %c0_2 = arith.constant 0 : index
    %1 = vector.load %arg2[%c0_1, %c0_2] : memref<9x6xbf16, #tpu.memory_space<vmem>>, vector<9x6xbf16>
    %cst = arith.constant dense<0.000000e+00> : vector<1568x6xf32>
    %2 = tpu.matmul %0, %1, %cst {dimension_numbers = #tpu.dot_dimension_numbers<[1], [0], [0], [1], [0, 0, 1, 1], [], []>} : vector<1568x9xbf16>, vector<9x6xbf16>, vector<1568x6xf32> -> vector<1568x6xf32>
    %c0_3 = arith.constant 0 : index
    %c0_4 = arith.constant 0 : index
    %3 = vector.load %arg3[%c0_3, %c0_4] : memref<1x6xf32, #tpu.memory_space<vmem>>, vector<1x6xf32>
    %4 = vector.broadcast %3 : vector<1x6xf32> to vector<1568x6xf32>
    %5 = arith.addf %2, %4 : vector<1568x6xf32>
    %cst_5 = arith.constant 0.000000e+00 : f32
    %6 = vector.broadcast %cst_5 : f32 to vector<1568x6xf32>
    %7 = arith.maximumf %5, %6 : vector<1568x6xf32>
    %8 = vector.extract_strided_slice %7 {offsets = [0, 0], sizes = [98, 6], strides = [1, 1]} : vector<1568x6xf32> to vector<98x6xf32>
    %9 = vector.extract_strided_slice %7 {offsets = [98, 0], sizes = [98, 6], strides = [1, 1]} : vector<1568x6xf32> to vector<98x6xf32>
    %10 = arith.maximumf %8, %9 : vector<98x6xf32>
    %11 = vector.extract_strided_slice %7 {offsets = [392, 0], sizes = [98, 6], strides = [1, 1]} : vector<1568x6xf32> to vector<98x6xf32>
    %12 = vector.extract_strided_slice %7 {offsets = [490, 0], sizes = [98, 6], strides = [1, 1]} : vector<1568x6xf32> to vector<98x6xf32>
    %13 = arith.maximumf %11, %12 : vector<98x6xf32>
    %14 = arith.maximumf %10, %13 : vector<98x6xf32>
    %15 = vector.extract_strided_slice %7 {offsets = [196, 0], sizes = [98, 6], strides = [1, 1]} : vector<1568x6xf32> to vector<98x6xf32>
    %16 = vector.extract_strided_slice %7 {offsets = [294, 0], sizes = [98, 6], strides = [1, 1]} : vector<1568x6xf32> to vector<98x6xf32>
    %17 = arith.maximumf %15, %16 : vector<98x6xf32>
    %18 = vector.extract_strided_slice %7 {offsets = [588, 0], sizes = [98, 6], strides = [1, 1]} : vector<1568x6xf32> to vector<98x6xf32>
    %19 = vector.extract_strided_slice %7 {offsets = [686, 0], sizes = [98, 6], strides = [1, 1]} : vector<1568x6xf32> to vector<98x6xf32>
    %20 = arith.maximumf %18, %19 : vector<98x6xf32>
    %21 = arith.maximumf %17, %20 : vector<98x6xf32>
    %22 = vector.extract_strided_slice %7 {offsets = [784, 0], sizes = [98, 6], strides = [1, 1]} : vector<1568x6xf32> to vector<98x6xf32>
    %23 = vector.extract_strided_slice %7 {offsets = [882, 0], sizes = [98, 6], strides = [1, 1]} : vector<1568x6xf32> to vector<98x6xf32>
    %24 = arith.maximumf %22, %23 : vector<98x6xf32>
    %25 = vector.extract_strided_slice %7 {offsets = [1176, 0], sizes = [98, 6], strides = [1, 1]} : vector<1568x6xf32> to vector<98x6xf32>
    %26 = vector.extract_strided_slice %7 {offsets = [1274, 0], sizes = [98, 6], strides = [1, 1]} : vector<1568x6xf32> to vector<98x6xf32>
    %27 = arith.maximumf %25, %26 : vector<98x6xf32>
    %28 = arith.maximumf %24, %27 : vector<98x6xf32>
    %29 = vector.extract_strided_slice %7 {offsets = [980, 0], sizes = [98, 6], strides = [1, 1]} : vector<1568x6xf32> to vector<98x6xf32>
    %30 = vector.extract_strided_slice %7 {offsets = [1078, 0], sizes = [98, 6], strides = [1, 1]} : vector<1568x6xf32> to vector<98x6xf32>
    %31 = arith.maximumf %29, %30 : vector<98x6xf32>
    %32 = vector.extract_strided_slice %7 {offsets = [1372, 0], sizes = [98, 6], strides = [1, 1]} : vector<1568x6xf32> to vector<98x6xf32>
    %33 = vector.extract_strided_slice %7 {offsets = [1470, 0], sizes = [98, 6], strides = [1, 1]} : vector<1568x6xf32> to vector<98x6xf32>
    %34 = arith.maximumf %32, %33 : vector<98x6xf32>
    %35 = arith.maximumf %31, %34 : vector<98x6xf32>
    %36 = vector.extract_strided_slice %14 {offsets = [0, 0], sizes = [10, 6], strides = [1, 1]} : vector<98x6xf32> to vector<10x6xf32>
    %37 = vector.extract_strided_slice %14 {offsets = [14, 0], sizes = [10, 6], strides = [1, 1]} : vector<98x6xf32> to vector<10x6xf32>
    %38 = vector.extract_strided_slice %14 {offsets = [28, 0], sizes = [10, 6], strides = [1, 1]} : vector<98x6xf32> to vector<10x6xf32>
    %39 = vector.extract_strided_slice %14 {offsets = [42, 0], sizes = [10, 6], strides = [1, 1]} : vector<98x6xf32> to vector<10x6xf32>
    %40 = vector.extract_strided_slice %14 {offsets = [56, 0], sizes = [10, 6], strides = [1, 1]} : vector<98x6xf32> to vector<10x6xf32>
    %41 = tpu.concatenate %36, %37, %38, %39, %40 in 0 : vector<10x6xf32>, vector<10x6xf32>, vector<10x6xf32>, vector<10x6xf32>, vector<10x6xf32> -> vector<50x6xf32>
    %42 = vector.extract_strided_slice %21 {offsets = [0, 0], sizes = [10, 6], strides = [1, 1]} : vector<98x6xf32> to vector<10x6xf32>
    %43 = vector.extract_strided_slice %21 {offsets = [14, 0], sizes = [10, 6], strides = [1, 1]} : vector<98x6xf32> to vector<10x6xf32>
    %44 = vector.extract_strided_slice %21 {offsets = [28, 0], sizes = [10, 6], strides = [1, 1]} : vector<98x6xf32> to vector<10x6xf32>
    %45 = vector.extract_strided_slice %21 {offsets = [42, 0], sizes = [10, 6], strides = [1, 1]} : vector<98x6xf32> to vector<10x6xf32>
    %46 = vector.extract_strided_slice %21 {offsets = [56, 0], sizes = [10, 6], strides = [1, 1]} : vector<98x6xf32> to vector<10x6xf32>
    %47 = tpu.concatenate %42, %43, %44, %45, %46 in 0 : vector<10x6xf32>, vector<10x6xf32>, vector<10x6xf32>, vector<10x6xf32>, vector<10x6xf32> -> vector<50x6xf32>
    %48 = vector.extract_strided_slice %14 {offsets = [2, 0], sizes = [10, 6], strides = [1, 1]} : vector<98x6xf32> to vector<10x6xf32>
    %49 = vector.extract_strided_slice %14 {offsets = [16, 0], sizes = [10, 6], strides = [1, 1]} : vector<98x6xf32> to vector<10x6xf32>
    %50 = vector.extract_strided_slice %14 {offsets = [30, 0], sizes = [10, 6], strides = [1, 1]} : vector<98x6xf32> to vector<10x6xf32>
    %51 = vector.extract_strided_slice %14 {offsets = [44, 0], sizes = [10, 6], strides = [1, 1]} : vector<98x6xf32> to vector<10x6xf32>
    %52 = vector.extract_strided_slice %14 {offsets = [58, 0], sizes = [10, 6], strides = [1, 1]} : vector<98x6xf32> to vector<10x6xf32>
    %53 = tpu.concatenate %48, %49, %50, %51, %52 in 0 : vector<10x6xf32>, vector<10x6xf32>, vector<10x6xf32>, vector<10x6xf32>, vector<10x6xf32> -> vector<50x6xf32>
    %54 = vector.extract_strided_slice %21 {offsets = [2, 0], sizes = [10, 6], strides = [1, 1]} : vector<98x6xf32> to vector<10x6xf32>
    %55 = vector.extract_strided_slice %21 {offsets = [16, 0], sizes = [10, 6], strides = [1, 1]} : vector<98x6xf32> to vector<10x6xf32>
    %56 = vector.extract_strided_slice %21 {offsets = [30, 0], sizes = [10, 6], strides = [1, 1]} : vector<98x6xf32> to vector<10x6xf32>
    %57 = vector.extract_strided_slice %21 {offsets = [44, 0], sizes = [10, 6], strides = [1, 1]} : vector<98x6xf32> to vector<10x6xf32>
    %58 = vector.extract_strided_slice %21 {offsets = [58, 0], sizes = [10, 6], strides = [1, 1]} : vector<98x6xf32> to vector<10x6xf32>
    %59 = tpu.concatenate %54, %55, %56, %57, %58 in 0 : vector<10x6xf32>, vector<10x6xf32>, vector<10x6xf32>, vector<10x6xf32>, vector<10x6xf32> -> vector<50x6xf32>
    %60 = vector.extract_strided_slice %14 {offsets = [4, 0], sizes = [10, 6], strides = [1, 1]} : vector<98x6xf32> to vector<10x6xf32>
    %61 = vector.extract_strided_slice %14 {offsets = [18, 0], sizes = [10, 6], strides = [1, 1]} : vector<98x6xf32> to vector<10x6xf32>
    %62 = vector.extract_strided_slice %14 {offsets = [32, 0], sizes = [10, 6], strides = [1, 1]} : vector<98x6xf32> to vector<10x6xf32>
    %63 = vector.extract_strided_slice %14 {offsets = [46, 0], sizes = [10, 6], strides = [1, 1]} : vector<98x6xf32> to vector<10x6xf32>
    %64 = vector.extract_strided_slice %14 {offsets = [60, 0], sizes = [10, 6], strides = [1, 1]} : vector<98x6xf32> to vector<10x6xf32>
    %65 = tpu.concatenate %60, %61, %62, %63, %64 in 0 : vector<10x6xf32>, vector<10x6xf32>, vector<10x6xf32>, vector<10x6xf32>, vector<10x6xf32> -> vector<50x6xf32>
    %66 = vector.extract_strided_slice %28 {offsets = [0, 0], sizes = [10, 6], strides = [1, 1]} : vector<98x6xf32> to vector<10x6xf32>
    %67 = vector.extract_strided_slice %28 {offsets = [14, 0], sizes = [10, 6], strides = [1, 1]} : vector<98x6xf32> to vector<10x6xf32>
    %68 = vector.extract_strided_slice %28 {offsets = [28, 0], sizes = [10, 6], strides = [1, 1]} : vector<98x6xf32> to vector<10x6xf32>
    %69 = vector.extract_strided_slice %28 {offsets = [42, 0], sizes = [10, 6], strides = [1, 1]} : vector<98x6xf32> to vector<10x6xf32>
    %70 = vector.extract_strided_slice %28 {offsets = [56, 0], sizes = [10, 6], strides = [1, 1]} : vector<98x6xf32> to vector<10x6xf32>
    %71 = tpu.concatenate %66, %67, %68, %69, %70 in 0 : vector<10x6xf32>, vector<10x6xf32>, vector<10x6xf32>, vector<10x6xf32>, vector<10x6xf32> -> vector<50x6xf32>
    %72 = vector.extract_strided_slice %35 {offsets = [0, 0], sizes = [10, 6], strides = [1, 1]} : vector<98x6xf32> to vector<10x6xf32>
    %73 = vector.extract_strided_slice %35 {offsets = [14, 0], sizes = [10, 6], strides = [1, 1]} : vector<98x6xf32> to vector<10x6xf32>
    %74 = vector.extract_strided_slice %35 {offsets = [28, 0], sizes = [10, 6], strides = [1, 1]} : vector<98x6xf32> to vector<10x6xf32>
    %75 = vector.extract_strided_slice %35 {offsets = [42, 0], sizes = [10, 6], strides = [1, 1]} : vector<98x6xf32> to vector<10x6xf32>
    %76 = vector.extract_strided_slice %35 {offsets = [56, 0], sizes = [10, 6], strides = [1, 1]} : vector<98x6xf32> to vector<10x6xf32>
    %77 = tpu.concatenate %72, %73, %74, %75, %76 in 0 : vector<10x6xf32>, vector<10x6xf32>, vector<10x6xf32>, vector<10x6xf32>, vector<10x6xf32> -> vector<50x6xf32>
    %78 = vector.extract_strided_slice %28 {offsets = [2, 0], sizes = [10, 6], strides = [1, 1]} : vector<98x6xf32> to vector<10x6xf32>
    %79 = vector.extract_strided_slice %28 {offsets = [16, 0], sizes = [10, 6], strides = [1, 1]} : vector<98x6xf32> to vector<10x6xf32>
    %80 = vector.extract_strided_slice %28 {offsets = [30, 0], sizes = [10, 6], strides = [1, 1]} : vector<98x6xf32> to vector<10x6xf32>
    %81 = vector.extract_strided_slice %28 {offsets = [44, 0], sizes = [10, 6], strides = [1, 1]} : vector<98x6xf32> to vector<10x6xf32>
    %82 = vector.extract_strided_slice %28 {offsets = [58, 0], sizes = [10, 6], strides = [1, 1]} : vector<98x6xf32> to vector<10x6xf32>
    %83 = tpu.concatenate %78, %79, %80, %81, %82 in 0 : vector<10x6xf32>, vector<10x6xf32>, vector<10x6xf32>, vector<10x6xf32>, vector<10x6xf32> -> vector<50x6xf32>
    %84 = vector.extract_strided_slice %35 {offsets = [2, 0], sizes = [10, 6], strides = [1, 1]} : vector<98x6xf32> to vector<10x6xf32>
    %85 = vector.extract_strided_slice %35 {offsets = [16, 0], sizes = [10, 6], strides = [1, 1]} : vector<98x6xf32> to vector<10x6xf32>
    %86 = vector.extract_strided_slice %35 {offsets = [30, 0], sizes = [10, 6], strides = [1, 1]} : vector<98x6xf32> to vector<10x6xf32>
    %87 = vector.extract_strided_slice %35 {offsets = [44, 0], sizes = [10, 6], strides = [1, 1]} : vector<98x6xf32> to vector<10x6xf32>
    %88 = vector.extract_strided_slice %35 {offsets = [58, 0], sizes = [10, 6], strides = [1, 1]} : vector<98x6xf32> to vector<10x6xf32>
    %89 = tpu.concatenate %84, %85, %86, %87, %88 in 0 : vector<10x6xf32>, vector<10x6xf32>, vector<10x6xf32>, vector<10x6xf32>, vector<10x6xf32> -> vector<50x6xf32>
    %90 = vector.extract_strided_slice %28 {offsets = [4, 0], sizes = [10, 6], strides = [1, 1]} : vector<98x6xf32> to vector<10x6xf32>
    %91 = vector.extract_strided_slice %28 {offsets = [18, 0], sizes = [10, 6], strides = [1, 1]} : vector<98x6xf32> to vector<10x6xf32>
    %92 = vector.extract_strided_slice %28 {offsets = [32, 0], sizes = [10, 6], strides = [1, 1]} : vector<98x6xf32> to vector<10x6xf32>
    %93 = vector.extract_strided_slice %28 {offsets = [46, 0], sizes = [10, 6], strides = [1, 1]} : vector<98x6xf32> to vector<10x6xf32>
    %94 = vector.extract_strided_slice %28 {offsets = [60, 0], sizes = [10, 6], strides = [1, 1]} : vector<98x6xf32> to vector<10x6xf32>
    %95 = tpu.concatenate %90, %91, %92, %93, %94 in 0 : vector<10x6xf32>, vector<10x6xf32>, vector<10x6xf32>, vector<10x6xf32>, vector<10x6xf32> -> vector<50x6xf32>
    %96 = vector.extract_strided_slice %14 {offsets = [14, 0], sizes = [10, 6], strides = [1, 1]} : vector<98x6xf32> to vector<10x6xf32>
    %97 = vector.extract_strided_slice %14 {offsets = [28, 0], sizes = [10, 6], strides = [1, 1]} : vector<98x6xf32> to vector<10x6xf32>
    %98 = vector.extract_strided_slice %14 {offsets = [42, 0], sizes = [10, 6], strides = [1, 1]} : vector<98x6xf32> to vector<10x6xf32>
    %99 = vector.extract_strided_slice %14 {offsets = [56, 0], sizes = [10, 6], strides = [1, 1]} : vector<98x6xf32> to vector<10x6xf32>
    %100 = vector.extract_strided_slice %14 {offsets = [70, 0], sizes = [10, 6], strides = [1, 1]} : vector<98x6xf32> to vector<10x6xf32>
    %101 = tpu.concatenate %96, %97, %98, %99, %100 in 0 : vector<10x6xf32>, vector<10x6xf32>, vector<10x6xf32>, vector<10x6xf32>, vector<10x6xf32> -> vector<50x6xf32>
    %102 = vector.extract_strided_slice %21 {offsets = [14, 0], sizes = [10, 6], strides = [1, 1]} : vector<98x6xf32> to vector<10x6xf32>
    %103 = vector.extract_strided_slice %21 {offsets = [28, 0], sizes = [10, 6], strides = [1, 1]} : vector<98x6xf32> to vector<10x6xf32>
    %104 = vector.extract_strided_slice %21 {offsets = [42, 0], sizes = [10, 6], strides = [1, 1]} : vector<98x6xf32> to vector<10x6xf32>
    %105 = vector.extract_strided_slice %21 {offsets = [56, 0], sizes = [10, 6], strides = [1, 1]} : vector<98x6xf32> to vector<10x6xf32>
    %106 = vector.extract_strided_slice %21 {offsets = [70, 0], sizes = [10, 6], strides = [1, 1]} : vector<98x6xf32> to vector<10x6xf32>
    %107 = tpu.concatenate %102, %103, %104, %105, %106 in 0 : vector<10x6xf32>, vector<10x6xf32>, vector<10x6xf32>, vector<10x6xf32>, vector<10x6xf32> -> vector<50x6xf32>
    %108 = vector.extract_strided_slice %14 {offsets = [16, 0], sizes = [10, 6], strides = [1, 1]} : vector<98x6xf32> to vector<10x6xf32>
    %109 = vector.extract_strided_slice %14 {offsets = [30, 0], sizes = [10, 6], strides = [1, 1]} : vector<98x6xf32> to vector<10x6xf32>
    %110 = vector.extract_strided_slice %14 {offsets = [44, 0], sizes = [10, 6], strides = [1, 1]} : vector<98x6xf32> to vector<10x6xf32>
    %111 = vector.extract_strided_slice %14 {offsets = [58, 0], sizes = [10, 6], strides = [1, 1]} : vector<98x6xf32> to vector<10x6xf32>
    %112 = vector.extract_strided_slice %14 {offsets = [72, 0], sizes = [10, 6], strides = [1, 1]} : vector<98x6xf32> to vector<10x6xf32>
    %113 = tpu.concatenate %108, %109, %110, %111, %112 in 0 : vector<10x6xf32>, vector<10x6xf32>, vector<10x6xf32>, vector<10x6xf32>, vector<10x6xf32> -> vector<50x6xf32>
    %114 = vector.extract_strided_slice %21 {offsets = [16, 0], sizes = [10, 6], strides = [1, 1]} : vector<98x6xf32> to vector<10x6xf32>
    %115 = vector.extract_strided_slice %21 {offsets = [30, 0], sizes = [10, 6], strides = [1, 1]} : vector<98x6xf32> to vector<10x6xf32>
    %116 = vector.extract_strided_slice %21 {offsets = [44, 0], sizes = [10, 6], strides = [1, 1]} : vector<98x6xf32> to vector<10x6xf32>
    %117 = vector.extract_strided_slice %21 {offsets = [58, 0], sizes = [10, 6], strides = [1, 1]} : vector<98x6xf32> to vector<10x6xf32>
    %118 = vector.extract_strided_slice %21 {offsets = [72, 0], sizes = [10, 6], strides = [1, 1]} : vector<98x6xf32> to vector<10x6xf32>
    %119 = tpu.concatenate %114, %115, %116, %117, %118 in 0 : vector<10x6xf32>, vector<10x6xf32>, vector<10x6xf32>, vector<10x6xf32>, vector<10x6xf32> -> vector<50x6xf32>
    %120 = vector.extract_strided_slice %14 {offsets = [18, 0], sizes = [10, 6], strides = [1, 1]} : vector<98x6xf32> to vector<10x6xf32>
    %121 = vector.extract_strided_slice %14 {offsets = [32, 0], sizes = [10, 6], strides = [1, 1]} : vector<98x6xf32> to vector<10x6xf32>
    %122 = vector.extract_strided_slice %14 {offsets = [46, 0], sizes = [10, 6], strides = [1, 1]} : vector<98x6xf32> to vector<10x6xf32>
    %123 = vector.extract_strided_slice %14 {offsets = [60, 0], sizes = [10, 6], strides = [1, 1]} : vector<98x6xf32> to vector<10x6xf32>
    %124 = vector.extract_strided_slice %14 {offsets = [74, 0], sizes = [10, 6], strides = [1, 1]} : vector<98x6xf32> to vector<10x6xf32>
    %125 = tpu.concatenate %120, %121, %122, %123, %124 in 0 : vector<10x6xf32>, vector<10x6xf32>, vector<10x6xf32>, vector<10x6xf32>, vector<10x6xf32> -> vector<50x6xf32>
    %126 = vector.extract_strided_slice %28 {offsets = [14, 0], sizes = [10, 6], strides = [1, 1]} : vector<98x6xf32> to vector<10x6xf32>
    %127 = vector.extract_strided_slice %28 {offsets = [28, 0], sizes = [10, 6], strides = [1, 1]} : vector<98x6xf32> to vector<10x6xf32>
    %128 = vector.extract_strided_slice %28 {offsets = [42, 0], sizes = [10, 6], strides = [1, 1]} : vector<98x6xf32> to vector<10x6xf32>
    %129 = vector.extract_strided_slice %28 {offsets = [56, 0], sizes = [10, 6], strides = [1, 1]} : vector<98x6xf32> to vector<10x6xf32>
    %130 = vector.extract_strided_slice %28 {offsets = [70, 0], sizes = [10, 6], strides = [1, 1]} : vector<98x6xf32> to vector<10x6xf32>
    %131 = tpu.concatenate %126, %127, %128, %129, %130 in 0 : vector<10x6xf32>, vector<10x6xf32>, vector<10x6xf32>, vector<10x6xf32>, vector<10x6xf32> -> vector<50x6xf32>
    %132 = vector.extract_strided_slice %35 {offsets = [14, 0], sizes = [10, 6], strides = [1, 1]} : vector<98x6xf32> to vector<10x6xf32>
    %133 = vector.extract_strided_slice %35 {offsets = [28, 0], sizes = [10, 6], strides = [1, 1]} : vector<98x6xf32> to vector<10x6xf32>
    %134 = vector.extract_strided_slice %35 {offsets = [42, 0], sizes = [10, 6], strides = [1, 1]} : vector<98x6xf32> to vector<10x6xf32>
    %135 = vector.extract_strided_slice %35 {offsets = [56, 0], sizes = [10, 6], strides = [1, 1]} : vector<98x6xf32> to vector<10x6xf32>
    %136 = vector.extract_strided_slice %35 {offsets = [70, 0], sizes = [10, 6], strides = [1, 1]} : vector<98x6xf32> to vector<10x6xf32>
    %137 = tpu.concatenate %132, %133, %134, %135, %136 in 0 : vector<10x6xf32>, vector<10x6xf32>, vector<10x6xf32>, vector<10x6xf32>, vector<10x6xf32> -> vector<50x6xf32>
    %138 = vector.extract_strided_slice %28 {offsets = [16, 0], sizes = [10, 6], strides = [1, 1]} : vector<98x6xf32> to vector<10x6xf32>
    %139 = vector.extract_strided_slice %28 {offsets = [30, 0], sizes = [10, 6], strides = [1, 1]} : vector<98x6xf32> to vector<10x6xf32>
    %140 = vector.extract_strided_slice %28 {offsets = [44, 0], sizes = [10, 6], strides = [1, 1]} : vector<98x6xf32> to vector<10x6xf32>
    %141 = vector.extract_strided_slice %28 {offsets = [58, 0], sizes = [10, 6], strides = [1, 1]} : vector<98x6xf32> to vector<10x6xf32>
    %142 = vector.extract_strided_slice %28 {offsets = [72, 0], sizes = [10, 6], strides = [1, 1]} : vector<98x6xf32> to vector<10x6xf32>
    %143 = tpu.concatenate %138, %139, %140, %141, %142 in 0 : vector<10x6xf32>, vector<10x6xf32>, vector<10x6xf32>, vector<10x6xf32>, vector<10x6xf32> -> vector<50x6xf32>
    %144 = vector.extract_strided_slice %35 {offsets = [16, 0], sizes = [10, 6], strides = [1, 1]} : vector<98x6xf32> to vector<10x6xf32>
    %145 = vector.extract_strided_slice %35 {offsets = [30, 0], sizes = [10, 6], strides = [1, 1]} : vector<98x6xf32> to vector<10x6xf32>
    %146 = vector.extract_strided_slice %35 {offsets = [44, 0], sizes = [10, 6], strides = [1, 1]} : vector<98x6xf32> to vector<10x6xf32>
    %147 = vector.extract_strided_slice %35 {offsets = [58, 0], sizes = [10, 6], strides = [1, 1]} : vector<98x6xf32> to vector<10x6xf32>
    %148 = vector.extract_strided_slice %35 {offsets = [72, 0], sizes = [10, 6], strides = [1, 1]} : vector<98x6xf32> to vector<10x6xf32>
    %149 = tpu.concatenate %144, %145, %146, %147, %148 in 0 : vector<10x6xf32>, vector<10x6xf32>, vector<10x6xf32>, vector<10x6xf32>, vector<10x6xf32> -> vector<50x6xf32>
    %150 = vector.extract_strided_slice %28 {offsets = [18, 0], sizes = [10, 6], strides = [1, 1]} : vector<98x6xf32> to vector<10x6xf32>
    %151 = vector.extract_strided_slice %28 {offsets = [32, 0], sizes = [10, 6], strides = [1, 1]} : vector<98x6xf32> to vector<10x6xf32>
    %152 = vector.extract_strided_slice %28 {offsets = [46, 0], sizes = [10, 6], strides = [1, 1]} : vector<98x6xf32> to vector<10x6xf32>
    %153 = vector.extract_strided_slice %28 {offsets = [60, 0], sizes = [10, 6], strides = [1, 1]} : vector<98x6xf32> to vector<10x6xf32>
    %154 = vector.extract_strided_slice %28 {offsets = [74, 0], sizes = [10, 6], strides = [1, 1]} : vector<98x6xf32> to vector<10x6xf32>
    %155 = tpu.concatenate %150, %151, %152, %153, %154 in 0 : vector<10x6xf32>, vector<10x6xf32>, vector<10x6xf32>, vector<10x6xf32>, vector<10x6xf32> -> vector<50x6xf32>
    %156 = vector.extract_strided_slice %14 {offsets = [28, 0], sizes = [10, 6], strides = [1, 1]} : vector<98x6xf32> to vector<10x6xf32>
    %157 = vector.extract_strided_slice %14 {offsets = [42, 0], sizes = [10, 6], strides = [1, 1]} : vector<98x6xf32> to vector<10x6xf32>
    %158 = vector.extract_strided_slice %14 {offsets = [56, 0], sizes = [10, 6], strides = [1, 1]} : vector<98x6xf32> to vector<10x6xf32>
    %159 = vector.extract_strided_slice %14 {offsets = [70, 0], sizes = [10, 6], strides = [1, 1]} : vector<98x6xf32> to vector<10x6xf32>
    %160 = vector.extract_strided_slice %14 {offsets = [84, 0], sizes = [10, 6], strides = [1, 1]} : vector<98x6xf32> to vector<10x6xf32>
    %161 = tpu.concatenate %156, %157, %158, %159, %160 in 0 : vector<10x6xf32>, vector<10x6xf32>, vector<10x6xf32>, vector<10x6xf32>, vector<10x6xf32> -> vector<50x6xf32>
    %162 = vector.extract_strided_slice %21 {offsets = [28, 0], sizes = [10, 6], strides = [1, 1]} : vector<98x6xf32> to vector<10x6xf32>
    %163 = vector.extract_strided_slice %21 {offsets = [42, 0], sizes = [10, 6], strides = [1, 1]} : vector<98x6xf32> to vector<10x6xf32>
    %164 = vector.extract_strided_slice %21 {offsets = [56, 0], sizes = [10, 6], strides = [1, 1]} : vector<98x6xf32> to vector<10x6xf32>
    %165 = vector.extract_strided_slice %21 {offsets = [70, 0], sizes = [10, 6], strides = [1, 1]} : vector<98x6xf32> to vector<10x6xf32>
    %166 = vector.extract_strided_slice %21 {offsets = [84, 0], sizes = [10, 6], strides = [1, 1]} : vector<98x6xf32> to vector<10x6xf32>
    %167 = tpu.concatenate %162, %163, %164, %165, %166 in 0 : vector<10x6xf32>, vector<10x6xf32>, vector<10x6xf32>, vector<10x6xf32>, vector<10x6xf32> -> vector<50x6xf32>
    %168 = vector.extract_strided_slice %14 {offsets = [30, 0], sizes = [10, 6], strides = [1, 1]} : vector<98x6xf32> to vector<10x6xf32>
    %169 = vector.extract_strided_slice %14 {offsets = [44, 0], sizes = [10, 6], strides = [1, 1]} : vector<98x6xf32> to vector<10x6xf32>
    %170 = vector.extract_strided_slice %14 {offsets = [58, 0], sizes = [10, 6], strides = [1, 1]} : vector<98x6xf32> to vector<10x6xf32>
    %171 = vector.extract_strided_slice %14 {offsets = [72, 0], sizes = [10, 6], strides = [1, 1]} : vector<98x6xf32> to vector<10x6xf32>
    %172 = vector.extract_strided_slice %14 {offsets = [86, 0], sizes = [10, 6], strides = [1, 1]} : vector<98x6xf32> to vector<10x6xf32>
    %173 = tpu.concatenate %168, %169, %170, %171, %172 in 0 : vector<10x6xf32>, vector<10x6xf32>, vector<10x6xf32>, vector<10x6xf32>, vector<10x6xf32> -> vector<50x6xf32>
    %174 = vector.extract_strided_slice %21 {offsets = [30, 0], sizes = [10, 6], strides = [1, 1]} : vector<98x6xf32> to vector<10x6xf32>
    %175 = vector.extract_strided_slice %21 {offsets = [44, 0], sizes = [10, 6], strides = [1, 1]} : vector<98x6xf32> to vector<10x6xf32>
    %176 = vector.extract_strided_slice %21 {offsets = [58, 0], sizes = [10, 6], strides = [1, 1]} : vector<98x6xf32> to vector<10x6xf32>
    %177 = vector.extract_strided_slice %21 {offsets = [72, 0], sizes = [10, 6], strides = [1, 1]} : vector<98x6xf32> to vector<10x6xf32>
    %178 = vector.extract_strided_slice %21 {offsets = [86, 0], sizes = [10, 6], strides = [1, 1]} : vector<98x6xf32> to vector<10x6xf32>
    %179 = tpu.concatenate %174, %175, %176, %177, %178 in 0 : vector<10x6xf32>, vector<10x6xf32>, vector<10x6xf32>, vector<10x6xf32>, vector<10x6xf32> -> vector<50x6xf32>
    %180 = vector.extract_strided_slice %14 {offsets = [32, 0], sizes = [10, 6], strides = [1, 1]} : vector<98x6xf32> to vector<10x6xf32>
    %181 = vector.extract_strided_slice %14 {offsets = [46, 0], sizes = [10, 6], strides = [1, 1]} : vector<98x6xf32> to vector<10x6xf32>
    %182 = vector.extract_strided_slice %14 {offsets = [60, 0], sizes = [10, 6], strides = [1, 1]} : vector<98x6xf32> to vector<10x6xf32>
    %183 = vector.extract_strided_slice %14 {offsets = [74, 0], sizes = [10, 6], strides = [1, 1]} : vector<98x6xf32> to vector<10x6xf32>
    %184 = vector.extract_strided_slice %14 {offsets = [88, 0], sizes = [10, 6], strides = [1, 1]} : vector<98x6xf32> to vector<10x6xf32>
    %185 = tpu.concatenate %180, %181, %182, %183, %184 in 0 : vector<10x6xf32>, vector<10x6xf32>, vector<10x6xf32>, vector<10x6xf32>, vector<10x6xf32> -> vector<50x6xf32>
    %186 = tpu.concatenate %41, %47, %53, %59, %65, %71, %77, %83, %89, %95, %101, %107, %113, %119, %125, %131 in 1 : vector<50x6xf32>, vector<50x6xf32>, vector<50x6xf32>, vector<50x6xf32>, vector<50x6xf32>, vector<50x6xf32>, vector<50x6xf32>, vector<50x6xf32>, vector<50x6xf32>, vector<50x6xf32>, vector<50x6xf32>, vector<50x6xf32>, vector<50x6xf32>, vector<50x6xf32>, vector<50x6xf32>, vector<50x6xf32> -> vector<50x96xf32>
    %187 = tpu.concatenate %137, %143, %149, %155, %161, %167, %173, %179, %185 in 1 : vector<50x6xf32>, vector<50x6xf32>, vector<50x6xf32>, vector<50x6xf32>, vector<50x6xf32>, vector<50x6xf32>, vector<50x6xf32>, vector<50x6xf32>, vector<50x6xf32> -> vector<50x54xf32>
    %188 = tpu.concatenate %186, %187 in 1 : vector<50x96xf32>, vector<50x54xf32> -> vector<50x150xf32>
    %189 = arith.truncf %188 : vector<50x150xf32> to vector<50x150xbf16>
    %c0_6 = arith.constant 0 : index
    %c0_7 = arith.constant 0 : index
    %190 = vector.load %arg4[%c0_6, %c0_7] : memref<150x16xbf16, #tpu.memory_space<vmem>>, vector<150x16xbf16>
    %cst_8 = arith.constant dense<0.000000e+00> : vector<50x16xf32>
    %191 = tpu.matmul %189, %190, %cst_8 {dimension_numbers = #tpu.dot_dimension_numbers<[1], [0], [0], [1], [0, 0, 1, 1], [], []>} : vector<50x150xbf16>, vector<150x16xbf16>, vector<50x16xf32> -> vector<50x16xf32>
    %c0_9 = arith.constant 0 : index
    %c0_10 = arith.constant 0 : index
    %192 = vector.load %arg5[%c0_9, %c0_10] : memref<1x16xf32, #tpu.memory_space<vmem>>, vector<1x16xf32>
    %193 = vector.broadcast %192 : vector<1x16xf32> to vector<50x16xf32>
    %194 = arith.addf %191, %193 : vector<50x16xf32>
    %cst_11 = arith.constant 0.000000e+00 : f32
    %195 = vector.broadcast %cst_11 : f32 to vector<50x16xf32>
    %196 = arith.maximumf %194, %195 : vector<50x16xf32>
    %197 = vector.extract_strided_slice %21 {offsets = [0, 0], sizes = [10, 6], strides = [1, 1]} : vector<98x6xf32> to vector<10x6xf32>
    %198 = vector.extract_strided_slice %21 {offsets = [14, 0], sizes = [10, 6], strides = [1, 1]} : vector<98x6xf32> to vector<10x6xf32>
    %199 = vector.extract_strided_slice %21 {offsets = [28, 0], sizes = [10, 6], strides = [1, 1]} : vector<98x6xf32> to vector<10x6xf32>
    %200 = vector.extract_strided_slice %21 {offsets = [42, 0], sizes = [10, 6], strides = [1, 1]} : vector<98x6xf32> to vector<10x6xf32>
    %201 = vector.extract_strided_slice %21 {offsets = [56, 0], sizes = [10, 6], strides = [1, 1]} : vector<98x6xf32> to vector<10x6xf32>
    %202 = tpu.concatenate %197, %198, %199, %200, %201 in 0 : vector<10x6xf32>, vector<10x6xf32>, vector<10x6xf32>, vector<10x6xf32>, vector<10x6xf32> -> vector<50x6xf32>
    %203 = vector.extract_strided_slice %14 {offsets = [2, 0], sizes = [10, 6], strides = [1, 1]} : vector<98x6xf32> to vector<10x6xf32>
    %204 = vector.extract_strided_slice %14 {offsets = [16, 0], sizes = [10, 6], strides = [1, 1]} : vector<98x6xf32> to vector<10x6xf32>
    %205 = vector.extract_strided_slice %14 {offsets = [30, 0], sizes = [10, 6], strides = [1, 1]} : vector<98x6xf32> to vector<10x6xf32>
    %206 = vector.extract_strided_slice %14 {offsets = [44, 0], sizes = [10, 6], strides = [1, 1]} : vector<98x6xf32> to vector<10x6xf32>
    %207 = vector.extract_strided_slice %14 {offsets = [58, 0], sizes = [10, 6], strides = [1, 1]} : vector<98x6xf32> to vector<10x6xf32>
    %208 = tpu.concatenate %203, %204, %205, %206, %207 in 0 : vector<10x6xf32>, vector<10x6xf32>, vector<10x6xf32>, vector<10x6xf32>, vector<10x6xf32> -> vector<50x6xf32>
    %209 = vector.extract_strided_slice %21 {offsets = [2, 0], sizes = [10, 6], strides = [1, 1]} : vector<98x6xf32> to vector<10x6xf32>
    %210 = vector.extract_strided_slice %21 {offsets = [16, 0], sizes = [10, 6], strides = [1, 1]} : vector<98x6xf32> to vector<10x6xf32>
    %211 = vector.extract_strided_slice %21 {offsets = [30, 0], sizes = [10, 6], strides = [1, 1]} : vector<98x6xf32> to vector<10x6xf32>
    %212 = vector.extract_strided_slice %21 {offsets = [44, 0], sizes = [10, 6], strides = [1, 1]} : vector<98x6xf32> to vector<10x6xf32>
    %213 = vector.extract_strided_slice %21 {offsets = [58, 0], sizes = [10, 6], strides = [1, 1]} : vector<98x6xf32> to vector<10x6xf32>
    %214 = tpu.concatenate %209, %210, %211, %212, %213 in 0 : vector<10x6xf32>, vector<10x6xf32>, vector<10x6xf32>, vector<10x6xf32>, vector<10x6xf32> -> vector<50x6xf32>
    %215 = vector.extract_strided_slice %14 {offsets = [4, 0], sizes = [10, 6], strides = [1, 1]} : vector<98x6xf32> to vector<10x6xf32>
    %216 = vector.extract_strided_slice %14 {offsets = [18, 0], sizes = [10, 6], strides = [1, 1]} : vector<98x6xf32> to vector<10x6xf32>
    %217 = vector.extract_strided_slice %14 {offsets = [32, 0], sizes = [10, 6], strides = [1, 1]} : vector<98x6xf32> to vector<10x6xf32>
    %218 = vector.extract_strided_slice %14 {offsets = [46, 0], sizes = [10, 6], strides = [1, 1]} : vector<98x6xf32> to vector<10x6xf32>
    %219 = vector.extract_strided_slice %14 {offsets = [60, 0], sizes = [10, 6], strides = [1, 1]} : vector<98x6xf32> to vector<10x6xf32>
    %220 = tpu.concatenate %215, %216, %217, %218, %219 in 0 : vector<10x6xf32>, vector<10x6xf32>, vector<10x6xf32>, vector<10x6xf32>, vector<10x6xf32> -> vector<50x6xf32>
    %221 = vector.extract_strided_slice %21 {offsets = [4, 0], sizes = [10, 6], strides = [1, 1]} : vector<98x6xf32> to vector<10x6xf32>
    %222 = vector.extract_strided_slice %21 {offsets = [18, 0], sizes = [10, 6], strides = [1, 1]} : vector<98x6xf32> to vector<10x6xf32>
    %223 = vector.extract_strided_slice %21 {offsets = [32, 0], sizes = [10, 6], strides = [1, 1]} : vector<98x6xf32> to vector<10x6xf32>
    %224 = vector.extract_strided_slice %21 {offsets = [46, 0], sizes = [10, 6], strides = [1, 1]} : vector<98x6xf32> to vector<10x6xf32>
    %225 = vector.extract_strided_slice %21 {offsets = [60, 0], sizes = [10, 6], strides = [1, 1]} : vector<98x6xf32> to vector<10x6xf32>
    %226 = tpu.concatenate %221, %222, %223, %224, %225 in 0 : vector<10x6xf32>, vector<10x6xf32>, vector<10x6xf32>, vector<10x6xf32>, vector<10x6xf32> -> vector<50x6xf32>
    %227 = vector.extract_strided_slice %35 {offsets = [0, 0], sizes = [10, 6], strides = [1, 1]} : vector<98x6xf32> to vector<10x6xf32>
    %228 = vector.extract_strided_slice %35 {offsets = [14, 0], sizes = [10, 6], strides = [1, 1]} : vector<98x6xf32> to vector<10x6xf32>
    %229 = vector.extract_strided_slice %35 {offsets = [28, 0], sizes = [10, 6], strides = [1, 1]} : vector<98x6xf32> to vector<10x6xf32>
    %230 = vector.extract_strided_slice %35 {offsets = [42, 0], sizes = [10, 6], strides = [1, 1]} : vector<98x6xf32> to vector<10x6xf32>
    %231 = vector.extract_strided_slice %35 {offsets = [56, 0], sizes = [10, 6], strides = [1, 1]} : vector<98x6xf32> to vector<10x6xf32>
    %232 = tpu.concatenate %227, %228, %229, %230, %231 in 0 : vector<10x6xf32>, vector<10x6xf32>, vector<10x6xf32>, vector<10x6xf32>, vector<10x6xf32> -> vector<50x6xf32>
    %233 = vector.extract_strided_slice %28 {offsets = [2, 0], sizes = [10, 6], strides = [1, 1]} : vector<98x6xf32> to vector<10x6xf32>
    %234 = vector.extract_strided_slice %28 {offsets = [16, 0], sizes = [10, 6], strides = [1, 1]} : vector<98x6xf32> to vector<10x6xf32>
    %235 = vector.extract_strided_slice %28 {offsets = [30, 0], sizes = [10, 6], strides = [1, 1]} : vector<98x6xf32> to vector<10x6xf32>
    %236 = vector.extract_strided_slice %28 {offsets = [44, 0], sizes = [10, 6], strides = [1, 1]} : vector<98x6xf32> to vector<10x6xf32>
    %237 = vector.extract_strided_slice %28 {offsets = [58, 0], sizes = [10, 6], strides = [1, 1]} : vector<98x6xf32> to vector<10x6xf32>
    %238 = tpu.concatenate %233, %234, %235, %236, %237 in 0 : vector<10x6xf32>, vector<10x6xf32>, vector<10x6xf32>, vector<10x6xf32>, vector<10x6xf32> -> vector<50x6xf32>
    %239 = vector.extract_strided_slice %35 {offsets = [2, 0], sizes = [10, 6], strides = [1, 1]} : vector<98x6xf32> to vector<10x6xf32>
    %240 = vector.extract_strided_slice %35 {offsets = [16, 0], sizes = [10, 6], strides = [1, 1]} : vector<98x6xf32> to vector<10x6xf32>
    %241 = vector.extract_strided_slice %35 {offsets = [30, 0], sizes = [10, 6], strides = [1, 1]} : vector<98x6xf32> to vector<10x6xf32>
    %242 = vector.extract_strided_slice %35 {offsets = [44, 0], sizes = [10, 6], strides = [1, 1]} : vector<98x6xf32> to vector<10x6xf32>
    %243 = vector.extract_strided_slice %35 {offsets = [58, 0], sizes = [10, 6], strides = [1, 1]} : vector<98x6xf32> to vector<10x6xf32>
    %244 = tpu.concatenate %239, %240, %241, %242, %243 in 0 : vector<10x6xf32>, vector<10x6xf32>, vector<10x6xf32>, vector<10x6xf32>, vector<10x6xf32> -> vector<50x6xf32>
    %245 = vector.extract_strided_slice %28 {offsets = [4, 0], sizes = [10, 6], strides = [1, 1]} : vector<98x6xf32> to vector<10x6xf32>
    %246 = vector.extract_strided_slice %28 {offsets = [18, 0], sizes = [10, 6], strides = [1, 1]} : vector<98x6xf32> to vector<10x6xf32>
    %247 = vector.extract_strided_slice %28 {offsets = [32, 0], sizes = [10, 6], strides = [1, 1]} : vector<98x6xf32> to vector<10x6xf32>
    %248 = vector.extract_strided_slice %28 {offsets = [46, 0], sizes = [10, 6], strides = [1, 1]} : vector<98x6xf32> to vector<10x6xf32>
    %249 = vector.extract_strided_slice %28 {offsets = [60, 0], sizes = [10, 6], strides = [1, 1]} : vector<98x6xf32> to vector<10x6xf32>
    %250 = tpu.concatenate %245, %246, %247, %248, %249 in 0 : vector<10x6xf32>, vector<10x6xf32>, vector<10x6xf32>, vector<10x6xf32>, vector<10x6xf32> -> vector<50x6xf32>
    %251 = vector.extract_strided_slice %35 {offsets = [4, 0], sizes = [10, 6], strides = [1, 1]} : vector<98x6xf32> to vector<10x6xf32>
    %252 = vector.extract_strided_slice %35 {offsets = [18, 0], sizes = [10, 6], strides = [1, 1]} : vector<98x6xf32> to vector<10x6xf32>
    %253 = vector.extract_strided_slice %35 {offsets = [32, 0], sizes = [10, 6], strides = [1, 1]} : vector<98x6xf32> to vector<10x6xf32>
    %254 = vector.extract_strided_slice %35 {offsets = [46, 0], sizes = [10, 6], strides = [1, 1]} : vector<98x6xf32> to vector<10x6xf32>
    %255 = vector.extract_strided_slice %35 {offsets = [60, 0], sizes = [10, 6], strides = [1, 1]} : vector<98x6xf32> to vector<10x6xf32>
    %256 = tpu.concatenate %251, %252, %253, %254, %255 in 0 : vector<10x6xf32>, vector<10x6xf32>, vector<10x6xf32>, vector<10x6xf32>, vector<10x6xf32> -> vector<50x6xf32>
    %257 = vector.extract_strided_slice %21 {offsets = [14, 0], sizes = [10, 6], strides = [1, 1]} : vector<98x6xf32> to vector<10x6xf32>
    %258 = vector.extract_strided_slice %21 {offsets = [28, 0], sizes = [10, 6], strides = [1, 1]} : vector<98x6xf32> to vector<10x6xf32>
    %259 = vector.extract_strided_slice %21 {offsets = [42, 0], sizes = [10, 6], strides = [1, 1]} : vector<98x6xf32> to vector<10x6xf32>
    %260 = vector.extract_strided_slice %21 {offsets = [56, 0], sizes = [10, 6], strides = [1, 1]} : vector<98x6xf32> to vector<10x6xf32>
    %261 = vector.extract_strided_slice %21 {offsets = [70, 0], sizes = [10, 6], strides = [1, 1]} : vector<98x6xf32> to vector<10x6xf32>
    %262 = tpu.concatenate %257, %258, %259, %260, %261 in 0 : vector<10x6xf32>, vector<10x6xf32>, vector<10x6xf32>, vector<10x6xf32>, vector<10x6xf32> -> vector<50x6xf32>
    %263 = vector.extract_strided_slice %14 {offsets = [16, 0], sizes = [10, 6], strides = [1, 1]} : vector<98x6xf32> to vector<10x6xf32>
    %264 = vector.extract_strided_slice %14 {offsets = [30, 0], sizes = [10, 6], strides = [1, 1]} : vector<98x6xf32> to vector<10x6xf32>
    %265 = vector.extract_strided_slice %14 {offsets = [44, 0], sizes = [10, 6], strides = [1, 1]} : vector<98x6xf32> to vector<10x6xf32>
    %266 = vector.extract_strided_slice %14 {offsets = [58, 0], sizes = [10, 6], strides = [1, 1]} : vector<98x6xf32> to vector<10x6xf32>
    %267 = vector.extract_strided_slice %14 {offsets = [72, 0], sizes = [10, 6], strides = [1, 1]} : vector<98x6xf32> to vector<10x6xf32>
    %268 = tpu.concatenate %263, %264, %265, %266, %267 in 0 : vector<10x6xf32>, vector<10x6xf32>, vector<10x6xf32>, vector<10x6xf32>, vector<10x6xf32> -> vector<50x6xf32>
    %269 = vector.extract_strided_slice %21 {offsets = [16, 0], sizes = [10, 6], strides = [1, 1]} : vector<98x6xf32> to vector<10x6xf32>
    %270 = vector.extract_strided_slice %21 {offsets = [30, 0], sizes = [10, 6], strides = [1, 1]} : vector<98x6xf32> to vector<10x6xf32>
    %271 = vector.extract_strided_slice %21 {offsets = [44, 0], sizes = [10, 6], strides = [1, 1]} : vector<98x6xf32> to vector<10x6xf32>
    %272 = vector.extract_strided_slice %21 {offsets = [58, 0], sizes = [10, 6], strides = [1, 1]} : vector<98x6xf32> to vector<10x6xf32>
    %273 = vector.extract_strided_slice %21 {offsets = [72, 0], sizes = [10, 6], strides = [1, 1]} : vector<98x6xf32> to vector<10x6xf32>
    %274 = tpu.concatenate %269, %270, %271, %272, %273 in 0 : vector<10x6xf32>, vector<10x6xf32>, vector<10x6xf32>, vector<10x6xf32>, vector<10x6xf32> -> vector<50x6xf32>
    %275 = vector.extract_strided_slice %14 {offsets = [18, 0], sizes = [10, 6], strides = [1, 1]} : vector<98x6xf32> to vector<10x6xf32>
    %276 = vector.extract_strided_slice %14 {offsets = [32, 0], sizes = [10, 6], strides = [1, 1]} : vector<98x6xf32> to vector<10x6xf32>
    %277 = vector.extract_strided_slice %14 {offsets = [46, 0], sizes = [10, 6], strides = [1, 1]} : vector<98x6xf32> to vector<10x6xf32>
    %278 = vector.extract_strided_slice %14 {offsets = [60, 0], sizes = [10, 6], strides = [1, 1]} : vector<98x6xf32> to vector<10x6xf32>
    %279 = vector.extract_strided_slice %14 {offsets = [74, 0], sizes = [10, 6], strides = [1, 1]} : vector<98x6xf32> to vector<10x6xf32>
    %280 = tpu.concatenate %275, %276, %277, %278, %279 in 0 : vector<10x6xf32>, vector<10x6xf32>, vector<10x6xf32>, vector<10x6xf32>, vector<10x6xf32> -> vector<50x6xf32>
    %281 = vector.extract_strided_slice %21 {offsets = [18, 0], sizes = [10, 6], strides = [1, 1]} : vector<98x6xf32> to vector<10x6xf32>
    %282 = vector.extract_strided_slice %21 {offsets = [32, 0], sizes = [10, 6], strides = [1, 1]} : vector<98x6xf32> to vector<10x6xf32>
    %283 = vector.extract_strided_slice %21 {offsets = [46, 0], sizes = [10, 6], strides = [1, 1]} : vector<98x6xf32> to vector<10x6xf32>
    %284 = vector.extract_strided_slice %21 {offsets = [60, 0], sizes = [10, 6], strides = [1, 1]} : vector<98x6xf32> to vector<10x6xf32>
    %285 = vector.extract_strided_slice %21 {offsets = [74, 0], sizes = [10, 6], strides = [1, 1]} : vector<98x6xf32> to vector<10x6xf32>
    %286 = tpu.concatenate %281, %282, %283, %284, %285 in 0 : vector<10x6xf32>, vector<10x6xf32>, vector<10x6xf32>, vector<10x6xf32>, vector<10x6xf32> -> vector<50x6xf32>
    %287 = vector.extract_strided_slice %35 {offsets = [14, 0], sizes = [10, 6], strides = [1, 1]} : vector<98x6xf32> to vector<10x6xf32>
    %288 = vector.extract_strided_slice %35 {offsets = [28, 0], sizes = [10, 6], strides = [1, 1]} : vector<98x6xf32> to vector<10x6xf32>
    %289 = vector.extract_strided_slice %35 {offsets = [42, 0], sizes = [10, 6], strides = [1, 1]} : vector<98x6xf32> to vector<10x6xf32>
    %290 = vector.extract_strided_slice %35 {offsets = [56, 0], sizes = [10, 6], strides = [1, 1]} : vector<98x6xf32> to vector<10x6xf32>
    %291 = vector.extract_strided_slice %35 {offsets = [70, 0], sizes = [10, 6], strides = [1, 1]} : vector<98x6xf32> to vector<10x6xf32>
    %292 = tpu.concatenate %287, %288, %289, %290, %291 in 0 : vector<10x6xf32>, vector<10x6xf32>, vector<10x6xf32>, vector<10x6xf32>, vector<10x6xf32> -> vector<50x6xf32>
    %293 = vector.extract_strided_slice %28 {offsets = [16, 0], sizes = [10, 6], strides = [1, 1]} : vector<98x6xf32> to vector<10x6xf32>
    %294 = vector.extract_strided_slice %28 {offsets = [30, 0], sizes = [10, 6], strides = [1, 1]} : vector<98x6xf32> to vector<10x6xf32>
    %295 = vector.extract_strided_slice %28 {offsets = [44, 0], sizes = [10, 6], strides = [1, 1]} : vector<98x6xf32> to vector<10x6xf32>
    %296 = vector.extract_strided_slice %28 {offsets = [58, 0], sizes = [10, 6], strides = [1, 1]} : vector<98x6xf32> to vector<10x6xf32>
    %297 = vector.extract_strided_slice %28 {offsets = [72, 0], sizes = [10, 6], strides = [1, 1]} : vector<98x6xf32> to vector<10x6xf32>
    %298 = tpu.concatenate %293, %294, %295, %296, %297 in 0 : vector<10x6xf32>, vector<10x6xf32>, vector<10x6xf32>, vector<10x6xf32>, vector<10x6xf32> -> vector<50x6xf32>
    %299 = vector.extract_strided_slice %35 {offsets = [16, 0], sizes = [10, 6], strides = [1, 1]} : vector<98x6xf32> to vector<10x6xf32>
    %300 = vector.extract_strided_slice %35 {offsets = [30, 0], sizes = [10, 6], strides = [1, 1]} : vector<98x6xf32> to vector<10x6xf32>
    %301 = vector.extract_strided_slice %35 {offsets = [44, 0], sizes = [10, 6], strides = [1, 1]} : vector<98x6xf32> to vector<10x6xf32>
    %302 = vector.extract_strided_slice %35 {offsets = [58, 0], sizes = [10, 6], strides = [1, 1]} : vector<98x6xf32> to vector<10x6xf32>
    %303 = vector.extract_strided_slice %35 {offsets = [72, 0], sizes = [10, 6], strides = [1, 1]} : vector<98x6xf32> to vector<10x6xf32>
    %304 = tpu.concatenate %299, %300, %301, %302, %303 in 0 : vector<10x6xf32>, vector<10x6xf32>, vector<10x6xf32>, vector<10x6xf32>, vector<10x6xf32> -> vector<50x6xf32>
    %305 = vector.extract_strided_slice %28 {offsets = [18, 0], sizes = [10, 6], strides = [1, 1]} : vector<98x6xf32> to vector<10x6xf32>
    %306 = vector.extract_strided_slice %28 {offsets = [32, 0], sizes = [10, 6], strides = [1, 1]} : vector<98x6xf32> to vector<10x6xf32>
    %307 = vector.extract_strided_slice %28 {offsets = [46, 0], sizes = [10, 6], strides = [1, 1]} : vector<98x6xf32> to vector<10x6xf32>
    %308 = vector.extract_strided_slice %28 {offsets = [60, 0], sizes = [10, 6], strides = [1, 1]} : vector<98x6xf32> to vector<10x6xf32>
    %309 = vector.extract_strided_slice %28 {offsets = [74, 0], sizes = [10, 6], strides = [1, 1]} : vector<98x6xf32> to vector<10x6xf32>
    %310 = tpu.concatenate %305, %306, %307, %308, %309 in 0 : vector<10x6xf32>, vector<10x6xf32>, vector<10x6xf32>, vector<10x6xf32>, vector<10x6xf32> -> vector<50x6xf32>
    %311 = vector.extract_strided_slice %35 {offsets = [18, 0], sizes = [10, 6], strides = [1, 1]} : vector<98x6xf32> to vector<10x6xf32>
    %312 = vector.extract_strided_slice %35 {offsets = [32, 0], sizes = [10, 6], strides = [1, 1]} : vector<98x6xf32> to vector<10x6xf32>
    %313 = vector.extract_strided_slice %35 {offsets = [46, 0], sizes = [10, 6], strides = [1, 1]} : vector<98x6xf32> to vector<10x6xf32>
    %314 = vector.extract_strided_slice %35 {offsets = [60, 0], sizes = [10, 6], strides = [1, 1]} : vector<98x6xf32> to vector<10x6xf32>
    %315 = vector.extract_strided_slice %35 {offsets = [74, 0], sizes = [10, 6], strides = [1, 1]} : vector<98x6xf32> to vector<10x6xf32>
    %316 = tpu.concatenate %311, %312, %313, %314, %315 in 0 : vector<10x6xf32>, vector<10x6xf32>, vector<10x6xf32>, vector<10x6xf32>, vector<10x6xf32> -> vector<50x6xf32>
    %317 = vector.extract_strided_slice %21 {offsets = [28, 0], sizes = [10, 6], strides = [1, 1]} : vector<98x6xf32> to vector<10x6xf32>
    %318 = vector.extract_strided_slice %21 {offsets = [42, 0], sizes = [10, 6], strides = [1, 1]} : vector<98x6xf32> to vector<10x6xf32>
    %319 = vector.extract_strided_slice %21 {offsets = [56, 0], sizes = [10, 6], strides = [1, 1]} : vector<98x6xf32> to vector<10x6xf32>
    %320 = vector.extract_strided_slice %21 {offsets = [70, 0], sizes = [10, 6], strides = [1, 1]} : vector<98x6xf32> to vector<10x6xf32>
    %321 = vector.extract_strided_slice %21 {offsets = [84, 0], sizes = [10, 6], strides = [1, 1]} : vector<98x6xf32> to vector<10x6xf32>
    %322 = tpu.concatenate %317, %318, %319, %320, %321 in 0 : vector<10x6xf32>, vector<10x6xf32>, vector<10x6xf32>, vector<10x6xf32>, vector<10x6xf32> -> vector<50x6xf32>
    %323 = vector.extract_strided_slice %14 {offsets = [30, 0], sizes = [10, 6], strides = [1, 1]} : vector<98x6xf32> to vector<10x6xf32>
    %324 = vector.extract_strided_slice %14 {offsets = [44, 0], sizes = [10, 6], strides = [1, 1]} : vector<98x6xf32> to vector<10x6xf32>
    %325 = vector.extract_strided_slice %14 {offsets = [58, 0], sizes = [10, 6], strides = [1, 1]} : vector<98x6xf32> to vector<10x6xf32>
    %326 = vector.extract_strided_slice %14 {offsets = [72, 0], sizes = [10, 6], strides = [1, 1]} : vector<98x6xf32> to vector<10x6xf32>
    %327 = vector.extract_strided_slice %14 {offsets = [86, 0], sizes = [10, 6], strides = [1, 1]} : vector<98x6xf32> to vector<10x6xf32>
    %328 = tpu.concatenate %323, %324, %325, %326, %327 in 0 : vector<10x6xf32>, vector<10x6xf32>, vector<10x6xf32>, vector<10x6xf32>, vector<10x6xf32> -> vector<50x6xf32>
    %329 = vector.extract_strided_slice %21 {offsets = [30, 0], sizes = [10, 6], strides = [1, 1]} : vector<98x6xf32> to vector<10x6xf32>
    %330 = vector.extract_strided_slice %21 {offsets = [44, 0], sizes = [10, 6], strides = [1, 1]} : vector<98x6xf32> to vector<10x6xf32>
    %331 = vector.extract_strided_slice %21 {offsets = [58, 0], sizes = [10, 6], strides = [1, 1]} : vector<98x6xf32> to vector<10x6xf32>
    %332 = vector.extract_strided_slice %21 {offsets = [72, 0], sizes = [10, 6], strides = [1, 1]} : vector<98x6xf32> to vector<10x6xf32>
    %333 = vector.extract_strided_slice %21 {offsets = [86, 0], sizes = [10, 6], strides = [1, 1]} : vector<98x6xf32> to vector<10x6xf32>
    %334 = tpu.concatenate %329, %330, %331, %332, %333 in 0 : vector<10x6xf32>, vector<10x6xf32>, vector<10x6xf32>, vector<10x6xf32>, vector<10x6xf32> -> vector<50x6xf32>
    %335 = vector.extract_strided_slice %14 {offsets = [32, 0], sizes = [10, 6], strides = [1, 1]} : vector<98x6xf32> to vector<10x6xf32>
    %336 = vector.extract_strided_slice %14 {offsets = [46, 0], sizes = [10, 6], strides = [1, 1]} : vector<98x6xf32> to vector<10x6xf32>
    %337 = vector.extract_strided_slice %14 {offsets = [60, 0], sizes = [10, 6], strides = [1, 1]} : vector<98x6xf32> to vector<10x6xf32>
    %338 = vector.extract_strided_slice %14 {offsets = [74, 0], sizes = [10, 6], strides = [1, 1]} : vector<98x6xf32> to vector<10x6xf32>
    %339 = vector.extract_strided_slice %14 {offsets = [88, 0], sizes = [10, 6], strides = [1, 1]} : vector<98x6xf32> to vector<10x6xf32>
    %340 = tpu.concatenate %335, %336, %337, %338, %339 in 0 : vector<10x6xf32>, vector<10x6xf32>, vector<10x6xf32>, vector<10x6xf32>, vector<10x6xf32> -> vector<50x6xf32>
    %341 = vector.extract_strided_slice %21 {offsets = [32, 0], sizes = [10, 6], strides = [1, 1]} : vector<98x6xf32> to vector<10x6xf32>
    %342 = vector.extract_strided_slice %21 {offsets = [46, 0], sizes = [10, 6], strides = [1, 1]} : vector<98x6xf32> to vector<10x6xf32>
    %343 = vector.extract_strided_slice %21 {offsets = [60, 0], sizes = [10, 6], strides = [1, 1]} : vector<98x6xf32> to vector<10x6xf32>
    %344 = vector.extract_strided_slice %21 {offsets = [74, 0], sizes = [10, 6], strides = [1, 1]} : vector<98x6xf32> to vector<10x6xf32>
    %345 = vector.extract_strided_slice %21 {offsets = [88, 0], sizes = [10, 6], strides = [1, 1]} : vector<98x6xf32> to vector<10x6xf32>
    %346 = tpu.concatenate %341, %342, %343, %344, %345 in 0 : vector<10x6xf32>, vector<10x6xf32>, vector<10x6xf32>, vector<10x6xf32>, vector<10x6xf32> -> vector<50x6xf32>
    %347 = tpu.concatenate %202, %208, %214, %220, %226, %232, %238, %244, %250, %256, %262, %268, %274, %280, %286, %292 in 1 : vector<50x6xf32>, vector<50x6xf32>, vector<50x6xf32>, vector<50x6xf32>, vector<50x6xf32>, vector<50x6xf32>, vector<50x6xf32>, vector<50x6xf32>, vector<50x6xf32>, vector<50x6xf32>, vector<50x6xf32>, vector<50x6xf32>, vector<50x6xf32>, vector<50x6xf32>, vector<50x6xf32>, vector<50x6xf32> -> vector<50x96xf32>
    %348 = tpu.concatenate %298, %304, %310, %316, %322, %328, %334, %340, %346 in 1 : vector<50x6xf32>, vector<50x6xf32>, vector<50x6xf32>, vector<50x6xf32>, vector<50x6xf32>, vector<50x6xf32>, vector<50x6xf32>, vector<50x6xf32>, vector<50x6xf32> -> vector<50x54xf32>
    %349 = tpu.concatenate %347, %348 in 1 : vector<50x96xf32>, vector<50x54xf32> -> vector<50x150xf32>
    %350 = arith.truncf %349 : vector<50x150xf32> to vector<50x150xbf16>
    %c0_12 = arith.constant 0 : index
    %c0_13 = arith.constant 0 : index
    %351 = vector.load %arg4[%c0_12, %c0_13] : memref<150x16xbf16, #tpu.memory_space<vmem>>, vector<150x16xbf16>
    %cst_14 = arith.constant dense<0.000000e+00> : vector<50x16xf32>
    %352 = tpu.matmul %350, %351, %cst_14 {dimension_numbers = #tpu.dot_dimension_numbers<[1], [0], [0], [1], [0, 0, 1, 1], [], []>} : vector<50x150xbf16>, vector<150x16xbf16>, vector<50x16xf32> -> vector<50x16xf32>
    %c0_15 = arith.constant 0 : index
    %c0_16 = arith.constant 0 : index
    %353 = vector.load %arg5[%c0_15, %c0_16] : memref<1x16xf32, #tpu.memory_space<vmem>>, vector<1x16xf32>
    %354 = vector.broadcast %353 : vector<1x16xf32> to vector<50x16xf32>
    %355 = arith.addf %352, %354 : vector<50x16xf32>
    %cst_17 = arith.constant 0.000000e+00 : f32
    %356 = vector.broadcast %cst_17 : f32 to vector<50x16xf32>
    %357 = arith.maximumf %355, %356 : vector<50x16xf32>
    %358 = arith.maximumf %196, %357 : vector<50x16xf32>
    %359 = vector.extract_strided_slice %28 {offsets = [0, 0], sizes = [10, 6], strides = [1, 1]} : vector<98x6xf32> to vector<10x6xf32>
    %360 = vector.extract_strided_slice %28 {offsets = [14, 0], sizes = [10, 6], strides = [1, 1]} : vector<98x6xf32> to vector<10x6xf32>
    %361 = vector.extract_strided_slice %28 {offsets = [28, 0], sizes = [10, 6], strides = [1, 1]} : vector<98x6xf32> to vector<10x6xf32>
    %362 = vector.extract_strided_slice %28 {offsets = [42, 0], sizes = [10, 6], strides = [1, 1]} : vector<98x6xf32> to vector<10x6xf32>
    %363 = vector.extract_strided_slice %28 {offsets = [56, 0], sizes = [10, 6], strides = [1, 1]} : vector<98x6xf32> to vector<10x6xf32>
    %364 = tpu.concatenate %359, %360, %361, %362, %363 in 0 : vector<10x6xf32>, vector<10x6xf32>, vector<10x6xf32>, vector<10x6xf32>, vector<10x6xf32> -> vector<50x6xf32>
    %365 = vector.extract_strided_slice %35 {offsets = [0, 0], sizes = [10, 6], strides = [1, 1]} : vector<98x6xf32> to vector<10x6xf32>
    %366 = vector.extract_strided_slice %35 {offsets = [14, 0], sizes = [10, 6], strides = [1, 1]} : vector<98x6xf32> to vector<10x6xf32>
    %367 = vector.extract_strided_slice %35 {offsets = [28, 0], sizes = [10, 6], strides = [1, 1]} : vector<98x6xf32> to vector<10x6xf32>
    %368 = vector.extract_strided_slice %35 {offsets = [42, 0], sizes = [10, 6], strides = [1, 1]} : vector<98x6xf32> to vector<10x6xf32>
    %369 = vector.extract_strided_slice %35 {offsets = [56, 0], sizes = [10, 6], strides = [1, 1]} : vector<98x6xf32> to vector<10x6xf32>
    %370 = tpu.concatenate %365, %366, %367, %368, %369 in 0 : vector<10x6xf32>, vector<10x6xf32>, vector<10x6xf32>, vector<10x6xf32>, vector<10x6xf32> -> vector<50x6xf32>
    %371 = vector.extract_strided_slice %28 {offsets = [2, 0], sizes = [10, 6], strides = [1, 1]} : vector<98x6xf32> to vector<10x6xf32>
    %372 = vector.extract_strided_slice %28 {offsets = [16, 0], sizes = [10, 6], strides = [1, 1]} : vector<98x6xf32> to vector<10x6xf32>
    %373 = vector.extract_strided_slice %28 {offsets = [30, 0], sizes = [10, 6], strides = [1, 1]} : vector<98x6xf32> to vector<10x6xf32>
    %374 = vector.extract_strided_slice %28 {offsets = [44, 0], sizes = [10, 6], strides = [1, 1]} : vector<98x6xf32> to vector<10x6xf32>
    %375 = vector.extract_strided_slice %28 {offsets = [58, 0], sizes = [10, 6], strides = [1, 1]} : vector<98x6xf32> to vector<10x6xf32>
    %376 = tpu.concatenate %371, %372, %373, %374, %375 in 0 : vector<10x6xf32>, vector<10x6xf32>, vector<10x6xf32>, vector<10x6xf32>, vector<10x6xf32> -> vector<50x6xf32>
    %377 = vector.extract_strided_slice %35 {offsets = [2, 0], sizes = [10, 6], strides = [1, 1]} : vector<98x6xf32> to vector<10x6xf32>
    %378 = vector.extract_strided_slice %35 {offsets = [16, 0], sizes = [10, 6], strides = [1, 1]} : vector<98x6xf32> to vector<10x6xf32>
    %379 = vector.extract_strided_slice %35 {offsets = [30, 0], sizes = [10, 6], strides = [1, 1]} : vector<98x6xf32> to vector<10x6xf32>
    %380 = vector.extract_strided_slice %35 {offsets = [44, 0], sizes = [10, 6], strides = [1, 1]} : vector<98x6xf32> to vector<10x6xf32>
    %381 = vector.extract_strided_slice %35 {offsets = [58, 0], sizes = [10, 6], strides = [1, 1]} : vector<98x6xf32> to vector<10x6xf32>
    %382 = tpu.concatenate %377, %378, %379, %380, %381 in 0 : vector<10x6xf32>, vector<10x6xf32>, vector<10x6xf32>, vector<10x6xf32>, vector<10x6xf32> -> vector<50x6xf32>
    %383 = vector.extract_strided_slice %28 {offsets = [4, 0], sizes = [10, 6], strides = [1, 1]} : vector<98x6xf32> to vector<10x6xf32>
    %384 = vector.extract_strided_slice %28 {offsets = [18, 0], sizes = [10, 6], strides = [1, 1]} : vector<98x6xf32> to vector<10x6xf32>
    %385 = vector.extract_strided_slice %28 {offsets = [32, 0], sizes = [10, 6], strides = [1, 1]} : vector<98x6xf32> to vector<10x6xf32>
    %386 = vector.extract_strided_slice %28 {offsets = [46, 0], sizes = [10, 6], strides = [1, 1]} : vector<98x6xf32> to vector<10x6xf32>
    %387 = vector.extract_strided_slice %28 {offsets = [60, 0], sizes = [10, 6], strides = [1, 1]} : vector<98x6xf32> to vector<10x6xf32>
    %388 = tpu.concatenate %383, %384, %385, %386, %387 in 0 : vector<10x6xf32>, vector<10x6xf32>, vector<10x6xf32>, vector<10x6xf32>, vector<10x6xf32> -> vector<50x6xf32>
    %389 = vector.extract_strided_slice %14 {offsets = [14, 0], sizes = [10, 6], strides = [1, 1]} : vector<98x6xf32> to vector<10x6xf32>
    %390 = vector.extract_strided_slice %14 {offsets = [28, 0], sizes = [10, 6], strides = [1, 1]} : vector<98x6xf32> to vector<10x6xf32>
    %391 = vector.extract_strided_slice %14 {offsets = [42, 0], sizes = [10, 6], strides = [1, 1]} : vector<98x6xf32> to vector<10x6xf32>
    %392 = vector.extract_strided_slice %14 {offsets = [56, 0], sizes = [10, 6], strides = [1, 1]} : vector<98x6xf32> to vector<10x6xf32>
    %393 = vector.extract_strided_slice %14 {offsets = [70, 0], sizes = [10, 6], strides = [1, 1]} : vector<98x6xf32> to vector<10x6xf32>
    %394 = tpu.concatenate %389, %390, %391, %392, %393 in 0 : vector<10x6xf32>, vector<10x6xf32>, vector<10x6xf32>, vector<10x6xf32>, vector<10x6xf32> -> vector<50x6xf32>
    %395 = vector.extract_strided_slice %21 {offsets = [14, 0], sizes = [10, 6], strides = [1, 1]} : vector<98x6xf32> to vector<10x6xf32>
    %396 = vector.extract_strided_slice %21 {offsets = [28, 0], sizes = [10, 6], strides = [1, 1]} : vector<98x6xf32> to vector<10x6xf32>
    %397 = vector.extract_strided_slice %21 {offsets = [42, 0], sizes = [10, 6], strides = [1, 1]} : vector<98x6xf32> to vector<10x6xf32>
    %398 = vector.extract_strided_slice %21 {offsets = [56, 0], sizes = [10, 6], strides = [1, 1]} : vector<98x6xf32> to vector<10x6xf32>
    %399 = vector.extract_strided_slice %21 {offsets = [70, 0], sizes = [10, 6], strides = [1, 1]} : vector<98x6xf32> to vector<10x6xf32>
    %400 = tpu.concatenate %395, %396, %397, %398, %399 in 0 : vector<10x6xf32>, vector<10x6xf32>, vector<10x6xf32>, vector<10x6xf32>, vector<10x6xf32> -> vector<50x6xf32>
    %401 = vector.extract_strided_slice %14 {offsets = [16, 0], sizes = [10, 6], strides = [1, 1]} : vector<98x6xf32> to vector<10x6xf32>
    %402 = vector.extract_strided_slice %14 {offsets = [30, 0], sizes = [10, 6], strides = [1, 1]} : vector<98x6xf32> to vector<10x6xf32>
    %403 = vector.extract_strided_slice %14 {offsets = [44, 0], sizes = [10, 6], strides = [1, 1]} : vector<98x6xf32> to vector<10x6xf32>
    %404 = vector.extract_strided_slice %14 {offsets = [58, 0], sizes = [10, 6], strides = [1, 1]} : vector<98x6xf32> to vector<10x6xf32>
    %405 = vector.extract_strided_slice %14 {offsets = [72, 0], sizes = [10, 6], strides = [1, 1]} : vector<98x6xf32> to vector<10x6xf32>
    %406 = tpu.concatenate %401, %402, %403, %404, %405 in 0 : vector<10x6xf32>, vector<10x6xf32>, vector<10x6xf32>, vector<10x6xf32>, vector<10x6xf32> -> vector<50x6xf32>
    %407 = vector.extract_strided_slice %21 {offsets = [16, 0], sizes = [10, 6], strides = [1, 1]} : vector<98x6xf32> to vector<10x6xf32>
    %408 = vector.extract_strided_slice %21 {offsets = [30, 0], sizes = [10, 6], strides = [1, 1]} : vector<98x6xf32> to vector<10x6xf32>
    %409 = vector.extract_strided_slice %21 {offsets = [44, 0], sizes = [10, 6], strides = [1, 1]} : vector<98x6xf32> to vector<10x6xf32>
    %410 = vector.extract_strided_slice %21 {offsets = [58, 0], sizes = [10, 6], strides = [1, 1]} : vector<98x6xf32> to vector<10x6xf32>
    %411 = vector.extract_strided_slice %21 {offsets = [72, 0], sizes = [10, 6], strides = [1, 1]} : vector<98x6xf32> to vector<10x6xf32>
    %412 = tpu.concatenate %407, %408, %409, %410, %411 in 0 : vector<10x6xf32>, vector<10x6xf32>, vector<10x6xf32>, vector<10x6xf32>, vector<10x6xf32> -> vector<50x6xf32>
    %413 = vector.extract_strided_slice %14 {offsets = [18, 0], sizes = [10, 6], strides = [1, 1]} : vector<98x6xf32> to vector<10x6xf32>
    %414 = vector.extract_strided_slice %14 {offsets = [32, 0], sizes = [10, 6], strides = [1, 1]} : vector<98x6xf32> to vector<10x6xf32>
    %415 = vector.extract_strided_slice %14 {offsets = [46, 0], sizes = [10, 6], strides = [1, 1]} : vector<98x6xf32> to vector<10x6xf32>
    %416 = vector.extract_strided_slice %14 {offsets = [60, 0], sizes = [10, 6], strides = [1, 1]} : vector<98x6xf32> to vector<10x6xf32>
    %417 = vector.extract_strided_slice %14 {offsets = [74, 0], sizes = [10, 6], strides = [1, 1]} : vector<98x6xf32> to vector<10x6xf32>
    %418 = tpu.concatenate %413, %414, %415, %416, %417 in 0 : vector<10x6xf32>, vector<10x6xf32>, vector<10x6xf32>, vector<10x6xf32>, vector<10x6xf32> -> vector<50x6xf32>
    %419 = vector.extract_strided_slice %28 {offsets = [14, 0], sizes = [10, 6], strides = [1, 1]} : vector<98x6xf32> to vector<10x6xf32>
    %420 = vector.extract_strided_slice %28 {offsets = [28, 0], sizes = [10, 6], strides = [1, 1]} : vector<98x6xf32> to vector<10x6xf32>
    %421 = vector.extract_strided_slice %28 {offsets = [42, 0], sizes = [10, 6], strides = [1, 1]} : vector<98x6xf32> to vector<10x6xf32>
    %422 = vector.extract_strided_slice %28 {offsets = [56, 0], sizes = [10, 6], strides = [1, 1]} : vector<98x6xf32> to vector<10x6xf32>
    %423 = vector.extract_strided_slice %28 {offsets = [70, 0], sizes = [10, 6], strides = [1, 1]} : vector<98x6xf32> to vector<10x6xf32>
    %424 = tpu.concatenate %419, %420, %421, %422, %423 in 0 : vector<10x6xf32>, vector<10x6xf32>, vector<10x6xf32>, vector<10x6xf32>, vector<10x6xf32> -> vector<50x6xf32>
    %425 = vector.extract_strided_slice %35 {offsets = [14, 0], sizes = [10, 6], strides = [1, 1]} : vector<98x6xf32> to vector<10x6xf32>
    %426 = vector.extract_strided_slice %35 {offsets = [28, 0], sizes = [10, 6], strides = [1, 1]} : vector<98x6xf32> to vector<10x6xf32>
    %427 = vector.extract_strided_slice %35 {offsets = [42, 0], sizes = [10, 6], strides = [1, 1]} : vector<98x6xf32> to vector<10x6xf32>
    %428 = vector.extract_strided_slice %35 {offsets = [56, 0], sizes = [10, 6], strides = [1, 1]} : vector<98x6xf32> to vector<10x6xf32>
    %429 = vector.extract_strided_slice %35 {offsets = [70, 0], sizes = [10, 6], strides = [1, 1]} : vector<98x6xf32> to vector<10x6xf32>
    %430 = tpu.concatenate %425, %426, %427, %428, %429 in 0 : vector<10x6xf32>, vector<10x6xf32>, vector<10x6xf32>, vector<10x6xf32>, vector<10x6xf32> -> vector<50x6xf32>
    %431 = vector.extract_strided_slice %28 {offsets = [16, 0], sizes = [10, 6], strides = [1, 1]} : vector<98x6xf32> to vector<10x6xf32>
    %432 = vector.extract_strided_slice %28 {offsets = [30, 0], sizes = [10, 6], strides = [1, 1]} : vector<98x6xf32> to vector<10x6xf32>
    %433 = vector.extract_strided_slice %28 {offsets = [44, 0], sizes = [10, 6], strides = [1, 1]} : vector<98x6xf32> to vector<10x6xf32>
    %434 = vector.extract_strided_slice %28 {offsets = [58, 0], sizes = [10, 6], strides = [1, 1]} : vector<98x6xf32> to vector<10x6xf32>
    %435 = vector.extract_strided_slice %28 {offsets = [72, 0], sizes = [10, 6], strides = [1, 1]} : vector<98x6xf32> to vector<10x6xf32>
    %436 = tpu.concatenate %431, %432, %433, %434, %435 in 0 : vector<10x6xf32>, vector<10x6xf32>, vector<10x6xf32>, vector<10x6xf32>, vector<10x6xf32> -> vector<50x6xf32>
    %437 = vector.extract_strided_slice %35 {offsets = [16, 0], sizes = [10, 6], strides = [1, 1]} : vector<98x6xf32> to vector<10x6xf32>
    %438 = vector.extract_strided_slice %35 {offsets = [30, 0], sizes = [10, 6], strides = [1, 1]} : vector<98x6xf32> to vector<10x6xf32>
    %439 = vector.extract_strided_slice %35 {offsets = [44, 0], sizes = [10, 6], strides = [1, 1]} : vector<98x6xf32> to vector<10x6xf32>
    %440 = vector.extract_strided_slice %35 {offsets = [58, 0], sizes = [10, 6], strides = [1, 1]} : vector<98x6xf32> to vector<10x6xf32>
    %441 = vector.extract_strided_slice %35 {offsets = [72, 0], sizes = [10, 6], strides = [1, 1]} : vector<98x6xf32> to vector<10x6xf32>
    %442 = tpu.concatenate %437, %438, %439, %440, %441 in 0 : vector<10x6xf32>, vector<10x6xf32>, vector<10x6xf32>, vector<10x6xf32>, vector<10x6xf32> -> vector<50x6xf32>
    %443 = vector.extract_strided_slice %28 {offsets = [18, 0], sizes = [10, 6], strides = [1, 1]} : vector<98x6xf32> to vector<10x6xf32>
    %444 = vector.extract_strided_slice %28 {offsets = [32, 0], sizes = [10, 6], strides = [1, 1]} : vector<98x6xf32> to vector<10x6xf32>
    %445 = vector.extract_strided_slice %28 {offsets = [46, 0], sizes = [10, 6], strides = [1, 1]} : vector<98x6xf32> to vector<10x6xf32>
    %446 = vector.extract_strided_slice %28 {offsets = [60, 0], sizes = [10, 6], strides = [1, 1]} : vector<98x6xf32> to vector<10x6xf32>
    %447 = vector.extract_strided_slice %28 {offsets = [74, 0], sizes = [10, 6], strides = [1, 1]} : vector<98x6xf32> to vector<10x6xf32>
    %448 = tpu.concatenate %443, %444, %445, %446, %447 in 0 : vector<10x6xf32>, vector<10x6xf32>, vector<10x6xf32>, vector<10x6xf32>, vector<10x6xf32> -> vector<50x6xf32>
    %449 = vector.extract_strided_slice %14 {offsets = [28, 0], sizes = [10, 6], strides = [1, 1]} : vector<98x6xf32> to vector<10x6xf32>
    %450 = vector.extract_strided_slice %14 {offsets = [42, 0], sizes = [10, 6], strides = [1, 1]} : vector<98x6xf32> to vector<10x6xf32>
    %451 = vector.extract_strided_slice %14 {offsets = [56, 0], sizes = [10, 6], strides = [1, 1]} : vector<98x6xf32> to vector<10x6xf32>
    %452 = vector.extract_strided_slice %14 {offsets = [70, 0], sizes = [10, 6], strides = [1, 1]} : vector<98x6xf32> to vector<10x6xf32>
    %453 = vector.extract_strided_slice %14 {offsets = [84, 0], sizes = [10, 6], strides = [1, 1]} : vector<98x6xf32> to vector<10x6xf32>
    %454 = tpu.concatenate %449, %450, %451, %452, %453 in 0 : vector<10x6xf32>, vector<10x6xf32>, vector<10x6xf32>, vector<10x6xf32>, vector<10x6xf32> -> vector<50x6xf32>
    %455 = vector.extract_strided_slice %21 {offsets = [28, 0], sizes = [10, 6], strides = [1, 1]} : vector<98x6xf32> to vector<10x6xf32>
    %456 = vector.extract_strided_slice %21 {offsets = [42, 0], sizes = [10, 6], strides = [1, 1]} : vector<98x6xf32> to vector<10x6xf32>
    %457 = vector.extract_strided_slice %21 {offsets = [56, 0], sizes = [10, 6], strides = [1, 1]} : vector<98x6xf32> to vector<10x6xf32>
    %458 = vector.extract_strided_slice %21 {offsets = [70, 0], sizes = [10, 6], strides = [1, 1]} : vector<98x6xf32> to vector<10x6xf32>
    %459 = vector.extract_strided_slice %21 {offsets = [84, 0], sizes = [10, 6], strides = [1, 1]} : vector<98x6xf32> to vector<10x6xf32>
    %460 = tpu.concatenate %455, %456, %457, %458, %459 in 0 : vector<10x6xf32>, vector<10x6xf32>, vector<10x6xf32>, vector<10x6xf32>, vector<10x6xf32> -> vector<50x6xf32>
    %461 = vector.extract_strided_slice %14 {offsets = [30, 0], sizes = [10, 6], strides = [1, 1]} : vector<98x6xf32> to vector<10x6xf32>
    %462 = vector.extract_strided_slice %14 {offsets = [44, 0], sizes = [10, 6], strides = [1, 1]} : vector<98x6xf32> to vector<10x6xf32>
    %463 = vector.extract_strided_slice %14 {offsets = [58, 0], sizes = [10, 6], strides = [1, 1]} : vector<98x6xf32> to vector<10x6xf32>
    %464 = vector.extract_strided_slice %14 {offsets = [72, 0], sizes = [10, 6], strides = [1, 1]} : vector<98x6xf32> to vector<10x6xf32>
    %465 = vector.extract_strided_slice %14 {offsets = [86, 0], sizes = [10, 6], strides = [1, 1]} : vector<98x6xf32> to vector<10x6xf32>
    %466 = tpu.concatenate %461, %462, %463, %464, %465 in 0 : vector<10x6xf32>, vector<10x6xf32>, vector<10x6xf32>, vector<10x6xf32>, vector<10x6xf32> -> vector<50x6xf32>
    %467 = vector.extract_strided_slice %21 {offsets = [30, 0], sizes = [10, 6], strides = [1, 1]} : vector<98x6xf32> to vector<10x6xf32>
    %468 = vector.extract_strided_slice %21 {offsets = [44, 0], sizes = [10, 6], strides = [1, 1]} : vector<98x6xf32> to vector<10x6xf32>
    %469 = vector.extract_strided_slice %21 {offsets = [58, 0], sizes = [10, 6], strides = [1, 1]} : vector<98x6xf32> to vector<10x6xf32>
    %470 = vector.extract_strided_slice %21 {offsets = [72, 0], sizes = [10, 6], strides = [1, 1]} : vector<98x6xf32> to vector<10x6xf32>
    %471 = vector.extract_strided_slice %21 {offsets = [86, 0], sizes = [10, 6], strides = [1, 1]} : vector<98x6xf32> to vector<10x6xf32>
    %472 = tpu.concatenate %467, %468, %469, %470, %471 in 0 : vector<10x6xf32>, vector<10x6xf32>, vector<10x6xf32>, vector<10x6xf32>, vector<10x6xf32> -> vector<50x6xf32>
    %473 = vector.extract_strided_slice %14 {offsets = [32, 0], sizes = [10, 6], strides = [1, 1]} : vector<98x6xf32> to vector<10x6xf32>
    %474 = vector.extract_strided_slice %14 {offsets = [46, 0], sizes = [10, 6], strides = [1, 1]} : vector<98x6xf32> to vector<10x6xf32>
    %475 = vector.extract_strided_slice %14 {offsets = [60, 0], sizes = [10, 6], strides = [1, 1]} : vector<98x6xf32> to vector<10x6xf32>
    %476 = vector.extract_strided_slice %14 {offsets = [74, 0], sizes = [10, 6], strides = [1, 1]} : vector<98x6xf32> to vector<10x6xf32>
    %477 = vector.extract_strided_slice %14 {offsets = [88, 0], sizes = [10, 6], strides = [1, 1]} : vector<98x6xf32> to vector<10x6xf32>
    %478 = tpu.concatenate %473, %474, %475, %476, %477 in 0 : vector<10x6xf32>, vector<10x6xf32>, vector<10x6xf32>, vector<10x6xf32>, vector<10x6xf32> -> vector<50x6xf32>
    %479 = vector.extract_strided_slice %28 {offsets = [28, 0], sizes = [10, 6], strides = [1, 1]} : vector<98x6xf32> to vector<10x6xf32>
    %480 = vector.extract_strided_slice %28 {offsets = [42, 0], sizes = [10, 6], strides = [1, 1]} : vector<98x6xf32> to vector<10x6xf32>
    %481 = vector.extract_strided_slice %28 {offsets = [56, 0], sizes = [10, 6], strides = [1, 1]} : vector<98x6xf32> to vector<10x6xf32>
    %482 = vector.extract_strided_slice %28 {offsets = [70, 0], sizes = [10, 6], strides = [1, 1]} : vector<98x6xf32> to vector<10x6xf32>
    %483 = vector.extract_strided_slice %28 {offsets = [84, 0], sizes = [10, 6], strides = [1, 1]} : vector<98x6xf32> to vector<10x6xf32>
    %484 = tpu.concatenate %479, %480, %481, %482, %483 in 0 : vector<10x6xf32>, vector<10x6xf32>, vector<10x6xf32>, vector<10x6xf32>, vector<10x6xf32> -> vector<50x6xf32>
    %485 = vector.extract_strided_slice %35 {offsets = [28, 0], sizes = [10, 6], strides = [1, 1]} : vector<98x6xf32> to vector<10x6xf32>
    %486 = vector.extract_strided_slice %35 {offsets = [42, 0], sizes = [10, 6], strides = [1, 1]} : vector<98x6xf32> to vector<10x6xf32>
    %487 = vector.extract_strided_slice %35 {offsets = [56, 0], sizes = [10, 6], strides = [1, 1]} : vector<98x6xf32> to vector<10x6xf32>
    %488 = vector.extract_strided_slice %35 {offsets = [70, 0], sizes = [10, 6], strides = [1, 1]} : vector<98x6xf32> to vector<10x6xf32>
    %489 = vector.extract_strided_slice %35 {offsets = [84, 0], sizes = [10, 6], strides = [1, 1]} : vector<98x6xf32> to vector<10x6xf32>
    %490 = tpu.concatenate %485, %486, %487, %488, %489 in 0 : vector<10x6xf32>, vector<10x6xf32>, vector<10x6xf32>, vector<10x6xf32>, vector<10x6xf32> -> vector<50x6xf32>
    %491 = vector.extract_strided_slice %28 {offsets = [30, 0], sizes = [10, 6], strides = [1, 1]} : vector<98x6xf32> to vector<10x6xf32>
    %492 = vector.extract_strided_slice %28 {offsets = [44, 0], sizes = [10, 6], strides = [1, 1]} : vector<98x6xf32> to vector<10x6xf32>
    %493 = vector.extract_strided_slice %28 {offsets = [58, 0], sizes = [10, 6], strides = [1, 1]} : vector<98x6xf32> to vector<10x6xf32>
    %494 = vector.extract_strided_slice %28 {offsets = [72, 0], sizes = [10, 6], strides = [1, 1]} : vector<98x6xf32> to vector<10x6xf32>
    %495 = vector.extract_strided_slice %28 {offsets = [86, 0], sizes = [10, 6], strides = [1, 1]} : vector<98x6xf32> to vector<10x6xf32>
    %496 = tpu.concatenate %491, %492, %493, %494, %495 in 0 : vector<10x6xf32>, vector<10x6xf32>, vector<10x6xf32>, vector<10x6xf32>, vector<10x6xf32> -> vector<50x6xf32>
    %497 = vector.extract_strided_slice %35 {offsets = [30, 0], sizes = [10, 6], strides = [1, 1]} : vector<98x6xf32> to vector<10x6xf32>
    %498 = vector.extract_strided_slice %35 {offsets = [44, 0], sizes = [10, 6], strides = [1, 1]} : vector<98x6xf32> to vector<10x6xf32>
    %499 = vector.extract_strided_slice %35 {offsets = [58, 0], sizes = [10, 6], strides = [1, 1]} : vector<98x6xf32> to vector<10x6xf32>
    %500 = vector.extract_strided_slice %35 {offsets = [72, 0], sizes = [10, 6], strides = [1, 1]} : vector<98x6xf32> to vector<10x6xf32>
    %501 = vector.extract_strided_slice %35 {offsets = [86, 0], sizes = [10, 6], strides = [1, 1]} : vector<98x6xf32> to vector<10x6xf32>
    %502 = tpu.concatenate %497, %498, %499, %500, %501 in 0 : vector<10x6xf32>, vector<10x6xf32>, vector<10x6xf32>, vector<10x6xf32>, vector<10x6xf32> -> vector<50x6xf32>
    %503 = vector.extract_strided_slice %28 {offsets = [32, 0], sizes = [10, 6], strides = [1, 1]} : vector<98x6xf32> to vector<10x6xf32>
    %504 = vector.extract_strided_slice %28 {offsets = [46, 0], sizes = [10, 6], strides = [1, 1]} : vector<98x6xf32> to vector<10x6xf32>
    %505 = vector.extract_strided_slice %28 {offsets = [60, 0], sizes = [10, 6], strides = [1, 1]} : vector<98x6xf32> to vector<10x6xf32>
    %506 = vector.extract_strided_slice %28 {offsets = [74, 0], sizes = [10, 6], strides = [1, 1]} : vector<98x6xf32> to vector<10x6xf32>
    %507 = vector.extract_strided_slice %28 {offsets = [88, 0], sizes = [10, 6], strides = [1, 1]} : vector<98x6xf32> to vector<10x6xf32>
    %508 = tpu.concatenate %503, %504, %505, %506, %507 in 0 : vector<10x6xf32>, vector<10x6xf32>, vector<10x6xf32>, vector<10x6xf32>, vector<10x6xf32> -> vector<50x6xf32>
    %509 = tpu.concatenate %364, %370, %376, %382, %388, %394, %400, %406, %412, %418, %424, %430, %436, %442, %448, %454 in 1 : vector<50x6xf32>, vector<50x6xf32>, vector<50x6xf32>, vector<50x6xf32>, vector<50x6xf32>, vector<50x6xf32>, vector<50x6xf32>, vector<50x6xf32>, vector<50x6xf32>, vector<50x6xf32>, vector<50x6xf32>, vector<50x6xf32>, vector<50x6xf32>, vector<50x6xf32>, vector<50x6xf32>, vector<50x6xf32> -> vector<50x96xf32>
    %510 = tpu.concatenate %460, %466, %472, %478, %484, %490, %496, %502, %508 in 1 : vector<50x6xf32>, vector<50x6xf32>, vector<50x6xf32>, vector<50x6xf32>, vector<50x6xf32>, vector<50x6xf32>, vector<50x6xf32>, vector<50x6xf32>, vector<50x6xf32> -> vector<50x54xf32>
    %511 = tpu.concatenate %509, %510 in 1 : vector<50x96xf32>, vector<50x54xf32> -> vector<50x150xf32>
    %512 = arith.truncf %511 : vector<50x150xf32> to vector<50x150xbf16>
    %c0_18 = arith.constant 0 : index
    %c0_19 = arith.constant 0 : index
    %513 = vector.load %arg4[%c0_18, %c0_19] : memref<150x16xbf16, #tpu.memory_space<vmem>>, vector<150x16xbf16>
    %cst_20 = arith.constant dense<0.000000e+00> : vector<50x16xf32>
    %514 = tpu.matmul %512, %513, %cst_20 {dimension_numbers = #tpu.dot_dimension_numbers<[1], [0], [0], [1], [0, 0, 1, 1], [], []>} : vector<50x150xbf16>, vector<150x16xbf16>, vector<50x16xf32> -> vector<50x16xf32>
    %c0_21 = arith.constant 0 : index
    %c0_22 = arith.constant 0 : index
    %515 = vector.load %arg5[%c0_21, %c0_22] : memref<1x16xf32, #tpu.memory_space<vmem>>, vector<1x16xf32>
    %516 = vector.broadcast %515 : vector<1x16xf32> to vector<50x16xf32>
    %517 = arith.addf %514, %516 : vector<50x16xf32>
    %cst_23 = arith.constant 0.000000e+00 : f32
    %518 = vector.broadcast %cst_23 : f32 to vector<50x16xf32>
    %519 = arith.maximumf %517, %518 : vector<50x16xf32>
    %520 = arith.maximumf %358, %519 : vector<50x16xf32>
    %521 = vector.extract_strided_slice %35 {offsets = [0, 0], sizes = [10, 6], strides = [1, 1]} : vector<98x6xf32> to vector<10x6xf32>
    %522 = vector.extract_strided_slice %35 {offsets = [14, 0], sizes = [10, 6], strides = [1, 1]} : vector<98x6xf32> to vector<10x6xf32>
    %523 = vector.extract_strided_slice %35 {offsets = [28, 0], sizes = [10, 6], strides = [1, 1]} : vector<98x6xf32> to vector<10x6xf32>
    %524 = vector.extract_strided_slice %35 {offsets = [42, 0], sizes = [10, 6], strides = [1, 1]} : vector<98x6xf32> to vector<10x6xf32>
    %525 = vector.extract_strided_slice %35 {offsets = [56, 0], sizes = [10, 6], strides = [1, 1]} : vector<98x6xf32> to vector<10x6xf32>
    %526 = tpu.concatenate %521, %522, %523, %524, %525 in 0 : vector<10x6xf32>, vector<10x6xf32>, vector<10x6xf32>, vector<10x6xf32>, vector<10x6xf32> -> vector<50x6xf32>
    %527 = vector.extract_strided_slice %28 {offsets = [2, 0], sizes = [10, 6], strides = [1, 1]} : vector<98x6xf32> to vector<10x6xf32>
    %528 = vector.extract_strided_slice %28 {offsets = [16, 0], sizes = [10, 6], strides = [1, 1]} : vector<98x6xf32> to vector<10x6xf32>
    %529 = vector.extract_strided_slice %28 {offsets = [30, 0], sizes = [10, 6], strides = [1, 1]} : vector<98x6xf32> to vector<10x6xf32>
    %530 = vector.extract_strided_slice %28 {offsets = [44, 0], sizes = [10, 6], strides = [1, 1]} : vector<98x6xf32> to vector<10x6xf32>
    %531 = vector.extract_strided_slice %28 {offsets = [58, 0], sizes = [10, 6], strides = [1, 1]} : vector<98x6xf32> to vector<10x6xf32>
    %532 = tpu.concatenate %527, %528, %529, %530, %531 in 0 : vector<10x6xf32>, vector<10x6xf32>, vector<10x6xf32>, vector<10x6xf32>, vector<10x6xf32> -> vector<50x6xf32>
    %533 = vector.extract_strided_slice %35 {offsets = [2, 0], sizes = [10, 6], strides = [1, 1]} : vector<98x6xf32> to vector<10x6xf32>
    %534 = vector.extract_strided_slice %35 {offsets = [16, 0], sizes = [10, 6], strides = [1, 1]} : vector<98x6xf32> to vector<10x6xf32>
    %535 = vector.extract_strided_slice %35 {offsets = [30, 0], sizes = [10, 6], strides = [1, 1]} : vector<98x6xf32> to vector<10x6xf32>
    %536 = vector.extract_strided_slice %35 {offsets = [44, 0], sizes = [10, 6], strides = [1, 1]} : vector<98x6xf32> to vector<10x6xf32>
    %537 = vector.extract_strided_slice %35 {offsets = [58, 0], sizes = [10, 6], strides = [1, 1]} : vector<98x6xf32> to vector<10x6xf32>
    %538 = tpu.concatenate %533, %534, %535, %536, %537 in 0 : vector<10x6xf32>, vector<10x6xf32>, vector<10x6xf32>, vector<10x6xf32>, vector<10x6xf32> -> vector<50x6xf32>
    %539 = vector.extract_strided_slice %28 {offsets = [4, 0], sizes = [10, 6], strides = [1, 1]} : vector<98x6xf32> to vector<10x6xf32>
    %540 = vector.extract_strided_slice %28 {offsets = [18, 0], sizes = [10, 6], strides = [1, 1]} : vector<98x6xf32> to vector<10x6xf32>
    %541 = vector.extract_strided_slice %28 {offsets = [32, 0], sizes = [10, 6], strides = [1, 1]} : vector<98x6xf32> to vector<10x6xf32>
    %542 = vector.extract_strided_slice %28 {offsets = [46, 0], sizes = [10, 6], strides = [1, 1]} : vector<98x6xf32> to vector<10x6xf32>
    %543 = vector.extract_strided_slice %28 {offsets = [60, 0], sizes = [10, 6], strides = [1, 1]} : vector<98x6xf32> to vector<10x6xf32>
    %544 = tpu.concatenate %539, %540, %541, %542, %543 in 0 : vector<10x6xf32>, vector<10x6xf32>, vector<10x6xf32>, vector<10x6xf32>, vector<10x6xf32> -> vector<50x6xf32>
    %545 = vector.extract_strided_slice %35 {offsets = [4, 0], sizes = [10, 6], strides = [1, 1]} : vector<98x6xf32> to vector<10x6xf32>
    %546 = vector.extract_strided_slice %35 {offsets = [18, 0], sizes = [10, 6], strides = [1, 1]} : vector<98x6xf32> to vector<10x6xf32>
    %547 = vector.extract_strided_slice %35 {offsets = [32, 0], sizes = [10, 6], strides = [1, 1]} : vector<98x6xf32> to vector<10x6xf32>
    %548 = vector.extract_strided_slice %35 {offsets = [46, 0], sizes = [10, 6], strides = [1, 1]} : vector<98x6xf32> to vector<10x6xf32>
    %549 = vector.extract_strided_slice %35 {offsets = [60, 0], sizes = [10, 6], strides = [1, 1]} : vector<98x6xf32> to vector<10x6xf32>
    %550 = tpu.concatenate %545, %546, %547, %548, %549 in 0 : vector<10x6xf32>, vector<10x6xf32>, vector<10x6xf32>, vector<10x6xf32>, vector<10x6xf32> -> vector<50x6xf32>
    %551 = vector.extract_strided_slice %21 {offsets = [14, 0], sizes = [10, 6], strides = [1, 1]} : vector<98x6xf32> to vector<10x6xf32>
    %552 = vector.extract_strided_slice %21 {offsets = [28, 0], sizes = [10, 6], strides = [1, 1]} : vector<98x6xf32> to vector<10x6xf32>
    %553 = vector.extract_strided_slice %21 {offsets = [42, 0], sizes = [10, 6], strides = [1, 1]} : vector<98x6xf32> to vector<10x6xf32>
    %554 = vector.extract_strided_slice %21 {offsets = [56, 0], sizes = [10, 6], strides = [1, 1]} : vector<98x6xf32> to vector<10x6xf32>
    %555 = vector.extract_strided_slice %21 {offsets = [70, 0], sizes = [10, 6], strides = [1, 1]} : vector<98x6xf32> to vector<10x6xf32>
    %556 = tpu.concatenate %551, %552, %553, %554, %555 in 0 : vector<10x6xf32>, vector<10x6xf32>, vector<10x6xf32>, vector<10x6xf32>, vector<10x6xf32> -> vector<50x6xf32>
    %557 = vector.extract_strided_slice %14 {offsets = [16, 0], sizes = [10, 6], strides = [1, 1]} : vector<98x6xf32> to vector<10x6xf32>
    %558 = vector.extract_strided_slice %14 {offsets = [30, 0], sizes = [10, 6], strides = [1, 1]} : vector<98x6xf32> to vector<10x6xf32>
    %559 = vector.extract_strided_slice %14 {offsets = [44, 0], sizes = [10, 6], strides = [1, 1]} : vector<98x6xf32> to vector<10x6xf32>
    %560 = vector.extract_strided_slice %14 {offsets = [58, 0], sizes = [10, 6], strides = [1, 1]} : vector<98x6xf32> to vector<10x6xf32>
    %561 = vector.extract_strided_slice %14 {offsets = [72, 0], sizes = [10, 6], strides = [1, 1]} : vector<98x6xf32> to vector<10x6xf32>
    %562 = tpu.concatenate %557, %558, %559, %560, %561 in 0 : vector<10x6xf32>, vector<10x6xf32>, vector<10x6xf32>, vector<10x6xf32>, vector<10x6xf32> -> vector<50x6xf32>
    %563 = vector.extract_strided_slice %21 {offsets = [16, 0], sizes = [10, 6], strides = [1, 1]} : vector<98x6xf32> to vector<10x6xf32>
    %564 = vector.extract_strided_slice %21 {offsets = [30, 0], sizes = [10, 6], strides = [1, 1]} : vector<98x6xf32> to vector<10x6xf32>
    %565 = vector.extract_strided_slice %21 {offsets = [44, 0], sizes = [10, 6], strides = [1, 1]} : vector<98x6xf32> to vector<10x6xf32>
    %566 = vector.extract_strided_slice %21 {offsets = [58, 0], sizes = [10, 6], strides = [1, 1]} : vector<98x6xf32> to vector<10x6xf32>
    %567 = vector.extract_strided_slice %21 {offsets = [72, 0], sizes = [10, 6], strides = [1, 1]} : vector<98x6xf32> to vector<10x6xf32>
    %568 = tpu.concatenate %563, %564, %565, %566, %567 in 0 : vector<10x6xf32>, vector<10x6xf32>, vector<10x6xf32>, vector<10x6xf32>, vector<10x6xf32> -> vector<50x6xf32>
    %569 = vector.extract_strided_slice %14 {offsets = [18, 0], sizes = [10, 6], strides = [1, 1]} : vector<98x6xf32> to vector<10x6xf32>
    %570 = vector.extract_strided_slice %14 {offsets = [32, 0], sizes = [10, 6], strides = [1, 1]} : vector<98x6xf32> to vector<10x6xf32>
    %571 = vector.extract_strided_slice %14 {offsets = [46, 0], sizes = [10, 6], strides = [1, 1]} : vector<98x6xf32> to vector<10x6xf32>
    %572 = vector.extract_strided_slice %14 {offsets = [60, 0], sizes = [10, 6], strides = [1, 1]} : vector<98x6xf32> to vector<10x6xf32>
    %573 = vector.extract_strided_slice %14 {offsets = [74, 0], sizes = [10, 6], strides = [1, 1]} : vector<98x6xf32> to vector<10x6xf32>
    %574 = tpu.concatenate %569, %570, %571, %572, %573 in 0 : vector<10x6xf32>, vector<10x6xf32>, vector<10x6xf32>, vector<10x6xf32>, vector<10x6xf32> -> vector<50x6xf32>
    %575 = vector.extract_strided_slice %21 {offsets = [18, 0], sizes = [10, 6], strides = [1, 1]} : vector<98x6xf32> to vector<10x6xf32>
    %576 = vector.extract_strided_slice %21 {offsets = [32, 0], sizes = [10, 6], strides = [1, 1]} : vector<98x6xf32> to vector<10x6xf32>
    %577 = vector.extract_strided_slice %21 {offsets = [46, 0], sizes = [10, 6], strides = [1, 1]} : vector<98x6xf32> to vector<10x6xf32>
    %578 = vector.extract_strided_slice %21 {offsets = [60, 0], sizes = [10, 6], strides = [1, 1]} : vector<98x6xf32> to vector<10x6xf32>
    %579 = vector.extract_strided_slice %21 {offsets = [74, 0], sizes = [10, 6], strides = [1, 1]} : vector<98x6xf32> to vector<10x6xf32>
    %580 = tpu.concatenate %575, %576, %577, %578, %579 in 0 : vector<10x6xf32>, vector<10x6xf32>, vector<10x6xf32>, vector<10x6xf32>, vector<10x6xf32> -> vector<50x6xf32>
    %581 = vector.extract_strided_slice %35 {offsets = [14, 0], sizes = [10, 6], strides = [1, 1]} : vector<98x6xf32> to vector<10x6xf32>
    %582 = vector.extract_strided_slice %35 {offsets = [28, 0], sizes = [10, 6], strides = [1, 1]} : vector<98x6xf32> to vector<10x6xf32>
    %583 = vector.extract_strided_slice %35 {offsets = [42, 0], sizes = [10, 6], strides = [1, 1]} : vector<98x6xf32> to vector<10x6xf32>
    %584 = vector.extract_strided_slice %35 {offsets = [56, 0], sizes = [10, 6], strides = [1, 1]} : vector<98x6xf32> to vector<10x6xf32>
    %585 = vector.extract_strided_slice %35 {offsets = [70, 0], sizes = [10, 6], strides = [1, 1]} : vector<98x6xf32> to vector<10x6xf32>
    %586 = tpu.concatenate %581, %582, %583, %584, %585 in 0 : vector<10x6xf32>, vector<10x6xf32>, vector<10x6xf32>, vector<10x6xf32>, vector<10x6xf32> -> vector<50x6xf32>
    %587 = vector.extract_strided_slice %28 {offsets = [16, 0], sizes = [10, 6], strides = [1, 1]} : vector<98x6xf32> to vector<10x6xf32>
    %588 = vector.extract_strided_slice %28 {offsets = [30, 0], sizes = [10, 6], strides = [1, 1]} : vector<98x6xf32> to vector<10x6xf32>
    %589 = vector.extract_strided_slice %28 {offsets = [44, 0], sizes = [10, 6], strides = [1, 1]} : vector<98x6xf32> to vector<10x6xf32>
    %590 = vector.extract_strided_slice %28 {offsets = [58, 0], sizes = [10, 6], strides = [1, 1]} : vector<98x6xf32> to vector<10x6xf32>
    %591 = vector.extract_strided_slice %28 {offsets = [72, 0], sizes = [10, 6], strides = [1, 1]} : vector<98x6xf32> to vector<10x6xf32>
    %592 = tpu.concatenate %587, %588, %589, %590, %591 in 0 : vector<10x6xf32>, vector<10x6xf32>, vector<10x6xf32>, vector<10x6xf32>, vector<10x6xf32> -> vector<50x6xf32>
    %593 = vector.extract_strided_slice %35 {offsets = [16, 0], sizes = [10, 6], strides = [1, 1]} : vector<98x6xf32> to vector<10x6xf32>
    %594 = vector.extract_strided_slice %35 {offsets = [30, 0], sizes = [10, 6], strides = [1, 1]} : vector<98x6xf32> to vector<10x6xf32>
    %595 = vector.extract_strided_slice %35 {offsets = [44, 0], sizes = [10, 6], strides = [1, 1]} : vector<98x6xf32> to vector<10x6xf32>
    %596 = vector.extract_strided_slice %35 {offsets = [58, 0], sizes = [10, 6], strides = [1, 1]} : vector<98x6xf32> to vector<10x6xf32>
    %597 = vector.extract_strided_slice %35 {offsets = [72, 0], sizes = [10, 6], strides = [1, 1]} : vector<98x6xf32> to vector<10x6xf32>
    %598 = tpu.concatenate %593, %594, %595, %596, %597 in 0 : vector<10x6xf32>, vector<10x6xf32>, vector<10x6xf32>, vector<10x6xf32>, vector<10x6xf32> -> vector<50x6xf32>
    %599 = vector.extract_strided_slice %28 {offsets = [18, 0], sizes = [10, 6], strides = [1, 1]} : vector<98x6xf32> to vector<10x6xf32>
    %600 = vector.extract_strided_slice %28 {offsets = [32, 0], sizes = [10, 6], strides = [1, 1]} : vector<98x6xf32> to vector<10x6xf32>
    %601 = vector.extract_strided_slice %28 {offsets = [46, 0], sizes = [10, 6], strides = [1, 1]} : vector<98x6xf32> to vector<10x6xf32>
    %602 = vector.extract_strided_slice %28 {offsets = [60, 0], sizes = [10, 6], strides = [1, 1]} : vector<98x6xf32> to vector<10x6xf32>
    %603 = vector.extract_strided_slice %28 {offsets = [74, 0], sizes = [10, 6], strides = [1, 1]} : vector<98x6xf32> to vector<10x6xf32>
    %604 = tpu.concatenate %599, %600, %601, %602, %603 in 0 : vector<10x6xf32>, vector<10x6xf32>, vector<10x6xf32>, vector<10x6xf32>, vector<10x6xf32> -> vector<50x6xf32>
    %605 = vector.extract_strided_slice %35 {offsets = [18, 0], sizes = [10, 6], strides = [1, 1]} : vector<98x6xf32> to vector<10x6xf32>
    %606 = vector.extract_strided_slice %35 {offsets = [32, 0], sizes = [10, 6], strides = [1, 1]} : vector<98x6xf32> to vector<10x6xf32>
    %607 = vector.extract_strided_slice %35 {offsets = [46, 0], sizes = [10, 6], strides = [1, 1]} : vector<98x6xf32> to vector<10x6xf32>
    %608 = vector.extract_strided_slice %35 {offsets = [60, 0], sizes = [10, 6], strides = [1, 1]} : vector<98x6xf32> to vector<10x6xf32>
    %609 = vector.extract_strided_slice %35 {offsets = [74, 0], sizes = [10, 6], strides = [1, 1]} : vector<98x6xf32> to vector<10x6xf32>
    %610 = tpu.concatenate %605, %606, %607, %608, %609 in 0 : vector<10x6xf32>, vector<10x6xf32>, vector<10x6xf32>, vector<10x6xf32>, vector<10x6xf32> -> vector<50x6xf32>
    %611 = vector.extract_strided_slice %21 {offsets = [28, 0], sizes = [10, 6], strides = [1, 1]} : vector<98x6xf32> to vector<10x6xf32>
    %612 = vector.extract_strided_slice %21 {offsets = [42, 0], sizes = [10, 6], strides = [1, 1]} : vector<98x6xf32> to vector<10x6xf32>
    %613 = vector.extract_strided_slice %21 {offsets = [56, 0], sizes = [10, 6], strides = [1, 1]} : vector<98x6xf32> to vector<10x6xf32>
    %614 = vector.extract_strided_slice %21 {offsets = [70, 0], sizes = [10, 6], strides = [1, 1]} : vector<98x6xf32> to vector<10x6xf32>
    %615 = vector.extract_strided_slice %21 {offsets = [84, 0], sizes = [10, 6], strides = [1, 1]} : vector<98x6xf32> to vector<10x6xf32>
    %616 = tpu.concatenate %611, %612, %613, %614, %615 in 0 : vector<10x6xf32>, vector<10x6xf32>, vector<10x6xf32>, vector<10x6xf32>, vector<10x6xf32> -> vector<50x6xf32>
    %617 = vector.extract_strided_slice %14 {offsets = [30, 0], sizes = [10, 6], strides = [1, 1]} : vector<98x6xf32> to vector<10x6xf32>
    %618 = vector.extract_strided_slice %14 {offsets = [44, 0], sizes = [10, 6], strides = [1, 1]} : vector<98x6xf32> to vector<10x6xf32>
    %619 = vector.extract_strided_slice %14 {offsets = [58, 0], sizes = [10, 6], strides = [1, 1]} : vector<98x6xf32> to vector<10x6xf32>
    %620 = vector.extract_strided_slice %14 {offsets = [72, 0], sizes = [10, 6], strides = [1, 1]} : vector<98x6xf32> to vector<10x6xf32>
    %621 = vector.extract_strided_slice %14 {offsets = [86, 0], sizes = [10, 6], strides = [1, 1]} : vector<98x6xf32> to vector<10x6xf32>
    %622 = tpu.concatenate %617, %618, %619, %620, %621 in 0 : vector<10x6xf32>, vector<10x6xf32>, vector<10x6xf32>, vector<10x6xf32>, vector<10x6xf32> -> vector<50x6xf32>
    %623 = vector.extract_strided_slice %21 {offsets = [30, 0], sizes = [10, 6], strides = [1, 1]} : vector<98x6xf32> to vector<10x6xf32>
    %624 = vector.extract_strided_slice %21 {offsets = [44, 0], sizes = [10, 6], strides = [1, 1]} : vector<98x6xf32> to vector<10x6xf32>
    %625 = vector.extract_strided_slice %21 {offsets = [58, 0], sizes = [10, 6], strides = [1, 1]} : vector<98x6xf32> to vector<10x6xf32>
    %626 = vector.extract_strided_slice %21 {offsets = [72, 0], sizes = [10, 6], strides = [1, 1]} : vector<98x6xf32> to vector<10x6xf32>
    %627 = vector.extract_strided_slice %21 {offsets = [86, 0], sizes = [10, 6], strides = [1, 1]} : vector<98x6xf32> to vector<10x6xf32>
    %628 = tpu.concatenate %623, %624, %625, %626, %627 in 0 : vector<10x6xf32>, vector<10x6xf32>, vector<10x6xf32>, vector<10x6xf32>, vector<10x6xf32> -> vector<50x6xf32>
    %629 = vector.extract_strided_slice %14 {offsets = [32, 0], sizes = [10, 6], strides = [1, 1]} : vector<98x6xf32> to vector<10x6xf32>
    %630 = vector.extract_strided_slice %14 {offsets = [46, 0], sizes = [10, 6], strides = [1, 1]} : vector<98x6xf32> to vector<10x6xf32>
    %631 = vector.extract_strided_slice %14 {offsets = [60, 0], sizes = [10, 6], strides = [1, 1]} : vector<98x6xf32> to vector<10x6xf32>
    %632 = vector.extract_strided_slice %14 {offsets = [74, 0], sizes = [10, 6], strides = [1, 1]} : vector<98x6xf32> to vector<10x6xf32>
    %633 = vector.extract_strided_slice %14 {offsets = [88, 0], sizes = [10, 6], strides = [1, 1]} : vector<98x6xf32> to vector<10x6xf32>
    %634 = tpu.concatenate %629, %630, %631, %632, %633 in 0 : vector<10x6xf32>, vector<10x6xf32>, vector<10x6xf32>, vector<10x6xf32>, vector<10x6xf32> -> vector<50x6xf32>
    %635 = vector.extract_strided_slice %21 {offsets = [32, 0], sizes = [10, 6], strides = [1, 1]} : vector<98x6xf32> to vector<10x6xf32>
    %636 = vector.extract_strided_slice %21 {offsets = [46, 0], sizes = [10, 6], strides = [1, 1]} : vector<98x6xf32> to vector<10x6xf32>
    %637 = vector.extract_strided_slice %21 {offsets = [60, 0], sizes = [10, 6], strides = [1, 1]} : vector<98x6xf32> to vector<10x6xf32>
    %638 = vector.extract_strided_slice %21 {offsets = [74, 0], sizes = [10, 6], strides = [1, 1]} : vector<98x6xf32> to vector<10x6xf32>
    %639 = vector.extract_strided_slice %21 {offsets = [88, 0], sizes = [10, 6], strides = [1, 1]} : vector<98x6xf32> to vector<10x6xf32>
    %640 = tpu.concatenate %635, %636, %637, %638, %639 in 0 : vector<10x6xf32>, vector<10x6xf32>, vector<10x6xf32>, vector<10x6xf32>, vector<10x6xf32> -> vector<50x6xf32>
    %641 = vector.extract_strided_slice %35 {offsets = [28, 0], sizes = [10, 6], strides = [1, 1]} : vector<98x6xf32> to vector<10x6xf32>
    %642 = vector.extract_strided_slice %35 {offsets = [42, 0], sizes = [10, 6], strides = [1, 1]} : vector<98x6xf32> to vector<10x6xf32>
    %643 = vector.extract_strided_slice %35 {offsets = [56, 0], sizes = [10, 6], strides = [1, 1]} : vector<98x6xf32> to vector<10x6xf32>
    %644 = vector.extract_strided_slice %35 {offsets = [70, 0], sizes = [10, 6], strides = [1, 1]} : vector<98x6xf32> to vector<10x6xf32>
    %645 = vector.extract_strided_slice %35 {offsets = [84, 0], sizes = [10, 6], strides = [1, 1]} : vector<98x6xf32> to vector<10x6xf32>
    %646 = tpu.concatenate %641, %642, %643, %644, %645 in 0 : vector<10x6xf32>, vector<10x6xf32>, vector<10x6xf32>, vector<10x6xf32>, vector<10x6xf32> -> vector<50x6xf32>
    %647 = vector.extract_strided_slice %28 {offsets = [30, 0], sizes = [10, 6], strides = [1, 1]} : vector<98x6xf32> to vector<10x6xf32>
    %648 = vector.extract_strided_slice %28 {offsets = [44, 0], sizes = [10, 6], strides = [1, 1]} : vector<98x6xf32> to vector<10x6xf32>
    %649 = vector.extract_strided_slice %28 {offsets = [58, 0], sizes = [10, 6], strides = [1, 1]} : vector<98x6xf32> to vector<10x6xf32>
    %650 = vector.extract_strided_slice %28 {offsets = [72, 0], sizes = [10, 6], strides = [1, 1]} : vector<98x6xf32> to vector<10x6xf32>
    %651 = vector.extract_strided_slice %28 {offsets = [86, 0], sizes = [10, 6], strides = [1, 1]} : vector<98x6xf32> to vector<10x6xf32>
    %652 = tpu.concatenate %647, %648, %649, %650, %651 in 0 : vector<10x6xf32>, vector<10x6xf32>, vector<10x6xf32>, vector<10x6xf32>, vector<10x6xf32> -> vector<50x6xf32>
    %653 = vector.extract_strided_slice %35 {offsets = [30, 0], sizes = [10, 6], strides = [1, 1]} : vector<98x6xf32> to vector<10x6xf32>
    %654 = vector.extract_strided_slice %35 {offsets = [44, 0], sizes = [10, 6], strides = [1, 1]} : vector<98x6xf32> to vector<10x6xf32>
    %655 = vector.extract_strided_slice %35 {offsets = [58, 0], sizes = [10, 6], strides = [1, 1]} : vector<98x6xf32> to vector<10x6xf32>
    %656 = vector.extract_strided_slice %35 {offsets = [72, 0], sizes = [10, 6], strides = [1, 1]} : vector<98x6xf32> to vector<10x6xf32>
    %657 = vector.extract_strided_slice %35 {offsets = [86, 0], sizes = [10, 6], strides = [1, 1]} : vector<98x6xf32> to vector<10x6xf32>
    %658 = tpu.concatenate %653, %654, %655, %656, %657 in 0 : vector<10x6xf32>, vector<10x6xf32>, vector<10x6xf32>, vector<10x6xf32>, vector<10x6xf32> -> vector<50x6xf32>
    %659 = vector.extract_strided_slice %28 {offsets = [32, 0], sizes = [10, 6], strides = [1, 1]} : vector<98x6xf32> to vector<10x6xf32>
    %660 = vector.extract_strided_slice %28 {offsets = [46, 0], sizes = [10, 6], strides = [1, 1]} : vector<98x6xf32> to vector<10x6xf32>
    %661 = vector.extract_strided_slice %28 {offsets = [60, 0], sizes = [10, 6], strides = [1, 1]} : vector<98x6xf32> to vector<10x6xf32>
    %662 = vector.extract_strided_slice %28 {offsets = [74, 0], sizes = [10, 6], strides = [1, 1]} : vector<98x6xf32> to vector<10x6xf32>
    %663 = vector.extract_strided_slice %28 {offsets = [88, 0], sizes = [10, 6], strides = [1, 1]} : vector<98x6xf32> to vector<10x6xf32>
    %664 = tpu.concatenate %659, %660, %661, %662, %663 in 0 : vector<10x6xf32>, vector<10x6xf32>, vector<10x6xf32>, vector<10x6xf32>, vector<10x6xf32> -> vector<50x6xf32>
    %665 = vector.extract_strided_slice %35 {offsets = [32, 0], sizes = [10, 6], strides = [1, 1]} : vector<98x6xf32> to vector<10x6xf32>
    %666 = vector.extract_strided_slice %35 {offsets = [46, 0], sizes = [10, 6], strides = [1, 1]} : vector<98x6xf32> to vector<10x6xf32>
    %667 = vector.extract_strided_slice %35 {offsets = [60, 0], sizes = [10, 6], strides = [1, 1]} : vector<98x6xf32> to vector<10x6xf32>
    %668 = vector.extract_strided_slice %35 {offsets = [74, 0], sizes = [10, 6], strides = [1, 1]} : vector<98x6xf32> to vector<10x6xf32>
    %669 = vector.extract_strided_slice %35 {offsets = [88, 0], sizes = [10, 6], strides = [1, 1]} : vector<98x6xf32> to vector<10x6xf32>
    %670 = tpu.concatenate %665, %666, %667, %668, %669 in 0 : vector<10x6xf32>, vector<10x6xf32>, vector<10x6xf32>, vector<10x6xf32>, vector<10x6xf32> -> vector<50x6xf32>
    %671 = tpu.concatenate %526, %532, %538, %544, %550, %556, %562, %568, %574, %580, %586, %592, %598, %604, %610, %616 in 1 : vector<50x6xf32>, vector<50x6xf32>, vector<50x6xf32>, vector<50x6xf32>, vector<50x6xf32>, vector<50x6xf32>, vector<50x6xf32>, vector<50x6xf32>, vector<50x6xf32>, vector<50x6xf32>, vector<50x6xf32>, vector<50x6xf32>, vector<50x6xf32>, vector<50x6xf32>, vector<50x6xf32>, vector<50x6xf32> -> vector<50x96xf32>
    %672 = tpu.concatenate %622, %628, %634, %640, %646, %652, %658, %664, %670 in 1 : vector<50x6xf32>, vector<50x6xf32>, vector<50x6xf32>, vector<50x6xf32>, vector<50x6xf32>, vector<50x6xf32>, vector<50x6xf32>, vector<50x6xf32>, vector<50x6xf32> -> vector<50x54xf32>
    %673 = tpu.concatenate %671, %672 in 1 : vector<50x96xf32>, vector<50x54xf32> -> vector<50x150xf32>
    %674 = arith.truncf %673 : vector<50x150xf32> to vector<50x150xbf16>
    %c0_24 = arith.constant 0 : index
    %c0_25 = arith.constant 0 : index
    %675 = vector.load %arg4[%c0_24, %c0_25] : memref<150x16xbf16, #tpu.memory_space<vmem>>, vector<150x16xbf16>
    %cst_26 = arith.constant dense<0.000000e+00> : vector<50x16xf32>
    %676 = tpu.matmul %674, %675, %cst_26 {dimension_numbers = #tpu.dot_dimension_numbers<[1], [0], [0], [1], [0, 0, 1, 1], [], []>} : vector<50x150xbf16>, vector<150x16xbf16>, vector<50x16xf32> -> vector<50x16xf32>
    %c0_27 = arith.constant 0 : index
    %c0_28 = arith.constant 0 : index
    %677 = vector.load %arg5[%c0_27, %c0_28] : memref<1x16xf32, #tpu.memory_space<vmem>>, vector<1x16xf32>
    %678 = vector.broadcast %677 : vector<1x16xf32> to vector<50x16xf32>
    %679 = arith.addf %676, %678 : vector<50x16xf32>
    %cst_29 = arith.constant 0.000000e+00 : f32
    %680 = vector.broadcast %cst_29 : f32 to vector<50x16xf32>
    %681 = arith.maximumf %679, %680 : vector<50x16xf32>
    %682 = arith.maximumf %520, %681 : vector<50x16xf32>
    %683 = vector.extract_strided_slice %682 {offsets = [0, 0], sizes = [2, 16], strides = [1, 1]} : vector<50x16xf32> to vector<2x16xf32>
    %684 = vector.extract_strided_slice %682 {offsets = [2, 0], sizes = [2, 16], strides = [1, 1]} : vector<50x16xf32> to vector<2x16xf32>
    %685 = vector.extract_strided_slice %682 {offsets = [4, 0], sizes = [2, 16], strides = [1, 1]} : vector<50x16xf32> to vector<2x16xf32>
    %686 = vector.extract_strided_slice %682 {offsets = [6, 0], sizes = [2, 16], strides = [1, 1]} : vector<50x16xf32> to vector<2x16xf32>
    %687 = vector.extract_strided_slice %682 {offsets = [8, 0], sizes = [2, 16], strides = [1, 1]} : vector<50x16xf32> to vector<2x16xf32>
    %688 = vector.extract_strided_slice %682 {offsets = [10, 0], sizes = [2, 16], strides = [1, 1]} : vector<50x16xf32> to vector<2x16xf32>
    %689 = vector.extract_strided_slice %682 {offsets = [12, 0], sizes = [2, 16], strides = [1, 1]} : vector<50x16xf32> to vector<2x16xf32>
    %690 = vector.extract_strided_slice %682 {offsets = [14, 0], sizes = [2, 16], strides = [1, 1]} : vector<50x16xf32> to vector<2x16xf32>
    %691 = vector.extract_strided_slice %682 {offsets = [16, 0], sizes = [2, 16], strides = [1, 1]} : vector<50x16xf32> to vector<2x16xf32>
    %692 = vector.extract_strided_slice %682 {offsets = [18, 0], sizes = [2, 16], strides = [1, 1]} : vector<50x16xf32> to vector<2x16xf32>
    %693 = vector.extract_strided_slice %682 {offsets = [20, 0], sizes = [2, 16], strides = [1, 1]} : vector<50x16xf32> to vector<2x16xf32>
    %694 = vector.extract_strided_slice %682 {offsets = [22, 0], sizes = [2, 16], strides = [1, 1]} : vector<50x16xf32> to vector<2x16xf32>
    %695 = vector.extract_strided_slice %682 {offsets = [24, 0], sizes = [2, 16], strides = [1, 1]} : vector<50x16xf32> to vector<2x16xf32>
    %696 = vector.extract_strided_slice %682 {offsets = [26, 0], sizes = [2, 16], strides = [1, 1]} : vector<50x16xf32> to vector<2x16xf32>
    %697 = vector.extract_strided_slice %682 {offsets = [28, 0], sizes = [2, 16], strides = [1, 1]} : vector<50x16xf32> to vector<2x16xf32>
    %698 = vector.extract_strided_slice %682 {offsets = [30, 0], sizes = [2, 16], strides = [1, 1]} : vector<50x16xf32> to vector<2x16xf32>
    %699 = vector.extract_strided_slice %682 {offsets = [32, 0], sizes = [2, 16], strides = [1, 1]} : vector<50x16xf32> to vector<2x16xf32>
    %700 = vector.extract_strided_slice %682 {offsets = [34, 0], sizes = [2, 16], strides = [1, 1]} : vector<50x16xf32> to vector<2x16xf32>
    %701 = vector.extract_strided_slice %682 {offsets = [36, 0], sizes = [2, 16], strides = [1, 1]} : vector<50x16xf32> to vector<2x16xf32>
    %702 = vector.extract_strided_slice %682 {offsets = [38, 0], sizes = [2, 16], strides = [1, 1]} : vector<50x16xf32> to vector<2x16xf32>
    %703 = vector.extract_strided_slice %682 {offsets = [40, 0], sizes = [2, 16], strides = [1, 1]} : vector<50x16xf32> to vector<2x16xf32>
    %704 = vector.extract_strided_slice %682 {offsets = [42, 0], sizes = [2, 16], strides = [1, 1]} : vector<50x16xf32> to vector<2x16xf32>
    %705 = vector.extract_strided_slice %682 {offsets = [44, 0], sizes = [2, 16], strides = [1, 1]} : vector<50x16xf32> to vector<2x16xf32>
    %706 = vector.extract_strided_slice %682 {offsets = [46, 0], sizes = [2, 16], strides = [1, 1]} : vector<50x16xf32> to vector<2x16xf32>
    %707 = vector.extract_strided_slice %682 {offsets = [48, 0], sizes = [2, 16], strides = [1, 1]} : vector<50x16xf32> to vector<2x16xf32>
    %708 = tpu.concatenate %683, %684, %685, %686, %687, %688, %689, %690, %691, %692, %693, %694, %695, %696, %697, %698 in 1 : vector<2x16xf32>, vector<2x16xf32>, vector<2x16xf32>, vector<2x16xf32>, vector<2x16xf32>, vector<2x16xf32>, vector<2x16xf32>, vector<2x16xf32>, vector<2x16xf32>, vector<2x16xf32>, vector<2x16xf32>, vector<2x16xf32>, vector<2x16xf32>, vector<2x16xf32>, vector<2x16xf32>, vector<2x16xf32> -> vector<2x256xf32>
    %709 = tpu.concatenate %699, %700, %701, %702, %703, %704, %705, %706, %707 in 1 : vector<2x16xf32>, vector<2x16xf32>, vector<2x16xf32>, vector<2x16xf32>, vector<2x16xf32>, vector<2x16xf32>, vector<2x16xf32>, vector<2x16xf32>, vector<2x16xf32> -> vector<2x144xf32>
    %710 = tpu.concatenate %708, %709 in 1 : vector<2x256xf32>, vector<2x144xf32> -> vector<2x400xf32>
    %711 = arith.truncf %710 : vector<2x400xf32> to vector<2x400xbf16>
    %c0_30 = arith.constant 0 : index
    %c0_31 = arith.constant 0 : index
    %712 = vector.load %arg6[%c0_30, %c0_31] : memref<400x120xbf16, #tpu.memory_space<vmem>>, vector<400x120xbf16>
    %cst_32 = arith.constant dense<0.000000e+00> : vector<2x120xf32>
    %713 = tpu.matmul %711, %712, %cst_32 {dimension_numbers = #tpu.dot_dimension_numbers<[1], [0], [0], [1], [0, 0, 1, 1], [], []>} : vector<2x400xbf16>, vector<400x120xbf16>, vector<2x120xf32> -> vector<2x120xf32>
    %c0_33 = arith.constant 0 : index
    %c0_34 = arith.constant 0 : index
    %714 = vector.load %arg7[%c0_33, %c0_34] : memref<1x120xf32, #tpu.memory_space<vmem>>, vector<1x120xf32>
    %715 = vector.broadcast %714 : vector<1x120xf32> to vector<2x120xf32>
    %716 = arith.addf %713, %715 : vector<2x120xf32>
    %717 = arith.truncf %716 : vector<2x120xf32> to vector<2x120xbf16>
    %c0_35 = arith.constant 0 : index
    %c0_36 = arith.constant 0 : index
    %718 = vector.load %arg8[%c0_35, %c0_36] : memref<120x84xbf16, #tpu.memory_space<vmem>>, vector<120x84xbf16>
    %cst_37 = arith.constant dense<0.000000e+00> : vector<2x84xf32>
    %719 = tpu.matmul %717, %718, %cst_37 {dimension_numbers = #tpu.dot_dimension_numbers<[1], [0], [0], [1], [0, 0, 1, 1], [], []>} : vector<2x120xbf16>, vector<120x84xbf16>, vector<2x84xf32> -> vector<2x84xf32>
    %c0_38 = arith.constant 0 : index
    %c0_39 = arith.constant 0 : index
    %720 = vector.load %arg9[%c0_38, %c0_39] : memref<1x84xf32, #tpu.memory_space<vmem>>, vector<1x84xf32>
    %721 = vector.broadcast %720 : vector<1x84xf32> to vector<2x84xf32>
    %722 = arith.addf %719, %721 : vector<2x84xf32>
    %723 = arith.truncf %722 : vector<2x84xf32> to vector<2x84xbf16>
    %c0_40 = arith.constant 0 : index
    %c0_41 = arith.constant 0 : index
    %724 = vector.load %arg10[%c0_40, %c0_41] : memref<84x10xbf16, #tpu.memory_space<vmem>>, vector<84x10xbf16>
    %cst_42 = arith.constant dense<0.000000e+00> : vector<2x10xf32>
    %725 = tpu.matmul %723, %724, %cst_42 {dimension_numbers = #tpu.dot_dimension_numbers<[1], [0], [0], [1], [0, 0, 1, 1], [], []>} : vector<2x84xbf16>, vector<84x10xbf16>, vector<2x10xf32> -> vector<2x10xf32>
    %c0_43 = arith.constant 0 : index
    %c0_44 = arith.constant 0 : index
    %726 = vector.load %arg11[%c0_43, %c0_44] : memref<1x10xf32, #tpu.memory_space<vmem>>, vector<1x10xf32>
    %727 = vector.broadcast %726 : vector<1x10xf32> to vector<2x10xf32>
    %728 = arith.addf %725, %727 : vector<2x10xf32>
    %c0_45 = arith.constant 0 : index
    %c0_46 = arith.constant 0 : index
    %729 = vector.load %arg12[%c0_45, %c0_46] : memref<2x10xf32, #tpu.memory_space<vmem>>, vector<2x10xf32>
    tpu.vector_store %arg12[%c0_45, %c0_46], %728 {strides = array<i32>} : memref<2x10xf32, #tpu.memory_space<vmem>>, vector<2x10xf32>,
    return
  }
  func.func @transform_0(%arg0: i32) -> (i32, i32) {
    %c0_i32 = arith.constant 0 : i32
    %c0_i32_0 = arith.constant 0 : i32
    %c0_i32_1 = arith.constant 0 : i32
    return %c0_i32, %c0_i32_0 : i32, i32
  }
  func.func @transform_1(%arg0: i32) -> (i32, i32) {
    %c0_i32 = arith.constant 0 : i32
    %c0_i32_0 = arith.constant 0 : i32
    %c0_i32_1 = arith.constant 0 : i32
    return %c0_i32, %c0_i32_0 : i32, i32
  }
  func.func @transform_2(%arg0: i32) -> (i32, i32) {
    %c0_i32 = arith.constant 0 : i32
    %c0_i32_0 = arith.constant 0 : i32
    %c0_i32_1 = arith.constant 0 : i32
    return %c0_i32, %c0_i32_0 : i32, i32
  }
  func.func @transform_3(%arg0: i32) -> (i32, i32) {
    %c0_i32 = arith.constant 0 : i32
    %c0_i32_0 = arith.constant 0 : i32
    %c0_i32_1 = arith.constant 0 : i32
    return %c0_i32, %c0_i32_0 : i32, i32
  }
  func.func @transform_4(%arg0: i32) -> (i32, i32) {
    %c0_i32 = arith.constant 0 : i32
    %c0_i32_0 = arith.constant 0 : i32
    %c0_i32_1 = arith.constant 0 : i32
    return %c0_i32, %c0_i32_0 : i32, i32
  }
  func.func @transform_5(%arg0: i32) -> (i32, i32) {
    %c0_i32 = arith.constant 0 : i32
    %c0_i32_0 = arith.constant 0 : i32
    %c0_i32_1 = arith.constant 0 : i32
    return %c0_i32, %c0_i32_0 : i32, i32
  }
  func.func @transform_6(%arg0: i32) -> (i32, i32) {
    %c0_i32 = arith.constant 0 : i32
    %c0_i32_0 = arith.constant 0 : i32
    %c0_i32_1 = arith.constant 0 : i32
    return %c0_i32, %c0_i32_0 : i32, i32
  }
  func.func @transform_7(%arg0: i32) -> (i32, i32) {
    %c0_i32 = arith.constant 0 : i32
    %c0_i32_0 = arith.constant 0 : i32
    %c0_i32_1 = arith.constant 0 : i32
    return %c0_i32, %c0_i32_0 : i32, i32
  }
  func.func @transform_8(%arg0: i32) -> (i32, i32) {
    %c0_i32 = arith.constant 0 : i32
    %c0_i32_0 = arith.constant 0 : i32
    %c0_i32_1 = arith.constant 0 : i32
    return %c0_i32, %c0_i32_0 : i32, i32
  }
  func.func @transform_9(%arg0: i32) -> (i32, i32) {
    %c0_i32 = arith.constant 0 : i32
    %c0_i32_0 = arith.constant 0 : i32
    %c0_i32_1 = arith.constant 0 : i32
    return %c0_i32, %c0_i32_0 : i32, i32
  }
  func.func @transform_10(%arg0: i32) -> (i32, i32) {
    %c0_i32 = arith.constant 0 : i32
    %c0_i32_0 = arith.constant 0 : i32
    %c0_i32_1 = arith.constant 0 : i32
    return %c0_i32, %c0_i32_0 : i32, i32
  }
  func.func @transform_11(%arg0: i32) -> (i32, i32) {
    %c0_i32 = arith.constant 0 : i32
    %c0_i32_0 = arith.constant 0 : i32
    %c0_i32_1 = arith.constant 0 : i32
    return %c0_i32, %c0_i32_0 : i32, i32
  }
}

</mosaic_0001>

<bundles_post_ra>
// kernel: cnn_forward.1
= control target key start
LH: loop header
LB: loop body
LE: loop exit
PB: predicated region body
PF: predicated region fallthrough
CT: control target
= control target key end

     0   :  { %vm17009_vm0 = vcmask 1043456   ;;  %vm1036_vm1 = vcmask 1044480   ;;  %v9566_v2 = vmov 65535   ;;  %vm740_vm2 = vcmask 72704   ;;  %s16407_s0 = inlined_call_operand.vmem [shape: bf16[1568,9], index: 0, kind: input, shape index: {}]   ;;  %s16408_s1 = inlined_call_operand.vmem [shape: bf16[9,6], index: 1, kind: input, shape index: {}]   ;;  %s16409_s2 = inlined_call_operand.vmem [shape: f32[1,6], index: 2, kind: input, shape index: {}]   ;;  %s16410_s3 = inlined_call_operand.vmem [shape: bf16[150,16], index: 3, kind: input, shape index: {}]   ;;  %s16411_s4 = inlined_call_operand.vmem [shape: f32[1,16], index: 4, kind: input, shape index: {}]   ;;  %s16412_s5 = inlined_call_operand.vmem [shape: bf16[400,120], index: 5, kind: input, shape index: {}]   ;;  %s16413_s6 = inlined_call_operand.vmem [shape: f32[1,120], index: 6, kind: input, shape index: {}]   ;;  %s16414_s7 = inlined_call_operand.vmem [shape: bf16[120,84], index: 7, kind: input, shape index: {}]   ;;  %s16415_s8 = inlined_call_operand.vmem [shape: f32[1,84], index: 8, kind: input, shape index: {}]   ;;  %s16416_s9 = inlined_call_operand.vmem [shape: bf16[84,10], index: 9, kind: input, shape index: {}]   ;;  %s16417_s10 = inlined_call_operand.vmem [shape: f32[1,10], index: 10, kind: input, shape index: {}]   ;;  %s16418_s11 = inlined_call_operand.hbm [shape: f32[2,10], index: 11, kind: output, shape index: {}]  }
   0x1   :  { %v9383_v0 = vld [vmem:[%s16408_s1] sm:$0x1f]   ;;  %v1037_v3 = vsel %vm17009_vm0, 4294967295, %v9566_v2  ;;  %v9385_v6 = vld [vmem:[%s16407_s0 + $0x8] sm:$0xff]   ;;  %v9386_v7 = vld [vmem:[%s16407_s0 + $0x10] sm:$0xff]  }
   0x2   :  { %v9384_v1 = vld [vmem:[%s16407_s0] sm:$0xff]   ;;  %v1038_v4 = vsel %vm1036_vm1, %v1037_v3, 0  ;;  %v9387_v8 = vld [vmem:[%s16407_s0 + $0x18] sm:$0xff]   ;;  %v9389_v10 = vld [vmem:[%s16407_s0 + $0x28] sm:$0xff]  }
   0x3   :  { %7488 = vmatprep.mubr.msk.bf16.mxu0 %vm740_vm2, %v9384_v1  ;;  %v1040_v5 = vand.u32 %v9383_v0, %v1038_v4  ;;  %v9388_v9 = vld [vmem:[%s16407_s0 + $0x20] sm:$0xff]   ;;  %v9390_v11 = vld [vmem:[%s16407_s0 + $0x30] sm:$0xff]   ;;  %v9391_v12 = vld [vmem:[%s16407_s0 + $0x38] sm:$0xff]  }
   0x4   :  { %v9392_v13 = vld [vmem:[%s16407_s0 + $0x40] sm:$0xff]   ;;  %v9393_v14 = vld [vmem:[%s16407_s0 + $0x48] sm:$0xff]   ;;  %v9394_v15 = vld [vmem:[%s16407_s0 + $0x50] sm:$0xff]  }
   0x5   :  { %7486 = vmatprep.subr.bf16.mxu0 %v1040_v5  ;;  %7720 = vmatprep.subr.bf16.mxu1 %v1040_v5  ;;  %v9395_v16 = vld [vmem:[%s16407_s0 + $0x58] sm:$0xff]   ;;  %v9396_v17 = vld [vmem:[%s16407_s0 + $0x60] sm:$0xff]   ;;  %v9397_v18 = vld [vmem:[%s16407_s0 + $0x68] sm:$0xff]  }
   0x6   :  { %7487 = vmatpush3.bf16.msra.mxu0 %v1040_v5  ;;  %7721 = vmatpush3.bf16.msra.mxu1 %v1040_v5  ;;  %v9398_v19 = vld [vmem:[%s16407_s0 + $0x70] sm:$0xff]   ;;  %v9399_v20 = vld [vmem:[%s16407_s0 + $0x78] sm:$0xff]   ;;  %v9400_v21 = vld [vmem:[%s16407_s0 + $0x80] sm:$0xff]  }
   0x7   :  { %v9401_v22 = vld [vmem:[%s16407_s0 + $0x88] sm:$0xff]   ;;  %v9402_v23 = vld [vmem:[%s16407_s0 + $0x90] sm:$0xff]   ;;  %v9403_v24 = vld [vmem:[%s16407_s0 + $0x98] sm:$0xff]  }
   0x8   :  { %v9404_v25 = vld [vmem:[%s16407_s0 + $0xa0] sm:$0xff]   ;;  %v9405_v26 = vld [vmem:[%s16407_s0 + $0xa8] sm:$0xff]   ;;  %v9406_v27 = vld [vmem:[%s16407_s0 + $0xb0] sm:$0xff]  }
   0x9   :  { %7489 = vmatmul.mubr.msk.bf16.vlgmr.msra.gmra.mrb[0].mxu0 %vm740_vm2, %v9385_v6  ;;  %v9407_v28 = vld [vmem:[%s16407_s0 + $0xb8] sm:$0xff]   ;;  %v9408_v29 = vld [vmem:[%s16407_s0 + $0xc0] sm:$0xff]   ;;  %v9409_v30 = vld [vmem:[%s16407_s0 + $0xc8] sm:$0xff]  }
   0xa   :  { %7492 = vmatprep.mubr.msk.bf16.mxu0 %vm740_vm2, %v9386_v7  ;;  %v9410_v31 = vld [vmem:[%s16407_s0 + $0xd0] sm:$0xff]   ;;  %v9443_v33 = vld [vmem:[%s16407_s0 + $0x298] sm:$0xff]   ;;  %v9412_v35 = vld [vmem:[%s16407_s0 + $0xe0] sm:$0xff]  }
   0xb   :  { %v9442_v32 = vld [vmem:[%s16407_s0 + $0x290] sm:$0xff]   ;;  %v9411_v34 = vld [vmem:[%s16407_s0 + $0xd8] sm:$0xff]   ;;  %v9446_v36 = vld [vmem:[%s16407_s0 + $0x2a0] sm:$0xff]  }
   0xc   :  { %7652 = vmatprep.mubr.msk.bf16.mxu1 %vm740_vm2, %v9442_v32  ;;  %v9447_v37 = vld [vmem:[%s16407_s0 + $0x2a8] sm:$0xff]   ;;  %v9414_v39 = vld [vmem:[%s16407_s0 + $0xf0] sm:$0xff]   ;;  %v9451_v41 = vld [vmem:[%s16407_s0 + $0x2b8] sm:$0xff]  }
   0xd   :  { %7653 = vmatmul.mubr.msk.bf16.vlgmr.msra.gmra.mrb[0].mxu1 %vm740_vm2, %v9443_v33  ;;  %v9413_v38 = vld [vmem:[%s16407_s0 + $0xe8] sm:$0xff]   ;;  %v9450_v40 = vld [vmem:[%s16407_s0 + $0x2b0] sm:$0xff]  }
   0xe   :  { %7656 = vmatprep.mubr.msk.bf16.mxu1 %vm740_vm2, %v9446_v36 }
  0x11   :  { %7493 = vmatmul.mubr.msk.bf16.gmra.mrb[4].mxu0 %vm740_vm2, %v9387_v8 }
  0x12   :  { %7496 = vmatprep.mubr.msk.bf16.mxu0 %vm740_vm2, %v9388_v9 }
  0x15   :  { %7657 = vmatmul.mubr.msk.bf16.gmra.mrb[4].mxu1 %vm740_vm2, %v9447_v37 }
  0x19   :  { %7497 = vmatmul.mubr.msk.bf16.gmra.mrb[8].mxu0 %vm740_vm2, %v9389_v10 }
  0x1a   :  { %7500 = vmatprep.mubr.msk.bf16.mxu0 %vm740_vm2, %v9390_v11 }
  0x21   :  { %7501 = vmatmul.mubr.msk.bf16.gmra.mrb[12].mxu0 %vm740_vm2, %v9391_v12 }
  0x22   :  { %7504 = vmatprep.mubr.msk.bf16.mxu0 %vm740_vm2, %v9392_v13 }
  0x29   :  { %7505 = vmatmul.mubr.msk.bf16.gmra.mrb[16].mxu0 %vm740_vm2, %v9393_v14 }
  0x2a   :  { %7508 = vmatprep.mubr.msk.bf16.mxu0 %vm740_vm2, %v9394_v15 }
  0x31   :  { %7509 = vmatmul.mubr.msk.bf16.gmra.mrb[20].mxu0 %vm740_vm2, %v9395_v16 }
  0x32   :  { %7512 = vmatprep.mubr.msk.bf16.mxu0 %vm740_vm2, %v9396_v17 }
  0x39   :  { %7513 = vmatmul.mubr.msk.bf16.gmra.mrb[24].mxu0 %vm740_vm2, %v9397_v18 }
  0x3a   :  { %7516 = vmatprep.mubr.msk.bf16.mxu0 %vm740_vm2, %v9398_v19 }
  0x41   :  { %7517 = vmatmul.mubr.msk.bf16.gmra.mrb[28].mxu0 %vm740_vm2, %v9399_v20 }
  0x42   :  { %7520 = vmatprep.mubr.msk.bf16.mxu0 %vm740_vm2, %v9400_v21 }
  0x49   :  { %7521 = vmatmul.mubr.msk.bf16.gmra.mrb[32].mxu0 %vm740_vm2, %v9401_v22 }
  0x4a   :  { %7524 = vmatprep.mubr.msk.bf16.mxu0 %vm740_vm2, %v9402_v23 }
  0x51   :  { %7525 = vmatmul.mubr.msk.bf16.gmra.mrb[36].mxu0 %vm740_vm2, %v9403_v24 }
  0x52   :  { %7528 = vmatprep.mubr.msk.bf16.mxu0 %vm740_vm2, %v9404_v25 }
  0x59   :  { %7529 = vmatmul.mubr.msk.bf16.gmra.mrb[40].mxu0 %vm740_vm2, %v9405_v26 }
  0x5a   :  { %7532 = vmatprep.mubr.msk.bf16.mxu0 %vm740_vm2, %v9406_v27 }
  0x61   :  { %7533 = vmatmul.mubr.msk.bf16.gmra.mrb[44].mxu0 %vm740_vm2, %v9407_v28 }
  0x62   :  { %7536 = vmatprep.mubr.msk.bf16.mxu0 %vm740_vm2, %v9408_v29 }
  0x69   :  { %7537 = vmatmul.mubr.msk.bf16.gmra.mrb[48].mxu0 %vm740_vm2, %v9409_v30 }
  0x6a   :  { %7540 = vmatprep.mubr.msk.bf16.mxu0 %vm740_vm2, %v9410_v31 }
  0x71   :  { %7541 = vmatmul.mubr.msk.bf16.gmra.mrb[52].mxu0 %vm740_vm2, %v9411_v34 }
  0x72   :  { %7544 = vmatprep.mubr.msk.bf16.mxu0 %vm740_vm2, %v9412_v35 }
  0x73   :  { %16 = vsyncpa [#allocation3], 0  ;;  %7660 = vmatprep.mubr.msk.bf16.mxu1 %vm740_vm2, %v9450_v40  ;;  %v9415_v42 = vld [vmem:[%s16407_s0 + $0xf8] sm:$0xff]   ;;  %v9416_v43 = vld [vmem:[%s16407_s0 + $0x100] sm:$0xff]   ;;  %vm2068_vm3 = vcmask 1045504   ;;  %vm17008_vm4 = vcmask 1041408  }
  0x74   :  { %7661 = vmatmul.mubr.msk.bf16.gmra.mrb[8].mxu1 %vm740_vm2, %v9451_v41  ;;  %v9454_v44 = vld [vmem:[%s16407_s0 + $0x2c0] sm:$0xff]   ;;  %v9455_v45 = vld [vmem:[%s16407_s0 + $0x2c8] sm:$0xff]   ;;  %v9418_v47 = vld [vmem:[%s16407_s0 + $0x110] sm:$0xff]   ;;  %s9568_s17 = smov 84   ;;  %s9569_s18 = smov 12   ;;  %vm17010_vm5 = vcmask 48128  }
  0x75   :  { %7664 = vmatprep.mubr.msk.bf16.mxu1 %vm740_vm2, %v9454_v44  ;;  %v9417_v46 = vld [vmem:[%s16407_s0 + $0x108] sm:$0xff]   ;;  %v9458_v48 = vld [vmem:[%s16407_s0 + $0x2d0] sm:$0xff]   ;;  %v9459_v49 = vld [vmem:[%s16407_s0 + $0x2d8] sm:$0xff]   ;;  %s9570_s19 = smov 54   ;;  %s9571_s20 = smov 90   ;;  %vm3403_vm6 = vcmask 97280  }
  0x76   :  { %v9419_v50 = vld [vmem:[%s16407_s0 + $0x118] sm:$0xff]   ;;  %v9420_v51 = vld [vmem:[%s16407_s0 + $0x120] sm:$0xff]   ;;  %v9463_v53 = vld [vmem:[%s16407_s0 + $0x2e8] sm:$0xff]   ;;  %s9572_s21 = smov 18   ;;  %s9573_s22 = smov 60   ;;  %vm3411_vm7 = vcmask 146432  }
  0x77   :  { %v9462_v52 = vld [vmem:[%s16407_s0 + $0x2e0] sm:$0xff]   ;;  %v9421_v54 = vld [vmem:[%s16407_s0 + $0x128] sm:$0xff]   ;;  %v9422_v55 = vld [vmem:[%s16407_s0 + $0x130] sm:$0xff]   ;;  %s9574_s24 = smov 72   ;;  %s9575_s25 = smov 48   ;;  %vm3419_vm8 = vcmask 195584  }
  0x78   :  { %v9466_v56 = vld [vmem:[%s16407_s0 + $0x2f0] sm:$0xff]   ;;  %v9467_v57 = vld [vmem:[%s16407_s0 + $0x2f8] sm:$0xff]   ;;  %v9424_v59 = vld [vmem:[%s16407_s0 + $0x140] sm:$0xff]   ;;  %s9576_s26 = smov 66   ;;  %s9577_s27 = smov 30   ;;  %vm3427_vm9 = vcmask 244736  }
  0x79   :  { %7545 = vmatmul.mubr.msk.bf16.gmra.mrb[56].mxu0 %vm740_vm2, %v9413_v38  ;;  %v9423_v58 = vld [vmem:[%s16407_s0 + $0x138] sm:$0xff]   ;;  %v9470_v60 = vld [vmem:[%s16407_s0 + $0x300] sm:$0xff]   ;;  %v9471_v61 = vld [vmem:[%s16407_s0 + $0x308] sm:$0xff]   ;;  %s9578_s28 = smov 42   ;;  %s9579_s29 = smov 36   ;;  %vm3435_vm10 = vcmask 293888  }
  0x7a   :  { %7548 = vmatprep.mubr.msk.bf16.mxu0 %vm740_vm2, %v9414_v39  ;;  %v9425_v62 = vld [vmem:[%s16407_s0 + $0x148] sm:$0xff]   ;;  %v9426_v63 = vld [vmem:[%s16407_s0 + $0x150] sm:$0xff]   ;;  %v9427_v0 = vld [vmem:[%s16407_s0 + $0x158] sm:$0xff]   ;;  %s9580_s30 = smov 6   ;;  %s9581_s12 = smov 78   ;;  %vm3443_vm11 = vcmask 343040  }
  0x7b   :  { %v9428_v1 = vld [vmem:[%s16407_s0 + $0x160] sm:$0xff]   ;;  %v9429_v2 = vld [vmem:[%s16407_s0 + $0x168] sm:$0xff]   ;;  %v9430_v3 = vld [vmem:[%s16407_s0 + $0x170] sm:$0xff]   ;;  %vm3451_vm12 = vcmask 392192   ;;  %s9583_s23 = smov 96   ;;  %vm3904_vm13 = vcmask 1042432  }
  0x7c   :  { %7665 = vmatmul.mubr.msk.bf16.gmra.mrb[12].mxu1 %vm740_vm2, %v9455_v45  ;;  %v9431_v4 = vld [vmem:[%s16407_s0 + $0x178] sm:$0xff]   ;;  %v9432_v5 = vld [vmem:[%s16407_s0 + $0x180] sm:$0xff]   ;;  %v9433_v6 = vld [vmem:[%s16407_s0 + $0x188] sm:$0xff]   ;;  %vm3459_vm14 = vcmask 441344   ;;  %vm3467_vm15 = vcmask 490496   ;;  %vm17026_vm1 = vcmask 539648  }
  0x7d   :  { %7668 = vmatprep.mubr.msk.bf16.mxu1 %vm740_vm2, %v9458_v48  ;;  %v9434_v7 = vld [vmem:[%s16407_s0 + $0x190] sm:$0xff]   ;;  %v9435_v8 = vld [vmem:[%s16407_s0 + $0x198] sm:$0xff]   ;;  %v9436_v9 = vld [vmem:[%s16407_s0 + $0x1a0] sm:$0xff]  }
  0x7e   :  { %v9437_v10 = vld [vmem:[%s16407_s0 + $0x1a8] sm:$0xff]   ;;  %v9438_v11 = vld [vmem:[%s16407_s0 + $0x1b0] sm:$0xff]   ;;  %v9439_v14 = vld [vmem:[%s16407_s0 + $0x1b8] sm:$0xff]  }
  0x7f   :  { %v9440_v16 = vld [vmem:[%s16407_s0 + $0x1c0] sm:$0xff]   ;;  %v9441_v20 = vld [vmem:[%s16407_s0 + $0x1c8] sm:$0xff]   ;;  %v9444_v22 = vld [vmem:[%s16407_s0 + $0x1d0] sm:$0xff]  }
  0x80   :  { %v9445_v26 = vld [vmem:[%s16407_s0 + $0x1d8] sm:$0xff]   ;;  %v9448_v28 = vld [vmem:[%s16407_s0 + $0x1e0] sm:$0xff]   ;;  %v9449_v34 = vld [vmem:[%s16407_s0 + $0x1e8] sm:$0xff]  }
  0x81   :  { %7549 = vmatmul.mubr.msk.bf16.gmra.mrb[60].mxu0 %vm740_vm2, %v9415_v42  ;;  %v9977_v30 = vld [vmem:[%s16409_s2] ss:$0 sm:$0xff]  ;;  %v9452_v37 = vld [vmem:[%s16407_s0 + $0x1f0] sm:$0xff]  }
  0x82   :  { %7552 = vmatprep.mubr.msk.bf16.mxu0 %vm740_vm2, %v9416_v43 }
  0x84   :  { %7669 = vmatmul.mubr.msk.bf16.gmra.mrb[16].mxu1 %vm740_vm2, %v9459_v49 }
  0x85   :  { %7672 = vmatprep.mubr.msk.bf16.mxu1 %vm740_vm2, %v9462_v52 }
  0x89   :  { %7553 = vmatmul.mubr.msk.bf16.gmra.mrb[64].mxu0 %vm740_vm2, %v9417_v46 }
  0x8a   :  { %7556 = vmatprep.mubr.msk.bf16.mxu0 %vm740_vm2, %v9418_v47 }
  0x8c   :  { %7673 = vmatmul.mubr.msk.bf16.gmra.mrb[20].mxu1 %vm740_vm2, %v9463_v53 }
  0x8d   :  { %7676 = vmatprep.mubr.msk.bf16.mxu1 %vm740_vm2, %v9466_v56 }
  0x91   :  { %7557 = vmatmul.mubr.msk.bf16.gmra.mrb[68].mxu0 %vm740_vm2, %v9419_v50 }
  0x92   :  { %7560 = vmatprep.mubr.msk.bf16.mxu0 %vm740_vm2, %v9420_v51 }
  0x94   :  { %7677 = vmatmul.mubr.msk.bf16.gmra.mrb[24].mxu1 %vm740_vm2, %v9467_v57 }
  0x95   :  { %7680 = vmatprep.mubr.msk.bf16.mxu1 %vm740_vm2, %v9470_v60 }
  0x99   :  { %7561 = vmatmul.mubr.msk.bf16.gmra.mrb[72].mxu0 %vm740_vm2, %v9421_v54 }
  0x9a   :  { %7564 = vmatprep.mubr.msk.bf16.mxu0 %vm740_vm2, %v9422_v55 }
  0x9c   :  { %7681 = vmatmul.mubr.msk.bf16.gmra.mrb[28].mxu1 %vm740_vm2, %v9471_v61  ;;  %v9453_v61 = vld [vmem:[%s16407_s0 + $0x1f8] sm:$0xff]  }
  0xa1   :  { %7565 = vmatmul.mubr.msk.bf16.gmra.mrb[76].mxu0 %vm740_vm2, %v9423_v58 }
  0xa2   :  { %7568 = vmatprep.mubr.msk.bf16.mxu0 %vm740_vm2, %v9424_v59 }
  0xa9   :  { %7569 = vmatmul.mubr.msk.bf16.gmra.mrb[80].mxu0 %vm740_vm2, %v9425_v62 }
  0xaa   :  { %7572 = vmatprep.mubr.msk.bf16.mxu0 %vm740_vm2, %v9426_v63 }
  0xb1   :  { %7573 = vmatmul.mubr.msk.bf16.gmra.mrb[84].mxu0 %vm740_vm2, %v9427_v0 }
  0xb2   :  { %7576 = vmatprep.mubr.msk.bf16.mxu0 %vm740_vm2, %v9428_v1 }
  0xb9   :  { %7577 = vmatmul.mubr.msk.bf16.gmra.mrb[88].mxu0 %vm740_vm2, %v9429_v2 }
  0xba   :  { %7580 = vmatprep.mubr.msk.bf16.mxu0 %vm740_vm2, %v9430_v3  ;;  %v9456_v3 = vld [vmem:[%s16407_s0 + $0x200] sm:$0xff]  }
  0xc1   :  { %7581 = vmatmul.mubr.msk.bf16.gmra.mrb[92].mxu0 %vm740_vm2, %v9431_v4 }
  0xc2   :  { %7584 = vmatprep.mubr.msk.bf16.mxu0 %vm740_vm2, %v9432_v5 }
  0xc9   :  { %7585 = vmatmul.mubr.msk.bf16.gmra.mrb[96].mxu0 %vm740_vm2, %v9433_v6 }
  0xca   :  { %7588 = vmatprep.mubr.msk.bf16.mxu0 %vm740_vm2, %v9434_v7 }
  0xd1   :  { %7589 = vmatmul.mubr.msk.bf16.gmra.mrb[100].mxu0 %vm740_vm2, %v9435_v8 }
  0xd2   :  { %7592 = vmatprep.mubr.msk.bf16.mxu0 %vm740_vm2, %v9436_v9 }
  0xd9   :  { %7593 = vmatmul.mubr.msk.bf16.gmra.mrb[104].mxu0 %vm740_vm2, %v9437_v10 }
  0xda   :  { %7596 = vmatprep.mubr.msk.bf16.mxu0 %vm740_vm2, %v9438_v11 }
  0xdc   :  { %v7490_v12 = vpop.f32.mrb[0].mxu0 }
  0xdd   :  { %v1076_v13 = vpop.f32.mrb[1].mxu0  ;;  %v1085_v38 = vadd.f32 %v7490_v12, %v9977_v30 }
  0xde   :  { %v7491_v15 = vpop.f32.mrb[2].mxu0  ;;  %v1077_v42 = vadd.f32 %v9977_v30, %v1076_v13 }
  0xdf   :  { %v1079_v17 = vpop.f32.mrb[3].mxu0  ;;  %v1861_v48 = vmax.f32 %v1085_v38, 0.0  ;;  %v1088_v52 = vadd.f32 %v7491_v15, %v9977_v30 }
  0xe0   :  { %v1080_v45 = vadd.f32 %v9977_v30, %v1079_v17  ;;  %v1859_v51 = vmax.f32 %v1077_v42, 0.0  ;;  %v9460_v42 = vld [vmem:[%s16407_s0 + $0x210] sm:$0xff]  }
  0xe1   :  { %7597 = vmatmul.mubr.msk.bf16.gmra.mrb[108].mxu0 %vm740_vm2, %v9439_v14 }
  0xe2   :  { %7600 = vmatprep.mubr.msk.bf16.mxu0 %vm740_vm2, %v9440_v16  ;;  %v1860_v56 = vmax.f32 %v1080_v45, 0.0  ;;  %v1862_v16 = vmax.f32 %v1088_v52, 0.0 }
  0xe4   :  { %v7494_v18 = vpop.f32.mrb[4].mxu0 }
  0xe5   :  { %v1092_v19 = vpop.f32.mrb[5].mxu0  ;;  %v1101_v57 = vadd.f32 %v7494_v18, %v9977_v30 }
  0xe6   :  { %v9951_v21 = vpop.f32.mrb[6].mxu0  ;;  %v1093_v9 = vadd.f32 %v9977_v30, %v1092_v19 }
  0xe7   :  { %v1095_v23 = vpop.f32.mrb[7].mxu0  ;;  %v1865_v17 = vmax.f32 %v1101_v57, 0.0  ;;  %v1104_v19 = vadd.f32 %v9951_v21, %v9977_v30 }
  0xe8   :  { %v1096_v12 = vadd.f32 %v9977_v30, %v1095_v23 }
  0xe9   :  { %7601 = vmatmul.mubr.msk.bf16.gmra.mrb[112].mxu0 %vm740_vm2, %v9441_v20  ;;  %v1866_v57 = vmax.f32 %v1104_v19, 0.0 }
  0xea   :  { %7604 = vmatprep.mubr.msk.bf16.mxu0 %vm740_vm2, %v9444_v22  ;;  %v1863_v22 = vmax.f32 %v1093_v9, 0.0  ;;  %v1864_v23 = vmax.f32 %v1096_v12, 0.0 }
  0xec   :  { %v9958_v24 = vpop.f32.mrb[8].mxu0 }
  0xed   :  { %v9960_v25 = vpop.f32.mrb[9].mxu0 }
  0xee   :  { %v9965_v27 = vpop.f32.mrb[10].mxu0  ;;  %v1109_v52 = vadd.f32 %v9977_v30, %v9960_v25 }
  0xef   :  { %v9970_v29 = vpop.f32.mrb[11].mxu0  ;;  %v1120_v12 = vadd.f32 %v9965_v27, %v9977_v30 }
  0xf1   :  { %7605 = vmatmul.mubr.msk.bf16.gmra.mrb[116].mxu0 %vm740_vm2, %v9445_v26 }
  0xf2   :  { %7608 = vmatprep.mubr.msk.bf16.mxu0 %vm740_vm2, %v9448_v28 }
  0xf4   :  { %v7502_v31 = vpop.f32.mrb[12].mxu0 }
  0xf5   :  { %v1133_v32 = vadd.f32 %v7502_v31, %v9977_v30  ;;  %v1124_v33 = vpop.f32.mrb[13].mxu0 }
  0xf6   :  { %v9984_v35 = vadd.f32 %v9977_v30, %v1124_v33  ;;  %v7503_v36 = vpop.f32.mrb[14].mxu0 }
  0xf7   :  { %v1873_v39 = vmax.f32 %v1133_v32, 0.0  ;;  %v1136_v40 = vadd.f32 %v7503_v36, %v9977_v30  ;;  %v1127_v41 = vpop.f32.mrb[15].mxu0 }
  0xf8   :  { %v1871_v43 = vmax.f32 %v9984_v35, 0.0  ;;  %v1128_v44 = vadd.f32 %v9977_v30, %v1127_v41 }
  0xf9   :  { %v1874_v46 = vmax.f32 %v1136_v40, 0.0  ;;  %7609 = vmatmul.mubr.msk.bf16.gmra.mrb[120].mxu0 %vm740_vm2, %v9449_v34  ;;  %v2072_v49 = vrot.slane %v1873_v39, 2 }
  0xfa   :  { %v1872_v47 = vmax.f32 %v1128_v44, 0.0  ;;  %7612 = vmatprep.mubr.msk.bf16.mxu0 %vm740_vm2, %v9452_v37  ;;  %v2069_v53 = vrot.slane %v1871_v43, 2  ;;  %v9457_v37 = vld [vmem:[%s16407_s0 + $0x208] sm:$0xff]  }
  0xfb   :  { %v2074_v50 = vrot.slane %v1874_v46, 2 }
  0xfc   :  { %v2070_v54 = vrot.slane %v1872_v47, 2  ;;  %v7506_v55 = vpop.f32.mrb[16].mxu0 }
  0xfd   :  { %v2075_v58 = vsel %vm2068_vm3, %v2072_v49, %v2074_v50  ;;  %v1149_v59 = vadd.f32 %v7506_v55, %v9977_v30  ;;  %v1140_v60 = vpop.f32.mrb[17].mxu0 }
  0xfe   :  { %v10006_v62 = vmax.f32 %v1861_v48, %v2075_v58  ;;  %v2071_v63 = vsel %vm2068_vm3, %v2069_v53, %v2070_v54  ;;  %v2073_v0 = vsel %vm2068_vm3, %v2070_v54, %v2072_v49  ;;  %v1141_v1 = vadd.f32 %v9977_v30, %v1140_v60  ;;  %v7507_v2 = vpop.f32.mrb[18].mxu0 }
  0xff   :  { %v10014_v4 = vmax.f32 %v1859_v51, %v2071_v63  ;;  %v10016_v5 = vmax.f32 %v1860_v56, %v2073_v0  ;;  %v1877_v6 = vmax.f32 %v1149_v59, 0.0  ;;  %v1152_v7 = vadd.f32 %v7507_v2, %v9977_v30  ;;  %v1143_v8 = vpop.f32.mrb[19].mxu0 }
 0x100   :  { %v1875_v10 = vmax.f32 %v1141_v1, 0.0  ;;  %v1144_v11 = vadd.f32 %v9977_v30, %v1143_v8  ;;  %v1117_v49 = vadd.f32 %v9958_v24, %v9977_v30  ;;  %v1112_v53 = vadd.f32 %v9977_v30, %v9970_v29 }
 0x101   :  { %v1878_v13 = vmax.f32 %v1152_v7, 0.0  ;;  %7613 = vmatmul.mubr.msk.bf16.gmra.mrb[124].mxu0 %vm740_vm2, %v9453_v61  ;;  %v2080_v18 = vrot.slane %v1877_v6, 2  ;;  %v1867_v0 = vmax.f32 %v1109_v52, 0.0 }
 0x102   :  { %v2076_v14 = vrot.slane %v1875_v10, 2  ;;  %v1876_v15 = vmax.f32 %v1144_v11, 0.0  ;;  %7616 = vmatprep.mubr.msk.bf16.mxu0 %vm740_vm2, %v9456_v3  ;;  %v1869_v24 = vmax.f32 %v1117_v49, 0.0  ;;  %v1868_v25 = vmax.f32 %v1112_v53, 0.0  ;;  %v9461_v3 = vld [vmem:[%s16407_s0 + $0x218] sm:$0xff]   ;;  %v9464_v11 = vld [vmem:[%s16407_s0 + $0x220] sm:$0xff]  }
 0x103   :  { %v2082_v20 = vrot.slane %v1878_v13, 2 }
 0x104   :  { %v2077_v26 = vsel %vm2068_vm3, %v2074_v50, %v2076_v14  ;;  %v2078_v28 = vrot.slane %v1876_v15, 2  ;;  %v7510_v31 = vpop.f32.mrb[20].mxu0 }
 0x105   :  { %v10027_v32 = vmax.f32 %v1862_v16, %v2077_v26  ;;  %v2083_v33 = vsel %vm2068_vm3, %v2080_v18, %v2082_v20  ;;  %v1165_v34 = vadd.f32 %v7510_v31, %v9977_v30  ;;  %v1156_v36 = vpop.f32.mrb[21].mxu0 }
 0x106   :  { %v10034_v38 = vmax.f32 %v1865_v17, %v2083_v33  ;;  %v2079_v21 = vsel %vm2068_vm3, %v2076_v14, %v2078_v28  ;;  %v2081_v39 = vsel %vm2068_vm3, %v2078_v28, %v2080_v18  ;;  %v1157_v40 = vadd.f32 %v9977_v30, %v1156_v36  ;;  %v7511_v41 = vpop.f32.mrb[22].mxu0  ;;  %v9465_v28 = vld [vmem:[%s16407_s0 + $0x228] sm:$0xff]  }
 0x107   :  { %v10042_v44 = vmax.f32 %v1863_v22, %v2079_v21  ;;  %v10044_v45 = vmax.f32 %v1864_v23, %v2081_v39  ;;  %v1881_v46 = vmax.f32 %v1165_v34, 0.0  ;;  %v1168_v47 = vadd.f32 %v7511_v41, %v9977_v30  ;;  %v1159_v48 = vpop.f32.mrb[23].mxu0  ;;  %v9468_v23 = vld [vmem:[%s16407_s0 + $0x230] sm:$0xff]   ;;  %v9469_v34 = vld [vmem:[%s16407_s0 + $0x238] sm:$0xff]  }
 0x108   :  { %v1879_v50 = vmax.f32 %v1157_v40, 0.0  ;;  %v1160_v51 = vadd.f32 %v9977_v30, %v1159_v48  ;;  %v1870_v18 = vmax.f32 %v1120_v12, 0.0  ;;  %v9474_v48 = vld [vmem:[%s16407_s0 + $0x250] sm:$0xff]  }
 0x109   :  { %v1882_v54 = vmax.f32 %v1168_v47, 0.0  ;;  %7617 = vmatmul.mubr.msk.bf16.gmra.mrb[128].mxu0 %vm740_vm2, %v9457_v37  ;;  %v2088_v58 = vrot.slane %v1881_v46, 2  ;;  %v9472_v37 = vld [vmem:[%s16407_s0 + $0x240] sm:$0xff]  }
 0x10a   :  { %v2084_v55 = vrot.slane %v1879_v50, 2  ;;  %v1880_v56 = vmax.f32 %v1160_v51, 0.0  ;;  %7620 = vmatprep.mubr.msk.bf16.mxu0 %vm740_vm2, %v9460_v42  ;;  %v9473_v42 = vld [vmem:[%s16407_s0 + $0x248] sm:$0xff]  }
 0x10b   :  { %v2090_v59 = vrot.slane %v1882_v54, 2 }
 0x10c   :  { %v2085_v60 = vsel %vm2068_vm3, %v2082_v20, %v2084_v55  ;;  %v2086_v61 = vrot.slane %v1880_v56, 2  ;;  %v7514_v63 = vpop.f32.mrb[24].mxu0 }
 0x10d   :  { %v10057_v1 = vmax.f32 %v1866_v57, %v2085_v60  ;;  %v2091_v29 = vsel %vm2068_vm3, %v2088_v58, %v2090_v59  ;;  %v1172_v2 = vpop.f32.mrb[25].mxu0  ;;  %v1181_v52 = vadd.f32 %v7514_v63, %v9977_v30 }
 0x10e   :  { %v10063_v6 = vmax.f32 %v1869_v24, %v2091_v29  ;;  %v2087_v7 = vsel %vm2068_vm3, %v2084_v55, %v2086_v61  ;;  %v2089_v8 = vsel %vm2068_vm3, %v2086_v61, %v2088_v58  ;;  %v10068_v9 = vadd.f32 %v9977_v30, %v1172_v2  ;;  %v7515_v10 = vpop.f32.mrb[26].mxu0 }
 0x10f   :  { %v10075_v13 = vmax.f32 %v1867_v0, %v2087_v7  ;;  %v10077_v14 = vmax.f32 %v1868_v25, %v2089_v8  ;;  %v1175_v15 = vpop.f32.mrb[27].mxu0  ;;  %v1885_v24 = vmax.f32 %v1181_v52, 0.0  ;;  %v1184_v60 = vadd.f32 %v7515_v10, %v9977_v30  ;;  %v9475_v8 = vld [vmem:[%s16407_s0 + $0x258] sm:$0xff]  }
 0x110   :  { %v1883_v16 = vmax.f32 %v10068_v9, 0.0  ;;  %v1176_v55 = vadd.f32 %v9977_v30, %v1175_v15 }
 0x111   :  { %7621 = vmatmul.mubr.msk.bf16.gmra.mrb[132].mxu0 %vm740_vm2, %v9461_v3 }
 0x112   :  { %v2092_v17 = vrot.slane %v1883_v16, 2  ;;  %7624 = vmatprep.mubr.msk.bf16.mxu0 %vm740_vm2, %v9464_v11  ;;  %v1884_v25 = vmax.f32 %v1176_v55, 0.0 }
 0x114   :  { %v2093_v20 = vsel %vm2068_vm3, %v2090_v59, %v2092_v17  ;;  %v10085_v22 = vmax.f32 %v1871_v43, %v2092_v17  ;;  %v7518_v27 = vpop.f32.mrb[28].mxu0  ;;  %v9476_v17 = vld [vmem:[%s16407_s0 + $0x260] sm:$0xff]  }
 0x115   :  { %v10087_v19 = vmax.f32 %v1870_v18, %v2093_v20  ;;  %v1188_v26 = vpop.f32.mrb[29].mxu0  ;;  %v1197_v29 = vadd.f32 %v7518_v27, %v9977_v30 }
 0x116   :  { %v10092_v31 = vpop.f32.mrb[30].mxu0 }
 0x117   :  { %v1191_v33 = vpop.f32.mrb[31].mxu0 }
 0x119   :  { %7625 = vmatmul.mubr.msk.bf16.gmra.mrb[136].mxu0 %vm740_vm2, %v9465_v28 }
 0x11a   :  { %7628 = vmatprep.mubr.msk.bf16.mxu0 %vm740_vm2, %v9468_v23 }
 0x11c   :  { %v10099_v35 = vpop.f32.mrb[32].mxu0 }
 0x11d   :  { %v10101_v43 = vpop.f32.mrb[33].mxu0 }
 0x11e   :  { %v10106_v36 = vpop.f32.mrb[34].mxu0 }
 0x11f   :  { %v10111_v21 = vpop.f32.mrb[35].mxu0 }
 0x121   :  { %7629 = vmatmul.mubr.msk.bf16.gmra.mrb[140].mxu0 %vm740_vm2, %v9469_v34  ;;  %v1189_v34 = vadd.f32 %v9977_v30, %v1188_v26  ;;  %v1200_v26 = vadd.f32 %v10092_v31, %v9977_v30 }
 0x122   :  { %7632 = vmatprep.mubr.msk.bf16.mxu0 %vm740_vm2, %v9472_v37 }
 0x124   :  { %v7526_v39 = vpop.f32.mrb[36].mxu0 }
 0x125   :  { %v1229_v40 = vadd.f32 %v7526_v39, %v9977_v30  ;;  %v1220_v41 = vpop.f32.mrb[37].mxu0 }
 0x126   :  { %v10120_v46 = vadd.f32 %v9977_v30, %v1220_v41  ;;  %v7527_v47 = vpop.f32.mrb[38].mxu0 }
 0x127   :  { %v1897_v49 = vmax.f32 %v1229_v40, 0.0  ;;  %v1232_v50 = vadd.f32 %v7527_v47, %v9977_v30  ;;  %v1223_v51 = vpop.f32.mrb[39].mxu0  ;;  %v1192_v40 = vadd.f32 %v9977_v30, %v1191_v33 }
 0x128   :  { %v1895_v53 = vmax.f32 %v10120_v46, 0.0  ;;  %v1224_v54 = vadd.f32 %v9977_v30, %v1223_v51  ;;  %v1887_v51 = vmax.f32 %v1189_v34, 0.0  ;;  %v1890_v34 = vmax.f32 %v1200_v26, 0.0 }
 0x129   :  { %v1898_v56 = vmax.f32 %v1232_v50, 0.0  ;;  %7633 = vmatmul.mubr.msk.bf16.gmra.mrb[144].mxu0 %vm740_vm2, %v9473_v42  ;;  %v2213_v58 = vrot.slane %v1897_v49, 2  ;;  %v1888_v33 = vmax.f32 %v1192_v40, 0.0 }
 0x12a   :  { %v1896_v57 = vmax.f32 %v1224_v54, 0.0  ;;  %7636 = vmatprep.mubr.msk.bf16.mxu0 %vm740_vm2, %v9474_v48  ;;  %v2210_v61 = vrot.slane %v1895_v53, 2  ;;  %v1889_v48 = vmax.f32 %v1197_v29, 0.0 }
 0x12b   :  { %v2215_v59 = vrot.slane %v1898_v56, 2 }
 0x12c   :  { %v2211_v63 = vrot.slane %v1896_v57, 2  ;;  %v7530_v0 = vpop.f32.mrb[40].mxu0 }
 0x12d   :  { %v2216_v2 = vsel %vm2068_vm3, %v2213_v58, %v2215_v59  ;;  %v1245_v3 = vadd.f32 %v7530_v0, %v9977_v30  ;;  %v1236_v7 = vpop.f32.mrb[41].mxu0 }
 0x12e   :  { %v10141_v9 = vmax.f32 %v1885_v24, %v2216_v2  ;;  %v2212_v10 = vsel %vm2068_vm3, %v2210_v61, %v2211_v63  ;;  %v2214_v11 = vsel %vm2068_vm3, %v2211_v63, %v2213_v58  ;;  %v1237_v12 = vadd.f32 %v9977_v30, %v1236_v7  ;;  %v7531_v15 = vpop.f32.mrb[42].mxu0 }
 0x12f   :  { %v10149_v18 = vmax.f32 %v1883_v16, %v2212_v10  ;;  %v10151_v20 = vmax.f32 %v1884_v25, %v2214_v11  ;;  %v1901_v27 = vmax.f32 %v1245_v3, 0.0  ;;  %v1248_v28 = vadd.f32 %v7531_v15, %v9977_v30  ;;  %v1239_v23 = vpop.f32.mrb[43].mxu0  ;;  %v9478_v25 = vld [vmem:[%s16407_s0 + $0x270] sm:$0xff]  }
 0x130   :  { %v1899_v37 = vmax.f32 %v1237_v12, 0.0  ;;  %v1240_v39 = vadd.f32 %v9977_v30, %v1239_v23  ;;  %v1886_v16 = vmax.f32 %v1184_v60, 0.0  ;;  %v9477_v60 = vld [vmem:[%s16407_s0 + $0x268] sm:$0xff]   ;;  %v1213_v10 = vadd.f32 %v10099_v35, %v9977_v30 }
 0x131   :  { %v1902_v41 = vmax.f32 %v1248_v28, 0.0  ;;  %7637 = vmatmul.mubr.msk.bf16.gmra.mrb[148].mxu0 %vm740_vm2, %v9475_v8  ;;  %v2221_v49 = vrot.slane %v1901_v27, 2  ;;  %v1205_v15 = vadd.f32 %v9977_v30, %v10101_v43 }
 0x132   :  { %v2217_v42 = vrot.slane %v1899_v37, 2  ;;  %v1900_v47 = vmax.f32 %v1240_v39, 0.0  ;;  %7640 = vmatprep.mubr.msk.bf16.mxu0 %vm740_vm2, %v9476_v17  ;;  %v1208_v17 = vadd.f32 %v9977_v30, %v10111_v21  ;;  %v1893_v35 = vmax.f32 %v1213_v10, 0.0 }
 0x133   :  { %v2223_v50 = vrot.slane %v1902_v41, 2 }
 0x134   :  { %v2218_v52 = vsel %vm2068_vm3, %v2215_v59, %v2217_v42  ;;  %v2219_v54 = vrot.slane %v1900_v47, 2  ;;  %v7534_v55 = vpop.f32.mrb[44].mxu0  ;;  %v1891_v47 = vmax.f32 %v1205_v15, 0.0  ;;  %v1892_v43 = vmax.f32 %v1208_v17, 0.0 }
 0x135   :  { %v10162_v56 = vmax.f32 %v1886_v16, %v2218_v52  ;;  %v2224_v57 = vsel %vm2068_vm3, %v2221_v49, %v2223_v50  ;;  %v1261_v58 = vadd.f32 %v7534_v55, %v9977_v30  ;;  %v1252_v24 = vpop.f32.mrb[45].mxu0  ;;  %v9480_v55 = vld [vmem:[%s16407_s0 + $0x280] sm:$0xff]  }
 0x136   :  { %v10169_v61 = vmax.f32 %v1889_v48, %v2224_v57  ;;  %v2220_v31 = vsel %vm2068_vm3, %v2217_v42, %v2219_v54  ;;  %v2222_v59 = vsel %vm2068_vm3, %v2219_v54, %v2221_v49  ;;  %v1253_v63 = vadd.f32 %v9977_v30, %v1252_v24  ;;  %v7535_v0 = vpop.f32.mrb[46].mxu0  ;;  %v9479_v49 = vld [vmem:[%s16407_s0 + $0x278] sm:$0xff]  }
 0x137   :  { %v10177_v29 = vmax.f32 %v1887_v51, %v2220_v31  ;;  %v10179_v2 = vmax.f32 %v1888_v33, %v2222_v59  ;;  %v1905_v3 = vmax.f32 %v1261_v58, 0.0  ;;  %v1264_v7 = vadd.f32 %v7535_v0, %v9977_v30  ;;  %v1255_v8 = vpop.f32.mrb[47].mxu0 }
 0x138   :  { %v1903_v11 = vmax.f32 %v1253_v63, 0.0  ;;  %v1256_v12 = vadd.f32 %v9977_v30, %v1255_v8  ;;  %v1216_v33 = vadd.f32 %v10106_v36, %v9977_v30 }
 0x139   :  { %v1906_v27 = vmax.f32 %v1264_v7, 0.0  ;;  %7641 = vmatmul.mubr.msk.bf16.gmra.mrb[152].mxu0 %vm740_vm2, %v9477_v60  ;;  %v2229_v37 = vrot.slane %v1905_v3, 2  ;;  %v9481_v7 = vld [vmem:[%s16407_s0 + $0x288] sm:$0xff]   ;;  %s9567_s0 = smov 24  }
 0x13a   :  { %v2225_v28 = vrot.slane %v1903_v11, 2  ;;  %v1904_v23 = vmax.f32 %v1256_v12, 0.0  ;;  %7644 = vmatprep.mubr.msk.bf16.mxu0 %vm740_vm2, %v9478_v25  ;;  %v1894_v59 = vmax.f32 %v1216_v33, 0.0 }
 0x13b   :  { %v2231_v39 = vrot.slane %v1906_v27, 2 }
 0x13c   :  { %v2226_v40 = vsel %vm2068_vm3, %v2223_v50, %v2225_v28  ;;  %v2227_v41 = vrot.slane %v1904_v23, 2  ;;  %v7538_v42 = vpop.f32.mrb[48].mxu0 }
 0x13d   :  { %v10192_v16 = vmax.f32 %v1890_v34, %v2226_v40  ;;  %v2232_v21 = vsel %vm2068_vm3, %v2229_v37, %v2231_v39  ;;  %v1268_v48 = vpop.f32.mrb[49].mxu0  ;;  %v1277_v23 = vadd.f32 %v7538_v42, %v9977_v30 }
 0x13e   :  { %v10198_v51 = vmax.f32 %v1893_v35, %v2232_v21  ;;  %v2228_v26 = vsel %vm2068_vm3, %v2225_v28, %v2227_v41  ;;  %v2230_v52 = vsel %vm2068_vm3, %v2227_v41, %v2229_v37  ;;  %v1269_v50 = vadd.f32 %v9977_v30, %v1268_v48  ;;  %v7539_v54 = vpop.f32.mrb[50].mxu0 }
 0x13f   :  { %v10208_v57 = vmax.f32 %v1891_v47, %v2228_v26  ;;  %v10210_v58 = vmax.f32 %v1892_v43, %v2230_v52  ;;  %v1271_v24 = vpop.f32.mrb[51].mxu0  ;;  %v1909_v43 = vmax.f32 %v1277_v23, 0.0 }
 0x140   :  { %v1907_v60 = vmax.f32 %v1269_v50, 0.0  ;;  %v1272_v35 = vadd.f32 %v9977_v30, %v1271_v24 }
 0x141   :  { %7645 = vmatmul.mubr.msk.bf16.gmra.mrb[156].mxu0 %vm740_vm2, %v9479_v49  ;;  %v1280_v49 = vadd.f32 %v7539_v54, %v9977_v30 }
 0x142   :  { %v2233_v31 = vrot.slane %v1907_v60, 2  ;;  %7648 = vmatprep.mubr.msk.bf16.mxu0 %vm740_vm2, %v9480_v55  ;;  %v1908_v26 = vmax.f32 %v1272_v35, 0.0 }
 0x144   :  { %v2234_v63 = vsel %vm2068_vm3, %v2231_v39, %v2233_v31  ;;  %v10217_v0 = vmax.f32 %v1895_v53, %v2233_v31  ;;  %v7542_v25 = vpop.f32.mrb[52].mxu0 }
 0x145   :  { %v10219_v36 = vmax.f32 %v1894_v59, %v2234_v63  ;;  %v1284_v3 = vpop.f32.mrb[53].mxu0  ;;  %v1293_v42 = vadd.f32 %v7542_v25, %v9977_v30 }
 0x146   :  { %17033 = vst [vmem:[#allocation5_spill] sm:$0xff] %v10217_v0  ;;  %v7543_v8 = vpop.f32.mrb[54].mxu0  ;;  %v1285_v55 = vadd.f32 %v9977_v30, %v1284_v3 }
 0x147   :  { %17034 = vst [vmem:[#allocation6_spill] sm:$0xff] %v10219_v36  ;;  %v1287_v10 = vpop.f32.mrb[55].mxu0  ;;  %v10243_v33 = vadd.f32 %v7543_v8, %v9977_v30 }
 0x148   :  { %v1288_v59 = vadd.f32 %v9977_v30, %v1287_v10 }
 0x149   :  { %7649 = vmatmul.mubr.msk.bf16.gmra.mrb[160].mxu0 %vm740_vm2, %v9481_v7  ;;  %vm3483_vm2 = vcmask 588800  }
 0x14c   :  { %v7546_v11 = vpop.f32.mrb[56].mxu0 }
 0x14d   :  { %v1300_v12 = vpop.f32.mrb[57].mxu0  ;;  %v10253_v3 = vadd.f32 %v7546_v11, %v9977_v30  ;;  %v1911_v11 = vmax.f32 %v1285_v55, 0.0 }
 0x14e   :  { %v10225_v15 = vpop.f32.mrb[58].mxu0 }
 0x14f   :  { %v1303_v17 = vpop.f32.mrb[59].mxu0 }
 0x154   :  { %v7550_v46 = vpop.f32.mrb[60].mxu0 }
 0x155   :  { %v1325_v53 = vadd.f32 %v7550_v46, %v9977_v30  ;;  %v10228_v27 = vpop.f32.mrb[61].mxu0  ;;  %v10250_v46 = vpop.f32.mrb[0].mxu1 }
 0x156   :  { %v7551_v28 = vpop.f32.mrb[62].mxu0  ;;  %17035 = vst [vmem:[#allocation7_spill] sm:$0xff] %v10250_v46 }
 0x157   :  { %v1921_v34 = vmax.f32 %v1325_v53, 0.0  ;;  %v1328_v37 = vadd.f32 %v7551_v28, %v9977_v30  ;;  %v1319_v39 = vpop.f32.mrb[63].mxu0 }
 0x158   :  { %v10234_v40 = vadd.f32 %v9977_v30, %v1319_v39 }
 0x159   :  { %v1922_v41 = vmax.f32 %v1328_v37, 0.0  ;;  %v2134_v21 = vrot.slane %v1921_v34, 2  ;;  %v10256_v34 = vpop.f32.mrb[1].mxu1  ;;  %v1910_v37 = vmax.f32 %v1280_v49, 0.0  ;;  %v1912_v49 = vmax.f32 %v1288_v59, 0.0 }
 0x15a   :  { %v16419_v47 = vmax.f32 %v10234_v40, 0.0  ;;  %17036 = vst [vmem:[#allocation8_spill] sm:$0xff] %v10256_v34 }
 0x15b   :  { %v2136_v48 = vrot.slane %v1922_v41, 2  ;;  %v10262_v41 = vpop.f32.mrb[2].mxu1 }
 0x15c   :  { %v2133_v52 = vrot.slane %v16419_v47, 2  ;;  %v7554_v50 = vpop.f32.mrb[64].mxu0  ;;  %17038 = vst [vmem:[#allocation10_spill] sm:$0xff] %v10262_v41 }
 0x15d   :  { %v2137_v24 = vsel %vm2068_vm3, %v2134_v21, %v2136_v48  ;;  %v1341_v60 = vadd.f32 %v7554_v50, %v9977_v30  ;;  %v1332_v31 = vpop.f32.mrb[65].mxu0  ;;  %v1914_v50 = vmax.f32 %v10243_v33, 0.0 }
 0x15e   :  { %v2172_v54 = vmax.f32 %v1909_v43, %v2137_v24  ;;  %v2135_v63 = vsel %vm2068_vm3, %v2133_v52, %v2134_v21  ;;  %v1333_v25 = vadd.f32 %v9977_v30, %v1332_v31  ;;  %v7555_v7 = vpop.f32.mrb[66].mxu0  ;;  %v1913_v43 = vmax.f32 %v1293_v42, 0.0  ;;  %v10267_v52 = vpop.f32.mrb[3].mxu1 }
 0x15f   :  { %v2171_v8 = vmax.f32 %v1908_v26, %v2135_v63  ;;  %v1925_v53 = vmax.f32 %v1341_v60, 0.0  ;;  %v1344_v28 = vadd.f32 %v7555_v7, %v9977_v30  ;;  %v1335_v23 = vpop.f32.mrb[67].mxu0  ;;  %17040 = vst [vmem:[#allocation12_spill] sm:$0xff] %v10267_v52  ;;  %v10270_v60 = vpop.f32.mrb[4].mxu1 }
 0x160   :  { %v10259_v10 = vmax.f32 %v10016_v5, %v2172_v54  ;;  %v1923_v39 = vmax.f32 %v1333_v25, 0.0  ;;  %v1336_v35 = vadd.f32 %v9977_v30, %v1335_v23  ;;  %17041 = vst [vmem:[#allocation13_spill] sm:$0xff] %v10270_v60  ;;  %v10274_v54 = vadd.f32 %v9977_v30, %v1300_v12  ;;  %v10276_v63 = vpop.f32.mrb[5].mxu1 }
 0x161   :  { %v10265_v21 = vmax.f32 %v10014_v4, %v2171_v8  ;;  %v1926_v26 = vmax.f32 %v1344_v28, 0.0  ;;  %v2142_v42 = vrot.slane %v1925_v53, 2  ;;  %17042 = vst [vmem:[#allocation14_spill] sm:$0xff] %v10276_v63  ;;  %v10279_v4 = vadd.f32 %v9977_v30, %v1303_v17  ;;  %v10285_v8 = vpop.f32.mrb[6].mxu1 }
 0x162   :  { %17037 = vst [vmem:[#allocation9_spill] sm:$0xff] %v10259_v10  ;;  %v2138_v24 = vrot.slane %v1923_v39, 2  ;;  %v1924_v5 = vmax.f32 %v1336_v35, 0.0  ;;  %v10283_v7 = vrot.slane %v10259_v10, 4  ;;  %17044 = vst [vmem:[#allocation16_spill] sm:$0xff] %v10285_v8  ;;  %v10290_v35 = vpop.f32.mrb[7].mxu1 }
 0x163   :  { %17039 = vst [vmem:[#allocation11_spill] sm:$0xff] %v10265_v21  ;;  %v2144_v55 = vrot.slane %v1926_v26, 2  ;;  %v2718_v39 = vrot.slane %v10265_v21, 4  ;;  %17045 = vst [vmem:[#allocation17_spill] sm:$0xff] %v10290_v35  ;;  %v10295_v31 = vpop.f32.mrb[8].mxu1 }
 0x164   :  { %v2139_v25 = vsel %vm2068_vm3, %v2136_v48, %v2138_v24  ;;  %v2140_v33 = vrot.slane %v1924_v5, 2  ;;  %v7558_v59 = vpop.f32.mrb[68].mxu0  ;;  %17043 = vst [vmem:[#allocation15_spill] sm:$0xff] %v10283_v7  ;;  %17046 = vst [vmem:[#allocation18_spill] sm:$0xff] %v10295_v31  ;;  %v10300_v52 = vpop.f32.mrb[9].mxu1 }
 0x165   :  { %v2173_v28 = vmax.f32 %v1910_v37, %v2139_v25  ;;  %v2145_v12 = vsel %vm2068_vm3, %v2142_v42, %v2144_v55  ;;  %v1357_v53 = vadd.f32 %v7558_v59, %v9977_v30  ;;  %v1348_v23 = vpop.f32.mrb[69].mxu0  ;;  %17048 = vst [vmem:[#allocation20_spill] sm:$0xff] %v10300_v52 }
 0x166   :  { %v2176_v17 = vmax.f32 %v1913_v43, %v2145_v12  ;;  %v2141_v48 = vsel %vm2068_vm3, %v2138_v24, %v2140_v33  ;;  %v2143_v26 = vsel %vm2068_vm3, %v2140_v33, %v2142_v42  ;;  %v1349_v5 = vadd.f32 %v9977_v30, %v1348_v23  ;;  %v7559_v47 = vpop.f32.mrb[70].mxu0  ;;  %v10307_v12 = vpop.f32.mrb[10].mxu1 }
 0x167   :  { %v10298_v37 = vmax.f32 %v10006_v62, %v2173_v28  ;;  %v2174_v25 = vmax.f32 %v1911_v11, %v2141_v48  ;;  %v2175_v59 = vmax.f32 %v1912_v49, %v2143_v26  ;;  %v1929_v60 = vmax.f32 %v1357_v53, 0.0  ;;  %v1351_v63 = vpop.f32.mrb[71].mxu0  ;;  %17049 = vst [vmem:[#allocation21_spill] sm:$0xff] %v10307_v12 }
 0x168   :  { %v10303_v43 = vmax.f32 %v10044_v45, %v2176_v17  ;;  %v1927_v24 = vmax.f32 %v1349_v5, 0.0  ;;  %v1360_v42 = vadd.f32 %v7559_v47, %v9977_v30  ;;  %v1352_v33 = vadd.f32 %v9977_v30, %v1351_v63  ;;  %v10320_v45 = vpop.f32.mrb[11].mxu1 }
 0x169   :  { %17047 = vst [vmem:[#allocation19_spill] sm:$0xff] %v10298_v37  ;;  %v1915_v23 = vmax.f32 %v10274_v54, 0.0  ;;  %v10312_v62 = vadd.f32 %v10225_v15, %v9977_v30  ;;  %v10315_v11 = vmax.f32 %v10027_v32, %v2174_v25  ;;  %v10318_v49 = vmax.f32 %v10042_v44, %v2175_v59  ;;  %17052 = vst [vmem:[#allocation24_spill] sm:$0xff] %v10320_v45  ;;  %v10322_v17 = vpop.f32.mrb[12].mxu1 }
 0x16a   :  { %v2150_v28 = vrot.slane %v1929_v60, 2  ;;  %v2146_v47 = vrot.slane %v1927_v24, 2  ;;  %v1930_v53 = vmax.f32 %v1360_v42, 0.0  ;;  %v1928_v63 = vmax.f32 %v1352_v33, 0.0  ;;  %17053 = vst [vmem:[#allocation25_spill] sm:$0xff] %v10322_v17  ;;  %v10337_v60 = vpop.f32.mrb[13].mxu1 }
 0x16b   :  { %17050 = vst [vmem:[#allocation22_spill] sm:$0xff] %v10315_v11  ;;  %17051 = vst [vmem:[#allocation23_spill] sm:$0xff] %v10318_v49  ;;  %v1916_v54 = vmax.f32 %v10279_v4, 0.0  ;;  %v10328_v15 = vsel %vm17008_vm4, %v10283_v7, %v10298_v37  ;;  %v10332_v32 = vsel %vm17009_vm0, %v2718_v39, %v10283_v7  ;;  %v10335_v44 = vrot.slane %v10315_v11, 2  ;;  %v10350_v7 = vpop.f32.mrb[14].mxu1 }
 0x16c   :  { %17054 = vst [vmem:[#allocation26_spill] sm:$0xff] %v10332_v32  ;;  %17055 = vst [vmem:[#allocation27_spill] sm:$0xff] %v10337_v60  ;;  %v2147_v48 = vsel %vm2068_vm3, %v2144_v55, %v2146_v47  ;;  %v2152_v26 = vrot.slane %v1930_v53, 2  ;;  %v2148_v5 = vrot.slane %v1928_v63, 2  ;;  %v10340_v25 = vpop.f32.mrb[72].mxu0  ;;  %v7748_v4 = vpack.i.bf16 %v10328_v15, %v10332_v32 }
 0x16d   :  { %v1317_v59 = vadd.f32 %v9977_v30, %v10228_v27  ;;  %v2177_v24 = vmax.f32 %v1914_v50, %v2147_v48  ;;  %v1364_v39 = vpop.f32.mrb[73].mxu0  ;;  %v2885_v42 = vrot.slane %v10298_v37, 2  ;;  %v10348_v33 = vrot.slane %v10318_v49, 6  ;;  %17056 = vst [vmem:[#allocation28_spill] sm:$0xff] %v10350_v7  ;;  %v10359_v48 = vpop.f32.mrb[15].mxu1 }
 0x16e   :  { %v2153_v55 = vsel %vm2068_vm3, %v2150_v28, %v2152_v26  ;;  %v2149_v53 = vsel %vm2068_vm3, %v2146_v47, %v2148_v5  ;;  %v2151_v63 = vsel %vm2068_vm3, %v2148_v5, %v2150_v28  ;;  %7749 = vrot.lane.b32.xlu0 %v7748_v4, %s9567_s0  ;;  %v1365_v27 = vadd.f32 %v9977_v30, %v1364_v39  ;;  %v10357_v50 = vpop.f32.mrb[74].mxu0  ;;  %v10366_v12 = vpop.f32.mrb[16].mxu1 }
 0x16f   :  { %17057 = vst [vmem:[#allocation29_spill] sm:$0xff] %v10359_v48  ;;  %v10362_v35 = vmax.f32 %v10034_v38, %v2177_v24  ;;  %v17058_v7 = vmax.f32 %v10253_v3, 0.0  ;;  %v2178_v17 = vmax.f32 %v1915_v23, %v2149_v53  ;;  %v2179_v45 = vmax.f32 %v1916_v54, %v2151_v63  ;;  %v1367_v47 = vpop.f32.mrb[75].mxu0  ;;  %17059 = vst [vmem:[#allocation30_spill] sm:$0xff] %v10366_v12  ;;  %v10376_v38 = vpop.f32.mrb[17].mxu1 }
 0x170   :  { %v1931_v28 = vmax.f32 %v1365_v27, 0.0  ;;  %v10369_v5 = vadd.f32 %v9977_v30, %v1367_v47  ;;  %v10373_v4 = vsel %vm2068_vm3, %v2885_v42, %v10335_v44  ;;  %v2664_v39 = vrot.slane %v10259_v10, 2  ;;  %17061 = vst [vmem:[#allocation32_spill] sm:$0xff] %v10376_v38  ;;  %v10388_v24 = vpop.f32.mrb[18].mxu1 }
 0x171   :  { %v2180_v60 = vmax.f32 %v17058_v7, %v2153_v55  ;;  %17060 = vst [vmem:[#allocation31_spill] sm:$0xff] %v10373_v4  ;;  %v10382_v7 = vmax.f32 %v10057_v1, %v2178_v17  ;;  %v10385_v23 = vmax.f32 %v10075_v13, %v2179_v45  ;;  %v2663_v54 = vrot.slane %v10265_v21, 2  ;;  %17065 = vst [vmem:[#allocation36_spill] sm:$0xff] %v10388_v24 }
 0x172   :  { %v2154_v55 = vrot.slane %v1931_v28, 2  ;;  %v16423_v42 = vmax.f32 %v10369_v5, 0.0  ;;  %v10394_v53 = vsel %vm17008_vm4, %v10335_v44, %v10348_v33  ;;  %v1918_v1 = vmax.f32 %v10312_v62, 0.0 }
 0x173   :  { %v10379_v3 = vmax.f32 %v10077_v14, %v2180_v60  ;;  %17063 = vst [vmem:[#allocation34_spill] sm:$0xff] %v10382_v7  ;;  %17064 = vst [vmem:[#allocation35_spill] sm:$0xff] %v10385_v23  ;;  %v10396_v14 = vpop.f32.mrb[19].mxu1  ;;  %v10401_v13 = vpack.i.bf16 %v10394_v53, %v10373_v4  ;;  %v1919_v17 = vmax.f32 %v1317_v59, 0.0  ;;  %v10406_v60 = vrot.slane %v10303_v43, 4 }
 0x174   :  { %17066 = vst [vmem:[#allocation37_spill] sm:$0xff] %v10394_v53  ;;  %17067 = vst [vmem:[#allocation38_spill] sm:$0xff] %v10396_v14  ;;  %v10403_v45 = vpop.f32.mrb[20].mxu1  ;;  %v2155_v63 = vsel %vm2068_vm3, %v2152_v26, %v2154_v55  ;;  %v2156_v27 = vrot.slane %v16423_v42, 2  ;;  %v7566_v47 = vpop.f32.mrb[76].mxu0  ;;  %v10416_v62 = vsel %vm2068_vm3, %v2663_v54, %v2664_v39  ;;  %v2668_v59 = vrot.slane %v10298_v37, 6 }
 0x175   :  { %17062 = vst [vmem:[#allocation33_spill] sm:$0xff] %v10379_v3  ;;  %17068 = vst [vmem:[#allocation39_spill] sm:$0xff] %v10401_v13  ;;  %v10411_v28 = vpop.f32.mrb[21].mxu1  ;;  %v2181_v21 = vmax.f32 %v1918_v1, %v2155_v63  ;;  %7759 = vrot.lane.b32.xlu1 %v10401_v13, %s9568_s17  ;;  %v10420_v14 = vpop.f32.mrb[77].mxu0  ;;  %v17073_v38 = vmax.f32 %v10234_v40, 0.0  ;;  %v10428_v63 = vrot.slane %v10318_v49, 2 }
 0x176   :  { %17069 = vst [vmem:[#allocation40_spill] sm:$0xff] %v10403_v45  ;;  %17070 = vst [vmem:[#allocation41_spill] sm:$0xff] %v10406_v60  ;;  %v10422_v26 = vpop.f32.mrb[22].mxu1  ;;  %v2157_v42 = vsel %vm2068_vm3, %v2154_v55, %v2156_v27  ;;  %v10431_v12 = vrot.slane %v10303_v43, 6  ;;  %v7567_v54 = vpop.f32.mrb[78].mxu0  ;;  %v17076_v55 = vrot.slane %v10315_v11, 6 }
 0x177   :  { %17071 = vst [vmem:[#allocation42_spill] sm:$0xff] %v10411_v28  ;;  %17072 = vst [vmem:[#allocation43_spill] sm:$0xff] %v10422_v26  ;;  %v2183_v1 = vmax.f32 %v17073_v38, %v2156_v27  ;;  %v10433_v48 = vpop.f32.mrb[23].mxu1  ;;  %v10436_v4 = vmax.f32 %v10063_v6, %v2181_v21  ;;  %v2182_v28 = vmax.f32 %v1919_v17, %v2157_v42  ;;  %v1383_v38 = vpop.f32.mrb[79].mxu0  ;;  %v10468_v17 = vrot.slane %v10318_v49, 4 }
 0x178   :  { %17074 = vst [vmem:[#allocation44_spill] sm:$0xff] %v10433_v48  ;;  %v10439_v26 = vsel %vm17008_vm4, %v2664_v39, %v2668_v59  ;;  %v2670_v40 = vsel %vm17008_vm4, %v2668_v59, %v17076_v55  ;;  %v10444_v27 = vpop.f32.mrb[24].mxu1  ;;  %v2676_v6 = vsel %vm2068_vm3, %v10335_v44, %v10428_v63  ;;  %v10457_v21 = vsel %vm2068_vm3, %v10428_v63, %v10431_v12 }
 0x179   :  { %17075 = vst [vmem:[#allocation45_spill] sm:$0xff] %v10436_v4  ;;  %17077 = vst [vmem:[#allocation46_spill] sm:$0xff] %v10444_v27  ;;  %v10447_v45 = vmax.f32 %v10085_v22, %v2183_v1  ;;  %v7753_v48 = vpack.i.bf16 %v10439_v26, %v10416_v62  ;;  %v10459_v39 = vpop.f32.mrb[25].mxu1  ;;  %v10462_v42 = vmax.f32 %v10087_v19, %v2182_v28  ;;  %v2630_v1 = vrot.slane %v10362_v35, 4 }
 0x17a   :  { %17079 = vst [vmem:[#allocation48_spill] sm:$0xff] %v10457_v21  ;;  %17080 = vst [vmem:[#allocation49_spill] sm:$0xff] %v10459_v39  ;;  %v10465_v22 = vsel %vm17009_vm0, %v2670_v40, %v2676_v6  ;;  %v2864_v55 = vrot.slane %v10315_v11, 4  ;;  %v2722_v19 = vsel %vm17009_vm0, %v10468_v17, %v10406_v60  ;;  %v10481_v28 = vsel %vm17009_vm0, %v10315_v11, %v10468_v17 }
 0x17b   :  { %17078 = vst [vmem:[#allocation47_spill] sm:$0xff] %v10447_v45  ;;  %17081 = vst [vmem:[#allocation50_spill] sm:$0xff] %v10462_v42  ;;  %7754 = vrot.lane.b32.xlu0 %v7753_v48, %s9569_s18  ;;  %v7773_v44 = vpack.i.bf16 %v10457_v21, %v10465_v22  ;;  %v10486_v40 = vsel %vm2068_vm3, %v2722_v19, %v10303_v43  ;;  %v10490_v27 = vadd.f32 %v10340_v25, %v9977_v30  ;;  %v10503_v19 = vpop.f32.mrb[26].mxu1 }
 0x17c   :  { %17082 = vst [vmem:[#allocation51_spill] sm:$0xff] %v10465_v22  ;;  %17083 = vst [vmem:[#allocation52_spill] sm:$0xff] %v10481_v28  ;;  %v7570_v48 = vpop.f32.mrb[80].mxu0  ;;  %v10494_v39 = vadd.f32 %v10357_v50, %v9977_v30  ;;  %v2865_v52 = vsel %vm17009_vm0, %v2864_v55, %v10468_v17  ;;  %v10507_v24 = vsel %vm17009_vm0, %v10406_v60, %v2630_v1  ;;  %v10518_v31 = vpop.f32.mrb[27].mxu1  ;;  %v2841_v60 = vrot.slane %v10259_v10, 6 }
 0x17d   :  { %7774 = vrot.lane.b32.xlu1 %v7773_v44, %s9569_s18  ;;  %17084 = vst [vmem:[#allocation53_spill] sm:$0xff] %v10486_v40  ;;  %v10501_v44 = vsel %vm17008_vm4, %v10468_v17, %v10303_v43  ;;  %v1396_v21 = vpop.f32.mrb[81].mxu0  ;;  %17085 = vst [vmem:[#allocation54_spill] sm:$0xff] %v10503_v19  ;;  %v7778_v25 = vpack.i.bf16 %v10486_v40, %v10481_v28  ;;  %v10514_v50 = vadd.f32 %v7566_v47, %v9977_v30 }
 0x17e   :  { %17086 = vst [vmem:[#allocation55_spill] sm:$0xff] %v10507_v24  ;;  %v10516_v55 = vpop.f32.mrb[82].mxu0  ;;  %17087 = vst [vmem:[#allocation56_spill] sm:$0xff] %v10518_v31  ;;  %v10522_v19 = vsel %vm17009_vm0, %v2630_v1, %v10382_v7  ;;  %v10526_v8 = vsel %vm17008_vm4, %v2668_v59, %v2676_v6  ;;  %v7768_v47 = vpack.i.bf16 %v10501_v44, %v2865_v52  ;;  %v10542_v6 = vpop.f32.mrb[28].mxu1 }
 0x17f   :  { %7764 = vrot.lane.b32.xlu0 %v10401_v13, %s9570_s19  ;;  %v10528_v13 = vpop.f32.mrb[83].mxu0  ;;  %v10536_v31 = vsel %vm17008_vm4, %v10303_v43, %v10507_v24  ;;  %v10540_v10 = vsel %vm17008_vm4, %v2841_v60, %v2668_v59  ;;  %17090 = vst [vmem:[#allocation59_spill] sm:$0xff] %v10542_v6  ;;  %v7808_v41 = vpack.i.bf16 %v10522_v19, %v10328_v15  ;;  %v10551_v24 = vrot.slane %v10385_v23, 4  ;;  %v10553_v1 = vpop.f32.mrb[29].mxu1 }
 0x180   :  { %17088 = vst [vmem:[#allocation57_spill] sm:$0xff] %v10536_v31  ;;  %17089 = vst [vmem:[#allocation58_spill] sm:$0xff] %v10540_v10  ;;  %v7783_v22 = vpack.i.bf16 %v10526_v8, %v10540_v10  ;;  %v10557_v60 = vadd.f32 %v9977_v30, %v10420_v14  ;;  %v10560_v59 = vadd.f32 %v7567_v54, %v9977_v30  ;;  %v2680_v15 = vrot.slane %v10362_v35, 6  ;;  %v10587_v28 = vpop.f32.mrb[30].mxu1 }
 0x181   :  { %7779 = vrot.lane.b32.xlu1 %v7778_v25, %s9567_s0  ;;  %17091 = vst [vmem:[#allocation60_spill] sm:$0xff] %v10551_v24  ;;  %17092 = vst [vmem:[#allocation61_spill] sm:$0xff] %v10553_v1  ;;  %v10566_v25 = vadd.f32 %v9977_v30, %v1383_v38  ;;  %v10569_v6 = vrot.slane %v10382_v7, 4  ;;  %v2892_v14 = vrot.slane %v10303_v43, 2  ;;  %v10573_v1 = vrot.slane %v10362_v35, 2  ;;  %v10655_v53 = vpop.f32.mrb[31].mxu1 }
 0x182   :  { %v10576_v54 = vadd.f32 %v7570_v48, %v9977_v30  ;;  %v10585_v38 = vsel %vm17008_vm4, %v10431_v12, %v2680_v15  ;;  %17094 = vst [vmem:[#allocation63_spill] sm:$0xff] %v10587_v28  ;;  %v7813_v45 = vpack.i.bf16 %v2865_v52, %v10551_v24  ;;  %v10594_v42 = vsel %vm17009_vm0, %v10428_v63, %v10431_v12 }
 0x183   :  { %7769 = vrot.lane.b32.xlu0 %v7768_v47, %s9571_s20  ;;  %v2868_v47 = vsel %vm17008_vm4, %v10315_v11, %v2865_v52  ;;  %17093 = vst [vmem:[#allocation62_spill] sm:$0xff] %v10585_v38  ;;  %v2894_v15 = vsel %vm2068_vm3, %v2892_v14, %v10573_v1  ;;  %v10608_v52 = vld [vmem:[%s16409_s2] ss:$0 sm:$0xff]  ;;  %v10626_v28 = vsel %vm17009_vm0, %v10362_v35, %v10569_v6  ;;  %17099 = vst [vmem:[#allocation66_spill] sm:$0xff] %v10655_v53 }
 0x184   :  { %v7574_v10 = vpop.f32.mrb[84].mxu0  ;;  %v10618_v14 = vadd.f32 %v10608_v52, %v1396_v21  ;;  %17097 = vst [vmem:[#allocation65_spill] sm:$0xff] %v10626_v28  ;;  %v2869_v34 = vsel %vm17009_vm0, %v10468_v17, %v10303_v43 }
 0x185   :  { %7809 = vrot.lane.b32.xlu1 %v7808_v41, %s9572_s21  ;;  %v1421_v41 = vadd.f32 %v7574_v10, %v9977_v30  ;;  %v10581_v40 = vpop.f32.mrb[85].mxu0  ;;  %v17095_v30 = vrot.slane %v10382_v7, 2  ;;  %v7793_v46 = vpack.i.bf16 %v2869_v34, %v2868_v47 }
 0x186   :  { %v7575_v48 = vpop.f32.mrb[86].mxu0 }
 0x187   :  { %7784 = vrot.lane.b32.xlu0 %v7783_v22, %s9573_s22  ;;  %v10600_v10 = vsel %vm2068_vm3, %v10585_v38, %v17095_v30  ;;  %v1945_v22 = vmax.f32 %v1421_v41, 0.0  ;;  %v1424_v63 = vadd.f32 %v10608_v52, %v7575_v48  ;;  %v1415_v4 = vpop.f32.mrb[87].mxu0  ;;  %v10615_v30 = vpack.i.bf16 %v2868_v47, %v10298_v37 }
 0x188   :  { %v10621_v41 = vadd.f32 %v10608_v52, %v1415_v4  ;;  %v7818_v4 = vpack.i.bf16 %v10522_v19, %v10536_v31  ;;  %v17100_v47 = vmax.f32 %v10490_v27, 0.0  ;;  %v10680_v27 = vsel %vm17008_vm4, %v10348_v33, %v2894_v15 }
 0x189   :  { %7814 = vrot.lane.b32.xlu1 %v7813_v45, %s9567_s0  ;;  %17096 = vst [vmem:[#allocation64_spill] sm:$0xff] %v10615_v30  ;;  %v2275_v48 = vrot.slane %v1945_v22, 2  ;;  %v1946_v45 = vmax.f32 %v1424_v63, 0.0  ;;  %v2889_v22 = vsel %vm17008_vm4, %v10348_v33, %v10431_v12  ;;  %17102 = vst [vmem:[#allocation67_spill] sm:$0xff] %v10680_v27 }
 0x18a   :  { %v10645_v21 = vsel %vm17009_vm0, %v2889_v22, %v2894_v15  ;;  %v17098_v12 = vmax.f32 %v10621_v41, 0.0  ;;  %v10660_v22 = vpack.i.bf16 %v10536_v31, %v10318_v49  ;;  %v10673_v49 = vsel %vm2068_vm3, %v10362_v35, %v10569_v6 }
 0x18b   :  { %7789 = vrot.lane.b32.xlu0 %v10615_v30, %s9574_s24  ;;  %v2277_v63 = vrot.slane %v1946_v45, 2  ;;  %v10650_v30 = vadd.f32 %v10608_v52, %v10516_v55  ;;  %v7798_v55 = vpack.i.bf16 %v10594_v42, %v10526_v8  ;;  %v17101_v8 = vmax.f32 %v10369_v5, 0.0 }
 0x18c   :  { %v2274_v38 = vrot.slane %v17098_v12, 2  ;;  %v7578_v43 = vpop.f32.mrb[88].mxu0  ;;  %v10689_v5 = vrot.slane %v10382_v7, 6 }
 0x18d   :  { %7819 = vrot.lane.b32.xlu1 %v7818_v4, %s9575_s25  ;;  %v2278_v45 = vsel %vm2068_vm3, %v2275_v48, %v2277_v63  ;;  %v1437_v37 = vadd.f32 %v10608_v52, %v7578_v43  ;;  %v1428_v17 = vpop.f32.mrb[89].mxu0 }
 0x18e   :  { %v2313_v4 = vmax.f32 %v17100_v47, %v2278_v45  ;;  %v2276_v12 = vsel %vm2068_vm3, %v2274_v38, %v2275_v48  ;;  %v1429_v53 = vadd.f32 %v10608_v52, %v1428_v17  ;;  %v7579_v36 = vpop.f32.mrb[90].mxu0 }
 0x18f   :  { %7794 = vrot.lane.b32.xlu0 %v7793_v46, %s9576_s26  ;;  %v2312_v43 = vmax.f32 %v17101_v8, %v2276_v12  ;;  %v1949_v0 = vmax.f32 %v1437_v37, 0.0  ;;  %v1440_v32 = vadd.f32 %v10608_v52, %v7579_v36  ;;  %v1431_v31 = vpop.f32.mrb[91].mxu0  ;;  %v10693_v36 = vadd.f32 %v10608_v52, %v10528_v13 }
 0x190   :  { %v10683_v38 = vmax.f32 %v10151_v20, %v2313_v4  ;;  %v1947_v48 = vmax.f32 %v1429_v53, 0.0  ;;  %v1432_v17 = vadd.f32 %v10608_v52, %v1431_v31  ;;  %v17104_v31 = vrot.slane %v10315_v11, 6 }
 0x191   :  { %7854 = vrot.lane.b32.xlu1 %v10660_v22, %s9569_s18  ;;  %v10696_v37 = vmax.f32 %v10149_v18, %v2312_v43  ;;  %v2283_v15 = vrot.slane %v1949_v0, 2  ;;  %v1950_v45 = vmax.f32 %v1440_v32, 0.0  ;;  %v10708_v13 = vsel %vm17009_vm0, %v10569_v6, %v10551_v24 }
 0x192   :  { %17103 = vst [vmem:[#allocation68_spill] sm:$0xff] %v10683_v38  ;;  %v2279_v20 = vrot.slane %v1947_v48, 2  ;;  %v1948_v47 = vmax.f32 %v1432_v17, 0.0  ;;  %v10703_v53 = vsel %vm17008_vm4, %v17104_v31, %v10348_v33  ;;  %v10711_v0 = vpack.i.bf16 %v10673_v49, %v2869_v34 }
 0x193   :  { %7799 = vrot.lane.b32.xlu0 %v7798_v55, %s9577_s27  ;;  %17105 = vst [vmem:[#allocation69_spill] sm:$0xff] %v10703_v53  ;;  %v2285_v18 = vrot.slane %v1950_v45, 2  ;;  %v7823_v32 = vpack.i.bf16 %v10680_v27, %v10703_v53  ;;  %v17107_v55 = vpack.i.bf16 %v10600_v10, %v10594_v42  ;;  %v10723_v6 = vsel %vm17009_vm0, %v10573_v1, %v10689_v5 }
 0x194   :  { %17106 = vst [vmem:[#allocation70_spill] sm:$0xff] %v10711_v0  ;;  %v2280_v33 = vsel %vm2068_vm3, %v2277_v63, %v2279_v20  ;;  %v2281_v4 = vrot.slane %v1948_v47, 2  ;;  %v7582_v12 = vpop.f32.mrb[92].mxu0  ;;  %17108 = vst [vmem:[#allocation71_spill] sm:$0xff] %v10723_v6  ;;  %v17109_v8 = vmax.f32 %v10494_v39, 0.0  ;;  %v10733_v63 = vsel %vm2068_vm3, %v10708_v13, %v10385_v23 }
 0x195   :  { %7869 = vrot.lane.b32.xlu1 %v17107_v55, %s9573_s22  ;;  %v2286_v48 = vsel %vm2068_vm3, %v2283_v15, %v2285_v18  ;;  %v1453_v17 = vadd.f32 %v10608_v52, %v7582_v12  ;;  %v1444_v42 = vpop.f32.mrb[93].mxu0  ;;  %17110 = vst [vmem:[#allocation72_spill] sm:$0xff] %v10733_v63  ;;  %v17111_v45 = vmax.f32 %v10514_v50, 0.0  ;;  %v17114_v11 = vmax.f32 %v10566_v25, 0.0 }
 0x196   :  { %v2314_v43 = vmax.f32 %v17109_v8, %v2280_v33  ;;  %v2282_v31 = vsel %vm2068_vm3, %v2279_v20, %v2281_v4  ;;  %v2284_v39 = vsel %vm2068_vm3, %v2281_v4, %v2283_v15  ;;  %v1445_v55 = vadd.f32 %v10608_v52, %v1444_v42  ;;  %v7583_v33 = vpop.f32.mrb[94].mxu0 }
 0x197   :  { %7804 = vrot.lane.b32.xlu0 %v7793_v46, %s9578_s28  ;;  %v2317_v47 = vmax.f32 %v17111_v45, %v2286_v48  ;;  %v17113_v8 = vmax.f32 %v10557_v60, 0.0  ;;  %v2316_v53 = vmax.f32 %v17114_v11, %v2284_v39  ;;  %v1953_v46 = vmax.f32 %v1453_v17, 0.0  ;;  %v1447_v24 = vpop.f32.mrb[95].mxu0 }
 0x198   :  { %v10742_v12 = vmax.f32 %v10141_v9, %v2314_v43  ;;  %v1951_v15 = vmax.f32 %v1445_v55, 0.0  ;;  %v1456_v20 = vadd.f32 %v10608_v52, %v7583_v33  ;;  %v1448_v9 = vadd.f32 %v10608_v52, %v1447_v24 }
 0x199   :  { %v2315_v34 = vmax.f32 %v17113_v8, %v2282_v31  ;;  %v10749_v50 = vmax.f32 %v10179_v2, %v2317_v47  ;;  %7879 = vrot.lane.b32.xlu1 %v10711_v0, %s9574_s24  ;;  %v10759_v60 = vmax.f32 %v10177_v29, %v2316_v53  ;;  %v2291_v11 = vrot.slane %v1953_v46, 2 }
 0x19a   :  { %17112 = vst [vmem:[#allocation73_spill] sm:$0xff] %v10742_v12  ;;  %v2846_v25 = vrot.slane %v10385_v23, 6  ;;  %v2287_v2 = vrot.slane %v1951_v15, 2  ;;  %v1954_v43 = vmax.f32 %v1456_v20, 0.0  ;;  %v1952_v48 = vmax.f32 %v1448_v9, 0.0 }
 0x19b   :  { %17115 = vst [vmem:[#allocation74_spill] sm:$0xff] %v10749_v50  ;;  %v10756_v4 = vmax.f32 %v10162_v56, %v2315_v34  ;;  %17116 = vst [vmem:[#allocation75_spill] sm:$0xff] %v10759_v60  ;;  %7824 = vrot.lane.b32.xlu0 %v7823_v32, %s9577_s27  ;;  %v1940_v42 = vmax.f32 %v10693_v36, 0.0  ;;  %v1413_v56 = vadd.f32 %v10608_v52, %v10581_v40  ;;  %v10769_v24 = vrot.slane %v10379_v3, 6 }
 0x19c   :  { %v17118_v29 = vpack.i.bf16 %v10626_v28, %v10501_v44  ;;  %v2288_v53 = vsel %vm2068_vm3, %v2285_v18, %v2287_v2  ;;  %v2293_v32 = vrot.slane %v1954_v43, 2  ;;  %v2289_v34 = vrot.slane %v1952_v48, 2  ;;  %v10782_v47 = vpop.f32.mrb[96].mxu0 }
 0x19d   :  { %17117 = vst [vmem:[#allocation76_spill] sm:$0xff] %v10769_v24  ;;  %v17119_v45 = vrot.slane %v10379_v3, 4  ;;  %v17121_v40 = vmax.f32 %v10560_v59, 0.0  ;;  %v7888_v39 = vpack.i.bf16 %v10723_v6, %v10680_v27  ;;  %v10791_v44 = vsel %vm2068_vm3, %v10573_v1, %v10689_v5  ;;  %v1460_v18 = vpop.f32.mrb[97].mxu0 }
 0x19e   :  { %7884 = vrot.lane.b32.xlu1 %v17118_v29, %s9567_s0  ;;  %v10797_v55 = vsel %vm17008_vm4, %v2846_v25, %v10769_v24  ;;  %v2294_v59 = vsel %vm2068_vm3, %v2291_v11, %v2293_v32  ;;  %v2290_v33 = vsel %vm2068_vm3, %v2287_v2, %v2289_v34  ;;  %v2292_v8 = vsel %vm2068_vm3, %v2289_v34, %v2291_v11  ;;  %v10805_v1 = vpop.f32.mrb[98].mxu0 }
 0x19f   :  { %v10780_v36 = vsel %vm2068_vm3, %v10385_v23, %v17119_v45  ;;  %v2318_v31 = vmax.f32 %v17121_v40, %v2288_v53  ;;  %17122 = vst [vmem:[#allocation78_spill] sm:$0xff] %v10797_v55  ;;  %7829 = vrot.lane.b32.xlu0 %v10660_v22, %s9578_s28  ;;  %v1461_v46 = vadd.f32 %v10608_v52, %v1460_v18  ;;  %v17124_v20 = vmax.f32 %v10576_v54, 0.0  ;;  %v1463_v29 = vpop.f32.mrb[99].mxu0 }
 0x1a0   :  { %17120 = vst [vmem:[#allocation77_spill] sm:$0xff] %v10780_v36  ;;  %v17125_v43 = vmax.f32 %v10618_v14, 0.0  ;;  %v2320_v22 = vmax.f32 %v1940_v42, %v2292_v8  ;;  %v1942_v53 = vmax.f32 %v10650_v30, 0.0  ;;  %v7833_v11 = vpack.i.bf16 %v10780_v36, %v10522_v19 }
 0x1a1   :  { %v10808_v15 = vmax.f32 %v10169_v61, %v2318_v31  ;;  %v2321_v9 = vmax.f32 %v17124_v20, %v2294_v59  ;;  %v1955_v2 = vmax.f32 %v1461_v46, 0.0  ;;  %v1464_v61 = vadd.f32 %v10608_v52, %v1463_v29  ;;  %v17131_v29 = vld [vmem:[#allocation5_spill] sm:$0xff] }
 0x1a2   :  { %v2319_v48 = vmax.f32 %v17125_v43, %v2290_v33  ;;  %7889 = vrot.lane.b32.xlu1 %v7888_v39, %s9579_s29  ;;  %v10826_v14 = vmax.f32 %v10208_v57, %v2320_v22  ;;  %v10833_v42 = vpack.i.bf16 %v10791_v44, %v10645_v21  ;;  %v1943_v31 = vmax.f32 %v1413_v56, 0.0  ;;  %v17129_v43 = vld [vmem:[#allocation57_spill] sm:$0xff] }
 0x1a3   :  { %17123 = vst [vmem:[#allocation79_spill] sm:$0xff] %v10808_v15  ;;  %v10820_v34 = vmax.f32 %v10210_v58, %v2321_v9  ;;  %7834 = vrot.lane.b32.xlu0 %v7833_v11, %s9578_s28  ;;  %v2295_v45 = vrot.slane %v1955_v2, 2  ;;  %v1956_v40 = vmax.f32 %v1464_v61, 0.0  ;;  %v17127_v8 = vmax.f32 %v10621_v41, 0.0  ;;  %v17133_v41 = vld [vmem:[#allocation6_spill] sm:$0xff]  ;;  %v17137_v61 = vld [vmem:[#allocation37_spill] sm:$0xff] }
 0x1a4   :  { %v10823_v54 = vmax.f32 %v10192_v16, %v2319_v48  ;;  %17126 = vst [vmem:[#allocation80_spill] sm:$0xff] %v10833_v42  ;;  %v7838_v16 = vpack.i.bf16 %v10416_v62, %v10680_v27  ;;  %v7590_v39 = vpop.f32.mrb[100].mxu0  ;;  %v7903_v46 = vpack.i.bf16 %v10723_v6, %v10439_v26  ;;  %v17130_v48 = vld [vmem:[#allocation26_spill] sm:$0xff]  ;;  %v10863_v26 = vrot.slane %v10385_v23, 2 }
 0x1a5   :  { %v2296_v57 = vsel %vm2068_vm3, %v2293_v32, %v2295_v45  ;;  %v2297_v58 = vrot.slane %v1956_v40, 2  ;;  %v1476_v59 = vpop.f32.mrb[101].mxu0  ;;  %v7843_v22 = vpack.i.bf16 %v17130_v48, %v17129_v43  ;;  %v10874_v2 = vsel %vm17008_vm4, %v10689_v5, %v2846_v25  ;;  %v17147_v48 = vld [vmem:[#allocation45_spill] sm:$0xff]  ;;  %v17155_v43 = vld [vmem:[#allocation52_spill] sm:$0xff] }
 0x1a6   :  { %7894 = vrot.lane.b32.xlu1 %v10833_v42, %s9568_s17  ;;  %v2322_v18 = vmax.f32 %v1942_v53, %v2296_v57  ;;  %v10846_v20 = vpop.f32.mrb[102].mxu0  ;;  %17135 = vst [vmem:[#allocation5_spill] sm:$0xff] %v10863_v26  ;;  %v7923_v5 = vpack.i.bf16 %v10874_v2, %v10791_v44  ;;  %v7933_v44 = vpack.i.bf16 %v10379_v3, %v10733_v63  ;;  %v2901_v17 = vrot.slane %v10379_v3, 2 }
 0x1a7   :  { %7839 = vrot.lane.b32.xlu0 %v7838_v16, %s9580_s30  ;;  %v2298_v33 = vsel %vm2068_vm3, %v2295_v45, %v2297_v58  ;;  %v2324_v56 = vmax.f32 %v17127_v8, %v2297_v58  ;;  %v10851_v9 = vpop.f32.mrb[103].mxu0  ;;  %v7848_v45 = vpack.i.bf16 %v10645_v21, %v17137_v61  ;;  %v17142_v21 = vld [vmem:[#allocation62_spill] sm:$0xff]  ;;  %v17145_v8 = vld [vmem:[#allocation8_spill] sm:$0xff]  ;;  %v10963_v23 = vadd.f32 %v10608_v52, %v1476_v59 }
 0x1a8   :  { %v10849_v62 = vmax.f32 %v10198_v51, %v2322_v18  ;;  %v2323_v32 = vmax.f32 %v1943_v31, %v2298_v33  ;;  %v10868_v51 = vpack.i.bf16 %v10708_v13, %v10673_v49  ;;  %v17138_v31 = vrot.slane %v10382_v7, 2  ;;  %v17143_v18 = vld [vmem:[#allocation7_spill] sm:$0xff] }
 0x1a9   :  { %v10856_v53 = vmax.f32 %v17131_v29, %v2324_v56  ;;  %v10904_v33 = vadd.f32 %v10608_v52, %v17143_v18  ;;  %v10908_v56 = vadd.f32 %v10608_v52, %v17145_v8  ;;  %v10925_v29 = vrot.slane %v17147_v48, 2 }
 0x1aa   :  { %17128 = vst [vmem:[#allocation81_spill] sm:$0xff] %v10849_v62  ;;  %7904 = vrot.lane.b32.xlu1 %v7903_v46, %s9580_s30  ;;  %v10860_v11 = vmax.f32 %v17133_v41, %v2323_v32  ;;  %17136 = vst [vmem:[#allocation6_spill] sm:$0xff] %v10868_v51  ;;  %v10886_v49 = vsel %vm2068_vm3, %v17138_v31, %v10863_v26  ;;  %v10917_v46 = vpack.i.bf16 %v10708_v13, %v10362_v35 }
 0x1ab   :  { %17132 = vst [vmem:[#allocation57_spill] sm:$0xff] %v10856_v53  ;;  %7844 = vrot.lane.b32.xlu0 %v7843_v22, %s9572_s21  ;;  %v10900_v58 = vpack.i.bf16 %v10886_v49, %v17142_v21  ;;  %17144 = vst [vmem:[#allocation62_spill] sm:$0xff] %v10904_v33  ;;  %v10922_v22 = vpack.i.bf16 %v17147_v48, %v10379_v3  ;;  %v1469_v35 = vadd.f32 %v10608_v52, %v10782_v47  ;;  %v17152_v21 = vld [vmem:[#allocation47_spill] sm:$0xff]  ;;  %v17216_v33 = vld [vmem:[#allocation49_spill] sm:$0xff] }
 0x1ac   :  { %17134 = vst [vmem:[#allocation26_spill] sm:$0xff] %v10860_v11  ;;  %v10880_v40 = vpop.f32.mrb[104].mxu0  ;;  %17146 = vst [vmem:[#allocation7_spill] sm:$0xff] %v10908_v56  ;;  %v10937_v31 = vadd.f32 %v10608_v52, %v10805_v1  ;;  %v2979_v8 = vrot.slane %v17147_v48, 4  ;;  %v10981_v63 = vsel %vm2068_vm3, %v10874_v2, %v2901_v17 }
 0x1ad   :  { %v10888_v16 = vpop.f32.mrb[105].mxu0  ;;  %17148 = vst [vmem:[#allocation8_spill] sm:$0xff] %v10922_v22  ;;  %17149 = vst [vmem:[#allocation84_spill] sm:$0xff] %v10925_v29  ;;  %v1957_v7 = vmax.f32 %v1469_v35, 0.0 }
 0x1ae   :  { %7919 = vrot.lane.b32.xlu1 %v10868_v51, %s9576_s26  ;;  %17139 = vst [vmem:[#allocation37_spill] sm:$0xff] %v10888_v16  ;;  %v10893_v25 = vpop.f32.mrb[106].mxu0  ;;  %v1958_v28 = vmax.f32 %v10937_v31, 0.0  ;;  %17159 = vst [vmem:[#allocation88_spill] sm:$0xff] %v10981_v63  ;;  %v1959_v31 = vmax.f32 %v10963_v23, 0.0 }
 0x1af   :  { %7849 = vrot.lane.b32.xlu0 %v7848_v45, %s9581_s12  ;;  %17140 = vst [vmem:[#allocation82_spill] sm:$0xff] %v10893_v25  ;;  %v10895_v57 = vpop.f32.mrb[107].mxu0  ;;  %v7873_v45 = vpack.i.bf16 %v10797_v55, %v10886_v49 }
 0x1b0   :  { %17141 = vst [vmem:[#allocation83_spill] sm:$0xff] %v10895_v57 }
 0x1b2   :  { %7924 = vrot.lane.b32.xlu1 %v7923_v5, %s9581_s12  ;;  %v17151_v5 = vld [vmem:[#allocation50_spill] sm:$0xff] }
 0x1b3   :  { %7859 = vrot.lane.b32.xlu0 %v10900_v58, %s9569_s18  ;;  %v7953_v18 = vpack.i.bf16 %v17152_v21, %v17151_v5  ;;  %v7958_v0 = vpack.i.bf16 %v17155_v43, %v17151_v5  ;;  %v17157_v43 = vrot.slane %v10379_v3, 4  ;;  %v10977_v59 = vrot.slane %v17151_v5, 4 }
 0x1b4   :  { %v7598_v32 = vpop.f32.mrb[108].mxu0 }
 0x1b5   :  { %v10928_v41 = vadd.f32 %v10608_v52, %v7598_v32  ;;  %v10930_v61 = vpop.f32.mrb[109].mxu0  ;;  %v10946_v32 = vpack.i.bf16 %v10379_v3, %v10708_v13  ;;  %v10960_v13 = vadd.f32 %v10608_v52, %v7590_v39  ;;  %v3030_v39 = vsel %vm17009_vm0, %v17157_v43, %v2979_v8  ;;  %17158 = vst [vmem:[#allocation87_spill] sm:$0xff] %v10977_v59 }
 0x1b6   :  { %7934 = vrot.lane.b32.xlu1 %v7933_v44, %s9567_s0  ;;  %17150 = vst [vmem:[#allocation85_spill] sm:$0xff] %v10930_v61  ;;  %v7599_v44 = vpop.f32.mrb[110].mxu0  ;;  %v1480_v43 = vadd.f32 %v10608_v52, %v10851_v9  ;;  %v11009_v9 = vsel %vm17009_vm0, %v2979_v8, %v10977_v59 }
 0x1b7   :  { %7864 = vrot.lane.b32.xlu0 %v10917_v46, %s9567_s0  ;;  %17153 = vst [vmem:[#allocation50_spill] sm:$0xff] %v10946_v32  ;;  %v16459_v47 = vmax.f32 %v10928_v41, 0.0  ;;  %v1520_v1 = vadd.f32 %v10608_v52, %v7599_v44  ;;  %v10951_v30 = vpop.f32.mrb[111].mxu0  ;;  %v10967_v44 = vsel %vm2068_vm3, %v2901_v17, %v10925_v29  ;;  %v1961_v35 = vmax.f32 %v10960_v13, 0.0  ;;  %17161 = vst [vmem:[#allocation90_spill] sm:$0xff] %v11009_v9 }
 0x1b8   :  { %17154 = vst [vmem:[#allocation86_spill] sm:$0xff] %v10951_v30  ;;  %17156 = vst [vmem:[#allocation52_spill] sm:$0xff] %v10967_v44  ;;  %v10995_v17 = vpack.i.bf16 %v3030_v39, %v10780_v36  ;;  %v1960_v23 = vmax.f32 %v1480_v43, 0.0 }
 0x1b9   :  { %v2351_v27 = vrot.slane %v16459_v47, 2 }
 0x1ba   :  { %7944 = vrot.lane.b32.xlu1 %v10922_v22, %s9576_s26  ;;  %v1970_v22 = vmax.f32 %v1520_v1, 0.0 }
 0x1bb   :  { %7874 = vrot.lane.b32.xlu0 %v7873_v45, %s9573_s22  ;;  %v10988_v45 = vpack.i.bf16 %v10967_v44, %v10981_v63 }
 0x1bc   :  { %v2352_v1 = vrot.slane %v1970_v22, 2  ;;  %v7602_v3 = vpop.f32.mrb[112].mxu0  ;;  %v10999_v22 = vadd.f32 %v10608_v52, %v10846_v20 }
 0x1bd   :  { %v1533_v47 = vadd.f32 %v10608_v52, %v7602_v3  ;;  %v1524_v55 = vpop.f32.mrb[113].mxu0  ;;  %v17163_v3 = vld [vmem:[#allocation53_spill] sm:$0xff] }
 0x1be   :  { %7954 = vrot.lane.b32.xlu1 %v7953_v18, %s9575_s25  ;;  %17160 = vst [vmem:[#allocation89_spill] sm:$0xff] %v10999_v22  ;;  %v2353_v18 = vsel %vm2068_vm3, %v2351_v27, %v2352_v1  ;;  %v1525_v20 = vadd.f32 %v10608_v52, %v1524_v55  ;;  %v7603_v36 = vpop.f32.mrb[114].mxu0 }
 0x1bf   :  { %7899 = vrot.lane.b32.xlu0 %v10946_v32, %s9574_s24  ;;  %v11011_v13 = vmax.f32 %v1957_v7, %v2353_v18  ;;  %v1973_v42 = vmax.f32 %v1533_v47, 0.0  ;;  %v1536_v32 = vadd.f32 %v10608_v52, %v7603_v36  ;;  %v1527_v26 = vpop.f32.mrb[115].mxu0  ;;  %v11021_v7 = vrot.slane %v17151_v5, 6  ;;  %v17170_v18 = vld [vmem:[#allocation10_spill] sm:$0xff] }
 0x1c0   :  { %v1971_v8 = vmax.f32 %v1525_v20, 0.0  ;;  %v1528_v55 = vadd.f32 %v10608_v52, %v1527_v26  ;;  %v11034_v47 = vpack.i.bf16 %v10967_v44, %v10874_v2  ;;  %v11038_v26 = vadd.f32 %v10608_v52, %v10880_v40 }
 0x1c1   :  { %17162 = vst [vmem:[#allocation91_spill] sm:$0xff] %v11011_v13  ;;  %17164 = vst [vmem:[#allocation53_spill] sm:$0xff] %v11021_v7  ;;  %v2358_v27 = vrot.slane %v1973_v42, 2  ;;  %v2997_v13 = vrot.slane %v17147_v48, 6  ;;  %v1974_v51 = vmax.f32 %v1536_v32, 0.0  ;;  %v2697_v20 = vrot.slane %v10742_v12, 2 }
 0x1c2   :  { %7959 = vrot.lane.b32.xlu1 %v7958_v0, %s9572_s21  ;;  %v2354_v36 = vrot.slane %v1971_v8, 2  ;;  %v11030_v0 = vpack.i.bf16 %v17151_v5, %v3030_v39  ;;  %17166 = vst [vmem:[#allocation93_spill] sm:$0xff] %v11034_v47  ;;  %v1972_v43 = vmax.f32 %v1528_v55, 0.0  ;;  %17167 = vst [vmem:[#allocation94_spill] sm:$0xff] %v11038_v26  ;;  %v11042_v32 = vrot.slane %v10756_v4, 2 }
 0x1c3   :  { %7909 = vrot.lane.b32.xlu0 %v10900_v58, %s9580_s30  ;;  %v2360_v42 = vrot.slane %v1974_v51, 2  ;;  %v11049_v2 = vsel %vm17008_vm4, %v2997_v13, %v11021_v7  ;;  %v11057_v53 = vadd.f32 %v10608_v52, %v17170_v18 }
 0x1c4   :  { %17165 = vst [vmem:[#allocation92_spill] sm:$0xff] %v11030_v0  ;;  %v2355_v58 = vsel %vm2068_vm3, %v2352_v1, %v2354_v36  ;;  %17168 = vst [vmem:[#allocation95_spill] sm:$0xff] %v11049_v2  ;;  %v2356_v5 = vrot.slane %v1972_v43, 2  ;;  %v7606_v39 = vpop.f32.mrb[116].mxu0 }
 0x1c5   :  { %v11051_v8 = vmax.f32 %v1958_v28, %v2355_v58  ;;  %v2361_v51 = vsel %vm2068_vm3, %v2358_v27, %v2360_v42  ;;  %v1549_v40 = vadd.f32 %v10608_v52, %v7606_v39  ;;  %v1540_v55 = vpop.f32.mrb[117].mxu0  ;;  %17171 = vst [vmem:[#allocation10_spill] sm:$0xff] %v11057_v53  ;;  %v2640_v53 = vrot.slane %v10696_v37, 4 }
 0x1c6   :  { %7964 = vrot.lane.b32.xlu1 %v10988_v45, %s9579_s29  ;;  %v11061_v1 = vmax.f32 %v1961_v35, %v2361_v51  ;;  %v2357_v13 = vsel %vm2068_vm3, %v2354_v36, %v2356_v5  ;;  %v2359_v43 = vsel %vm2068_vm3, %v2356_v5, %v2358_v27  ;;  %v1541_v28 = vadd.f32 %v10608_v52, %v1540_v55  ;;  %v7607_v58 = vpop.f32.mrb[118].mxu0 }
 0x1c7   :  { %17169 = vst [vmem:[#allocation96_spill] sm:$0xff] %v11051_v8  ;;  %7914 = vrot.lane.b32.xlu0 %v10917_v46, %s9572_s21  ;;  %v11066_v8 = vmax.f32 %v1959_v31, %v2357_v13  ;;  %v11068_v39 = vmax.f32 %v1960_v23, %v2359_v43  ;;  %v1977_v11 = vmax.f32 %v1549_v40, 0.0  ;;  %v1552_v18 = vadd.f32 %v10608_v52, %v7607_v58  ;;  %v1543_v62 = vpop.f32.mrb[119].mxu0 }
 0x1c8   :  { %17172 = vst [vmem:[#allocation97_spill] sm:$0xff] %v11061_v1  ;;  %v1975_v46 = vmax.f32 %v1541_v28, 0.0  ;;  %v11075_v35 = vsel %vm2068_vm3, %v2697_v20, %v11042_v32  ;;  %v11078_v27 = vrot.slane %v10756_v4, 4  ;;  %v1544_v31 = vadd.f32 %v10608_v52, %v1543_v62  ;;  %v17178_v20 = vld [vmem:[#allocation51_spill] sm:$0xff] }
 0x1c9   :  { %17173 = vst [vmem:[#allocation98_spill] sm:$0xff] %v11066_v8  ;;  %17174 = vst [vmem:[#allocation99_spill] sm:$0xff] %v11068_v39  ;;  %v8008_v23 = vpack.i.bf16 %v11021_v7, %v11049_v2  ;;  %v2366_v36 = vrot.slane %v1977_v11, 2  ;;  %v1978_v5 = vmax.f32 %v1552_v18, 0.0  ;;  %v17177_v40 = vpack.i.bf16 %v10886_v49, %v10600_v10  ;;  %v17179_v11 = vld [vmem:[#allocation16_spill] sm:$0xff] }
 0x1ca   :  { %7969 = vrot.lane.b32.xlu1 %v10995_v17, %s9575_s25  ;;  %17175 = vst [vmem:[#allocation100_spill] sm:$0xff] %v11075_v35  ;;  %17176 = vst [vmem:[#allocation101_spill] sm:$0xff] %v11078_v27  ;;  %v2362_v13 = vrot.slane %v1975_v46, 2  ;;  %v2871_v43 = vrot.slane %v10742_v12, 4  ;;  %v1976_v28 = vmax.f32 %v1544_v31, 0.0  ;;  %v11095_v18 = vadd.f32 %v10608_v52, %v17179_v11 }
 0x1cb   :  { %7929 = vrot.lane.b32.xlu0 %v17177_v40, %s9577_s27  ;;  %v2368_v58 = vrot.slane %v1978_v5, 2  ;;  %v3987_v51 = vrot.slane %v10742_v12, 6  ;;  %v17181_v10 = vpack.i.bf16 %v10925_v29, %v10967_v44  ;;  %v11112_v31 = vsel %vm17008_vm4, %v11078_v27, %v10759_v60 }
 0x1cc   :  { %17180 = vst [vmem:[#allocation51_spill] sm:$0xff] %v11095_v18  ;;  %v11103_v49 = vsel %vm2068_vm3, %v2360_v42, %v2362_v13  ;;  %v11107_v46 = vsel %vm17009_vm0, %v2871_v43, %v11078_v27  ;;  %v2364_v5 = vrot.slane %v1976_v28, 2  ;;  %v7610_v40 = vpop.f32.mrb[120].mxu0  ;;  %v17185_v42 = vrot.slane %v10756_v4, 6 }
 0x1cd   :  { %17182 = vst [vmem:[#allocation16_spill] sm:$0xff] %v11103_v49  ;;  %17183 = vst [vmem:[#allocation102_spill] sm:$0xff] %v11107_v46  ;;  %v11115_v11 = vsel %vm2068_vm3, %v2366_v36, %v2368_v58  ;;  %v11118_v62 = vadd.f32 %v10608_v52, %v7610_v40  ;;  %v17186_v43 = vpack.i.bf16 %v10981_v63, %v10723_v6  ;;  %v17189_v40 = vld [vmem:[#allocation18_spill] sm:$0xff]  ;;  %v17191_v63 = vld [vmem:[#allocation36_spill] sm:$0xff] }
 0x1ce   :  { %7994 = vrot.lane.b32.xlu1 %v17181_v10, %s9581_s12  ;;  %17184 = vst [vmem:[#allocation103_spill] sm:$0xff] %v11115_v11  ;;  %v1556_v10 = vpop.f32.mrb[121].mxu0  ;;  %v3989_v55 = vsel %vm17008_vm4, %v3987_v51, %v17185_v42  ;;  %v11128_v27 = vsel %vm2068_vm3, %v2362_v13, %v2364_v5  ;;  %v11131_v28 = vsel %vm2068_vm3, %v2364_v5, %v2366_v36  ;;  %v17197_v11 = vld [vmem:[#allocation21_spill] sm:$0xff]  ;;  %v17202_v49 = vld [vmem:[#allocation40_spill] sm:$0xff] }
 0x1cf   :  { %7939 = vrot.lane.b32.xlu0 %v17186_v43, %s9577_s27  ;;  %17187 = vst [vmem:[#allocation104_spill] sm:$0xff] %v11128_v27  ;;  %17188 = vst [vmem:[#allocation105_spill] sm:$0xff] %v11131_v28  ;;  %v1557_v8 = vadd.f32 %v10608_v52, %v1556_v10  ;;  %v11136_v1 = vadd.f32 %v10608_v52, %v17189_v40  ;;  %v11138_v39 = vpop.f32.mrb[122].mxu0  ;;  %v11142_v51 = vpack.i.bf16 %v11112_v31, %v11107_v46  ;;  %v17194_v40 = vld [vmem:[#allocation48_spill] sm:$0xff] }
 0x1d0   :  { %v16478_v42 = vmax.f32 %v11118_v62, 0.0  ;;  %v1559_v43 = vpop.f32.mrb[123].mxu0  ;;  %v11148_v36 = vadd.f32 %v10608_v52, %v17191_v63  ;;  %v17193_v5 = vpack.i.bf16 %v10977_v59, %v11009_v9  ;;  %v17195_v27 = vld [vmem:[#allocation20_spill] sm:$0xff]  ;;  %v11164_v63 = vpack.i.bf16 %v3989_v55, %v10925_v29  ;;  %v17204_v55 = vld [vmem:[#allocation42_spill] sm:$0xff] }
 0x1d1   :  { %17190 = vst [vmem:[#allocation18_spill] sm:$0xff] %v11142_v51  ;;  %v1979_v10 = vmax.f32 %v1557_v8, 0.0  ;;  %v11158_v61 = vadd.f32 %v10608_v52, %v17195_v27  ;;  %v1560_v13 = vadd.f32 %v10608_v52, %v1559_v43  ;;  %v11168_v59 = vadd.f32 %v10608_v52, %v17197_v11  ;;  %v17198_v8 = vld [vmem:[#allocation24_spill] sm:$0xff] }
 0x1d2   :  { %17192 = vst [vmem:[#allocation36_spill] sm:$0xff] %v11148_v36  ;;  %8004 = vrot.lane.b32.xlu1 %v17193_v5, %s9567_s0  ;;  %v2374_v25 = vrot.slane %v16478_v42, 2  ;;  %17196 = vst [vmem:[#allocation48_spill] sm:$0xff] %v11164_v63  ;;  %v11172_v5 = vadd.f32 %v10608_v52, %v17198_v8  ;;  %v17199_v27 = vpack.i.bf16 %v17152_v21, %v17163_v3  ;;  %v2033_v6 = vmax.f32 %v11136_v1, 0.0  ;;  %v17208_v21 = vld [vmem:[#allocation43_spill] sm:$0xff] }
 0x1d3   :  { %v2370_v43 = vrot.slane %v1979_v10, 2  ;;  %v1980_v42 = vmax.f32 %v1560_v13, 0.0  ;;  %v17200_v29 = vmax.f32 %v10928_v41, 0.0  ;;  %v11185_v11 = vrot.slane %v10749_v50, 4 }
 0x1d4   :  { %7949 = vrot.lane.b32.xlu0 %v17199_v27, %s9572_s21  ;;  %v1821_v28 = vadd.f32 %v10608_v52, %v17202_v49  ;;  %v2031_v1 = vmax.f32 %v11158_v61, 0.0  ;;  %v11195_v10 = vpop.f32.mrb[124].mxu0 }
 0x1d5   :  { %v11182_v9 = vmax.f32 %v17200_v29, %v2374_v25  ;;  %v11192_v3 = vsel %vm2068_vm3, %v2368_v58, %v2370_v43  ;;  %v2372_v13 = vrot.slane %v1980_v42, 2  ;;  %v4023_v27 = vsel %vm17008_vm4, %v11185_v11, %v10808_v15  ;;  %v11203_v49 = vpop.f32.mrb[125].mxu0  ;;  %v17207_v29 = vld [vmem:[#allocation25_spill] sm:$0xff] }
 0x1d6   :  { %8009 = vrot.lane.b32.xlu1 %v8008_v23, %s9579_s29  ;;  %17203 = vst [vmem:[#allocation21_spill] sm:$0xff] %v11192_v3  ;;  %v2045_v23 = vmax.f32 %v1821_v28, 0.0  ;;  %v1813_v58 = vadd.f32 %v10608_v52, %v17204_v55  ;;  %v11217_v41 = vadd.f32 %v10608_v52, %v17207_v29  ;;  %v11219_v8 = vpop.f32.mrb[126].mxu0  ;;  %v1824_v28 = vadd.f32 %v10608_v52, %v17208_v21 }
 0x1d7   :  { %17201 = vst [vmem:[#allocation20_spill] sm:$0xff] %v11182_v9  ;;  %v11210_v61 = vsel %vm2068_vm3, %v2370_v43, %v2372_v13  ;;  %v11213_v42 = vsel %vm2068_vm3, %v2372_v13, %v2374_v25  ;;  %v2032_v55 = vmax.f32 %v11172_v5, 0.0  ;;  %v17209_v9 = vld [vmem:[#allocation27_spill] sm:$0xff]  ;;  %v11228_v43 = vpop.f32.mrb[127].mxu0  ;;  %v17210_v25 = vmax.f32 %v11148_v36, 0.0 }
 0x1d8   :  { %7974 = vrot.lane.b32.xlu0 %v11030_v0, %s9578_s28  ;;  %17205 = vst [vmem:[#allocation24_spill] sm:$0xff] %v11210_v61  ;;  %17206 = vst [vmem:[#allocation40_spill] sm:$0xff] %v11213_v42  ;;  %v11226_v0 = vadd.f32 %v10608_v52, %v17209_v9  ;;  %v2043_v61 = vmax.f32 %v1813_v58, 0.0  ;;  %v17211_v29 = vpack.i.bf16 %v17178_v20, %v11049_v2  ;;  %v17212_v21 = vrot.slane %v10759_v60, 4  ;;  %v17213_v42 = vld [vmem:[#allocation44_spill] sm:$0xff] }
 0x1d9   :  { %v2556_v13 = vrot.slane %v17210_v25, 2  ;;  %v2561_v3 = vrot.slane %v2045_v23, 2  ;;  %v2046_v9 = vmax.f32 %v1824_v28, 0.0  ;;  %v1816_v30 = vadd.f32 %v10608_v52, %v17213_v42 }
 0x1da   :  { %8019 = vrot.lane.b32.xlu1 %v17211_v29, %s9580_s30  ;;  %v11240_v5 = vsel %vm17009_vm0, %v17212_v21, %v11185_v11  ;;  %v2702_v58 = vrot.slane %v10759_v60, 6  ;;  %v2703_v25 = vrot.slane %v10749_v50, 6  ;;  %v2557_v20 = vrot.slane %v2043_v61, 2  ;;  %v17214_v21 = vld [vmem:[#allocation28_spill] sm:$0xff] }
 0x1db   :  { %v11245_v26 = vpack.i.bf16 %v4023_v27, %v11240_v5  ;;  %v11254_v23 = vadd.f32 %v10608_v52, %v17214_v21  ;;  %v2563_v28 = vrot.slane %v2046_v9, 2  ;;  %v2044_v56 = vmax.f32 %v1816_v30, 0.0  ;;  %v17218_v21 = vld [vmem:[#allocation29_spill] sm:$0xff] }
 0x1dc   :  { %7979 = vrot.lane.b32.xlu0 %v11034_v47, %s9568_s17  ;;  %v11258_v27 = vrot.slane %v10808_v15, 2  ;;  %v2558_v22 = vsel %vm2068_vm3, %v2556_v13, %v2557_v20  ;;  %v1829_v61 = vadd.f32 %v10608_v52, %v17216_v33  ;;  %v17217_v29 = vpack.i.bf16 %v11075_v35, %v10769_v24  ;;  %v11267_v47 = vpop.f32.mrb[128].mxu0 }
 0x1dd   :  { %v11271_v30 = vadd.f32 %v10608_v52, %v17218_v21  ;;  %v17219_v9 = vmax.f32 %v11095_v18, 0.0  ;;  %v2564_v13 = vsel %vm2068_vm3, %v2561_v3, %v2563_v28  ;;  %v2559_v16 = vrot.slane %v2044_v56, 2  ;;  %v11282_v24 = vpop.f32.mrb[129].mxu0 }
 0x1de   :  { %17215 = vst [vmem:[#allocation42_spill] sm:$0xff] %v11258_v27  ;;  %8029 = vrot.lane.b32.xlu1 %v17217_v29, %s9573_s22  ;;  %v11279_v33 = vsel %vm17008_vm4, %v2702_v58, %v2703_v25  ;;  %v11284_v29 = vmax.f32 %v2033_v6, %v2564_v13  ;;  %v2047_v57 = vmax.f32 %v1829_v61, 0.0  ;;  %v2641_v21 = vrot.slane %v10683_v38, 4  ;;  %v17222_v25 = vld [vmem:[#allocation46_spill] sm:$0xff] }
 0x1df   :  { %v11275_v42 = vmax.f32 %v17219_v9, %v2558_v22  ;;  %17220 = vst [vmem:[#allocation25_spill] sm:$0xff] %v11279_v33  ;;  %v11289_v22 = vpop.f32.mrb[130].mxu0  ;;  %v2560_v9 = vsel %vm2068_vm3, %v2557_v20, %v2559_v16  ;;  %v2562_v56 = vsel %vm2068_vm3, %v2559_v16, %v2561_v3  ;;  %v1837_v18 = vadd.f32 %v10608_v52, %v17222_v25 }
 0x1e0   :  { %7984 = vrot.lane.b32.xlu0 %v10988_v45, %s9580_s30  ;;  %17221 = vst [vmem:[#allocation43_spill] sm:$0xff] %v11289_v22  ;;  %v11299_v6 = vsel %vm2068_vm3, %v11279_v33, %v11258_v27  ;;  %v11301_v61 = vpop.f32.mrb[131].mxu0  ;;  %v11303_v45 = vmax.f32 %v2031_v1, %v2560_v9  ;;  %v11305_v13 = vmax.f32 %v2032_v55, %v2562_v56  ;;  %v11314_v3 = vrot.slane %v10749_v50, 2  ;;  %v17229_v22 = vld [vmem:[#allocation54_spill] sm:$0xff]  ;;  %v17230_v27 = vld [vmem:[#allocation56_spill] sm:$0xff] }
 0x1e1   :  { %17223 = vst [vmem:[#allocation27_spill] sm:$0xff] %v11299_v6  ;;  %v11311_v16 = vadd.f32 %v10608_v52, %v11138_v39  ;;  %v3005_v20 = vrot.slane %v10759_v60, 2  ;;  %v2565_v25 = vrot.slane %v2047_v57, 2  ;;  %v2036_v36 = vmax.f32 %v11271_v30, 0.0 }
 0x1e2   :  { %8039 = vrot.lane.b32.xlu1 %v11142_v51, %s9581_s12  ;;  %v11320_v1 = vsel %vm17009_vm0, %v11042_v32, %v2702_v58  ;;  %v11324_v55 = vsel %vm17008_vm4, %v2641_v21, %v10742_v12  ;;  %v11327_v9 = vrot.slane %v10808_v15, 6  ;;  %v11334_v57 = vsel %vm17009_vm0, %v2640_v53, %v2641_v21  ;;  %v11376_v53 = vpop.permute.xlu0 %7749 }
 0x1e3   :  { %17224 = vst [vmem:[#allocation44_spill] sm:$0xff] %v11320_v1  ;;  %17225 = vst [vmem:[#allocation28_spill] sm:$0xff] %v11324_v55  ;;  %v8073_v39 = vpack.i.bf16 %v11299_v6, %v11320_v1  ;;  %v2049_v30 = vmax.f32 %v1837_v18, 0.0  ;;  %v2566_v56 = vsel %vm2068_vm3, %v2563_v28, %v2565_v25  ;;  %v11339_v51 = vsel %vm17008_vm4, %v11042_v32, %v2702_v58  ;;  %v17231_v32 = vld [vmem:[#allocation30_spill] sm:$0xff] }
 0x1e4   :  { %17226 = vst [vmem:[#allocation49_spill] sm:$0xff] %v11327_v9  ;;  %7989 = vrot.lane.b32.xlu0 %v10995_v17, %s9572_s21  ;;  %17227 = vst [vmem:[#allocation29_spill] sm:$0xff] %v11334_v57  ;;  %v17228_v12 = vmax.f32 %v11168_v59, 0.0  ;;  %v1840_v17 = vadd.f32 %v10608_v52, %v17229_v22  ;;  %v1832_v6 = vadd.f32 %v10608_v52, %v17230_v27 }
 0x1e5   :  { %v8023_v18 = vpack.i.bf16 %v11324_v55, %v11334_v57  ;;  %v11356_v58 = vadd.f32 %v10608_v52, %v17231_v32  ;;  %v11360_v59 = vsel %vm2068_vm3, %v3005_v20, %v11314_v3  ;;  %v11368_v27 = vsel %vm17008_vm4, %v11314_v3, %v11327_v9  ;;  %17234 = vst [vmem:[#allocation54_spill] sm:$0xff] %v11376_v53 }
 0x1e6   :  { %v11343_v33 = vmax.f32 %v17228_v12, %v2566_v56  ;;  %8049 = vrot.lane.b32.xlu1 %v11164_v63, %s9568_s17  ;;  %v7622_v12 = vpop.f32.mrb[132].mxu0  ;;  %17232 = vst [vmem:[#allocation46_spill] sm:$0xff] %v11360_v59  ;;  %v2050_v22 = vmax.f32 %v1840_v17, 0.0  ;;  %v2048_v56 = vmax.f32 %v1832_v6, 0.0  ;;  %v17233_v32 = vpack.i.bf16 %v11021_v7, %v17194_v40 }
 0x1e7   :  { %v11363_v28 = vadd.f32 %v10608_v52, %v7622_v12  ;;  %v11370_v21 = vpop.f32.mrb[133].mxu0  ;;  %v11380_v20 = vadd.f32 %v10608_v52, %v11195_v10  ;;  %v11384_v12 = vpack.i.bf16 %v11339_v51, %v11075_v35  ;;  %v11387_v55 = vrot.slane %v10808_v15, 4 }
 0x1e8   :  { %7999 = vrot.lane.b32.xlu0 %v17233_v32, %s9580_s30  ;;  %v7623_v63 = vpop.f32.mrb[134].mxu0  ;;  %v2569_v6 = vrot.slane %v2049_v30, 2  ;;  %v11393_v57 = vrot.slane %v2050_v22, 2  ;;  %v2567_v53 = vrot.slane %v2048_v56, 2  ;;  %v11399_v10 = vadd.f32 %v10608_v52, %v11203_v49  ;;  %v11405_v30 = vpop.permute.xlu1 %7759 }
 0x1e9   :  { %17235 = vst [vmem:[#allocation56_spill] sm:$0xff] %v11384_v12  ;;  %17236 = vst [vmem:[#allocation30_spill] sm:$0xff] %v11387_v55  ;;  %v16509_v17 = vmax.f32 %v11363_v28, 0.0  ;;  %v1616_v40 = vadd.f32 %v10608_v52, %v7623_v63  ;;  %v11391_v32 = vpop.f32.mrb[135].mxu0  ;;  %v11403_v7 = vadd.f32 %v10608_v52, %v11219_v8  ;;  %v11409_v63 = vadd.f32 %v10608_v52, %v11228_v43 }
 0x1ea   :  { %17237 = vst [vmem:[#allocation106_spill] sm:$0xff] %v11391_v32  ;;  %8064 = vrot.lane.b32.xlu1 %v11245_v26, %s9575_s25  ;;  %17238 = vst [vmem:[#allocation107_spill] sm:$0xff] %v11405_v30  ;;  %v11413_v22 = vpack.i.bf16 %v11368_v27, %v11360_v59  ;;  %v2572_v49 = vsel %vm2068_vm3, %v2569_v6, %v11393_v57  ;;  %v2568_v8 = vsel %vm2068_vm3, %v2565_v25, %v2567_v53 }
 0x1eb   :  { %v2492_v56 = vrot.slane %v16509_v17, 2  ;;  %v1994_v1 = vmax.f32 %v1616_v40, 0.0  ;;  %v17239_v30 = vpack.i.bf16 %v11049_v2, %v10967_v44  ;;  %v11427_v43 = vsel %vm17009_vm0, %v10749_v50, %v11387_v55 }
 0x1ec   :  { %v17240_v9 = vmax.f32 %v11217_v41, 0.0  ;;  %v2570_v40 = vsel %vm2068_vm3, %v2567_v53, %v2569_v6  ;;  %v17241_v17 = vmax.f32 %v11226_v0, 0.0  ;;  %v1985_v25 = vmax.f32 %v11380_v20, 0.0  ;;  %v7626_v0 = vpop.f32.mrb[136].mxu0  ;;  %v17243_v20 = vld [vmem:[#allocation61_spill] sm:$0xff] }
 0x1ed   :  { %8014 = vrot.lane.b32.xlu0 %v17239_v30, %s9577_s27  ;;  %v2493_v32 = vrot.slane %v1994_v1, 2  ;;  %v2985_v30 = vsel %vm17009_vm0, %v11185_v11, %v11387_v55  ;;  %v11442_v44 = vmax.f32 %v2036_v36, %v2570_v40  ;;  %v8043_v53 = vpack.i.bf16 %v11107_v46, %v17147_v48 }
 0x1ee   :  { %v11431_v59 = vmax.f32 %v17240_v9, %v2572_v49  ;;  %v11436_v15 = vmax.f32 %v17241_v17, %v2568_v8  ;;  %v11446_v9 = vpop.permute.xlu0 %7754  ;;  %8074 = vrot.lane.b32.xlu1 %v8073_v39, %s9572_s21  ;;  %v1845_v1 = vadd.f32 %v10608_v52, %v17243_v20  ;;  %v1629_v11 = vadd.f32 %v10608_v52, %v7626_v0  ;;  %v1620_v49 = vpop.f32.mrb[137].mxu0 }
 0x1ef   :  { %17242 = vst [vmem:[#allocation108_spill] sm:$0xff] %v11446_v9  ;;  %v2494_v36 = vsel %vm2068_vm3, %v2492_v56, %v2493_v32  ;;  %v11458_v17 = vpack.i.bf16 %v11427_v43, %v11112_v31  ;;  %v11461_v39 = vpop.permute.xlu1 %7774  ;;  %v17245_v8 = vmax.f32 %v11118_v62, 0.0  ;;  %v1621_v20 = vadd.f32 %v10608_v52, %v1620_v49  ;;  %v7627_v41 = vpop.f32.mrb[138].mxu0 }
 0x1f0   :  { %17244 = vst [vmem:[#allocation61_spill] sm:$0xff] %v11461_v39  ;;  %v11468_v56 = vsel %vm17008_vm4, %v10749_v50, %v2985_v30  ;;  %v2051_v0 = vmax.f32 %v1845_v1, 0.0  ;;  %v1997_v6 = vmax.f32 %v1629_v11, 0.0  ;;  %v1632_v31 = vadd.f32 %v10608_v52, %v7627_v41  ;;  %v1623_v2 = vpop.f32.mrb[139].mxu0 }
 0x1f1   :  { %8024 = vrot.lane.b32.xlu0 %v8023_v18, %s9580_s30  ;;  %v2530_v40 = vmax.f32 %v17245_v8, %v2494_v36  ;;  %17246 = vst [vmem:[#allocation109_spill] sm:$0xff] %v11468_v56  ;;  %v17247_v48 = vrot.slane %v10759_v60, 4  ;;  %v11480_v62 = vsel %vm2068_vm3, %v11240_v5, %v10749_v50  ;;  %v1995_v41 = vmax.f32 %v1621_v20, 0.0 }
 0x1f2   :  { %17249 = vst [vmem:[#allocation111_spill] sm:$0xff] %v11480_v62  ;;  %v11482_v36 = vpop.permute.xlu0 %7764  ;;  %8079 = vrot.lane.b32.xlu1 %v11413_v22, %s9579_s29  ;;  %v1624_v1 = vadd.f32 %v10608_v52, %v1623_v2  ;;  %v11490_v11 = vrot.slane %v2051_v0, 2  ;;  %v2499_v49 = vrot.slane %v1997_v6, 2  ;;  %v1998_v5 = vmax.f32 %v1632_v31, 0.0 }
 0x1f3   :  { %v11475_v18 = vsel %vm17009_vm0, %v10756_v4, %v17247_v48  ;;  %17250 = vst [vmem:[#allocation112_spill] sm:$0xff] %v11482_v36  ;;  %v11487_v30 = vmax.f32 %v2530_v40, %v11275_v42  ;;  %v11494_v48 = vadd.f32 %v10608_v52, %v11267_v47  ;;  %v11497_v8 = vrot.slane %v10820_v34, 4  ;;  %v11509_v2 = vpop.permute.xlu1 %7779 }
 0x1f4   :  { %17248 = vst [vmem:[#allocation110_spill] sm:$0xff] %v11475_v18  ;;  %v11501_v36 = vadd.f32 %v10608_v52, %v11282_v24  ;;  %v11505_v42 = vadd.f32 %v10608_v52, %v11301_v61  ;;  %17252 = vst [vmem:[#allocation114_spill] sm:$0xff] %v11509_v2  ;;  %v2495_v47 = vrot.slane %v1995_v41, 2  ;;  %v1996_v40 = vmax.f32 %v1624_v1, 0.0  ;;  %v7630_v41 = vpop.f32.mrb[140].mxu0 }
 0x1f5   :  { %17251 = vst [vmem:[#allocation113_spill] sm:$0xff] %v11487_v30  ;;  %8034 = vrot.lane.b32.xlu0 %v11384_v12, %s9576_s26  ;;  %v11511_v6 = vrot.slane %v1998_v5, 2  ;;  %v8113_v20 = vpack.i.bf16 %v11468_v56, %v10759_v60  ;;  %v8053_v24 = vpack.i.bf16 %v11480_v62, %v11475_v18  ;;  %v2574_v52 = vsel %vm2068_vm3, %v11393_v57, %v11490_v11 }
 0x1f6   :  { %v11520_v61 = vpop.permute.xlu0 %7769  ;;  %8104 = vrot.lane.b32.xlu1 %v11458_v17, %s9575_s25  ;;  %v2496_v0 = vsel %vm2068_vm3, %v2493_v32, %v2495_v47  ;;  %v2497_v31 = vrot.slane %v1996_v40, 2  ;;  %v11528_v1 = vsel %vm17009_vm0, %v11387_v55, %v10823_v54  ;;  %v17255_v5 = vmax.f32 %v11254_v23, 0.0 }
 0x1f7   :  { %17253 = vst [vmem:[#allocation115_spill] sm:$0xff] %v11520_v61  ;;  %17254 = vst [vmem:[#allocation116_spill] sm:$0xff] %v11528_v1  ;;  %v17256_v57 = vmax.f32 %v11311_v16, 0.0  ;;  %v2502_v18 = vsel %vm2068_vm3, %v2499_v49, %v11511_v6  ;;  %v11541_v32 = vsel %vm2068_vm3, %v10826_v14, %v11497_v8  ;;  %v2691_v40 = vrot.slane %v10696_v37, 6  ;;  %v1636_v61 = vpop.f32.mrb[141].mxu0  ;;  %v11545_v23 = vpop.permute.xlu1 %7809 }
 0x1f8   :  { %v11532_v12 = vmax.f32 %v17255_v5, %v2574_v52  ;;  %17257 = vst [vmem:[#allocation117_spill] sm:$0xff] %v11541_v32  ;;  %v2534_v2 = vmax.f32 %v1985_v25, %v2502_v18  ;;  %17258 = vst [vmem:[#allocation118_spill] sm:$0xff] %v11545_v23  ;;  %v2498_v52 = vsel %vm2068_vm3, %v2495_v47, %v2497_v31  ;;  %v2692_v18 = vrot.slane %v10683_v38, 6  ;;  %v17261_v23 = vld [vmem:[#allocation59_spill] sm:$0xff] }
 0x1f9   :  { %v2531_v62 = vmax.f32 %v17256_v57, %v2496_v0  ;;  %8044 = vrot.lane.b32.xlu0 %v8043_v53, %s9574_s24  ;;  %v2500_v16 = vsel %vm2068_vm3, %v2497_v31, %v2499_v49  ;;  %v11552_v0 = vld [vmem:[%s16409_s2] ss:$0 sm:$0xff]  ;;  %v7631_v57 = vpop.f32.mrb[142].mxu0  ;;  %v17260_v53 = vmax.f32 %v11399_v10, 0.0  ;;  %s9588_s2 = smov 112  }
 0x1fa   :  { %v1645_v5 = vadd.f32 %v11552_v0, %v7630_v41  ;;  %v1853_v47 = vadd.f32 %v11552_v0, %v17261_v23  ;;  %v1639_v49 = vpop.f32.mrb[143].mxu0  ;;  %v11564_v31 = vmax.f32 %v2534_v2, %v11343_v33  ;;  %v11566_v39 = vpop.permute.xlu0 %7784  ;;  %v17263_v41 = vmax.f32 %v11409_v63, 0.0  ;;  %8114 = vrot.lane.b32.xlu1 %v8113_v20, %s9567_s0 }
 0x1fb   :  { %v11556_v37 = vmax.f32 %v2531_v62, %v11303_v45  ;;  %v2532_v25 = vmax.f32 %v17260_v53, %v2498_v52  ;;  %17262 = vst [vmem:[#allocation59_spill] sm:$0xff] %v11566_v39  ;;  %v1637_v10 = vadd.f32 %v11552_v0, %v1636_v61  ;;  %v8118_v23 = vpack.i.bf16 %v11541_v32, %v11528_v1  ;;  %v11586_v20 = vpop.permute.xlu1 %7814 }
 0x1fc   :  { %v2533_v9 = vmax.f32 %v17263_v41, %v2500_v16  ;;  %v2001_v45 = vmax.f32 %v1645_v5, 0.0  ;;  %v11579_v33 = vsel %vm17008_vm4, %v2692_v18, %v11075_v35  ;;  %v1648_v2 = vadd.f32 %v11552_v0, %v7631_v57  ;;  %17264 = vst [vmem:[#allocation120_spill] sm:$0xff] %v11586_v20  ;;  %v7634_v41 = vpop.f32.mrb[144].mxu0 }
 0x1fd   :  { %17259 = vst [vmem:[#allocation119_spill] sm:$0xff] %v11556_v37  ;;  %v11573_v62 = vmax.f32 %v2532_v25, %v11305_v13  ;;  %8054 = vrot.lane.b32.xlu0 %v8053_v24, %s9580_s30  ;;  %v1999_v61 = vmax.f32 %v1637_v10, 0.0  ;;  %v1640_v13 = vadd.f32 %v11552_v0, %v1639_v49  ;;  %v11590_v52 = vrot.slane %v10826_v14, 6 }
 0x1fe   :  { %v11583_v63 = vmax.f32 %v2533_v9, %v11284_v29  ;;  %v1989_v16 = vmax.f32 %v11494_v48, 0.0  ;;  %v2507_v5 = vrot.slane %v2001_v45, 2  ;;  %v11594_v53 = vsel %vm17008_vm4, %v2691_v40, %v2692_v18  ;;  %v11597_v9 = vpop.permute.xlu0 %7789  ;;  %8119 = vrot.lane.b32.xlu1 %v8118_v23, %s9567_s0  ;;  %v1652_v18 = vpop.f32.mrb[145].mxu0 }
 0x1ff   :  { %17265 = vst [vmem:[#allocation121_spill] sm:$0xff] %v11590_v52  ;;  %v2002_v57 = vmax.f32 %v1648_v2, 0.0  ;;  %v1987_v29 = vmax.f32 %v11501_v36, 0.0  ;;  %17266 = vst [vmem:[#allocation122_spill] sm:$0xff] %v11597_v9  ;;  %v8058_v24 = vpack.i.bf16 %v11579_v33, %v11594_v53  ;;  %v2503_v25 = vrot.slane %v1999_v61, 2  ;;  %v11609_v23 = vpop.permute.xlu1 %7819  ;;  %v17270_v9 = vld [vmem:[#allocation42_spill] sm:$0xff] }
 0x200   :  { %v2000_v49 = vmax.f32 %v1640_v13, 0.0  ;;  %v1988_v10 = vmax.f32 %v11505_v42, 0.0  ;;  %v2053_v48 = vmax.f32 %v1853_v47, 0.0  ;;  %v1661_v40 = vadd.f32 %v11552_v0, %v7634_v41  ;;  %17267 = vst [vmem:[#allocation123_spill] sm:$0xff] %v11609_v23  ;;  %v17268_v13 = vld [vmem:[#allocation63_spill] sm:$0xff]  ;;  %v11615_v47 = vpop.f32.mrb[146].mxu0 }
 0x201   :  { %v11603_v45 = vrot.slane %v2002_v57, 2  ;;  %8059 = vrot.lane.b32.xlu0 %v8058_v24, %s9572_s21  ;;  %v2504_v36 = vsel %vm2068_vm3, %v11511_v6, %v2503_v25  ;;  %v8128_v61 = vpack.i.bf16 %v10522_v19, %v11590_v52  ;;  %v1856_v42 = vadd.f32 %v11552_v0, %v17268_v13  ;;  %v1655_v23 = vpop.f32.mrb[147].mxu0 }
 0x202   :  { %v2505_v2 = vrot.slane %v2000_v49, 2  ;;  %v17269_v57 = vmax.f32 %v11403_v7, 0.0  ;;  %v2853_v6 = vsel %vm2068_vm3, %v11314_v3, %v17270_v9  ;;  %v11624_v20 = vpop.permute.xlu0 %7794  ;;  %v2005_v39 = vmax.f32 %v1661_v40, 0.0  ;;  %v17272_v7 = vld [vmem:[#allocation12_spill] sm:$0xff] }
 0x203   :  { %v2510_v24 = vsel %vm2068_vm3, %v2507_v5, %v11603_v45  ;;  %17271 = vst [vmem:[#allocation63_spill] sm:$0xff] %v11624_v20  ;;  %8129 = vrot.lane.b32.xlu1 %v8128_v61, %s9569_s18  ;;  %v2577_v50 = vrot.slane %v2053_v48, 2  ;;  %v2054_v40 = vmax.f32 %v1856_v42, 0.0  ;;  %v17275_v61 = vld [vmem:[#allocation43_spill] sm:$0xff] }
 0x204   :  { %v2535_v41 = vmax.f32 %v17269_v57, %v2504_v36  ;;  %v2538_v49 = vmax.f32 %v1989_v16, %v2510_v24  ;;  %v2506_v19 = vsel %vm2068_vm3, %v2503_v25, %v2505_v2  ;;  %v2508_v13 = vsel %vm2068_vm3, %v2505_v2, %v2507_v5  ;;  %v11641_v5 = vpop.permute.xlu1 %7854 }
 0x205   :  { %v11631_v36 = vadd.f32 %v11552_v0, %v17272_v7  ;;  %v2536_v38 = vmax.f32 %v1987_v29, %v2506_v19  ;;  %v2537_v24 = vmax.f32 %v1988_v10, %v2508_v13  ;;  %8069 = vrot.lane.b32.xlu0 %v11245_v26, %s9572_s21  ;;  %17274 = vst [vmem:[#allocation12_spill] sm:$0xff] %v11641_v5  ;;  %v2515_v25 = vrot.slane %v2005_v39, 2  ;;  %v17277_v29 = vld [vmem:[#allocation25_spill] sm:$0xff]  ;;  %v17283_v13 = vld [vmem:[#allocation14_spill] sm:$0xff] }
 0x206   :  { %v11634_v57 = vmax.f32 %v2535_v41, %v11436_v15  ;;  %v11637_v16 = vmax.f32 %v2538_v49, %v11532_v12  ;;  %v2041_v2 = vmax.f32 %v11356_v58, 0.0  ;;  %v1600_v7 = vadd.f32 %v11552_v0, %v17275_v61  ;;  %v11656_v26 = vpop.permute.xlu0 %7799  ;;  %v11664_v41 = vpop.f32.mrb[148].mxu0 }
 0x207   :  { %v11647_v15 = vmax.f32 %v2536_v38, %v11442_v44  ;;  %v11651_v12 = vsel %vm17009_vm0, %v17277_v29, %v2853_v6  ;;  %v11654_v10 = vmax.f32 %v2537_v24, %v11431_v59  ;;  %17279 = vst [vmem:[#allocation124_spill] sm:$0xff] %v11656_v26  ;;  %v17280_v39 = vmax.f32 %v11363_v28, 0.0  ;;  %v17281_v38 = vld [vmem:[#allocation32_spill] sm:$0xff]  ;;  %v17282_v6 = vld [vmem:[#allocation38_spill] sm:$0xff]  ;;  %v11673_v28 = vpop.f32.mrb[149].mxu0 }
 0x208   :  { %17273 = vst [vmem:[#allocation42_spill] sm:$0xff] %v11637_v16  ;;  %v2579_v42 = vrot.slane %v2054_v40, 2  ;;  %v11662_v58 = vpack.i.bf16 %v11651_v12, %v11339_v51  ;;  %v1797_v44 = vadd.f32 %v11552_v0, %v17281_v38  ;;  %v1800_v49 = vadd.f32 %v11552_v0, %v17282_v6  ;;  %v17284_v40 = vld [vmem:[#allocation36_spill] sm:$0xff] }
 0x209   :  { %17276 = vst [vmem:[#allocation43_spill] sm:$0xff] %v11647_v15  ;;  %17278 = vst [vmem:[#allocation25_spill] sm:$0xff] %v11654_v10  ;;  %v2542_v48 = vmax.f32 %v17280_v39, %v2515_v25  ;;  %v8083_v59 = vpack.i.bf16 %v11594_v53, %v11368_v27  ;;  %v1653_v19 = vadd.f32 %v11552_v0, %v1652_v18  ;;  %v17285_v61 = vmax.f32 %v17284_v40, 0.0  ;;  %v17286_v39 = vld [vmem:[#allocation66_spill] sm:$0xff]  ;;  %v11686_v53 = vpop.permute.xlu1 %7869  ;;  %v11688_v18 = vpop.f32.mrb[150].mxu0 }
 0x20a   :  { %v11677_v24 = vadd.f32 %v11552_v0, %v17283_v13  ;;  %v2580_v51 = vsel %vm2068_vm3, %v2577_v50, %v2579_v42  ;;  %8134 = vrot.lane.b32.xlu1 %v11662_v58, %s9579_s29  ;;  %v1848_v38 = vadd.f32 %v11552_v0, %v17286_v39  ;;  %17287 = vst [vmem:[#allocation32_spill] sm:$0xff] %v11686_v53  ;;  %v17288_v13 = vld [vmem:[#allocation106_spill] sm:$0xff]  ;;  %v11695_v40 = vpop.f32.mrb[151].mxu0  ;;  %v11699_v60 = vpop.permute.xlu0 %7804  ;;  %v2039_v46 = vmax.f32 %v1797_v44, 0.0 }
 0x20b   :  { %v2606_v29 = vmax.f32 %v17285_v61, %v2579_v42  ;;  %v1605_v6 = vadd.f32 %v11552_v0, %v11370_v21  ;;  %v1608_v26 = vadd.f32 %v11552_v0, %v17288_v13  ;;  %v2605_v5 = vmax.f32 %v2041_v2, %v2580_v51  ;;  %8084 = vrot.lane.b32.xlu0 %v8083_v59, %s9569_s18 }
 0x20c   :  { %v2003_v42 = vmax.f32 %v1653_v19, 0.0  ;;  %v1990_v61 = vmax.f32 %v1600_v7, 0.0  ;;  %v2052_v39 = vmax.f32 %v1848_v38, 0.0  ;;  %17290 = vst [vmem:[#allocation14_spill] sm:$0xff] %v11699_v60  ;;  %v1656_v53 = vadd.f32 %v11552_v0, %v1655_v23 }
 0x20d   :  { %v11697_v20 = vmax.f32 %v2542_v48, %v2606_v29  ;;  %v2040_v35 = vmax.f32 %v1800_v49, 0.0  ;;  %v16542_v10 = vrot.slane %v10823_v54, 4  ;;  %v11704_v59 = vrot.slane %v10826_v14, 4  ;;  %v11706_v19 = vpop.permute.xlu1 %7879 }
 0x20e   :  { %v2511_v21 = vrot.slane %v2003_v42, 2  ;;  %v2575_v13 = vrot.slane %v2052_v39, 2  ;;  %v2004_v2 = vmax.f32 %v1656_v53, 0.0  ;;  %17292 = vst [vmem:[#allocation66_spill] sm:$0xff] %v11706_v19  ;;  %v1991_v7 = vmax.f32 %v1605_v6, 0.0  ;;  %v11718_v53 = vpop.permute.xlu0 %7824  ;;  %v7642_v6 = vpop.f32.mrb[152].mxu0 }
 0x20f   :  { %17289 = vst [vmem:[#allocation38_spill] sm:$0xff] %v11697_v20  ;;  %17291 = vst [vmem:[#allocation36_spill] sm:$0xff] %v11704_v59  ;;  %v1992_v48 = vmax.f32 %v1608_v26, 0.0  ;;  %v11711_v29 = vrot.slane %v10823_v54, 6  ;;  %8089 = vrot.lane.b32.xlu0 %v11458_v17, %s9574_s24  ;;  %v17294_v26 = vld [vmem:[#allocation83_spill] sm:$0xff] }
 0x210   :  { %v2512_v51 = vsel %vm2068_vm3, %v11603_v45, %v2511_v21  ;;  %v2576_v44 = vsel %vm2068_vm3, %v11490_v11, %v2575_v13  ;;  %v2578_v49 = vsel %vm2068_vm3, %v2575_v13, %v2577_v50  ;;  %v2513_v38 = vrot.slane %v2004_v2, 2  ;;  %17293 = vst [vmem:[#allocation106_spill] sm:$0xff] %v11718_v53  ;;  %v1684_v11 = vpop.f32.mrb[153].mxu0  ;;  %v17296_v50 = vld [vmem:[#allocation10_spill] sm:$0xff] }
 0x211   :  { %v2539_v23 = vmax.f32 %v1990_v61, %v2512_v51  ;;  %v1496_v42 = vadd.f32 %v11552_v0, %v17294_v26  ;;  %v2603_v45 = vmax.f32 %v2039_v46, %v2576_v44  ;;  %v2604_v39 = vmax.f32 %v2040_v35, %v2578_v49  ;;  %v17297_v51 = vld [vmem:[#allocation79_spill] sm:$0xff]  ;;  %v11733_v19 = vpop.permute.xlu1 %7884  ;;  %v7643_v46 = vpop.f32.mrb[154].mxu0 }
 0x212   :  { %v11726_v61 = vsel %vm17009_vm0, %v16542_v10, %v11704_v59  ;;  %v2026_v13 = vmax.f32 %v17296_v50, 0.0  ;;  %v2514_v2 = vsel %vm2068_vm3, %v2511_v21, %v2513_v38  ;;  %v2516_v17 = vsel %vm2068_vm3, %v2513_v38, %v2515_v25  ;;  %17298 = vst [vmem:[#allocation10_spill] sm:$0xff] %v11733_v19  ;;  %v1687_v10 = vpop.f32.mrb[155].mxu0  ;;  %v17300_v25 = vld [vmem:[#allocation46_spill] sm:$0xff] }
 0x213   :  { %17295 = vst [vmem:[#allocation83_spill] sm:$0xff] %v11726_v61  ;;  %v8138_v53 = vpack.i.bf16 %v11726_v61, %v17297_v51  ;;  %v11735_v35 = vmax.f32 %v2539_v23, %v2603_v45  ;;  %v2540_v44 = vmax.f32 %v1991_v7, %v2514_v2  ;;  %v2541_v49 = vmax.f32 %v1992_v48, %v2516_v17  ;;  %v17302_v23 = vld [vmem:[#allocation49_spill] sm:$0xff]  ;;  %v11750_v48 = vpop.permute.xlu0 %7829  ;;  %v17308_v17 = vld [vmem:[#allocation62_spill] sm:$0xff] }
 0x214   :  { %v2863_v26 = vsel %vm2068_vm3, %v17270_v9, %v11711_v29  ;;  %v2024_v50 = vmax.f32 %v11631_v36, 0.0  ;;  %v2027_v21 = vmax.f32 %v11677_v24, 0.0  ;;  %v17301_v38 = vrot.slane %v10756_v4, 6  ;;  %17303 = vst [vmem:[#allocation49_spill] sm:$0xff] %v11750_v48  ;;  %v17307_v24 = vld [vmem:[#allocation37_spill] sm:$0xff] }
 0x215   :  { %17299 = vst [vmem:[#allocation125_spill] sm:$0xff] %v11735_v35  ;;  %8139 = vrot.lane.b32.xlu1 %v8138_v53, %s9580_s30  ;;  %v3994_v7 = vsel %vm17009_vm0, %v11314_v3, %v17302_v23  ;;  %v11752_v45 = vmax.f32 %v2540_v44, %v2604_v39  ;;  %v11754_v2 = vmax.f32 %v2541_v49, %v2605_v5  ;;  %v17309_v61 = vmax.f32 %v17308_v17, 0.0  ;;  %v11765_v19 = vpop.permute.xlu1 %7889  ;;  %v17312_v48 = vld [vmem:[#allocation13_spill] sm:$0xff]  ;;  %v17314_v44 = vld [vmem:[#allocation7_spill] sm:$0xff]  ;;  %v17326_v35 = vld [vmem:[#allocation82_spill] sm:$0xff] }
 0x216   :  { %v3993_v51 = vsel %vm17008_vm4, %v17301_v38, %v17300_v25  ;;  %v1493_v53 = vadd.f32 %v11552_v0, %v17307_v24  ;;  %v11763_v38 = vpack.i.bf16 %v2863_v26, %v11651_v12  ;;  %17311 = vst [vmem:[#allocation62_spill] sm:$0xff] %v11765_v19  ;;  %v1964_v3 = vmax.f32 %v1496_v42, 0.0  ;;  %v17320_v25 = vld [vmem:[#allocation86_spill] sm:$0xff] }
 0x217   :  { %17304 = vst [vmem:[#allocation126_spill] sm:$0xff] %v11752_v45  ;;  %17305 = vst [vmem:[#allocation127_spill] sm:$0xff] %v11754_v2  ;;  %v11756_v36 = vpack.i.bf16 %v3994_v7, %v3993_v51  ;;  %v2428_v4 = vrot.slane %v17309_v61, 2  ;;  %v2430_v60 = vrot.slane %v2026_v13, 2  ;;  %v1757_v39 = vadd.f32 %v11552_v0, %v17312_v48  ;;  %v17313_v51 = vld [vmem:[#allocation89_spill] sm:$0xff]  ;;  %v11783_v42 = vpop.permute.xlu0 %7834  ;;  %v11785_v13 = vpop.f32.mrb[156].mxu0 }
 0x218   :  { %17310 = vst [vmem:[#allocation37_spill] sm:$0xff] %v11763_v38  ;;  %v11774_v5 = vsel %vm17008_vm4, %v11711_v29, %v11590_v52  ;;  %v1962_v61 = vmax.f32 %v17313_v51, 0.0  ;;  %v17315_v12 = vmax.f32 %v17314_v44, 0.0  ;;  %17316 = vst [vmem:[#allocation13_spill] sm:$0xff] %v11783_v42  ;;  %v17317_v7 = vld [vmem:[#allocation94_spill] sm:$0xff]  ;;  %v2426_v24 = vrot.slane %v2024_v50, 2 }
 0x219   :  { %17306 = vst [vmem:[#allocation128_spill] sm:$0xff] %v11756_v36  ;;  %8094 = vrot.lane.b32.xlu0 %v11756_v36, %s9568_s17  ;;  %8149 = vrot.lane.b32.xlu1 %v11763_v38, %s9576_s26  ;;  %v1965_v48 = vmax.f32 %v17317_v7, 0.0  ;;  %v11788_v17 = vrot.slane %v2027_v21, 2  ;;  %v11790_v36 = vpop.f32.mrb[157].mxu0  ;;  %v1963_v19 = vmax.f32 %v1493_v53, 0.0  ;;  %v17318_v51 = vld [vmem:[#allocation17_spill] sm:$0xff]  ;;  %v1693_v52 = vadd.f32 %v11552_v0, %v7642_v6  ;;  %v11796_v38 = vpop.permute.xlu1 %7894 }
 0x21a   :  { %v11779_v49 = vrot.slane %v17315_v12, 2  ;;  %v1752_v44 = vadd.f32 %v11552_v0, %v17318_v51  ;;  %v8158_v12 = vpack.i.bf16 %v11774_v5, %v2863_v26  ;;  %17319 = vst [vmem:[#allocation89_spill] sm:$0xff] %v11796_v38  ;;  %v11798_v42 = vpop.f32.mrb[158].mxu0  ;;  %v1512_v7 = vadd.f32 %v11552_v0, %v17320_v25  ;;  %v17321_v21 = vld [vmem:[#allocation105_spill] sm:$0xff]  ;;  %v17323_v25 = vld [vmem:[#allocation16_spill] sm:$0xff] }
 0x21b   :  { %v2029_v50 = vmax.f32 %v1757_v39, 0.0  ;;  %v2396_v53 = vmax.f32 %v1964_v3, %v17321_v21  ;;  %v2431_v20 = vsel %vm2068_vm3, %v2428_v4, %v2430_v60  ;;  %v11806_v51 = vpop.f32.mrb[159].mxu0  ;;  %v2013_v6 = vmax.f32 %v1693_v52, 0.0  ;;  %v11815_v45 = vpop.permute.xlu0 %7839  ;;  %v17325_v21 = vld [vmem:[#allocation103_spill] sm:$0xff] }
 0x21c   :  { %v11811_v26 = vpack.i.bf16 %v11528_v1, %v11468_v56  ;;  %v1685_v38 = vadd.f32 %v11552_v0, %v1684_v11  ;;  %v2394_v39 = vmax.f32 %v1962_v61, %v17323_v25  ;;  %17324 = vst [vmem:[#allocation94_spill] sm:$0xff] %v11815_v45  ;;  %v1696_v3 = vadd.f32 %v11552_v0, %v7643_v46  ;;  %v17328_v61 = vld [vmem:[#allocation85_spill] sm:$0xff] }
 0x21d   :  { %8099 = vrot.lane.b32.xlu0 %v11413_v22, %s9580_s30  ;;  %8159 = vrot.lane.b32.xlu1 %v8158_v12, %s9573_s22  ;;  %v2427_v22 = vsel %vm2068_vm3, %v11779_v49, %v2426_v24  ;;  %v2397_v2 = vmax.f32 %v1965_v48, %v17325_v21  ;;  %v2433_v52 = vsel %vm2068_vm3, %v2430_v60, %v11788_v17  ;;  %v11825_v11 = vpop.permute.xlu1 %7904  ;;  %v11831_v45 = vrot.slane %v2029_v50, 2  ;;  %v11842_v21 = vpop.f32.mrb[160].mxu0 }
 0x21e   :  { %17322 = vst [vmem:[#allocation7_spill] sm:$0xff] %v11811_v26  ;;  %v1504_v1 = vadd.f32 %v11552_v0, %v17326_v35  ;;  %v2460_v56 = vmax.f32 %v2013_v6, %v2431_v20  ;;  %v2011_v37 = vmax.f32 %v1685_v38, 0.0  ;;  %17327 = vst [vmem:[#allocation17_spill] sm:$0xff] %v11825_v11  ;;  %v11829_v25 = vadd.f32 %v11552_v0, %v17328_v61  ;;  %v17330_v35 = vld [vmem:[#allocation104_spill] sm:$0xff]  ;;  %v17332_v61 = vld [vmem:[#allocation51_spill] sm:$0xff] }
 0x21f   :  { %v2028_v30 = vmax.f32 %v1752_v44, 0.0  ;;  %v2014_v46 = vmax.f32 %v1696_v3, 0.0  ;;  %v1688_v20 = vadd.f32 %v11552_v0, %v1687_v10  ;;  %v2395_v38 = vmax.f32 %v1963_v19, %v17330_v35  ;;  %v11840_v6 = vpop.permute.xlu0 %7844 }
 0x220   :  { %v11835_v48 = vmax.f32 %v2396_v53, %v2460_v56  ;;  %v2458_v60 = vmax.f32 %v2011_v37, %v2427_v22  ;;  %17331 = vst [vmem:[#allocation105_spill] sm:$0xff] %v11840_v6  ;;  %v1968_v50 = vmax.f32 %v1512_v7, 0.0  ;;  %v17333_v44 = vmax.f32 %v17332_v61, 0.0  ;;  %v11847_v56 = vpop.f32.mrb[161].mxu0 }
 0x221   :  { %8109 = vrot.lane.b32.xlu0 %v11811_v26, %s9577_s27  ;;  %8174 = vrot.lane.b32.xlu1 %v8158_v12, %s9579_s29  ;;  %v2461_v32 = vmax.f32 %v2014_v46, %v2433_v52  ;;  %v2429_v3 = vsel %vm2068_vm3, %v2426_v24, %v2428_v4  ;;  %v2012_v37 = vmax.f32 %v1688_v20, 0.0  ;;  %v2709_v10 = vrot.slane %v10823_v54, 2  ;;  %v11857_v12 = vpop.permute.xlu1 %7919  ;;  %v11859_v7 = vpop.f32.mrb[162].mxu0 }
 0x222   :  { %17329 = vst [vmem:[#allocation86_spill] sm:$0xff] %v11835_v48  ;;  %v2438_v11 = vrot.slane %v17333_v44, 2  ;;  %v11849_v53 = vmax.f32 %v2394_v39, %v2458_v60  ;;  %v11855_v19 = vsel %vm17008_vm4, %v17302_v23, %v11711_v29  ;;  %17334 = vst [vmem:[#allocation16_spill] sm:$0xff] %v11857_v12  ;;  %v11864_v4 = vrot.slane %v10826_v14, 2  ;;  %v11867_v39 = vpop.f32.mrb[163].mxu0 }
 0x223   :  { %v11861_v22 = vmax.f32 %v2397_v2, %v2461_v32  ;;  %v16565_v24 = vrot.slane %v10820_v34, 6  ;;  %v1966_v52 = vmax.f32 %v1504_v1, 0.0  ;;  %v2459_v46 = vmax.f32 %v2012_v37, %v2429_v3  ;;  %v11869_v60 = vpop.permute.xlu0 %7849  ;;  %v17338_v3 = vld [vmem:[#allocation40_spill] sm:$0xff] }
 0x224   :  { %17336 = vst [vmem:[#allocation82_spill] sm:$0xff] %v11869_v60  ;;  %v2434_v20 = vrot.slane %v2028_v30, 2  ;;  %v3013_v29 = vsel %vm2068_vm3, %v2709_v10, %v11864_v4  ;;  %v1709_v23 = vadd.f32 %v11552_v0, %v11785_v13  ;;  %v1967_v1 = vmax.f32 %v11829_v25, 0.0 }
 0x225   :  { %17335 = vst [vmem:[#allocation103_spill] sm:$0xff] %v11861_v22  ;;  %v11877_v32 = vsel %vm2068_vm3, %v11864_v4, %v16565_v24  ;;  %8124 = vrot.lane.b32.xlu0 %v11662_v58, %s9573_s22  ;;  %v11884_v2 = vmax.f32 %v2395_v38, %v2459_v46  ;;  %v11888_v30 = vsel %vm17009_vm0, %v11855_v19, %v3013_v29  ;;  %v11890_v35 = vpop.permute.xlu1 %7924  ;;  %v17339_v13 = vrot.slane %v10823_v54, 4  ;;  %v17340_v29 = vld [vmem:[#allocation21_spill] sm:$0xff] }
 0x226   :  { %17337 = vst [vmem:[#allocation85_spill] sm:$0xff] %v11890_v35  ;;  %v8183_v61 = vpack.i.bf16 %v11877_v32, %v11888_v30  ;;  %v2017_v44 = vmax.f32 %v1709_v23, 0.0  ;;  %v2400_v37 = vmax.f32 %v1968_v50, %v17338_v3  ;;  %v2439_v58 = vsel %vm2068_vm3, %v11831_v45, %v2438_v11  ;;  %v17342_v35 = vld [vmem:[#allocation81_spill] sm:$0xff] }
 0x227   :  { %v2876_v25 = vsel %vm17009_vm0, %v11387_v55, %v17339_v13  ;;  %v2710_v38 = vsel %vm2068_vm3, %v17270_v9, %v2709_v10  ;;  %v1701_v46 = vadd.f32 %v11552_v0, %v11790_v36  ;;  %v2398_v24 = vmax.f32 %v1966_v52, %v17340_v29  ;;  %v11906_v26 = vpop.permute.xlu0 %7859  ;;  %v17347_v29 = vld [vmem:[#allocation24_spill] sm:$0xff] }
 0x228   :  { %17341 = vst [vmem:[#allocation104_spill] sm:$0xff] %v11906_v26  ;;  %8184 = vrot.lane.b32.xlu1 %v8183_v61, %s9579_s29  ;;  %v2464_v50 = vmax.f32 %v2017_v44, %v2439_v58  ;;  %v2884_v23 = vsel %vm2068_vm3, %v2876_v25, %v10823_v54  ;;  %v8143_v3 = vpack.i.bf16 %v11774_v5, %v2710_v38  ;;  %v11915_v9 = vrot.slane %v17342_v35, 4 }
 0x229   :  { %v2435_v13 = vsel %vm2068_vm3, %v11788_v17, %v2434_v20  ;;  %v2015_v10 = vmax.f32 %v1701_v46, 0.0  ;;  %v1712_v36 = vadd.f32 %v11552_v0, %v11798_v42  ;;  %v11919_v52 = vpop.permute.xlu1 %7934  ;;  %v1664_v61 = vadd.f32 %v11552_v0, %v11615_v47 }
 0x22a   :  { %17343 = vst [vmem:[#allocation51_spill] sm:$0xff] %v11915_v9  ;;  %17344 = vst [vmem:[#allocation40_spill] sm:$0xff] %v11919_v52  ;;  %v11923_v44 = vmax.f32 %v2400_v37, %v2464_v50  ;;  %v11926_v58 = vpack.i.bf16 %v2884_v23, %v11427_v43  ;;  %8144 = vrot.lane.b32.xlu0 %v8143_v3, %s9572_s21  ;;  %v1704_v46 = vadd.f32 %v11552_v0, %v11806_v51 }
 0x22b   :  { %v2462_v17 = vmax.f32 %v2015_v10, %v2435_v13  ;;  %v2018_v38 = vmax.f32 %v1712_v36, 0.0  ;;  %v2399_v26 = vmax.f32 %v1967_v1, %v17347_v29  ;;  %v11932_v42 = vpop.permute.xlu0 %7864  ;;  %v2437_v47 = vsel %vm2068_vm3, %v2434_v20, %v11831_v45  ;;  %v17353_v20 = vld [vmem:[#allocation20_spill] sm:$0xff] }
 0x22c   :  { %17345 = vst [vmem:[#allocation21_spill] sm:$0xff] %v11923_v44  ;;  %17346 = vst [vmem:[#allocation81_spill] sm:$0xff] %v11926_v58  ;;  %8194 = vrot.lane.b32.xlu1 %v11926_v58, %s9581_s12  ;;  %v11941_v43 = vsel %vm17009_vm0, %v11497_v8, %v11915_v9  ;;  %v2016_v13 = vmax.f32 %v1704_v46, 0.0  ;;  %v2006_v1 = vmax.f32 %v1664_v61, 0.0  ;;  %v1677_v10 = vadd.f32 %v11552_v0, %v11664_v41 }
 0x22d   :  { %17348 = vst [vmem:[#allocation24_spill] sm:$0xff] %v11932_v42  ;;  %17349 = vst [vmem:[#allocation129_spill] sm:$0xff] %v11941_v43  ;;  %v11943_v37 = vmax.f32 %v2398_v24, %v2462_v17  ;;  %v2465_v50 = vmax.f32 %v2018_v38, %v2438_v11  ;;  %v11945_v51 = vpop.permute.xlu1 %7944  ;;  %v11950_v36 = vpack.i.bf16 %v10826_v14, %v2884_v23  ;;  %v11961_v61 = vrot.slane %v17342_v35, 2 }
 0x22e   :  { %17351 = vst [vmem:[#allocation131_spill] sm:$0xff] %v11945_v51  ;;  %8154 = vrot.lane.b32.xlu0 %v8143_v3, %s9569_s18  ;;  %v1725_v45 = vadd.f32 %v11552_v0, %v11842_v21  ;;  %v1680_v24 = vadd.f32 %v11552_v0, %v11688_v18  ;;  %v2463_v17 = vmax.f32 %v2016_v13, %v2437_v47  ;;  %v2415_v47 = vrot.slane %v2018_v38, 2 }
 0x22f   :  { %17350 = vst [vmem:[#allocation130_spill] sm:$0xff] %v11943_v37  ;;  %17352 = vst [vmem:[#allocation132_spill] sm:$0xff] %v11950_v36  ;;  %v11958_v11 = vmax.f32 %v17353_v20, %v2465_v50  ;;  %v11963_v46 = vpop.permute.xlu0 %7874  ;;  %v8163_v23 = vpack.i.bf16 %v10826_v14, %v2876_v25  ;;  %v1717_v21 = vadd.f32 %v11552_v0, %v11847_v56  ;;  %v17359_v25 = vld [vmem:[#allocation19_spill] sm:$0xff] }
 0x230   :  { %17355 = vst [vmem:[#allocation133_spill] sm:$0xff] %v11961_v61  ;;  %17356 = vst [vmem:[#allocation134_spill] sm:$0xff] %v11963_v46  ;;  %8204 = vrot.lane.b32.xlu1 %v11950_v36, %s9574_s24  ;;  %v2021_v41 = vmax.f32 %v1725_v45, 0.0  ;;  %v1728_v18 = vadd.f32 %v11552_v0, %v11859_v7  ;;  %v1669_v3 = vadd.f32 %v11552_v0, %v11673_v28  ;;  %v2009_v7 = vmax.f32 %v1677_v10, 0.0 }
 0x231   :  { %17354 = vst [vmem:[#allocation20_spill] sm:$0xff] %v11958_v11  ;;  %v1672_v29 = vadd.f32 %v11552_v0, %v11695_v40  ;;  %v11976_v50 = vmax.f32 %v2399_v26, %v2463_v17  ;;  %v11978_v13 = vpop.permute.xlu1 %7954  ;;  %v8218_v20 = vpack.i.bf16 %v17359_v25, %v11961_v61  ;;  %v2019_v56 = vmax.f32 %v1717_v21, 0.0 }
 0x232   :  { %17358 = vst [vmem:[#allocation136_spill] sm:$0xff] %v11978_v13  ;;  %v2420_v45 = vrot.slane %v2021_v41, 2  ;;  %8164 = vrot.lane.b32.xlu0 %v8163_v23, %s9567_s0  ;;  %v2022_v58 = vmax.f32 %v1728_v18, 0.0  ;;  %v2010_v46 = vmax.f32 %v1680_v24, 0.0  ;;  %v1720_v28 = vadd.f32 %v11552_v0, %v11867_v39  ;;  %v17361_v41 = vld [vmem:[#allocation60_spill] sm:$0xff] }
 0x233   :  { %17357 = vst [vmem:[#allocation135_spill] sm:$0xff] %v11976_v50  ;;  %v4024_v40 = vsel %vm17009_vm0, %v10823_v54, %v11704_v59  ;;  %v11988_v26 = vpop.permute.xlu0 %7899  ;;  %v2416_v38 = vrot.slane %v2019_v56, 2  ;;  %v2007_v23 = vmax.f32 %v1669_v3, 0.0  ;;  %v2008_v21 = vmax.f32 %v1672_v29, 0.0 }
 0x234   :  { %17360 = vst [vmem:[#allocation19_spill] sm:$0xff] %v11988_v26  ;;  %8219 = vrot.lane.b32.xlu1 %v8218_v20, %s9576_s26  ;;  %v2422_v17 = vrot.slane %v2022_v58, 2  ;;  %v8168_v13 = vpack.i.bf16 %v4024_v40, %v17361_v41  ;;  %v2020_v18 = vmax.f32 %v1720_v28, 0.0  ;;  %v11993_v10 = vrot.slane %v17342_v35, 6  ;;  %v17364_v20 = vld [vmem:[#allocation26_spill] sm:$0xff] }
 0x235   :  { %v11995_v24 = vpop.permute.xlu1 %7959  ;;  %v2417_v0 = vsel %vm2068_vm3, %v2415_v47, %v2416_v38  ;;  %v12003_v58 = vpack.i.bf16 %v17364_v20, %v11941_v43  ;;  %v12245_v60 = vpack.i.bf16 %v11941_v43, %v10826_v14 }
 0x236   :  { %17362 = vst [vmem:[#allocation60_spill] sm:$0xff] %v11993_v10  ;;  %17363 = vst [vmem:[#allocation137_spill] sm:$0xff] %v11995_v24  ;;  %v2423_v54 = vsel %vm2068_vm3, %v2420_v45, %v2422_v17  ;;  %v2425_v39 = vsel %vm2068_vm3, %v2422_v17, %v11779_v49  ;;  %8169 = vrot.lane.b32.xlu0 %v8168_v13, %s9572_s21  ;;  %v2453_v3 = vmax.f32 %v2006_v1, %v2417_v0  ;;  %v17367_v24 = vld [vmem:[#allocation57_spill] sm:$0xff]  ;;  %v17371_v13 = vld [vmem:[#allocation91_spill] sm:$0xff] }
 0x237   :  { %17365 = vst [vmem:[#allocation138_spill] sm:$0xff] %v12003_v58  ;;  %v2456_v29 = vmax.f32 %v2009_v7, %v2423_v54  ;;  %v2457_v56 = vmax.f32 %v2010_v46, %v2425_v39  ;;  %v2418_v28 = vrot.slane %v2020_v18, 2  ;;  %v12006_v41 = vpop.permute.xlu0 %7909  ;;  %v12009_v26 = vrot.slane %v17367_v24, 2  ;;  %v17373_v7 = vld [vmem:[#allocation99_spill] sm:$0xff]  ;;  %v17374_v18 = vld [vmem:[#allocation97_spill] sm:$0xff]  ;;  %17416 = vst [vmem:[#allocation167_spill] sm:$0xff] %v12245_v60 }
 0x238   :  { %17366 = vst [vmem:[#allocation139_spill] sm:$0xff] %v12006_v41  ;;  %8249 = vrot.lane.b32.xlu1 %v12003_v58, %s9567_s0  ;;  %v17369_v49 = vrot.slane %v10820_v34, 6  ;;  %v8178_v1 = vpack.i.bf16 %v11888_v30, %v11368_v27  ;;  %v12022_v46 = vmax.f32 %v17371_v13, %v2453_v3  ;;  %v3022_v3 = vrot.slane %v17364_v20, 2 }
 0x239   :  { %17368 = vst [vmem:[#allocation140_spill] sm:$0xff] %v12009_v26  ;;  %v12025_v17 = vmax.f32 %v17373_v7, %v2456_v29  ;;  %v12028_v0 = vmax.f32 %v17374_v18, %v2457_v56  ;;  %v2419_v54 = vsel %vm2068_vm3, %v2416_v38, %v2418_v28  ;;  %v12031_v39 = vpop.permute.xlu1 %7964  ;;  %v2421_v58 = vsel %vm2068_vm3, %v2418_v28, %v2420_v45  ;;  %v17378_v38 = vld [vmem:[#allocation96_spill] sm:$0xff] }
 0x23a   :  { %v12017_v47 = vsel %vm17008_vm4, %v17369_v49, %v11993_v10  ;;  %17372 = vst [vmem:[#allocation91_spill] sm:$0xff] %v12022_v46  ;;  %17376 = vst [vmem:[#allocation97_spill] sm:$0xff] %v12031_v39  ;;  %v2454_v49 = vmax.f32 %v2007_v23, %v2419_v54  ;;  %8179 = vrot.lane.b32.xlu0 %v8178_v1, %s9578_s28  ;;  %v2455_v27 = vmax.f32 %v2008_v21, %v2421_v58  ;;  %v17379_v23 = vld [vmem:[#allocation98_spill] sm:$0xff]  ;;  %v17405_v39 = vld [vmem:[#allocation23_spill] sm:$0xff] }
 0x23b   :  { %17370 = vst [vmem:[#allocation141_spill] sm:$0xff] %v12017_v47  ;;  %17375 = vst [vmem:[#allocation99_spill] sm:$0xff] %v12028_v0  ;;  %v12036_v51 = vpack.i.bf16 %v12017_v47, %v11877_v32  ;;  %v4018_v29 = vsel %vm17009_vm0, %v11704_v59, %v11497_v8  ;;  %v12043_v56 = vpop.permute.xlu0 %7914  ;;  %v12059_v58 = vsel %vm2068_vm3, %v3022_v3, %v12009_v26  ;;  %v4020_v7 = vrot.slane %v17364_v20, 4 }
 0x23c   :  { %17377 = vst [vmem:[#allocation142_spill] sm:$0xff] %v12043_v56  ;;  %v12046_v13 = vmax.f32 %v17378_v38, %v2454_v49  ;;  %v12052_v45 = vsel %vm2068_vm3, %v4018_v29, %v10820_v34  ;;  %v12055_v21 = vmax.f32 %v17379_v23, %v2455_v27  ;;  %v12066_v1 = vpack.i.bf16 %v12059_v58, %v12017_v47 }
 0x23d   :  { %8259 = vrot.lane.b32.xlu1 %v12036_v51, %s9569_s18  ;;  %v8188_v8 = vpack.i.bf16 %v12052_v45, %v4024_v40  ;;  %v12062_v28 = vpop.permute.xlu1 %7969  ;;  %v12071_v18 = vrot.slane %v17367_v24, 4  ;;  %v8198_v49 = vpack.i.bf16 %v11888_v30, %v11579_v33  ;;  %v2858_v27 = vrot.slane %v10820_v34, 2 }
 0x23e   :  { %17380 = vst [vmem:[#allocation96_spill] sm:$0xff] %v12055_v21  ;;  %17381 = vst [vmem:[#allocation98_spill] sm:$0xff] %v12062_v28  ;;  %v12090_v38 = vsel %vm2068_vm3, %v11855_v19, %v11864_v4  ;;  %v12093_v23 = vrot.slane %v11583_v63, 4  ;;  %v2813_v28 = vrot.slane %v11634_v57, 6  ;;  %v12152_v56 = vrot.slane %v11637_v16, 6 }
 0x23f   :  { %17382 = vst [vmem:[#allocation143_spill] sm:$0xff] %v12066_v1  ;;  %8189 = vrot.lane.b32.xlu0 %v8188_v8, %s9575_s25  ;;  %17383 = vst [vmem:[#allocation144_spill] sm:$0xff] %v12071_v18  ;;  %v12073_v54 = vpop.permute.xlu0 %7929  ;;  %v4022_v40 = vsel %vm17009_vm0, %v4020_v7, %v12071_v18  ;;  %v12098_v33 = vsel %vm2068_vm3, %v11864_v4, %v2858_v27  ;;  %v2860_v41 = vsel %vm2068_vm3, %v2858_v27, %v11961_v61 }
 0x240   :  { %17384 = vst [vmem:[#allocation145_spill] sm:$0xff] %v12073_v54  ;;  %v12085_v29 = vpack.i.bf16 %v4022_v40, %v17342_v35  ;;  %17387 = vst [vmem:[#allocation148_spill] sm:$0xff] %v12090_v38  ;;  %v2941_v35 = vrot.slane %v11573_v62, 4  ;;  %v8208_v19 = vpack.i.bf16 %v12098_v33, %v12090_v38  ;;  %v17391_v40 = vld [vmem:[#allocation44_spill] sm:$0xff]  ;;  %v17394_v38 = vld [vmem:[#allocation5_spill] sm:$0xff]  ;;  %v12146_v54 = vrot.slane %v11564_v31, 6 }
 0x241   :  { %8289 = vrot.lane.b32.xlu1 %v12066_v1, %s9579_s29  ;;  %v12082_v3 = vpop.permute.xlu1 %7994  ;;  %17388 = vst [vmem:[#allocation149_spill] sm:$0xff] %v12098_v33  ;;  %v8298_v1 = vpack.i.bf16 %v17391_v40, %v12059_v58  ;;  %v8213_v33 = vpack.i.bf16 %v11888_v30, %v17394_v38  ;;  %v12128_v40 = vrot.slane %v11637_v16, 4  ;;  %17401 = vst [vmem:[#allocation157_spill] sm:$0xff] %v12152_v56 }
 0x242   :  { %17385 = vst [vmem:[#allocation146_spill] sm:$0xff] %v12082_v3  ;;  %17386 = vst [vmem:[#allocation147_spill] sm:$0xff] %v12085_v29  ;;  %v12114_v4 = vsel %vm17009_vm0, %v2941_v35, %v12093_v23  ;;  %v8368_v42 = vpack.i.bf16 %v17405_v39, %v12152_v56  ;;  %v12264_v14 = vsel %vm17008_vm4, %v12093_v23, %v11564_v31 }
 0x243   :  { %8199 = vrot.lane.b32.xlu0 %v8198_v49, %s9569_s18  ;;  %v12100_v8 = vpop.permute.xlu0 %7939  ;;  %17392 = vst [vmem:[#allocation44_spill] sm:$0xff] %v12114_v4  ;;  %17396 = vst [vmem:[#allocation153_spill] sm:$0xff] %v12128_v40 }
 0x244   :  { %17389 = vst [vmem:[#allocation150_spill] sm:$0xff] %v12100_v8  ;;  %v2758_v8 = vrot.slane %v11634_v57, 4 }
 0x245   :  { %8294 = vrot.lane.b32.xlu1 %v12085_v29, %s9575_s25  ;;  %v12107_v7 = vpop.permute.xlu1 %8004  ;;  %v2757_v29 = vrot.slane %v11564_v31, 4 }
 0x246   :  { %17390 = vst [vmem:[#allocation151_spill] sm:$0xff] %v12107_v7 }
 0x247   :  { %8209 = vrot.lane.b32.xlu0 %v8208_v19, %s9568_s17  ;;  %v12116_v49 = vpop.permute.xlu0 %7949  ;;  %v8328_v19 = vpack.i.bf16 %v12114_v4, %v17394_v38  ;;  %v2759_v35 = vsel %vm17009_vm0, %v2757_v29, %v2758_v8  ;;  %v8223_v38 = vpack.i.bf16 %v17367_v24, %v17364_v20 }
 0x248   :  { %17393 = vst [vmem:[#allocation152_spill] sm:$0xff] %v12116_v49  ;;  %v12138_v30 = vsel %vm2068_vm3, %v2759_v35, %v11634_v57 }
 0x249   :  { %8299 = vrot.lane.b32.xlu1 %v8298_v1, %s9569_s18  ;;  %v12123_v7 = vpop.permute.xlu1 %8009  ;;  %v5660_v1 = vsel %vm17008_vm4, %v2758_v8, %v11647_v15  ;;  %17398 = vst [vmem:[#allocation155_spill] sm:$0xff] %v12138_v30 }
 0x24a   :  { %17395 = vst [vmem:[#allocation5_spill] sm:$0xff] %v12123_v7  ;;  %v8378_v7 = vpack.i.bf16 %v5660_v1, %v2759_v35  ;;  %v17403_v1 = vld [vmem:[#allocation31_spill] sm:$0xff] }
 0x24b   :  { %8214 = vrot.lane.b32.xlu0 %v8213_v33, %s9580_s30  ;;  %v12134_v49 = vpop.permute.xlu0 %7974  ;;  %v17400_v33 = vld [vmem:[#allocation69_spill] sm:$0xff]  ;;  %v8228_v20 = vpack.i.bf16 %v17403_v1, %v11915_v9  ;;  %v12183_v1 = vsel %vm17009_vm0, %v11583_v63, %v2757_v29  ;;  %v4000_v29 = vrot.slane %v11564_v31, 2 }
 0x24c   :  { %17397 = vst [vmem:[#allocation154_spill] sm:$0xff] %v12134_v49  ;;  %v8363_v49 = vpack.i.bf16 %v17400_v33, %v12128_v40  ;;  %17409 = vst [vmem:[#allocation161_spill] sm:$0xff] %v12183_v1 }
 0x24d   :  { %8329 = vrot.lane.b32.xlu1 %v8328_v19, %s9569_s18  ;;  %v12143_v3 = vpop.permute.xlu1 %8019  ;;  %v12159_v19 = vsel %vm17008_vm4, %v12146_v54, %v2813_v28  ;;  %v12175_v28 = vpack.i.bf16 %v2860_v41, %v11774_v5  ;;  %v17411_v5 = vld [vmem:[#allocation117_spill] sm:$0xff] }
 0x24e   :  { %17399 = vst [vmem:[#allocation156_spill] sm:$0xff] %v12143_v3  ;;  %v8238_v27 = vpack.i.bf16 %v11941_v43, %v17411_v5 }
 0x24f   :  { %8224 = vrot.lane.b32.xlu0 %v8223_v38, %s9577_s27  ;;  %v12155_v35 = vpop.permute.xlu0 %7979  ;;  %17407 = vst [vmem:[#allocation159_spill] sm:$0xff] %v12175_v28 }
 0x250   :  { %17402 = vst [vmem:[#allocation158_spill] sm:$0xff] %v12155_v35  ;;  %v2945_v35 = vrot.slane %v11647_v15, 4 }
 0x251   :  { %8364 = vrot.lane.b32.xlu1 %v8363_v49, %s9579_s29  ;;  %v12164_v3 = vpop.permute.xlu1 %8029 }
 0x252   :  { %17404 = vst [vmem:[#allocation31_spill] sm:$0xff] %v12164_v3 }
 0x253   :  { %8229 = vrot.lane.b32.xlu0 %v8228_v20, %s9581_s12  ;;  %v12171_v38 = vpop.permute.xlu0 %7984  ;;  %v12189_v20 = vrot.slane %v11634_v57, 2 }
 0x254   :  { %17406 = vst [vmem:[#allocation23_spill] sm:$0xff] %v12171_v38 }
 0x255   :  { %8369 = vrot.lane.b32.xlu1 %v8368_v42, %s9575_s25  ;;  %v12177_v49 = vpop.permute.xlu1 %8039  ;;  %v12192_v42 = vrot.slane %v11647_v15, 6  ;;  %v12216_v5 = vsel %vm2068_vm3, %v4000_v29, %v12189_v20 }
 0x256   :  { %17408 = vst [vmem:[#allocation160_spill] sm:$0xff] %v12177_v49 }
 0x257   :  { %8234 = vrot.lane.b32.xlu0 %v12175_v28, %s9576_s26  ;;  %v12185_v3 = vpop.permute.xlu0 %7989  ;;  %v8383_v28 = vpack.i.bf16 %v12138_v30, %v12183_v1 }
 0x258   :  { %17410 = vst [vmem:[#allocation162_spill] sm:$0xff] %v12185_v3 }
 0x259   :  { %8379 = vrot.lane.b32.xlu1 %v8378_v7, %s9575_s25  ;;  %v12196_v49 = vpop.permute.xlu1 %8049  ;;  %v12203_v7 = vrot.slane %v11647_v15, 2 }
 0x25a   :  { %17412 = vst [vmem:[#allocation163_spill] sm:$0xff] %v12196_v49  ;;  %v12212_v49 = vsel %vm17008_vm4, %v12189_v20, %v12192_v42 }
 0x25b   :  { %8239 = vrot.lane.b32.xlu0 %v8238_v27, %s9577_s27  ;;  %v12205_v3 = vpop.permute.xlu0 %7999  ;;  %v12219_v27 = vrot.slane %v11583_v63, 2  ;;  %v12237_v29 = vsel %vm2068_vm3, %v12159_v19, %v12203_v7 }
 0x25c   :  { %17413 = vst [vmem:[#allocation164_spill] sm:$0xff] %v12205_v3  ;;  %v4828_v3 = vsel %vm17009_vm0, %v2758_v8, %v2945_v35  ;;  %v12268_v8 = vsel %vm17009_vm0, %v11634_v57, %v2945_v35 }
 0x25d   :  { %8384 = vrot.lane.b32.xlu1 %v8383_v28, %s9579_s29  ;;  %v12221_v38 = vpop.permute.xlu1 %8064  ;;  %v8393_v28 = vpack.i.bf16 %v11647_v15, %v12138_v30  ;;  %v12232_v52 = vsel %vm17009_vm0, %v12219_v27, %v12146_v54  ;;  %v12251_v12 = vsel %vm17008_vm4, %v11634_v57, %v4828_v3  ;;  %v12282_v55 = vpack.i.bf16 %v12268_v8, %v12264_v14 }
 0x25e   :  { %17414 = vst [vmem:[#allocation165_spill] sm:$0xff] %v12221_v38  ;;  %v12255_v6 = vpack.i.bf16 %v12237_v29, %v12232_v52 }
 0x25f   :  { %8244 = vrot.lane.b32.xlu0 %v12036_v51, %s9578_s28  ;;  %v12239_v38 = vpop.permute.xlu0 %8014 }
 0x260   :  { %17415 = vst [vmem:[#allocation166_spill] sm:$0xff] %v12239_v38  ;;  %17418 = vst [vmem:[#allocation169_spill] sm:$0xff] %v12255_v6 }
 0x261   :  { %8394 = vrot.lane.b32.xlu1 %v8393_v28, %s9580_s30  ;;  %v12247_v51 = vpop.permute.xlu1 %8074  ;;  %v17420_v28 = vld [vmem:[#allocation27_spill] sm:$0xff] }
 0x262   :  { %17417 = vst [vmem:[#allocation168_spill] sm:$0xff] %v12247_v51  ;;  %v8263_v38 = vpack.i.bf16 %v12009_v26, %v17420_v28  ;;  %v17421_v51 = vld [vmem:[#allocation113_spill] sm:$0xff] }
 0x263   :  { %8254 = vrot.lane.b32.xlu0 %v12245_v60, %s9581_s12  ;;  %v12270_v3 = vpop.permute.xlu0 %8024  ;;  %v2801_v11 = vrot.slane %v17421_v51, 6  ;;  %v17422_v60 = vld [vmem:[#allocation119_spill] sm:$0xff]  ;;  %17424 = vst [vmem:[#allocation113_spill] sm:$0xff] %v12282_v55 }
 0x264   :  { %17419 = vst [vmem:[#allocation170_spill] sm:$0xff] %v12270_v3  ;;  %v16621_v36 = vrot.slane %v17422_v60, 6  ;;  %v12302_v3 = vsel %vm17009_vm0, %v12093_v23, %v11564_v31 }
 0x265   :  { %8404 = vrot.lane.b32.xlu1 %v12255_v6, %s9575_s25  ;;  %v12278_v18 = vpop.permute.xlu1 %8079  ;;  %v12295_v6 = vpack.i.bf16 %v11961_v61, %v2860_v41  ;;  %17428 = vst [vmem:[#allocation174_spill] sm:$0xff] %v12302_v3  ;;  %v12321_v61 = vpack.i.bf16 %v11915_v9, %v11941_v43  ;;  %v12339_v9 = vsel %vm2068_vm3, %v11634_v57, %v2945_v35 }
 0x266   :  { %17423 = vst [vmem:[#allocation27_spill] sm:$0xff] %v12278_v18  ;;  %v12292_v28 = vsel %vm17008_vm4, %v2801_v11, %v16621_v36  ;;  %v17429_v11 = vld [vmem:[#allocation25_spill] sm:$0xff]  ;;  %17436 = vst [vmem:[#allocation180_spill] sm:$0xff] %v12339_v9 }
 0x267   :  { %8264 = vrot.lane.b32.xlu0 %v8263_v38, %s9569_s18  ;;  %v12285_v24 = vpop.permute.xlu0 %8034  ;;  %17426 = vst [vmem:[#allocation172_spill] sm:$0xff] %v12295_v6  ;;  %v8418_v38 = vpack.i.bf16 %v12292_v28, %v12212_v49  ;;  %v16633_v36 = vrot.slane %v17429_v11, 4  ;;  %v4832_v23 = vsel %vm17009_vm0, %v2945_v35, %v17429_v11  ;;  %17432 = vst [vmem:[#allocation176_spill] sm:$0xff] %v12321_v61  ;;  %v2819_v59 = vrot.slane %v17429_v11, 2 }
 0x268   :  { %17425 = vst [vmem:[#allocation171_spill] sm:$0xff] %v12285_v24 }
 0x269   :  { %8414 = vrot.lane.b32.xlu1 %v12282_v55, %s9569_s18  ;;  %v12297_v18 = vpop.permute.xlu1 %8104  ;;  %v2751_v55 = vrot.slane %v17422_v60, 4  ;;  %v12346_v43 = vsel %vm2068_vm3, %v12203_v7, %v2819_v59 }
 0x26a   :  { %17427 = vst [vmem:[#allocation173_spill] sm:$0xff] %v12297_v18 }
 0x26b   :  { %8269 = vrot.lane.b32.xlu0 %v12295_v6, %s9573_s22  ;;  %v12310_v24 = vpop.permute.xlu0 %8044  ;;  %v12315_v41 = vsel %vm17008_vm4, %v2751_v55, %v11573_v62 }
 0x26c   :  { %17430 = vst [vmem:[#allocation25_spill] sm:$0xff] %v12310_v24  ;;  %17431 = vst [vmem:[#allocation175_spill] sm:$0xff] %v12315_v41  ;;  %v8423_v6 = vpack.i.bf16 %v4832_v23, %v12315_v41 }
 0x26d   :  { %8419 = vrot.lane.b32.xlu1 %v8418_v38, %s9578_s28  ;;  %v12323_v18 = vpop.permute.xlu1 %8114  ;;  %v12331_v38 = vsel %vm17009_vm0, %v2945_v35, %v16633_v36 }
 0x26e   :  { %17433 = vst [vmem:[#allocation177_spill] sm:$0xff] %v12323_v18  ;;  %17434 = vst [vmem:[#allocation178_spill] sm:$0xff] %v12331_v38  ;;  %v8278_v18 = vpack.i.bf16 %v11993_v10, %v12017_v47  ;;  %v8428_v36 = vpack.i.bf16 %v12331_v38, %v12339_v9  ;;  %v8283_v47 = vpack.i.bf16 %v12009_v26, %v12059_v58 }
 0x26f   :  { %8274 = vrot.lane.b32.xlu0 %v12321_v61, %s9574_s24  ;;  %v12333_v24 = vpop.permute.xlu0 %8054  ;;  %v2822_v61 = vrot.slane %v17429_v11, 6 }
 0x270   :  { %17435 = vst [vmem:[#allocation179_spill] sm:$0xff] %v12333_v24 }
 0x271   :  { %8424 = vrot.lane.b32.xlu1 %v8423_v6, %s9577_s27  ;;  %v12353_v6 = vsel %vm17008_vm4, %v2822_v61, %v12152_v56  ;;  %v12355_v57 = vpop.permute.xlu1 %8119  ;;  %v12362_v10 = vsel %vm2068_vm3, %v12203_v7, %v2822_v61  ;;  %v4005_v58 = vsel %vm17008_vm4, %v12192_v42, %v2822_v61 }
 0x272   :  { %17437 = vst [vmem:[#allocation181_spill] sm:$0xff] %v12353_v6  ;;  %17438 = vst [vmem:[#allocation182_spill] sm:$0xff] %v12355_v57  ;;  %v2750_v57 = vrot.slane %v17421_v51, 4 }
 0x273   :  { %8279 = vrot.lane.b32.xlu0 %v8278_v18, %s9568_s17  ;;  %v12357_v35 = vpop.permute.xlu0 %8059  ;;  %17440 = vst [vmem:[#allocation184_spill] sm:$0xff] %v12362_v10  ;;  %v8443_v18 = vpack.i.bf16 %v12353_v6, %v12362_v10  ;;  %v17472_v10 = vld [vmem:[#allocation100_spill] sm:$0xff] }
 0x274   :  { %17439 = vst [vmem:[#allocation183_spill] sm:$0xff] %v12357_v35  ;;  %v17442_v35 = vld [vmem:[#allocation53_spill] sm:$0xff] }
 0x275   :  { %8429 = vrot.lane.b32.xlu1 %v8428_v36, %s9570_s19  ;;  %v12374_v36 = vrot.slane %v11637_v16, 2  ;;  %v8303_v24 = vpack.i.bf16 %v11564_v31, %v17442_v35  ;;  %v12378_v56 = vpop.permute.xlu1 %8129  ;;  %v12397_v35 = vsel %vm17009_vm0, %v2750_v57, %v2751_v55 }
 0x276   :  { %17443 = vst [vmem:[#allocation186_spill] sm:$0xff] %v12378_v56  ;;  %17447 = vst [vmem:[#allocation189_spill] sm:$0xff] %v12397_v35  ;;  %v2807_v56 = vrot.slane %v11573_v62, 2 }
 0x277   :  { %8284 = vrot.lane.b32.xlu0 %v8283_v47, %s9578_s28  ;;  %v12369_v9 = vpop.permute.xlu0 %8069  ;;  %v12385_v47 = vsel %vm17009_vm0, %v12189_v20, %v12192_v42  ;;  %v12389_v51 = vsel %vm2068_vm3, %v4005_v58, %v12374_v36  ;;  %v2919_v42 = vsel %vm2068_vm3, %v12189_v20, %v12203_v7  ;;  %v12424_v20 = vsel %vm2068_vm3, %v12331_v38, %v17429_v11 }
 0x278   :  { %17441 = vst [vmem:[#allocation185_spill] sm:$0xff] %v12369_v9  ;;  %17444 = vst [vmem:[#allocation187_spill] sm:$0xff] %v12385_v47  ;;  %v12405_v9 = vrot.slane %v11849_v53, 4  ;;  %v12413_v55 = vsel %vm17009_vm0, %v12159_v19, %v2919_v42  ;;  %v8313_v19 = vpack.i.bf16 %v12397_v35, %v11877_v32  ;;  %v17455_v32 = vrot.slane %v17422_v60, 6 }
 0x279   :  { %8444 = vrot.lane.b32.xlu1 %v8443_v18, %s9571_s20  ;;  %17445 = vst [vmem:[#allocation188_spill] sm:$0xff] %v12389_v51  ;;  %v17446_v18 = vpack.i.bf16 %v12212_v49, %v12216_v5  ;;  %v8453_v49 = vpack.i.bf16 %v4832_v23, %v10820_v34  ;;  %17449 = vst [vmem:[#allocation191_spill] sm:$0xff] %v12413_v55  ;;  %v4843_v34 = vsel %vm2068_vm3, %v2819_v59, %v12374_v36 }
 0x27a   :  { %v12418_v57 = vsel %vm2068_vm3, %v12028_v0, %v12405_v9  ;;  %17451 = vst [vmem:[#allocation193_spill] sm:$0xff] %v12424_v20  ;;  %v8463_v23 = vpack.i.bf16 %v11637_v16, %v12424_v20  ;;  %v8318_v59 = vpack.i.bf16 %v12292_v28, %v12052_v45  ;;  %v8323_v45 = vpack.i.bf16 %v12183_v1, %v12315_v41 }
 0x27b   :  { %8304 = vrot.lane.b32.xlu0 %v8303_v24, %s9577_s27  ;;  %v8308_v24 = vpack.i.bf16 %v12315_v41, %v12397_v35  ;;  %17450 = vst [vmem:[#allocation192_spill] sm:$0xff] %v12418_v57  ;;  %v17461_v41 = vld [vmem:[#allocation125_spill] sm:$0xff] }
 0x27c   :  { %v12426_v7 = vpop.permute.xlu1 %8134 }
 0x27d   :  { %8449 = vrot.lane.b32.xlu1 %v17446_v18, %s9579_s29  ;;  %v12399_v61 = vpop.permute.xlu0 %8084  ;;  %17452 = vst [vmem:[#allocation194_spill] sm:$0xff] %v12426_v7  ;;  %v12437_v18 = vsel %vm2068_vm3, %v2807_v56, %v12219_v27  ;;  %v16667_v7 = vrot.slane %v12055_v21, 4 }
 0x27e   :  { %17448 = vst [vmem:[#allocation190_spill] sm:$0xff] %v12399_v61  ;;  %17453 = vst [vmem:[#allocation195_spill] sm:$0xff] %v12437_v18 }
 0x27f   :  { %8309 = vrot.lane.b32.xlu0 %v8308_v24, %s9579_s29  ;;  %v12443_v24 = vsel %vm17009_vm0, %v4005_v58, %v4843_v34 }
 0x281   :  { %8454 = vrot.lane.b32.xlu1 %v8453_v49, %s9567_s0  ;;  %v12439_v42 = vpop.permute.xlu0 %8089  ;;  %v12452_v49 = vsel %vm17008_vm4, %v17455_v32, %v12437_v18  ;;  %v8333_v32 = vpack.i.bf16 %v12264_v14, %v12114_v4 }
 0x282   :  { %17454 = vst [vmem:[#allocation196_spill] sm:$0xff] %v12439_v42  ;;  %v8483_v38 = vpack.i.bf16 %v12443_v24, %v12452_v49 }
 0x283   :  { %8314 = vrot.lane.b32.xlu0 %v8313_v19, %s9580_s30  ;;  %v17459_v19 = vpack.i.bf16 %v12251_v12, %v11564_v31  ;;  %v12486_v31 = vsel %vm17008_vm4, %v12219_v27, %v12146_v54  ;;  %v2949_v54 = vrot.slane %v17461_v41, 4 }
 0x284   :  { %17463 = vst [vmem:[#allocation202_spill] sm:$0xff] %v12486_v31  ;;  %v8338_v27 = vpack.i.bf16 %v12486_v31, %v12437_v18 }
 0x285   :  { %8464 = vrot.lane.b32.xlu1 %v8463_v23, %s9569_s18  ;;  %v5655_v61 = vsel %vm17009_vm0, %v12128_v40, %v2949_v54 }
 0x287   :  { %v12454_v56 = vpop.permute.xlu1 %8139  ;;  %8319 = vrot.lane.b32.xlu0 %v8318_v59, %s9572_s21  ;;  %v12474_v59 = vrot.slane %v12028_v0, 4 }
 0x288   :  { %17456 = vst [vmem:[#allocation197_spill] sm:$0xff] %v12454_v56  ;;  %v12513_v56 = vrot.slane %v11849_v53, 6 }
 0x289   :  { %8484 = vrot.lane.b32.xlu1 %v8483_v38, %s9578_s28  ;;  %v2933_v38 = vrot.slane %v12025_v17, 4 }
 0x28b   :  { %v12460_v58 = vpop.permute.xlu0 %8094  ;;  %v12464_v34 = vpop.permute.xlu1 %8149  ;;  %8324 = vrot.lane.b32.xlu0 %v8323_v45, %s9580_s30  ;;  %v4011_v45 = vrot.slane %v17461_v41, 6 }
 0x28c   :  { %17457 = vst [vmem:[#allocation198_spill] sm:$0xff] %v12460_v58  ;;  %17458 = vst [vmem:[#allocation199_spill] sm:$0xff] %v12464_v34  ;;  %v8508_v34 = vpack.i.bf16 %v17461_v41, %v11637_v16 }
 0x28d   :  { %8499 = vrot.lane.b32.xlu1 %v17459_v19, %s9567_s0  ;;  %v12491_v19 = vsel %vm17009_vm0, %v2933_v38, %v12474_v59  ;;  %v12509_v42 = vsel %vm2068_vm3, %v12374_v36, %v4011_v45 }
 0x28e   :  { %17464 = vst [vmem:[#allocation203_spill] sm:$0xff] %v12491_v19  ;;  %v12497_v14 = vsel %vm17008_vm4, %v12025_v17, %v12491_v19  ;;  %v8518_v57 = vpack.i.bf16 %v17472_v10, %v12509_v42  ;;  %v12566_v10 = vpack.i.bf16 %v12452_v49, %v12292_v28  ;;  %v12585_v28 = vsel %vm17008_vm4, %v11573_v62, %v12114_v4 }
 0x28f   :  { %v12471_v23 = vpop.permute.xlu0 %8099  ;;  %v12481_v58 = vpop.permute.xlu1 %8159  ;;  %8334 = vrot.lane.b32.xlu0 %v8333_v32, %s9580_s30  ;;  %17465 = vst [vmem:[#allocation204_spill] sm:$0xff] %v12497_v14  ;;  %v12535_v14 = vsel %vm17009_vm0, %v12025_v17, %v12474_v59  ;;  %17482 = vst [vmem:[#allocation215_spill] sm:$0xff] %v12585_v28 }
 0x290   :  { %17460 = vst [vmem:[#allocation200_spill] sm:$0xff] %v12471_v23  ;;  %17462 = vst [vmem:[#allocation201_spill] sm:$0xff] %v12481_v58  ;;  %v17467_v23 = vld [vmem:[#allocation127_spill] sm:$0xff] }
 0x291   :  { %8509 = vrot.lane.b32.xlu1 %v8508_v34, %s9570_s19  ;;  %v8513_v38 = vpack.i.bf16 %v12183_v1, %v17467_v23  ;;  %v12516_v34 = vrot.slane %v12046_v13, 4  ;;  %17470 = vst [vmem:[#allocation208_spill] sm:$0xff] %v12535_v14  ;;  %v5662_v14 = vsel %vm2068_vm3, %v5655_v61, %v17461_v41  ;;  %17476 = vst [vmem:[#allocation212_spill] sm:$0xff] %v12566_v10 }
 0x292   :  { %v2832_v61 = vsel %vm17009_vm0, %v12474_v59, %v12405_v9 }
 0x293   :  { %v12500_v58 = vpop.permute.xlu0 %8109  ;;  %8339 = vrot.lane.b32.xlu0 %v8338_v27, %s9576_s26  ;;  %v12523_v1 = vpop.permute.xlu1 %8174  ;;  %v12530_v27 = vsel %vm17008_vm4, %v12474_v59, %v11849_v53 }
 0x294   :  { %17466 = vst [vmem:[#allocation205_spill] sm:$0xff] %v12500_v58  ;;  %v12520_v58 = vrot.slane %v12028_v0, 2  ;;  %17468 = vst [vmem:[#allocation206_spill] sm:$0xff] %v12523_v1 }
 0x295   :  { %8514 = vrot.lane.b32.xlu1 %v8513_v38, %s9577_s27  ;;  %17469 = vst [vmem:[#allocation207_spill] sm:$0xff] %v12530_v27  ;;  %v2735_v38 = vsel %vm17009_vm0, %v12516_v34, %v16667_v7  ;;  %v16677_v7 = vrot.slane %v11884_v2, 4 }
 0x296   :  { %v12544_v1 = vsel %vm17009_vm0, %v12520_v58, %v12513_v56  ;;  %v12552_v27 = vsel %vm17008_vm4, %v12046_v13, %v2735_v38 }
 0x297   :  { %17471 = vst [vmem:[#allocation209_spill] sm:$0xff] %v12544_v1  ;;  %v12548_v18 = vpop.permute.xlu0 %8124  ;;  %17474 = vst [vmem:[#allocation210_spill] sm:$0xff] %v12552_v27  ;;  %8344 = vrot.lane.b32.xlu0 %v8333_v32, %s9581_s12  ;;  %v12562_v1 = vsel %vm2068_vm3, %v12520_v58, %v12513_v56  ;;  %v17479_v27 = vld [vmem:[#allocation126_spill] sm:$0xff] }
 0x298   :  { %17473 = vst [vmem:[#allocation100_spill] sm:$0xff] %v12548_v18  ;;  %17475 = vst [vmem:[#allocation211_spill] sm:$0xff] %v12562_v1  ;;  %v17478_v18 = vld [vmem:[#allocation102_spill] sm:$0xff]  ;;  %v12572_v26 = vrot.slane %v17479_v27, 4  ;;  %v2958_v1 = vrot.slane %v12028_v0, 6 }
 0x299   :  { %8519 = vrot.lane.b32.xlu1 %v8518_v57, %s9579_s29  ;;  %v8533_v32 = vpack.i.bf16 %v17478_v18, %v5662_v14  ;;  %v12591_v14 = vsel %vm17009_vm0, %v12405_v9, %v16677_v7  ;;  %v12609_v9 = vsel %vm2068_vm3, %v11637_v16, %v2949_v54 }
 0x29a   :  { %v12568_v38 = vpop.permute.xlu1 %8184  ;;  %17480 = vst [vmem:[#allocation102_spill] sm:$0xff] %v12572_v26  ;;  %17483 = vst [vmem:[#allocation216_spill] sm:$0xff] %v12591_v14 }
 0x29b   :  { %17477 = vst [vmem:[#allocation213_spill] sm:$0xff] %v12568_v38  ;;  %8349 = vrot.lane.b32.xlu0 %v12566_v10, %s9575_s25  ;;  %v12595_v10 = vsel %vm2068_vm3, %v2832_v61, %v11849_v53  ;;  %17487 = vst [vmem:[#allocation220_spill] sm:$0xff] %v12609_v9  ;;  %v12615_v61 = vsel %vm17008_vm4, %v11849_v53, %v12591_v14 }
 0x29c   :  { %v12580_v57 = vpop.permute.xlu0 %8144  ;;  %17484 = vst [vmem:[#allocation217_spill] sm:$0xff] %v12595_v10  ;;  %v3996_v10 = vrot.slane %v11573_v62, 6 }
 0x29d   :  { %8534 = vrot.lane.b32.xlu1 %v8533_v32, %s9575_s25  ;;  %17481 = vst [vmem:[#allocation214_spill] sm:$0xff] %v12580_v57  ;;  %v12599_v32 = vsel %vm17009_vm0, %v2949_v54, %v12572_v26  ;;  %v8353_v57 = vpack.i.bf16 %v12302_v3, %v12585_v28  ;;  %v8358_v54 = vpack.i.bf16 %v12232_v52, %v12452_v49  ;;  %v4848_v49 = vrot.slane %v17467_v23, 2 }
 0x29e   :  { %17485 = vst [vmem:[#allocation218_spill] sm:$0xff] %v12599_v32  ;;  %v12603_v38 = vpop.permute.xlu1 %8194  ;;  %v8538_v4 = vpack.i.bf16 %v12572_v26, %v12599_v32  ;;  %v8553_v28 = vpack.i.bf16 %v12599_v32, %v12609_v9  ;;  %v17492_v9 = vld [vmem:[#allocation38_spill] sm:$0xff] }
 0x29f   :  { %17486 = vst [vmem:[#allocation219_spill] sm:$0xff] %v12603_v38  ;;  %8354 = vrot.lane.b32.xlu0 %v8353_v57, %s9570_s19  ;;  %v12627_v57 = vrot.slane %v17479_v27, 6  ;;  %v12642_v19 = vrot.slane %v17492_v9, 2 }
 0x2a0   :  { %v12618_v7 = vpop.permute.xlu0 %8154 }
 0x2a1   :  { %8539 = vrot.lane.b32.xlu1 %v8538_v4, %s9569_s18  ;;  %17488 = vst [vmem:[#allocation221_spill] sm:$0xff] %v12618_v7  ;;  %17489 = vst [vmem:[#allocation222_spill] sm:$0xff] %v12627_v57  ;;  %v3997_v4 = vrot.slane %v11583_v63, 6  ;;  %v12638_v3 = vsel %vm17008_vm4, %v4011_v45, %v12627_v57  ;;  %v17495_v63 = vld [vmem:[#allocation47_spill] sm:$0xff] }
 0x2a2   :  { %v12629_v38 = vpop.permute.xlu1 %8204  ;;  %17491 = vst [vmem:[#allocation224_spill] sm:$0xff] %v12638_v3  ;;  %17493 = vst [vmem:[#allocation225_spill] sm:$0xff] %v12642_v19  ;;  %v8373_v7 = vpack.i.bf16 %v12216_v5, %v17495_v63  ;;  %v8558_v45 = vpack.i.bf16 %v12638_v3, %v12509_v42  ;;  %v12672_v63 = vsel %vm2068_vm3, %v4848_v49, %v12642_v19 }
 0x2a3   :  { %17490 = vst [vmem:[#allocation223_spill] sm:$0xff] %v12629_v38  ;;  %8359 = vrot.lane.b32.xlu0 %v8358_v54, %s9572_s21  ;;  %v12645_v38 = vrot.slane %v11884_v2, 2  ;;  %v2962_v54 = vrot.slane %v11849_v53, 2  ;;  %v12658_v23 = vsel %vm17008_vm4, %v3996_v10, %v3997_v4  ;;  %v12662_v14 = vsel %vm17008_vm4, %v3997_v4, %v12216_v5  ;;  %17500 = vst [vmem:[#allocation230_spill] sm:$0xff] %v12672_v63 }
 0x2a4   :  { %v12648_v62 = vpop.permute.xlu0 %8164  ;;  %17497 = vst [vmem:[#allocation228_spill] sm:$0xff] %v12658_v23  ;;  %17498 = vst [vmem:[#allocation229_spill] sm:$0xff] %v12662_v14  ;;  %v12683_v4 = vrot.slane %v17479_v27, 2  ;;  %v2955_v27 = vrot.slane %v12055_v21, 2 }
 0x2a5   :  { %8554 = vrot.lane.b32.xlu1 %v8553_v28, %s9577_s27  ;;  %17494 = vst [vmem:[#allocation226_spill] sm:$0xff] %v12648_v62  ;;  %v17499_v28 = vrot.slane %v12025_v17, 6  ;;  %v2964_v42 = vsel %vm2068_vm3, %v2962_v54, %v12645_v38  ;;  %v8563_v54 = vpack.i.bf16 %v12232_v52, %v12672_v63 }
 0x2a6   :  { %v12653_v0 = vpop.permute.xlu1 %8219  ;;  %v12680_v5 = vsel %vm17008_vm4, %v2958_v1, %v2964_v42  ;;  %17502 = vst [vmem:[#allocation232_spill] sm:$0xff] %v12683_v4 }
 0x2a7   :  { %17496 = vst [vmem:[#allocation227_spill] sm:$0xff] %v12653_v0  ;;  %v12667_v62 = vsel %vm17008_vm4, %v17499_v28, %v2958_v1  ;;  %8374 = vrot.lane.b32.xlu0 %v8373_v7, %s9578_s28  ;;  %v8388_v7 = vpack.i.bf16 %v12662_v14, %v12658_v23  ;;  %v16701_v28 = vrot.slane %v17461_v41, 2 }
 0x2a8   :  { %v12677_v10 = vpop.permute.xlu0 %8169 }
 0x2a9   :  { %8559 = vrot.lane.b32.xlu1 %v8558_v45, %s9578_s28  ;;  %17501 = vst [vmem:[#allocation231_spill] sm:$0xff] %v12677_v10  ;;  %v17504_v45 = vrot.slane %v17429_v11, 4  ;;  %v12708_v49 = vsel %vm2068_vm3, %v16701_v28, %v12683_v4  ;;  %v12727_v28 = vpack.i.bf16 %v12353_v6, %v12346_v43  ;;  %v12754_v6 = vrot.slane %v11861_v22, 4 }
 0x2aa   :  { %v12690_v0 = vpop.permute.xlu1 %8249  ;;  %17507 = vst [vmem:[#allocation236_spill] sm:$0xff] %v12708_v49 }
 0x2ab   :  { %17503 = vst [vmem:[#allocation233_spill] sm:$0xff] %v12690_v0  ;;  %v12698_v10 = vsel %vm17009_vm0, %v17504_v45, %v12128_v40  ;;  %8389 = vrot.lane.b32.xlu0 %v8388_v7, %s9572_s21  ;;  %v8568_v45 = vpack.i.bf16 %v12683_v4, %v12708_v49  ;;  %v12720_v7 = vsel %vm17009_vm0, %v12474_v59, %v11849_v53  ;;  %17510 = vst [vmem:[#allocation239_spill] sm:$0xff] %v12727_v28  ;;  %v17512_v49 = vld [vmem:[#allocation75_spill] sm:$0xff]  ;;  %v17517_v0 = vld [vmem:[#allocation46_spill] sm:$0xff] }
 0x2ac   :  { %17505 = vst [vmem:[#allocation234_spill] sm:$0xff] %v12698_v10  ;;  %v12702_v23 = vpop.permute.xlu0 %8179  ;;  %v8398_v52 = vpack.i.bf16 %v12698_v10, %v11647_v15  ;;  %v2784_v15 = vrot.slane %v12025_v17, 2  ;;  %v8573_v4 = vpack.i.bf16 %v17512_v49, %v11861_v22  ;;  %v12736_v53 = vrot.slane %v11861_v22, 2  ;;  %17518 = vst [vmem:[#allocation46_spill] sm:$0xff] %v12754_v6 }
 0x2ad   :  { %8564 = vrot.lane.b32.xlu1 %v8563_v54, %s9578_s28  ;;  %17506 = vst [vmem:[#allocation235_spill] sm:$0xff] %v12702_v23 }
 0x2ae   :  { %17513 = vst [vmem:[#allocation75_spill] sm:$0xff] %v12736_v53 }
 0x2af   :  { %v12712_v14 = vpop.permute.xlu1 %8259  ;;  %8399 = vrot.lane.b32.xlu0 %v8398_v52, %s9579_s29 }
 0x2b0   :  { %17508 = vst [vmem:[#allocation237_spill] sm:$0xff] %v12712_v14  ;;  %v8578_v14 = vpack.i.bf16 %v17517_v0, %v12736_v53 }
 0x2b1   :  { %8569 = vrot.lane.b32.xlu1 %v8568_v45, %s9571_s20  ;;  %v12723_v54 = vpop.permute.xlu0 %8189  ;;  %v12744_v45 = vsel %vm2068_vm3, %v2955_v27, %v2784_v15  ;;  %v12761_v27 = vrot.slane %v11835_v48, 4 }
 0x2b2   :  { %17509 = vst [vmem:[#allocation238_spill] sm:$0xff] %v12723_v54  ;;  %17515 = vst [vmem:[#allocation242_spill] sm:$0xff] %v12744_v45  ;;  %v2959_v54 = vsel %vm17008_vm4, %v2958_v1, %v12513_v56 }
 0x2b3   :  { %v12731_v63 = vpop.permute.xlu1 %8289  ;;  %8409 = vrot.lane.b32.xlu0 %v12727_v28, %s9575_s25 }
 0x2b4   :  { %17511 = vst [vmem:[#allocation240_spill] sm:$0xff] %v12731_v63  ;;  %v2974_v63 = vsel %vm17008_vm4, %v2784_v15, %v2958_v1 }
 0x2b5   :  { %8574 = vrot.lane.b32.xlu1 %v8573_v4, %s9577_s27  ;;  %v12741_v59 = vpop.permute.xlu0 %8199  ;;  %v12757_v4 = vsel %vm17009_vm0, %v2959_v54, %v2964_v42  ;;  %v12768_v1 = vpack.i.bf16 %v2974_v63, %v12744_v45  ;;  %v8583_v42 = vpack.i.bf16 %v17422_v60, %v12754_v6  ;;  %v17524_v54 = vld [vmem:[#allocation73_spill] sm:$0xff]  ;;  %v8458_v60 = vpack.i.bf16 %v12346_v43, %v12237_v29 }
 0x2b6   :  { %17514 = vst [vmem:[#allocation241_spill] sm:$0xff] %v12741_v59  ;;  %17519 = vst [vmem:[#allocation244_spill] sm:$0xff] %v12757_v4  ;;  %v12764_v59 = vpack.i.bf16 %v12757_v4, %v2974_v63  ;;  %v2907_v4 = vrot.slane %v12046_v13, 6  ;;  %v12808_v43 = vpack.i.bf16 %v12424_v20, %v12268_v8  ;;  %v2773_v8 = vrot.slane %v12022_v46, 2 }
 0x2b7   :  { %v12749_v23 = vpop.permute.xlu1 %8294  ;;  %8434 = vrot.lane.b32.xlu0 %v8398_v52, %s9577_s27  ;;  %v4826_v52 = vsel %vm17009_vm0, %v11884_v2, %v12761_v27 }
 0x2b8   :  { %17516 = vst [vmem:[#allocation243_spill] sm:$0xff] %v12749_v23  ;;  %17520 = vst [vmem:[#allocation245_spill] sm:$0xff] %v12764_v59 }
 0x2b9   :  { %8579 = vrot.lane.b32.xlu1 %v8578_v14, %s9578_s28  ;;  %v12770_v23 = vpop.permute.xlu0 %8209  ;;  %v12783_v14 = vrot.slane %v12055_v21, 6 }
 0x2ba   :  { %17521 = vst [vmem:[#allocation246_spill] sm:$0xff] %v12770_v23  ;;  %v3980_v23 = vsel %vm17008_vm4, %v17524_v54, %v17478_v18 }
 0x2bb   :  { %v12772_v10 = vpop.permute.xlu1 %8299  ;;  %8439 = vrot.lane.b32.xlu0 %v12727_v28, %s9578_s28  ;;  %v8588_v28 = vpack.i.bf16 %v4826_v52, %v3980_v23  ;;  %v2828_v52 = vrot.slane %v12022_v46, 4 }
 0x2bc   :  { %17522 = vst [vmem:[#allocation247_spill] sm:$0xff] %v12772_v10 }
 0x2bd   :  { %8584 = vrot.lane.b32.xlu1 %v8583_v42, %s9570_s19  ;;  %v12785_v63 = vpop.permute.xlu0 %8214  ;;  %v12797_v42 = vsel %vm2068_vm3, %v2784_v15, %v12520_v58  ;;  %v8593_v15 = vpack.i.bf16 %v12443_v24, %v12736_v53  ;;  %v2774_v58 = vrot.slane %v12046_v13, 2  ;;  %v8473_v13 = vpack.i.bf16 %v12389_v51, %v12385_v47 }
 0x2be   :  { %17523 = vst [vmem:[#allocation248_spill] sm:$0xff] %v12785_v63  ;;  %v2915_v18 = vsel %vm17008_vm4, %v12783_v14, %v12797_v42 }
 0x2bf   :  { %v12792_v10 = vpop.permute.xlu1 %8329  ;;  %8459 = vrot.lane.b32.xlu0 %v8458_v60, %s9572_s21  ;;  %v2908_v60 = vsel %vm17008_vm4, %v2907_v4, %v12783_v14  ;;  %v5661_v4 = vsel %vm17009_vm0, %v17429_v11, %v12128_v40  ;;  %v2790_v11 = vrot.slane %v11884_v2, 6 }
 0x2c0   :  { %17525 = vst [vmem:[#allocation73_spill] sm:$0xff] %v12792_v10 }
 0x2c1   :  { %8589 = vrot.lane.b32.xlu1 %v8588_v28, %s9567_s0  ;;  %v12804_v54 = vpop.permute.xlu0 %8224  ;;  %v12819_v28 = vpack.i.bf16 %v2915_v18, %v2908_v60  ;;  %v8598_v18 = vpack.i.bf16 %v5661_v4, %v12754_v6  ;;  %v12835_v60 = vsel %vm2068_vm3, %v2773_v8, %v2774_v58  ;;  %v8478_v8 = vpack.i.bf16 %v12397_v35, %v12251_v12 }
 0x2c2   :  { %17526 = vst [vmem:[#allocation249_spill] sm:$0xff] %v12804_v54  ;;  %v16731_v4 = vrot.slane %v11835_v48, 2  ;;  %v17543_v54 = vrot.slane %v12025_v17, 6 }
 0x2c3   :  { %v12812_v23 = vpop.permute.xlu1 %8364  ;;  %8469 = vrot.lane.b32.xlu0 %v12808_v43, %s9580_s30 }
 0x2c4   :  { %17527 = vst [vmem:[#allocation250_spill] sm:$0xff] %v12812_v23  ;;  %v12873_v12 = vsel %vm2068_vm3, %v16731_v4, %v12736_v53 }
 0x2c5   :  { %8594 = vrot.lane.b32.xlu1 %v8593_v15, %s9579_s29  ;;  %v12824_v20 = vpop.permute.xlu0 %8229  ;;  %v12839_v15 = vsel %vm17009_vm0, %v2828_v52, %v12516_v34  ;;  %v12881_v52 = vpack.i.bf16 %v12413_v55, %v12486_v31 }
 0x2c6   :  { %17528 = vst [vmem:[#allocation251_spill] sm:$0xff] %v12824_v20  ;;  %v12844_v20 = vsel %vm17009_vm0, %v12761_v27, %v12754_v6 }
 0x2c7   :  { %v12831_v24 = vpop.permute.xlu1 %8369  ;;  %17530 = vst [vmem:[#allocation253_spill] sm:$0xff] %v12844_v20  ;;  %8474 = vrot.lane.b32.xlu0 %v8473_v13, %s9572_s21  ;;  %v12862_v13 = vpack.i.bf16 %v12844_v20, %v11884_v2  ;;  %17535 = vst [vmem:[#allocation258_spill] sm:$0xff] %v12881_v52  ;;  %v4827_v4 = vsel %vm2068_vm3, %v12844_v20, %v11861_v22 }
 0x2c8   :  { %17529 = vst [vmem:[#allocation252_spill] sm:$0xff] %v12831_v24  ;;  %v8648_v31 = vpack.i.bf16 %v11943_v37, %v4827_v4 }
 0x2c9   :  { %8599 = vrot.lane.b32.xlu1 %v8598_v18, %s9575_s25  ;;  %v12849_v51 = vpop.permute.xlu0 %8234  ;;  %17533 = vst [vmem:[#allocation256_spill] sm:$0xff] %v12862_v13  ;;  %v12867_v18 = vsel %vm17008_vm4, %v12513_v56, %v2790_v11  ;;  %v12907_v11 = vsel %vm17008_vm4, %v2774_v58, %v12783_v14  ;;  %v12925_v58 = vsel %vm17008_vm4, %v12516_v34, %v12055_v21 }
 0x2ca   :  { %17531 = vst [vmem:[#allocation254_spill] sm:$0xff] %v12849_v51  ;;  %v12887_v56 = vpack.i.bf16 %v12873_v12, %v12867_v18  ;;  %v12903_v51 = vrot.slane %v11835_v48, 6  ;;  %v2780_v34 = vsel %vm17008_vm4, %v12783_v14, %v17543_v54  ;;  %v12976_v23 = vpack.i.bf16 %v12907_v11, %v12835_v60 }
 0x2cb   :  { %v12858_v63 = vpop.permute.xlu1 %8379  ;;  %8479 = vrot.lane.b32.xlu0 %v8478_v8, %s9577_s27 }
 0x2cc   :  { %17532 = vst [vmem:[#allocation255_spill] sm:$0xff] %v12858_v63  ;;  %17537 = vst [vmem:[#allocation260_spill] sm:$0xff] %v12887_v56  ;;  %v2912_v63 = vrot.slane %v11861_v22, 6 }
 0x2cd   :  { %8614 = vrot.lane.b32.xlu1 %v12862_v13, %s9575_s25  ;;  %v12877_v47 = vpop.permute.xlu0 %8239 }
 0x2ce   :  { %17534 = vst [vmem:[#allocation257_spill] sm:$0xff] %v12877_v47 }
 0x2cf   :  { %v12883_v8 = vpop.permute.xlu1 %8384  ;;  %8489 = vrot.lane.b32.xlu0 %v12881_v52, %s9571_s20 }
 0x2d0   :  { %17536 = vst [vmem:[#allocation259_spill] sm:$0xff] %v12883_v8  ;;  %v8493_v8 = vpack.i.bf16 %v17492_v9, %v12138_v30  ;;  %v2971_v30 = vrot.slane %v11943_v37, 2  ;;  %v12920_v9 = vsel %vm17009_vm0, %v12645_v38, %v12903_v51 }
 0x2d1   :  { %8634 = vrot.lane.b32.xlu1 %v12887_v56, %s9579_s29  ;;  %v12897_v35 = vpop.permute.xlu0 %8244 }
 0x2d2   :  { %17538 = vst [vmem:[#allocation261_spill] sm:$0xff] %v12897_v35  ;;  %v17540_v35 = vrot.slane %v11943_v37, 6 }
 0x2d3   :  { %v12909_v52 = vpop.permute.xlu1 %8394  ;;  %8494 = vrot.lane.b32.xlu0 %v8493_v8, %s9577_s27 }
 0x2d4   :  { %17539 = vst [vmem:[#allocation262_spill] sm:$0xff] %v12909_v52  ;;  %v2914_v47 = vsel %vm17008_vm4, %v2912_v63, %v17540_v35  ;;  %v8503_v35 = vpack.i.bf16 %v12642_v19, %v12237_v29  ;;  %v17542_v52 = vrot.slane %v11884_v2, 4  ;;  %v4855_v19 = vrot.slane %v11943_v37, 4  ;;  %v17547_v29 = vld [vmem:[#allocation58_spill] sm:$0xff] }
 0x2d5   :  { %8649 = vrot.lane.b32.xlu1 %v8648_v31, %s9567_s0  ;;  %v12930_v8 = vpop.permute.xlu0 %8254  ;;  %v12947_v4 = vpack.i.bf16 %v2914_v47, %v12873_v12  ;;  %v12963_v47 = vsel %vm17009_vm0, %v2780_v34, %v12797_v42  ;;  %17548 = vst [vmem:[#allocation58_spill] sm:$0xff] %v12976_v23  ;;  %v12980_v42 = vpack.i.bf16 %v12925_v58, %v12839_v15 }
 0x2d6   :  { %17541 = vst [vmem:[#allocation263_spill] sm:$0xff] %v12930_v8  ;;  %v12938_v24 = vsel %vm17009_vm0, %v17542_v52, %v11835_v48  ;;  %v12951_v8 = vsel %vm17008_vm4, %v12903_v51, %v2912_v63  ;;  %v8523_v63 = vpack.i.bf16 %v17400_v33, %v12572_v26  ;;  %v4860_v34 = vsel %vm2068_vm3, %v11861_v22, %v4855_v19 }
 0x2d7   :  { %v12944_v31 = vpop.permute.xlu1 %8404  ;;  %17545 = vst [vmem:[#allocation265_spill] sm:$0xff] %v12947_v4  ;;  %8504 = vrot.lane.b32.xlu0 %v8503_v35, %s9578_s28  ;;  %v4842_v52 = vsel %vm2068_vm3, %v12951_v8, %v2971_v30  ;;  %17549 = vst [vmem:[#allocation267_spill] sm:$0xff] %v12980_v42 }
 0x2d8   :  { %17544 = vst [vmem:[#allocation264_spill] sm:$0xff] %v12944_v31  ;;  %v8673_v31 = vpack.i.bf16 %v17547_v29, %v4842_v52  ;;  %v8528_v29 = vpack.i.bf16 %v17405_v39, %v12627_v57 }
 0x2d9   :  { %8669 = vrot.lane.b32.xlu1 %v12947_v4, %s9571_s20  ;;  %v12965_v14 = vpop.permute.xlu0 %8264  ;;  %v12994_v4 = vrot.slane %v11976_v50, 2 }
 0x2da   :  { %17546 = vst [vmem:[#allocation266_spill] sm:$0xff] %v12965_v14  ;;  %v8678_v14 = vpack.i.bf16 %v17359_v25, %v4860_v34 }
 0x2db   :  { %v12971_v35 = vpop.permute.xlu1 %8414  ;;  %8524 = vrot.lane.b32.xlu0 %v8523_v63, %s9580_s30  ;;  %17552 = vst [vmem:[#allocation270_spill] sm:$0xff] %v12994_v4  ;;  %v8683_v57 = vpack.i.bf16 %v17517_v0, %v12994_v4 }
 0x2dd   :  { %8674 = vrot.lane.b32.xlu1 %v8673_v31, %s9577_s27  ;;  %v12986_v54 = vpop.permute.xlu0 %8269  ;;  %v13002_v31 = vpack.i.bf16 %v12599_v32, %v11637_v16 }
 0x2de   :  { %17550 = vst [vmem:[#allocation268_spill] sm:$0xff] %v12986_v54  ;;  %v17556_v54 = vrot.slane %v17461_v41, 2 }
 0x2df   :  { %v12990_v26 = vpop.permute.xlu1 %8419  ;;  %8529 = vrot.lane.b32.xlu0 %v8528_v29, %s9572_s21  ;;  %17554 = vst [vmem:[#allocation272_spill] sm:$0xff] %v13002_v31  ;;  %v4822_v29 = vrot.slane %v11976_v50, 4 }
 0x2e0   :  { %17551 = vst [vmem:[#allocation269_spill] sm:$0xff] %v12990_v26  ;;  %v4009_v33 = vsel %vm2068_vm3, %v12374_v36, %v17556_v54 }
 0x2e1   :  { %8679 = vrot.lane.b32.xlu1 %v8678_v14, %s9578_s28  ;;  %v12998_v63 = vpop.permute.xlu0 %8274  ;;  %v13016_v14 = vsel %vm2068_vm3, %v2971_v30, %v12994_v4  ;;  %v13023_v0 = vpack.i.bf16 %v12638_v3, %v4009_v33  ;;  %v13031_v54 = vsel %vm17009_vm0, %v4855_v19, %v4822_v29 }
 0x2e2   :  { %17553 = vst [vmem:[#allocation271_spill] sm:$0xff] %v12998_v63  ;;  %17557 = vst [vmem:[#allocation274_spill] sm:$0xff] %v13016_v14  ;;  %v8698_v36 = vpack.i.bf16 %v13016_v14, %v4842_v52  ;;  %v8703_v33 = vpack.i.bf16 %v13031_v54, %v4860_v34  ;;  %v13043_v52 = vsel %vm2068_vm3, %v11884_v2, %v12761_v27 }
 0x2e3   :  { %v13004_v22 = vpop.permute.xlu1 %8424  ;;  %8544 = vrot.lane.b32.xlu0 %v13002_v31, %s9580_s30  ;;  %17559 = vst [vmem:[#allocation276_spill] sm:$0xff] %v13023_v0  ;;  %17561 = vst [vmem:[#allocation278_spill] sm:$0xff] %v13031_v54  ;;  %v8608_v34 = vpack.i.bf16 %v12844_v20, %v13043_v52  ;;  %v17569_v54 = vld [vmem:[#allocation36_spill] sm:$0xff] }
 0x2e4   :  { %17555 = vst [vmem:[#allocation273_spill] sm:$0xff] %v13004_v22  ;;  %17563 = vst [vmem:[#allocation280_spill] sm:$0xff] %v13043_v52 }
 0x2e5   :  { %8684 = vrot.lane.b32.xlu1 %v8683_v57, %s9569_s18  ;;  %v13020_v63 = vpop.permute.xlu0 %8279  ;;  %v4823_v57 = vrot.slane %v11923_v44, 4 }
 0x2e6   :  { %17558 = vst [vmem:[#allocation275_spill] sm:$0xff] %v13020_v63 }
 0x2e7   :  { %v13025_v41 = vpop.permute.xlu1 %8429  ;;  %8549 = vrot.lane.b32.xlu0 %v13023_v0, %s9572_s21  ;;  %v4824_v19 = vsel %vm17009_vm0, %v4822_v29, %v4823_v57  ;;  %v17564_v0 = vld [vmem:[#allocation101_spill] sm:$0xff]  ;;  %v17567_v29 = vld [vmem:[#allocation216_spill] sm:$0xff] }
 0x2e8   :  { %17560 = vst [vmem:[#allocation277_spill] sm:$0xff] %v13025_v41 }
 0x2e9   :  { %8699 = vrot.lane.b32.xlu1 %v8698_v36, %s9579_s29  ;;  %v13034_v30 = vpop.permute.xlu0 %8284 }
 0x2eb   :  { %v13037_v63 = vpop.permute.xlu1 %8444  ;;  %8604 = vrot.lane.b32.xlu0 %v12862_v13, %s9570_s19 }
 0x2ec   :  { %17562 = vst [vmem:[#allocation279_spill] sm:$0xff] %v13037_v63  ;;  %v3981_v63 = vsel %vm17009_vm0, %v17564_v0, %v17512_v49  ;;  %v8723_v0 = vpack.i.bf16 %v12055_v21, %v17569_v54 }
 0x2ed   :  { %8704 = vrot.lane.b32.xlu1 %v8703_v33, %s9575_s25  ;;  %v13049_v36 = vpop.permute.xlu0 %8304  ;;  %v8708_v27 = vpack.i.bf16 %v3981_v63, %v4824_v19  ;;  %v8618_v33 = vpack.i.bf16 %v11835_v48, %v17567_v29  ;;  %v17571_v19 = vld [vmem:[#allocation57_spill] sm:$0xff] }
 0x2ee   :  { %v17580_v29 = vld [vmem:[#allocation209_spill] sm:$0xff] }
 0x2ef   :  { %v13056_v41 = vpop.permute.xlu1 %8449  ;;  %8609 = vrot.lane.b32.xlu0 %v8608_v34, %s9580_s30  ;;  %v17572_v34 = vld [vmem:[#allocation203_spill] sm:$0xff] }
 0x2f0   :  { %17565 = vst [vmem:[#allocation101_spill] sm:$0xff] %v13056_v41 }
 0x2f1   :  { %8709 = vrot.lane.b32.xlu1 %v8708_v27, %s9567_s0  ;;  %v13060_v13 = vpop.permute.xlu0 %8309  ;;  %v8728_v27 = vpack.i.bf16 %v17572_v34, %v17571_v19 }
 0x2f2   :  { %17566 = vst [vmem:[#allocation281_spill] sm:$0xff] %v13060_v13  ;;  %v13079_v13 = vsel %vm2068_vm3, %v12645_v38, %v12903_v51  ;;  %v17578_v38 = vrot.slane %v11835_v48, 2 }
 0x2f3   :  { %v13064_v16 = vpop.permute.xlu1 %8454  ;;  %8619 = vrot.lane.b32.xlu0 %v8618_v33, %s9577_s27  ;;  %17573 = vst [vmem:[#allocation203_spill] sm:$0xff] %v13079_v13 }
 0x2f4   :  { %17568 = vst [vmem:[#allocation282_spill] sm:$0xff] %v13064_v16  ;;  %v17576_v16 = vld [vmem:[#allocation140_spill] sm:$0xff] }
 0x2f5   :  { %8724 = vrot.lane.b32.xlu1 %v8723_v0, %s9580_s30  ;;  %v13070_v41 = vpop.permute.xlu0 %8314  ;;  %v8628_v0 = vpack.i.bf16 %v12951_v8, %v13079_v13  ;;  %v8733_v34 = vpack.i.bf16 %v12667_v62, %v17576_v16 }
 0x2f6   :  { %17570 = vst [vmem:[#allocation283_spill] sm:$0xff] %v13070_v41 }
 0x2f7   :  { %v13072_v63 = vpop.permute.xlu1 %8464  ;;  %8624 = vrot.lane.b32.xlu0 %v12887_v56, %s9578_s28  ;;  %v8638_v56 = vpack.i.bf16 %v12920_v9, %v12128_v40 }
 0x2f9   :  { %8729 = vrot.lane.b32.xlu1 %v8728_v27, %s9567_s0  ;;  %v13084_v33 = vpop.permute.xlu0 %8319  ;;  %v2917_v27 = vsel %vm2068_vm3, %v12867_v18, %v17578_v38  ;;  %v17584_v38 = vld [vmem:[#allocation68_spill] sm:$0xff] }
 0x2fa   :  { %17574 = vst [vmem:[#allocation284_spill] sm:$0xff] %v13084_v33  ;;  %v8738_v3 = vpack.i.bf16 %v2917_v27, %v17580_v29  ;;  %v17586_v29 = vld [vmem:[#allocation74_spill] sm:$0xff] }
 0x2fb   :  { %v13088_v41 = vpop.permute.xlu1 %8484  ;;  %8629 = vrot.lane.b32.xlu0 %v8628_v0, %s9572_s21 }
 0x2fc   :  { %17575 = vst [vmem:[#allocation285_spill] sm:$0xff] %v13088_v41  ;;  %v17589_v41 = vld [vmem:[#allocation208_spill] sm:$0xff] }
 0x2fd   :  { %8734 = vrot.lane.b32.xlu1 %v8733_v34, %s9579_s29  ;;  %v13094_v51 = vpop.permute.xlu0 %8324  ;;  %v17581_v34 = vld [vmem:[#allocation157_spill] sm:$0xff]  ;;  %v8748_v22 = vpack.i.bf16 %v17589_v41, %v11923_v44 }
 0x2fe   :  { %17577 = vst [vmem:[#allocation286_spill] sm:$0xff] %v13094_v51  ;;  %v8643_v16 = vpack.i.bf16 %v12938_v24, %v17581_v34  ;;  %v17583_v51 = vld [vmem:[#allocation207_spill] sm:$0xff] }
 0x2ff   :  { %v13102_v33 = vpop.permute.xlu1 %8499  ;;  %8639 = vrot.lane.b32.xlu0 %v8638_v56, %s9577_s27  ;;  %v8743_v32 = vpack.i.bf16 %v17584_v38, %v17583_v51 }
 0x300   :  { %17579 = vst [vmem:[#allocation287_spill] sm:$0xff] %v13102_v33  ;;  %v17585_v33 = vld [vmem:[#allocation30_spill] sm:$0xff] }
 0x301   :  { %8739 = vrot.lane.b32.xlu1 %v8738_v3, %s9571_s20  ;;  %v13107_v0 = vpop.permute.xlu0 %8334  ;;  %v3982_v56 = vsel %vm2068_vm3, %v17586_v29, %v17585_v33  ;;  %v8658_v33 = vpack.i.bf16 %v11976_v50, %v11943_v37  ;;  %v17596_v29 = vld [vmem:[#allocation195_spill] sm:$0xff] }
 0x302   :  { %v8653_v54 = vpack.i.bf16 %v4823_v57, %v3982_v56  ;;  %v17593_v57 = vld [vmem:[#allocation211_spill] sm:$0xff] }
 0x303   :  { %v13111_v48 = vpop.permute.xlu1 %8509  ;;  %8644 = vrot.lane.b32.xlu0 %v8643_v16, %s9578_s28  ;;  %v13129_v16 = vrot.slane %v11923_v44, 6 }
 0x304   :  { %17582 = vst [vmem:[#allocation209_spill] sm:$0xff] %v13111_v48 }
 0x305   :  { %8744 = vrot.lane.b32.xlu1 %v8743_v32, %s9567_s0  ;;  %v13120_v27 = vpop.permute.xlu0 %8339  ;;  %17590 = vst [vmem:[#allocation30_spill] sm:$0xff] %v13129_v16  ;;  %v8753_v38 = vpack.i.bf16 %v13129_v16, %v17593_v57 }
 0x306   :  { %17587 = vst [vmem:[#allocation207_spill] sm:$0xff] %v13120_v27  ;;  %v8763_v27 = vpack.i.bf16 %v12867_v18, %v17593_v57 }
 0x307   :  { %v13122_v31 = vpop.permute.xlu1 %8514  ;;  %8654 = vrot.lane.b32.xlu0 %v8653_v54, %s9567_s0 }
 0x308   :  { %17588 = vst [vmem:[#allocation68_spill] sm:$0xff] %v13122_v31 }
 0x309   :  { %8749 = vrot.lane.b32.xlu1 %v8748_v22, %s9575_s25  ;;  %v13131_v32 = vpop.permute.xlu0 %8344  ;;  %v17595_v22 = vrot.slane %v11943_v37, 6 }
 0x30a   :  { %17591 = vst [vmem:[#allocation74_spill] sm:$0xff] %v13131_v32 }
 0x30b   :  { %v13135_v51 = vpop.permute.xlu1 %8519  ;;  %8659 = vrot.lane.b32.xlu0 %v8658_v33, %s9580_s30  ;;  %v13146_v56 = vpack.i.bf16 %v17596_v29, %v17595_v22 }
 0x30c   :  { %17592 = vst [vmem:[#allocation208_spill] sm:$0xff] %v13135_v51  ;;  %v17600_v51 = vld [vmem:[#allocation121_spill] sm:$0xff] }
 0x30d   :  { %8754 = vrot.lane.b32.xlu1 %v8753_v38, %s9579_s29  ;;  %v13141_v54 = vpop.permute.xlu0 %8349  ;;  %17597 = vst [vmem:[#allocation195_spill] sm:$0xff] %v13146_v56  ;;  %v8688_v38 = vpack.i.bf16 %v12994_v4, %v13016_v14  ;;  %v8768_v22 = vpack.i.bf16 %v12744_v45, %v17600_v51  ;;  %v17606_v51 = vld [vmem:[#allocation192_spill] sm:$0xff] }
 0x30e   :  { %17594 = vst [vmem:[#allocation211_spill] sm:$0xff] %v13141_v54 }
 0x30f   :  { %v13148_v32 = vpop.permute.xlu1 %8534  ;;  %8664 = vrot.lane.b32.xlu0 %v13146_v56, %s9571_s20 }
 0x310   :  { %17598 = vst [vmem:[#allocation288_spill] sm:$0xff] %v13148_v32  ;;  %v17601_v32 = vrot.slane %v12055_v21, 4 }
 0x311   :  { %8764 = vrot.lane.b32.xlu1 %v8763_v27, %s9569_s18  ;;  %v13155_v33 = vpop.permute.xlu0 %8354 }
 0x312   :  { %17599 = vst [vmem:[#allocation289_spill] sm:$0xff] %v13155_v33  ;;  %v13167_v18 = vsel %vm17009_vm0, %v17601_v32, %v12025_v17  ;;  %v13175_v33 = vpack.i.bf16 %v13016_v14, %v12951_v8  ;;  %v17607_v32 = vld [vmem:[#allocation144_spill] sm:$0xff]  ;;  %v17610_v8 = vld [vmem:[#allocation217_spill] sm:$0xff] }
 0x313   :  { %v13159_v54 = vpop.permute.xlu1 %8539  ;;  %17602 = vst [vmem:[#allocation121_spill] sm:$0xff] %v13167_v18  ;;  %8689 = vrot.lane.b32.xlu0 %v8688_v38, %s9572_s21  ;;  %v8773_v56 = vpack.i.bf16 %v17606_v51, %v13167_v18  ;;  %v17608_v38 = vld [vmem:[#allocation99_spill] sm:$0xff]  ;;  %v13192_v45 = vpack.i.bf16 %v17610_v8, %v17589_v41 }
 0x314   :  { %17604 = vst [vmem:[#allocation291_spill] sm:$0xff] %v13175_v33 }
 0x315   :  { %8769 = vrot.lane.b32.xlu1 %v8768_v22, %s9572_s21  ;;  %v13171_v27 = vpop.permute.xlu0 %8359  ;;  %v8713_v22 = vpack.i.bf16 %v17608_v38, %v17607_v32  ;;  %17611 = vst [vmem:[#allocation217_spill] sm:$0xff] %v13192_v45  ;;  %v17614_v32 = vld [vmem:[#allocation132_spill] sm:$0xff] }
 0x316   :  { %17603 = vst [vmem:[#allocation290_spill] sm:$0xff] %v13171_v27 }
 0x317   :  { %v13177_v48 = vpop.permute.xlu1 %8554  ;;  %8694 = vrot.lane.b32.xlu0 %v13175_v33, %s9569_s18 }
 0x318   :  { %17605 = vst [vmem:[#allocation292_spill] sm:$0xff] %v13177_v48 }
 0x319   :  { %8774 = vrot.lane.b32.xlu1 %v8773_v56, %s9577_s27  ;;  %v13184_v17 = vpop.permute.xlu0 %8374  ;;  %v17613_v56 = vpack.i.bf16 %v12615_v61, %v17608_v38 }
 0x31b   :  { %v13188_v27 = vpop.permute.xlu1 %8559  ;;  %8714 = vrot.lane.b32.xlu0 %v8713_v22, %s9575_s25  ;;  %v17617_v22 = vpack.i.bf16 %v12680_v5, %v12667_v62 }
 0x31c   :  { %17609 = vst [vmem:[#allocation99_spill] sm:$0xff] %v13188_v27 }
 0x31d   :  { %8789 = vrot.lane.b32.xlu1 %v13192_v45, %s9570_s19  ;;  %v13197_v18 = vpop.permute.xlu0 %8389  ;;  %v17618_v45 = vld [vmem:[#allocation80_spill] sm:$0xff] }
 0x31f   :  { %v13199_v4 = vpop.permute.xlu1 %8564  ;;  %8719 = vrot.lane.b32.xlu0 %v17613_v56, %s9578_s28  ;;  %v17621_v56 = vld [vmem:[#allocation184_spill] sm:$0xff] }
 0x320   :  { %17612 = vst [vmem:[#allocation293_spill] sm:$0xff] %v13199_v4  ;;  %v8838_v62 = vpack.i.bf16 %v17621_v56, %v12413_v55  ;;  %v17735_v55 = vld [vmem:[#allocation23_spill] sm:$0xff] }
 0x321   :  { %8809 = vrot.lane.b32.xlu1 %v17614_v32, %s9575_s25  ;;  %v13207_v51 = vpop.permute.xlu0 %8399 }
 0x322   :  { %17615 = vst [vmem:[#allocation132_spill] sm:$0xff] %v13207_v51 }
 0x323   :  { %v13209_v44 = vpop.permute.xlu1 %8569  ;;  %8759 = vrot.lane.b32.xlu0 %v17617_v22, %s9577_s27 }
 0x324   :  { %17616 = vst [vmem:[#allocation294_spill] sm:$0xff] %v13209_v44 }
 0x325   :  { %8819 = vrot.lane.b32.xlu1 %v17618_v45, %s9570_s19  ;;  %v13217_v14 = vpop.permute.xlu0 %8409  ;;  %v17623_v45 = vld [vmem:[#allocation204_spill] sm:$0xff] }
 0x326   :  { %17619 = vst [vmem:[#allocation295_spill] sm:$0xff] %v13217_v14  ;;  %v13237_v14 = vpack.i.bf16 %v12720_v7, %v17623_v45 }
 0x327   :  { %v13219_v33 = vpop.permute.xlu1 %8574  ;;  %8779 = vrot.lane.b32.xlu0 %v12976_v23, %s9578_s28 }
 0x328   :  { %17624 = vst [vmem:[#allocation204_spill] sm:$0xff] %v13237_v14 }
 0x329   :  { %8829 = vrot.lane.b32.xlu1 %v8738_v3, %s9573_s22  ;;  %v13224_v32 = vpop.permute.xlu0 %8434  ;;  %v8848_v3 = vpack.i.bf16 %v13043_v52, %v12720_v7 }
 0x32a   :  { %17620 = vst [vmem:[#allocation296_spill] sm:$0xff] %v13224_v32 }
 0x32b   :  { %v13226_v38 = vpop.permute.xlu1 %8579  ;;  %8784 = vrot.lane.b32.xlu0 %v12980_v42, %s9570_s19 }
 0x32d   :  { %8839 = vrot.lane.b32.xlu1 %v8838_v62, %s9576_s26  ;;  %v13233_v22 = vpop.permute.xlu0 %8439 }
 0x32e   :  { %17622 = vst [vmem:[#allocation297_spill] sm:$0xff] %v13233_v22  ;;  %v17629_v22 = vld [vmem:[#allocation6_spill] sm:$0xff] }
 0x32f   :  { %v13239_v44 = vpop.permute.xlu1 %8584  ;;  %8794 = vrot.lane.b32.xlu0 %v13237_v14, %s9580_s30  ;;  %v17630_v14 = vld [vmem:[#allocation234_spill] sm:$0xff] }
 0x330   :  { %17625 = vst [vmem:[#allocation298_spill] sm:$0xff] %v13239_v44 }
 0x331   :  { %8849 = vrot.lane.b32.xlu1 %v8848_v3, %s9574_s24  ;;  %v13246_v51 = vpop.permute.xlu0 %8459 }
 0x332   :  { %17626 = vst [vmem:[#allocation299_spill] sm:$0xff] %v13246_v51  ;;  %v8813_v51 = vpack.i.bf16 %v12128_v40, %v17630_v14 }
 0x333   :  { %v13248_v32 = vpop.permute.xlu1 %8589  ;;  %8799 = vrot.lane.b32.xlu0 %v12764_v59, %s9572_s21  ;;  %v17632_v59 = vld [vmem:[#allocation244_spill] sm:$0xff] }
 0x334   :  { %17627 = vst [vmem:[#allocation300_spill] sm:$0xff] %v13248_v32  ;;  %v17701_v32 = vld [vmem:[#allocation28_spill] sm:$0xff] }
 0x335   :  { %8859 = vrot.lane.b32.xlu1 %v12808_v43, %s9581_s12  ;;  %v13254_v62 = vpop.permute.xlu0 %8469  ;;  %v13270_v43 = vpack.i.bf16 %v13079_v13, %v17632_v59  ;;  %v17636_v59 = vld [vmem:[#allocation181_spill] sm:$0xff] }
 0x337   :  { %v13256_v44 = vpop.permute.xlu1 %8594  ;;  %8804 = vrot.lane.b32.xlu0 %v17629_v22, %s9578_s28  ;;  %17633 = vst [vmem:[#allocation244_spill] sm:$0xff] %v13270_v43 }
 0x338   :  { %17628 = vst [vmem:[#allocation301_spill] sm:$0xff] %v13256_v44  ;;  %v8823_v44 = vpack.i.bf16 %v12736_v53, %v12873_v12  ;;  %v17638_v12 = vpack.i.bf16 %v12835_v60, %v12680_v5  ;;  %v17644_v5 = vld [vmem:[#allocation20_spill] sm:$0xff] }
 0x339   :  { %8869 = vrot.lane.b32.xlu1 %v12768_v1, %s9569_s18  ;;  %v13262_v3 = vpop.permute.xlu0 %8474 }
 0x33b   :  { %v13266_v42 = vpop.permute.xlu1 %8599  ;;  %8814 = vrot.lane.b32.xlu0 %v8813_v51, %s9580_s30  ;;  %v8833_v51 = vpack.i.bf16 %v17581_v34, %v17636_v59  ;;  %v17641_v34 = vpack.i.bf16 %v12839_v15, %v12615_v61  ;;  %v17649_v61 = vld [vmem:[#allocation77_spill] sm:$0xff] }
 0x33c   :  { %17631 = vst [vmem:[#allocation6_spill] sm:$0xff] %v13266_v42  ;;  %v17645_v42 = vld [vmem:[#allocation76_spill] sm:$0xff] }
 0x33d   :  { %8874 = vrot.lane.b32.xlu1 %v13270_v43, %s9569_s18  ;;  %v13275_v22 = vpop.permute.xlu0 %8479 }
 0x33f   :  { %v13279_v23 = vpop.permute.xlu1 %8614  ;;  %8824 = vrot.lane.b32.xlu0 %v8823_v44, %s9569_s18  ;;  %v8843_v44 = vpack.i.bf16 %v12754_v6, %v12844_v20 }
 0x340   :  { %17634 = vst [vmem:[#allocation302_spill] sm:$0xff] %v13279_v23  ;;  %v17646_v23 = vld [vmem:[#allocation78_spill] sm:$0xff] }
 0x341   :  { %8879 = vrot.lane.b32.xlu1 %v12819_v28, %s9571_s20  ;;  %v13284_v40 = vpop.permute.xlu0 %8489  ;;  %v17647_v6 = vpack.i.bf16 %v17645_v42, %v17646_v23  ;;  %v17652_v23 = vld [vmem:[#allocation220_spill] sm:$0xff]  ;;  %v17653_v42 = vpack.i.bf16 %v12920_v9, %v12907_v11  ;;  %v8918_v9 = vpack.i.bf16 %v17589_v41, %v12925_v58 }
 0x342   :  { %17635 = vst [vmem:[#allocation303_spill] sm:$0xff] %v13284_v40 }
 0x343   :  { %v13288_v14 = vpop.permute.xlu1 %8634  ;;  %8834 = vrot.lane.b32.xlu0 %v8833_v51, %s9572_s21 }
 0x344   :  { %17637 = vst [vmem:[#allocation181_spill] sm:$0xff] %v13288_v14  ;;  %v17662_v14 = vld [vmem:[#allocation210_spill] sm:$0xff] }
 0x345   :  { %8884 = vrot.lane.b32.xlu1 %v17638_v12, %s9579_s29  ;;  %v13295_v53 = vpop.permute.xlu0 %8494  ;;  %v8903_v12 = vpack.i.bf16 %v17644_v5, %v17610_v8 }
 0x346   :  { %17639 = vst [vmem:[#allocation304_spill] sm:$0xff] %v13295_v53 }
 0x347   :  { %v13299_v13 = vpop.permute.xlu1 %8649  ;;  %8844 = vrot.lane.b32.xlu0 %v8843_v44, %s9567_s0 }
 0x348   :  { %17640 = vst [vmem:[#allocation305_spill] sm:$0xff] %v13299_v13  ;;  %v17700_v13 = vld [vmem:[#allocation116_spill] sm:$0xff] }
 0x349   :  { %8889 = vrot.lane.b32.xlu1 %v17641_v34, %s9575_s25  ;;  %v13306_v51 = vpop.permute.xlu0 %8504  ;;  %v8908_v34 = vpack.i.bf16 %v12835_v60, %v17649_v61  ;;  %v16830_v61 = vrot.slane %v17359_v25, 4 }
 0x34a   :  { %17642 = vst [vmem:[#allocation306_spill] sm:$0xff] %v13306_v51  ;;  %v17650_v51 = vld [vmem:[#allocation172_spill] sm:$0xff] }
 0x34b   :  { %v13308_v40 = vpop.permute.xlu1 %8669  ;;  %8854 = vrot.lane.b32.xlu0 %v17647_v6, %s9577_s27  ;;  %v8913_v6 = vpack.i.bf16 %v12839_v15, %v17652_v23  ;;  %v8928_v23 = vpack.i.bf16 %v17623_v45, %v12055_v21 }
 0x34c   :  { %17643 = vst [vmem:[#allocation307_spill] sm:$0xff] %v13308_v40 }
 0x34d   :  { %8904 = vrot.lane.b32.xlu1 %v8903_v12, %s9575_s25  ;;  %v13317_v44 = vpop.permute.xlu0 %8524 }
 0x34f   :  { %v13319_v53 = vpop.permute.xlu1 %8674  ;;  %8864 = vrot.lane.b32.xlu0 %v17650_v51, %s9579_s29  ;;  %v17654_v51 = vpack.i.bf16 %v12938_v24, %v12925_v58  ;;  %v17657_v24 = vld [vmem:[#allocation15_spill] sm:$0xff]  ;;  %v17677_v58 = vpack.i.bf16 %v12963_v47, %v12907_v11  ;;  %v4837_v11 = vrot.slane %v11976_v50, 6 }
 0x350   :  { %17648 = vst [vmem:[#allocation76_spill] sm:$0xff] %v13319_v53 }
 0x351   :  { %8909 = vrot.lane.b32.xlu1 %v8908_v34, %s9569_s18  ;;  %v13326_v5 = vpop.permute.xlu0 %8529 }
 0x353   :  { %v13328_v40 = vpop.permute.xlu1 %8679  ;;  %8894 = vrot.lane.b32.xlu0 %v17653_v42, %s9579_s29 }
 0x354   :  { %17651 = vst [vmem:[#allocation78_spill] sm:$0xff] %v13328_v40  ;;  %v13446_v40 = vsel %vm17008_vm4, %v4837_v11, %v13129_v16  ;;  %v17696_v16 = vld [vmem:[#allocation29_spill] sm:$0xff] }
 0x355   :  { %8914 = vrot.lane.b32.xlu1 %v8913_v6, %s9567_s0  ;;  %v13337_v60 = vpop.permute.xlu0 %8544  ;;  %v13361_v6 = vsel %vm17009_vm0, %v17657_v24, %v16830_v61  ;;  %v17664_v24 = vld [vmem:[#allocation108_spill] sm:$0xff] }
 0x357   :  { %v13339_v12 = vpop.permute.xlu1 %8684  ;;  %8899 = vrot.lane.b32.xlu0 %v17654_v51, %s9575_s25 }
 0x359   :  { %8924 = vrot.lane.b32.xlu1 %v12819_v28, %s9573_s22  ;;  %v13348_v15 = vpop.permute.xlu0 %8549  ;;  %v17698_v28 = vld [vmem:[#allocation109_spill] sm:$0xff] }
 0x35a   :  { %17655 = vst [vmem:[#allocation77_spill] sm:$0xff] %v13348_v15  ;;  %v17756_v15 = vld [vmem:[#allocation41_spill] sm:$0xff] }
 0x35b   :  { %v13352_v34 = vpop.permute.xlu1 %8699  ;;  %8919 = vrot.lane.b32.xlu0 %v8918_v9, %s9567_s0  ;;  %v8943_v9 = vpack.i.bf16 %v17662_v14, %v12022_v46 }
 0x35c   :  { %17656 = vst [vmem:[#allocation172_spill] sm:$0xff] %v13352_v34 }
 0x35d   :  { %8929 = vrot.lane.b32.xlu1 %v8928_v23, %s9574_s24  ;;  %v13368_v53 = vpop.permute.xlu0 %8604  ;;  %v17666_v23 = vld [vmem:[#allocation61_spill] sm:$0xff] }
 0x35e   :  { %17661 = vst [vmem:[#allocation220_spill] sm:$0xff] %v13368_v53 }
 0x35f   :  { %v13376_v51 = vpop.permute.xlu1 %8704  ;;  %8944 = vrot.lane.b32.xlu0 %v8943_v9, %s9577_s27 }
 0x360   :  { %17665 = vst [vmem:[#allocation15_spill] sm:$0xff] %v13376_v51 }
 0x361   :  { %8934 = vrot.lane.b32.xlu1 %v12768_v1, %s9568_s17  ;;  %v13393_v9 = vpop.permute.xlu0 %8609  ;;  %v8938_v1 = vpack.i.bf16 %v11884_v2, %v17610_v8 }
 0x363   :  { %v13398_v48 = vpop.permute.xlu1 %8709  ;;  %8959 = vrot.lane.b32.xlu0 %v17677_v58, %s9569_s18  ;;  %v17689_v58 = vld [vmem:[#allocation94_spill] sm:$0xff] }
 0x364   :  { %17674 = vst [vmem:[#allocation108_spill] sm:$0xff] %v13398_v48  ;;  %v7842_v51 = vunpack.i.h.bf16 %v17689_v58  ;;  %v7841_v34 = vunpack.i.l.bf16 %v17689_v58 }
 0x365   :  { %8939 = vrot.lane.b32.xlu1 %v8938_v1, %s9567_s0  ;;  %v13418_v61 = vpop.permute.xlu0 %8619  ;;  %v13428_v1 = vpack.i.bf16 %v17593_v57, %v12963_v47  ;;  %v17690_v57 = vld [vmem:[#allocation17_spill] sm:$0xff] }
 0x366   :  { %17681 = vst [vmem:[#allocation61_spill] sm:$0xff] %v13418_v61  ;;  %v7907_v8 = vunpack.i.h.bf16 %v17690_v57  ;;  %v7906_v4 = vunpack.i.l.bf16 %v17690_v57  ;;  %17692 = vst [vmem:[#allocation17_spill] sm:$0xff] %v13446_v40  ;;  %v13461_v48 = vsel %vm17010_vm5, %v17696_v16, %v7842_v51  ;;  %v13465_v58 = vsel %vm17010_vm5, %v17698_v28, %v7841_v34  ;;  %v17699_v61 = vld [vmem:[#allocation105_spill] sm:$0xff]  ;;  %v17718_v28 = vld [vmem:[#allocation83_spill] sm:$0xff] }
 0x367   :  { %v13424_v27 = vpop.permute.xlu1 %8724  ;;  %17685 = vst [vmem:[#allocation309_spill] sm:$0xff] %v13428_v1  ;;  %17697 = vst [vmem:[#allocation29_spill] sm:$0xff] %v13461_v48  ;;  %v7986_v48 = vunpack.i.l.bf16 %v17735_v55  ;;  %v17737_v51 = vld [vmem:[#allocation110_spill] sm:$0xff] }
 0x368   :  { %17684 = vst [vmem:[#allocation308_spill] sm:$0xff] %v13424_v27  ;;  %v13472_v57 = vsel %vm17010_vm5, %v17700_v13, %v7907_v8  ;;  %v13476_v11 = vsel %vm17010_vm5, %v17701_v32, %v7906_v4 }
 0x369   :  { %8949 = vrot.lane.b32.xlu1 %v13428_v1, %s9578_s28  ;;  %v13442_v53 = vpop.permute.xlu0 %8624  ;;  %v8953_v1 = vpack.i.bf16 %v12963_v47, %v13446_v40  ;;  %17702 = vst [vmem:[#allocation109_spill] sm:$0xff] %v13476_v11  ;;  %v17709_v11 = vld [vmem:[#allocation139_spill] sm:$0xff]  ;;  %v7987_v47 = vunpack.i.h.bf16 %v17735_v55  ;;  %v17744_v40 = vld [vmem:[#allocation9_spill] sm:$0xff] }
 0x36a   :  { %17691 = vst [vmem:[#allocation94_spill] sm:$0xff] %v13442_v53  ;;  %v7912_v53 = vunpack.i.h.bf16 %v17709_v11  ;;  %v17749_v55 = vld [vmem:[#allocation117_spill] sm:$0xff] }
 0x36b   :  { %v13451_v42 = vpop.permute.xlu1 %8729 }
 0x36c   :  { %v13512_v43 = vsel %vm17010_vm5, %v17718_v28, %v7912_v53  ;;  %v17739_v28 = vld [vmem:[#allocation26_spill] sm:$0xff] }
 0x36d   :  { %8954 = vrot.lane.b32.xlu1 %v8953_v1, %s9579_s29  ;;  %v13480_v34 = vpop.permute.xlu0 %8629  ;;  %v7911_v1 = vunpack.i.l.bf16 %v17709_v11  ;;  %17719 = vst [vmem:[#allocation83_spill] sm:$0xff] %v13512_v43 }
 0x36f   :  { %v13486_v13 = vpop.permute.xlu1 %8734 }
 0x370   :  { %17706 = vst [vmem:[#allocation116_spill] sm:$0xff] %v13486_v13  ;;  %v2635_v13 = vsel %vm17008_vm4, %v17744_v40, %v13361_v6  ;;  %vm3507_vm4 = vcmask 736256  }
 0x371   :  { %v13500_v8 = vpop.permute.xlu0 %8639 }
 0x372   :  { %17713 = vst [vmem:[#allocation28_spill] sm:$0xff] %v13500_v8  ;;  %v17721_v8 = vld [vmem:[#allocation79_spill] sm:$0xff] }
 0x373   :  { %v13506_v41 = vpop.permute.xlu1 %8739  ;;  %v13517_v31 = vsel %vm17010_vm5, %v17721_v8, %v7911_v1  ;;  %v17728_v1 = vld [vmem:[#allocation156_spill] sm:$0xff] }
 0x374   :  { %17716 = vst [vmem:[#allocation139_spill] sm:$0xff] %v13506_v41  ;;  %17722 = vst [vmem:[#allocation79_spill] sm:$0xff] %v13517_v31  ;;  %v8022_v8 = vunpack.i.h.bf16 %v17728_v1  ;;  %v8021_v46 = vunpack.i.l.bf16 %v17728_v1  ;;  %v17746_v1 = vld [vmem:[#allocation170_spill] sm:$0xff] }
 0x375   :  { %v13525_v53 = vpop.permute.xlu0 %8644  ;;  %v8027_v6 = vunpack.i.h.bf16 %v17746_v1 }
 0x376   :  { %17726 = vst [vmem:[#allocation310_spill] sm:$0xff] %v13525_v53  ;;  %v13550_v53 = vsel %vm17010_vm5, %v17737_v51, %v8022_v8  ;;  %v13554_v43 = vsel %vm17010_vm5, %v17739_v28, %v8021_v46  ;;  %v9482_v51 = vld [vmem:[%s16410_s3] sm:$0xff]  }
 0x377   :  { %v13531_v31 = vpop.permute.xlu1 %8744  ;;  %17738 = vst [vmem:[#allocation110_spill] sm:$0xff] %v13550_v53  ;;  %17740 = vst [vmem:[#allocation26_spill] sm:$0xff] %v13554_v43  ;;  %v17745_v46 = vld [vmem:[#allocation164_spill] sm:$0xff]  ;;  %v8026_v53 = vunpack.i.l.bf16 %v17746_v1  ;;  %v16899_v43 = vmov 0  }
 0x378   :  { %17729 = vst [vmem:[#allocation156_spill] sm:$0xff] %v13531_v31  ;;  %v8002_v28 = vunpack.i.h.bf16 %v17745_v46  ;;  %v8001_v8 = vunpack.i.l.bf16 %v17745_v46  ;;  %3908 = vmatprep.subr.bf16.mxu1 %v16899_v43  ;;  %v2637_v46 = vsel %vm2068_vm3, %v17405_v39, %v17756_v15  ;;  %v17762_v39 = vld [vmem:[#allocation179_spill] sm:$0xff]  ;;  %vm3491_vm3 = vcmask 637952  }
 0x379   :  { %v13545_v14 = vpop.permute.xlu0 %8654  ;;  %3909 = vmatpush1.bf16.msra.mxu1 %v9482_v51  ;;  %v17760_v51 = vld [vmem:[#allocation11_spill] sm:$0xff]  ;;  %v8057_v15 = vunpack.i.h.bf16 %v17762_v39 }
 0x37a   :  { %17736 = vst [vmem:[#allocation23_spill] sm:$0xff] %v13545_v14  ;;  %v13577_v14 = vsel %vm17010_vm5, %v17749_v55, %v7986_v48  ;;  %3910 = vmatprep.subr.bf16.mxu1 %v16899_v43  ;;  %v13601_v16 = vsel %vm17010_vm5, %v17571_v19, %v8002_v28  ;;  %v8056_v43 = vunpack.i.l.bf16 %v17762_v39  ;;  %v17768_v28 = vunpack.i.l.bf16 %v17664_v24  ;;  %v17787_v19 = vld [vmem:[#allocation237_spill] sm:$0xff] }
 0x37b   :  { %v13557_v41 = vpop.permute.xlu1 %8749  ;;  %17757 = vst [vmem:[#allocation170_spill] sm:$0xff] %v13601_v16  ;;  %v17770_v16 = vld [vmem:[#allocation183_spill] sm:$0xff]  ;;  %v3399_v32 = vsel %vm17010_vm5, %v2637_v46, %v8057_v15  ;;  %v17781_v39 = vunpack.i.l.bf16 %v17666_v23  ;;  %v17803_v15 = vld [vmem:[#allocation252_spill] sm:$0xff]  ;;  %v8337_v46 = vunpack.i.h.bf16 %v13107_v0 }
 0x37c   :  { %17742 = vst [vmem:[#allocation311_spill] sm:$0xff] %v13557_v41  ;;  %v17747_v41 = vld [vmem:[#allocation129_spill] sm:$0xff] }
 0x37d   :  { %v13573_v31 = vsel %vm17010_vm5, %v17747_v41, %v7987_v47  ;;  %v13581_v2 = vpop.permute.xlu0 %8659  ;;  %v17752_v47 = vld [vmem:[#allocation22_spill] sm:$0xff]  ;;  %v3397_v41 = vsel %vm17010_vm5, %v2635_v13, %v8027_v6  ;;  %v17791_v6 = vld [vmem:[#allocation213_spill] sm:$0xff] }
 0x37e   :  { %17748 = vst [vmem:[#allocation9_spill] sm:$0xff] %v13573_v31  ;;  %v17753_v31 = vrot.slane %v17359_v25, 4  ;;  %v17758_v25 = vld [vmem:[#allocation111_spill] sm:$0xff]  ;;  %v9483_v13 = vld [vmem:[%s16410_s3 + $0x8] sm:$0xff]  }
 0x37f   :  { %v13591_v55 = vpop.permute.xlu1 %8754  ;;  %3911 = vmatpush1.bf16.msra.mxu1 %v9483_v13 }
 0x380   :  { %v2636_v48 = vsel %vm17009_vm0, %v17753_v31, %v17752_v47  ;;  %17754 = vst [vmem:[#allocation164_spill] sm:$0xff] %v13591_v55  ;;  %v13605_v31 = vsel %vm17010_vm5, %v17758_v25, %v8001_v8  ;;  %v3396_v47 = vsel %vm17010_vm5, %v17760_v51, %v8026_v53  ;;  %v8062_v55 = vunpack.i.h.bf16 %v17770_v16  ;;  %v9484_v8 = vld [vmem:[%s16410_s3 + $0x10] sm:$0xff]  }
 0x381   :  { %17759 = vst [vmem:[#allocation129_spill] sm:$0xff] %v13605_v31  ;;  %v13613_v1 = vpop.permute.xlu0 %8664  ;;  %v3404_v4 = vsel %vm3403_vm6, %v3396_v47, %v17768_v28  ;;  %v17771_v31 = vunpack.i.h.bf16 %v17664_v24  ;;  %v3398_v40 = vsel %vm17010_vm5, %v2636_v48, %v8056_v43  ;;  %v17773_v28 = vmov 0   ;;  %v17796_v48 = vld [vmem:[#allocation238_spill] sm:$0xff] }
 0x382   :  { %17763 = vst [vmem:[#allocation22_spill] sm:$0xff] %v13613_v1  ;;  %3912 = vmatprep.subr.bf16.mxu1 %v17773_v28  ;;  %v17779_v51 = vunpack.i.h.bf16 %v17666_v23  ;;  %v17792_v23 = vld [vmem:[#allocation233_spill] sm:$0xff] }
 0x383   :  { %v13619_v53 = vpop.permute.xlu1 %8764  ;;  %v3405_v11 = vsel %vm3403_vm6, %v3397_v41, %v17771_v31  ;;  %v17775_v41 = vld [vmem:[#allocation190_spill] sm:$0xff]  ;;  %3913 = vmatpush1.bf16.msra.mxu1 %v9484_v8  ;;  %v17798_v8 = vld [vmem:[#allocation243_spill] sm:$0xff] }
 0x384   :  { %17766 = vst [vmem:[#allocation41_spill] sm:$0xff] %v13619_v53  ;;  %v8061_v53 = vunpack.i.l.bf16 %v17770_v16  ;;  %v8086_v31 = vunpack.i.l.bf16 %v17775_v41  ;;  %v13659_v24 = vsel %vm3403_vm6, %v3399_v32, %v17779_v51  ;;  %v13664_v16 = vsel %vm3403_vm6, %v3398_v40, %v17781_v39  ;;  %3914 = vmatprep.subr.bf16.mxu1 %v17773_v28  ;;  %v17790_v39 = vld [vmem:[#allocation205_spill] sm:$0xff] }
 0x385   :  { %v13640_v47 = vpop.permute.xlu0 %8689  ;;  %17780 = vst [vmem:[#allocation11_spill] sm:$0xff] %v13659_v24  ;;  %17782 = vst [vmem:[#allocation179_spill] sm:$0xff] %v13664_v16  ;;  %v13670_v43 = vsel %vm3411_vm7, %v3405_v11, %v8062_v55  ;;  %v8261_v32 = vunpack.i.l.bf16 %v17787_v19  ;;  %v17788_v11 = vld [vmem:[#allocation241_spill] sm:$0xff]  ;;  %v17793_v24 = vld [vmem:[#allocation235_spill] sm:$0xff]  ;;  %v8526_v41 = vunpack.i.l.bf16 %v13317_v44 }
 0x386   :  { %v13667_v25 = vsel %vm3411_vm7, %v3404_v4, %v8061_v53  ;;  %17784 = vst [vmem:[#allocation312_spill] sm:$0xff] %v13670_v43  ;;  %v5473_v4 = vsel %vm3403_vm6, %v13465_v58, %v8086_v31  ;;  %v8202_v55 = vunpack.i.h.bf16 %v17788_v11  ;;  %v17795_v16 = vld [vmem:[#allocation240_spill] sm:$0xff]  ;;  %v17802_v19 = vld [vmem:[#allocation249_spill] sm:$0xff]  ;;  %v8336_v43 = vunpack.i.l.bf16 %v13107_v0 }
 0x387   :  { %v13647_v13 = vpop.permute.xlu1 %8769  ;;  %17783 = vst [vmem:[#allocation183_spill] sm:$0xff] %v13667_v25  ;;  %v9485_v25 = vld [vmem:[%s16410_s3 + $0x18] sm:$0xff]   ;;  %v17804_v40 = vld [vmem:[#allocation257_spill] sm:$0xff]  ;;  %v4638_v26 = vsel %vm17010_vm5, %v11976_v50, %v8526_v41  ;;  %v8687_v0 = vunpack.i.h.bf16 %v13339_v12  ;;  %v8612_v41 = vunpack.i.h.bf16 %v13393_v9 }
 0x388   :  { %17776 = vst [vmem:[#allocation111_spill] sm:$0xff] %v13647_v13  ;;  %v13707_v58 = vsel %vm3403_vm6, %v13472_v57, %v8202_v55  ;;  %v17805_v55 = vld [vmem:[#allocation261_spill] sm:$0xff]  ;;  %3915 = vmatpush1.bf16.msra.mxu1 %v9485_v25  ;;  %v8472_v25 = vunpack.i.h.bf16 %v13254_v62  ;;  %v17808_v57 = vunpack.i.l.bf16 %v17699_v61  ;;  %v13753_v1 = vsel %vm17010_vm5, %v12055_v21, %v8336_v43 }
 0x389   :  { %v13676_v51 = vpop.permute.xlu0 %8694  ;;  %17799 = vst [vmem:[#allocation233_spill] sm:$0xff] %v13707_v58  ;;  %3916 = vmatprep.subr.bf16.mxu1 %v17773_v28  ;;  %v9486_v43 = vld [vmem:[%s16410_s3 + $0x20] sm:$0xff]   ;;  %v8631_v21 = vunpack.i.l.bf16 %v13480_v34 }
 0x38a   :  { %v13773_v61 = vsel %vm17010_vm5, %v13043_v52, %v8472_v25 }
 0x38b   :  { %v13683_v53 = vpop.permute.xlu1 %8774 }
 0x38c   :  { %17789 = vst [vmem:[#allocation313_spill] sm:$0xff] %v13683_v53  ;;  %v13696_v53 = vsel %vm3403_vm6, %v13577_v14, %v8261_v32  ;;  %v17801_v32 = vld [vmem:[#allocation250_spill] sm:$0xff]  ;;  %3917 = vmatpush1.bf16.msra.mxu1 %v9486_v43 }
 0x38d   :  { %17794 = vst [vmem:[#allocation205_spill] sm:$0xff] %v13696_v53  ;;  %v13701_v11 = vpop.permute.xlu0 %8714  ;;  %v8466_v53 = vunpack.i.l.bf16 %v13072_v63  ;;  %3918 = vmatprep.subr.bf16.mxu1 %v17773_v28 }
 0x38e   :  { %17797 = vst [vmem:[#allocation213_spill] sm:$0xff] %v13701_v11  ;;  %v8471_v11 = vunpack.i.l.bf16 %v13254_v62 }
 0x38f   :  { %v13710_v14 = vpop.permute.xlu1 %8789 }
 0x390   :  { %17800 = vst [vmem:[#allocation235_spill] sm:$0xff] %v13710_v14  ;;  %v13749_v14 = vsel %vm17010_vm5, %v17623_v45, %v8337_v46  ;;  %v8686_v45 = vunpack.i.l.bf16 %v13339_v12  ;;  %v8727_v12 = vunpack.i.h.bf16 %v13424_v27 }
 0x391   :  { %v13726_v58 = vpop.permute.xlu0 %8719 }
 0x392   :  { %17806 = vst [vmem:[#allocation240_spill] sm:$0xff] %v13726_v58  ;;  %v8611_v58 = vunpack.i.l.bf16 %v13393_v9  ;;  %v8532_v9 = vunpack.i.h.bf16 %v13326_v5 }
 0x393   :  { %v13732_v31 = vpop.permute.xlu1 %8809 }
 0x394   :  { %17807 = vst [vmem:[#allocation238_spill] sm:$0xff] %v13732_v31  ;;  %v13745_v31 = vsel %vm3411_vm7, %v5473_v4, %v17808_v57  ;;  %v13777_v4 = vsel %vm17010_vm5, %v12720_v7, %v8471_v11  ;;  %v3711_v25 = vsel %vm17010_vm5, %v17621_v56, %v8611_v58  ;;  %v8531_v58 = vunpack.i.l.bf16 %v13326_v5  ;;  %v9487_v7 = vld [vmem:[%s16410_s3 + $0x28] sm:$0xff]  }
 0x395   :  { %v13757_v62 = vpop.permute.xlu0 %8759  ;;  %v8546_v57 = vunpack.i.l.bf16 %v13337_v60  ;;  %v8731_v56 = vunpack.i.l.bf16 %v13451_v42  ;;  %3919 = vmatpush1.bf16.msra.mxu1 %v9487_v7  ;;  %v3712_v5 = vsel %vm17010_vm5, %v17636_v59, %v8612_v41 }
 0x396   :  { %17809 = vst [vmem:[#allocation243_spill] sm:$0xff] %v13757_v62  ;;  %v8547_v62 = vunpack.i.h.bf16 %v13337_v60  ;;  %3920 = vmatprep.subr.bf16.mxu1 %v17773_v28 }
 0x397   :  { %v13763_v46 = vpop.permute.xlu1 %8819 }
 0x398   :  { %17810 = vst [vmem:[#allocation249_spill] sm:$0xff] %v13763_v46  ;;  %v8527_v46 = vunpack.i.h.bf16 %v13317_v44  ;;  %v4645_v44 = vsel %vm3403_vm6, %v4638_v26, %v8686_v45  ;;  %v3718_v45 = vsel %vm3403_vm6, %v3711_v25, %v8466_v53  ;;  %v13812_v60 = vsel %vm17010_vm5, %v11943_v37, %v8547_v62  ;;  %v17815_v62 = vld [vmem:[#allocation77_spill] sm:$0xff] }
 0x399   :  { %v13788_v52 = vpop.permute.xlu0 %8779  ;;  %v3725_v27 = vsel %vm3411_vm7, %v3718_v45, %v8631_v21  ;;  %v3708_v53 = vsel %vm17010_vm5, %v17596_v29, %v8727_v12  ;;  %v4636_v21 = vsel %vm17010_vm5, %v12844_v20, %v8546_v57  ;;  %v8551_v7 = vunpack.i.l.bf16 %v17815_v62  ;;  %v9488_v29 = vld [vmem:[%s16410_s3 + $0x30] sm:$0xff]   ;;  %v17831_v20 = vld [vmem:[#allocation97_spill] sm:$0xff] }
 0x39a   :  { %17811 = vst [vmem:[#allocation257_spill] sm:$0xff] %v13788_v52  ;;  %v5465_v26 = vsel %vm17010_vm5, %v17512_v49, %v8527_v46  ;;  %v4652_v52 = vsel %vm3411_vm7, %v4645_v44, %v8531_v58  ;;  %v8732_v46 = vunpack.i.h.bf16 %v13451_v42  ;;  %v17816_v42 = vld [vmem:[#allocation40_spill] sm:$0xff]  ;;  %v8661_v57 = vunpack.i.l.bf16 %v13581_v2  ;;  %3921 = vmatpush1.bf16.msra.mxu1 %v9488_v29 }
 0x39b   :  { %v13795_v11 = vpop.permute.xlu1 %8829  ;;  %v5472_v43 = vsel %vm3403_vm6, %v5465_v26, %v8687_v0  ;;  %v8632_v0 = vunpack.i.h.bf16 %v13480_v34  ;;  %v4659_v41 = vsel %vm3419_vm8, %v4652_v52, %v8731_v56  ;;  %v17817_v34 = vunpack.i.l.bf16 %v17816_v42  ;;  %v17818_v58 = vld [vmem:[#allocation232_spill] sm:$0xff]  ;;  %3922 = vmatprep.subr.bf16.mxu1 %v17773_v28 }
 0x39c   :  { %17812 = vst [vmem:[#allocation261_spill] sm:$0xff] %v13795_v11  ;;  %v8662_v11 = vunpack.i.h.bf16 %v13581_v2  ;;  %v8692_v45 = vunpack.i.h.bf16 %v13640_v47  ;;  %v5479_v44 = vsel %vm3411_vm7, %v5472_v43, %v8532_v9  ;;  %v17819_v52 = vunpack.i.h.bf16 %v13072_v63  ;;  %v17825_v29 = vld [vmem:[#allocation236_spill] sm:$0xff] }
 0x39d   :  { %v13816_v50 = vpop.permute.xlu0 %8784  ;;  %v3732_v12 = vsel %vm3419_vm8, %v3725_v27, %v17817_v34  ;;  %v8696_v37 = vunpack.i.l.bf16 %v13676_v51  ;;  %v17822_v63 = vunpack.i.l.bf16 %v13049_v36 }
 0x39e   :  { %17813 = vst [vmem:[#allocation314_spill] sm:$0xff] %v13816_v50  ;;  %v3714_v26 = vsel %vm17010_vm5, %v17818_v58, %v8662_v11  ;;  %v3719_v56 = vsel %vm3403_vm6, %v3712_v5, %v17819_v52  ;;  %v13851_v11 = vsel %vm3419_vm8, %v5479_v44, %v8732_v46  ;;  %v8772_v46 = vunpack.i.h.bf16 %v13647_v13 }
 0x39f   :  { %v13824_v25 = vpop.permute.xlu1 %8839  ;;  %v3726_v2 = vsel %vm3411_vm7, %v3719_v56, %v8632_v0  ;;  %v13860_v5 = vsel %vm3427_vm9, %v4659_v41, %v17822_v63  ;;  %v17824_v0 = vunpack.i.h.bf16 %v13159_v54  ;;  %v3713_v52 = vsel %vm17010_vm5, %v17825_v29, %v8661_v57  ;;  %v17827_v63 = vld [vmem:[#allocation116_spill] sm:$0xff] }
 0x3a0   :  { %17814 = vst [vmem:[#allocation315_spill] sm:$0xff] %v13824_v25  ;;  %v17820_v25 = vunpack.i.h.bf16 %v12792_v10  ;;  %v8691_v56 = vunpack.i.l.bf16 %v13640_v47  ;;  %v4643_v13 = vsel %vm3403_vm6, %v4636_v21, %v8696_v37  ;;  %v17829_v10 = vld [vmem:[#allocation202_spill] sm:$0xff]  ;;  %v8697_v57 = vunpack.i.h.bf16 %v13676_v51  ;;  %v17834_v21 = vld [vmem:[#allocation151_spill] sm:$0xff] }
 0x3a1   :  { %v8795_v27 = vpop.permute.xlu0 %8794  ;;  %v3721_v44 = vsel %vm3403_vm6, %v3714_v26, %v17824_v0  ;;  %v17836_v51 = vunpack.i.h.bf16 %v12971_v35  ;;  %v4650_v58 = vsel %vm3411_vm7, %v4643_v13, %v8551_v7 }
 0x3a2   :  { %v3715_v50 = vsel %vm3403_vm6, %v3708_v53, %v17820_v25  ;;  %v8797_v43 = vunpack.i.h.bf16 %v8795_v27  ;;  %v8796_v9 = vunpack.i.l.bf16 %v8795_v27  ;;  %v17823_v53 = vunpack.i.l.bf16 %v17804_v40 }
 0x3a3   :  { %v13854_v34 = vpop.permute.xlu1 %8849  ;;  %v3728_v27 = vsel %vm3411_vm7, %v3721_v44, %v8692_v45 }
 0x3a4   :  { %17821 = vst [vmem:[#allocation77_spill] sm:$0xff] %v13854_v34  ;;  %v3739_v25 = vsel %vm3427_vm9, %v3732_v12, %v17823_v53  ;;  %v17826_v34 = vld [vmem:[#allocation191_spill] sm:$0xff]  ;;  %v17828_v12 = vunpack.i.h.bf16 %v17816_v42  ;;  %v3709_v26 = vsel %vm17010_vm5, %v17829_v10, %v8796_v9  ;;  %v3722_v42 = vsel %vm3411_vm7, %v3715_v50, %v8772_v46 }
 0x3a5   :  { %v3710_v41 = vsel %vm17010_vm5, %v17826_v34, %v8797_v43  ;;  %v8800_v0 = vpop.permute.xlu0 %8799  ;;  %v17832_v34 = vunpack.i.l.bf16 %v17831_v20  ;;  %v9489_v46 = vld [vmem:[%s16410_s3 + $0x38] sm:$0xff]  }
 0x3a6   :  { %v3733_v53 = vsel %vm3419_vm8, %v3726_v2, %v17828_v12  ;;  %v8802_v45 = vunpack.i.h.bf16 %v8800_v0  ;;  %v8801_v44 = vunpack.i.l.bf16 %v8800_v0  ;;  %v17833_v2 = vunpack.i.l.bf16 %v13159_v54  ;;  %3923 = vmatpush1.bf16.msra.mxu1 %v9489_v46 }
 0x3a7   :  { %v13883_v47 = vpop.permute.xlu1 %8859  ;;  %v3746_v43 = vsel %vm3435_vm10, %v3739_v25, %v17832_v34  ;;  %v17835_v12 = vunpack.i.h.bf16 %v17834_v21  ;;  %v3717_v9 = vsel %vm3403_vm6, %v3710_v41, %v17836_v51  ;;  %v17837_v25 = vunpack.i.l.bf16 %v12971_v35  ;;  %v17839_v34 = vld [vmem:[#allocation10_spill] sm:$0xff]  ;;  %3924 = vmatprep.subr.bf16.mxu1 %v17773_v28 }
 0x3a8   :  { %17830 = vst [vmem:[#allocation40_spill] sm:$0xff] %v13883_v47  ;;  %v3720_v37 = vsel %vm3403_vm6, %v3713_v52, %v17833_v2  ;;  %v3724_v54 = vsel %vm3411_vm7, %v3717_v9, %v8802_v45  ;;  %v17838_v52 = vunpack.i.h.bf16 %v17804_v40  ;;  %v17842_v35 = vunpack.i.l.bf16 %v17805_v55  ;;  %v17843_v45 = vld [vmem:[#allocation120_spill] sm:$0xff]  ;;  %v18019_v47 = vld [vmem:[#allocation137_spill] sm:$0xff] }
 0x3a9   :  { %v3735_v10 = vsel %vm3419_vm8, %v3728_v27, %v17835_v12  ;;  %v3727_v0 = vsel %vm3411_vm7, %v3720_v37, %v8691_v56  ;;  %v3716_v50 = vsel %vm3403_vm6, %v3709_v26, %v17837_v25  ;;  %v17840_v56 = vunpack.i.h.bf16 %v17839_v34  ;;  %v13914_v7 = vpop.permute.xlu0 %8804 }
 0x3aa   :  { %v3740_v27 = vsel %vm3427_vm9, %v3733_v53, %v17838_v52  ;;  %v3723_v41 = vsel %vm3411_vm7, %v3716_v50, %v8801_v44  ;;  %17841 = vst [vmem:[#allocation236_spill] sm:$0xff] %v13914_v7  ;;  %v3753_v26 = vsel %vm3443_vm11, %v3746_v43, %v17842_v35  ;;  %v17844_v2 = vunpack.i.h.bf16 %v17843_v45  ;;  %v17849_v52 = vld [vmem:[#allocation62_spill] sm:$0xff] }
 0x3ab   :  { %v3731_v13 = vsel %vm3419_vm8, %v3724_v54, %v17840_v56  ;;  %v17845_v40 = vunpack.i.h.bf16 %v17802_v19  ;;  %v4644_v44 = vsel %vm3403_vm6, %v13812_v60, %v8697_v57  ;;  %v17846_v12 = vunpack.i.h.bf16 %v17790_v39  ;;  %v8870_v9 = vpop.permute.xlu1 %8869 }
 0x3ac   :  { %v3729_v37 = vsel %vm3419_vm8, %v3722_v42, %v17844_v2  ;;  %v17847_v25 = vunpack.i.l.bf16 %v17834_v21  ;;  %v17848_v50 = vunpack.i.l.bf16 %v17792_v23  ;;  %v8871_v54 = vunpack.i.l.bf16 %v8870_v9 }
 0x3ad   :  { %v3742_v53 = vsel %vm3427_vm9, %v3735_v10, %v17845_v40  ;;  %v3738_v51 = vsel %vm3427_vm9, %v3731_v13, %v17846_v12  ;;  %v17850_v10 = vunpack.i.h.bf16 %v17849_v52  ;;  %v17851_v60 = vunpack.i.l.bf16 %v17839_v34 }
 0x3ae   :  { %v3734_v43 = vsel %vm3419_vm8, %v3727_v0, %v17847_v25  ;;  %v4657_v42 = vsel %vm3419_vm8, %v4650_v58, %v17848_v50  ;;  %v17852_v46 = vunpack.i.h.bf16 %v17793_v24  ;;  %v17853_v0 = vld [vmem:[#allocation98_spill] sm:$0xff]  ;;  %v17855_v58 = vunpack.i.h.bf16 %v17831_v20  ;;  %v13960_v25 = vpop.permute.xlu0 %8814  ;;  %v17859_v50 = vld [vmem:[#allocation5_spill] sm:$0xff] }
 0x3af   :  { %v3745_v56 = vsel %vm3435_vm10, %v3738_v51, %v17850_v10  ;;  %v3730_v57 = vsel %vm3419_vm8, %v3723_v41, %v17851_v60  ;;  %v17854_v13 = vunpack.i.l.bf16 %v17853_v0  ;;  %v17856_v40 = vunpack.i.h.bf16 %v13219_v33  ;;  %17858 = vst [vmem:[#allocation191_spill] sm:$0xff] %v13960_v25  ;;  %v17903_v25 = vld [vmem:[#allocation13_spill] sm:$0xff] }
 0x3b0   :  { %v3752_v21 = vsel %vm3443_vm11, %v3745_v56, %v17852_v46  ;;  %v3747_v2 = vsel %vm3435_vm10, %v3740_v27, %v17855_v58  ;;  %v17857_v34 = vunpack.i.h.bf16 %v17815_v62  ;;  %v4639_v51 = vsel %vm3403_vm6, %v13753_v1, %v8871_v54  ;;  %v17862_v56 = vld [vmem:[#allocation166_spill] sm:$0xff]  ;;  %v8875_v46 = vpop.permute.xlu1 %8874  ;;  %v17865_v1 = vld [vmem:[#allocation123_spill] sm:$0xff]  ;;  %v17868_v58 = vld [vmem:[#allocation177_spill] sm:$0xff] }
 0x3b1   :  { %v3760_v35 = vsel %vm3451_vm12, %v3753_v26, %v17854_v13  ;;  %v3736_v12 = vsel %vm3427_vm9, %v3729_v37, %v17856_v40  ;;  %v17860_v10 = vunpack.i.h.bf16 %v17859_v50  ;;  %v17861_v20 = vunpack.i.l.bf16 %v17802_v19 }
 0x3b2   :  { %v4651_v41 = vsel %vm3411_vm7, %v4644_v44, %v17857_v34  ;;  %v17863_v60 = vunpack.i.l.bf16 %v17862_v56  ;;  %v17864_v62 = vunpack.i.l.bf16 %v13197_v18  ;;  %v17866_v54 = vunpack.i.h.bf16 %v17865_v1 }
 0x3b3   :  { %v3749_v26 = vsel %vm3435_vm10, %v3742_v53, %v17860_v10  ;;  %v3741_v27 = vsel %vm3427_vm9, %v3734_v43, %v17861_v20  ;;  %v9490_v53 = vld [vmem:[%s16410_s3 + $0x40] sm:$0xff]   ;;  %v17867_v19 = vunpack.i.l.bf16 %v17790_v39  ;;  %v17869_v40 = vunpack.i.l.bf16 %v17868_v58 }
 0x3b4   :  { %v4664_v37 = vsel %vm3427_vm9, %v4657_v42, %v17863_v60  ;;  %v4646_v44 = vsel %vm3411_vm7, %v4639_v51, %v17864_v62  ;;  %v3759_v13 = vsel %vm3451_vm12, %v3752_v21, %v17866_v54  ;;  %v8877_v34 = vunpack.i.h.bf16 %v8875_v46  ;;  %v17871_v60 = vld [vmem:[#allocation106_spill] sm:$0xff]  ;;  %3925 = vmatpush1.bf16.msra.mxu1 %v9490_v53  ;;  %v14010_v53 = vpop.permute.xlu1 %8879 }
 0x3b5   :  { %v3737_v43 = vsel %vm3427_vm9, %v3730_v57, %v17867_v19  ;;  %v4653_v42 = vsel %vm3419_vm8, %v4646_v44, %v17869_v40  ;;  %v8876_v10 = vunpack.i.l.bf16 %v8875_v46  ;;  %v17870_v51 = vunpack.i.h.bf16 %v17792_v23  ;;  %v14000_v40 = vpop.permute.xlu0 %8824  ;;  %3926 = vmatprep.subr.bf16.mxu1 %v17773_v28  ;;  %17879 = vst [vmem:[#allocation202_spill] sm:$0xff] %v14010_v53 }
 0x3b6   :  { %v17872_v21 = vunpack.i.l.bf16 %v17871_v60  ;;  %v17873_v54 = vunpack.i.h.bf16 %v13034_v30  ;;  %v17874_v57 = vunpack.i.h.bf16 %v17801_v32  ;;  %v8872_v44 = vunpack.i.h.bf16 %v8870_v9  ;;  %17875 = vst [vmem:[#allocation116_spill] sm:$0xff] %v14000_v40  ;;  %v17880_v9 = vld [vmem:[#allocation27_spill] sm:$0xff] }
 0x3b7   :  { %v4658_v20 = vsel %vm3419_vm8, %v4651_v41, %v17870_v51  ;;  %v4642_v46 = vsel %vm3403_vm6, %v13773_v61, %v8877_v34  ;;  %v8983_v23 = vpack.i.bf16 %v3760_v35, %v3759_v13  ;;  %v17876_v41 = vunpack.i.l.bf16 %v17795_v16  ;;  %v17877_v51 = vld [vmem:[#allocation156_spill] sm:$0xff]  ;;  %v18104_v32 = vld [vmem:[#allocation287_spill] sm:$0xff] }
 0x3b8   :  { %v4660_v62 = vsel %vm3427_vm9, %v4653_v42, %v17872_v21  ;;  %v3756_v39 = vsel %vm3443_vm11, %v3749_v26, %v17873_v54  ;;  %v3743_v19 = vsel %vm3435_vm10, %v3736_v12, %v17874_v57  ;;  %v8746_v26 = vunpack.i.l.bf16 %v17877_v51  ;;  %v18105_v51 = vld [vmem:[#allocation195_spill] sm:$0xff] }
 0x3b9   :  { %v4671_v42 = vsel %vm3435_vm10, %v4664_v37, %v17876_v41  ;;  %v17878_v21 = vunpack.i.h.bf16 %v13262_v3  ;;  %v17881_v54 = vunpack.i.l.bf16 %v17880_v9  ;;  %v17882_v35 = vunpack.i.l.bf16 %v17849_v52  ;;  %v17884_v41 = vld [vmem:[#allocation182_spill] sm:$0xff]  ;;  %8984 = vrot.lane.b32.xlu1 %v8983_v23, %s9583_s23 }
 0x3ba   :  { %v17883_v37 = vunpack.i.h.bf16 %v17862_v56  ;;  %v4641_v57 = vsel %vm3403_vm6, %v13777_v4, %v8876_v10  ;;  %v17885_v40 = vunpack.i.h.bf16 %v17884_v41  ;;  %v17891_v4 = vld [vmem:[#allocation154_spill] sm:$0xff] }
 0x3bb   :  { %v4649_v12 = vsel %vm3411_vm7, %v4642_v46, %v17878_v21  ;;  %v4667_v61 = vsel %vm3435_vm10, %v4660_v62, %v17881_v54  ;;  %v3744_v13 = vsel %vm3435_vm10, %v3737_v43, %v17882_v35  ;;  %v17886_v62 = vunpack.i.l.bf16 %v17859_v50  ;;  %v17887_v21 = vld [vmem:[#allocation150_spill] sm:$0xff]  ;;  %v17889_v54 = vld [vmem:[#allocation136_spill] sm:$0xff] }
 0x3bc   :  { %v4665_v34 = vsel %vm3427_vm9, %v4658_v20, %v17883_v37  ;;  %v4656_v46 = vsel %vm3419_vm8, %v4649_v12, %v17885_v40  ;;  %v17888_v43 = vunpack.i.h.bf16 %v17887_v21  ;;  %v17890_v20 = vunpack.i.h.bf16 %v17889_v54  ;;  %v17895_v12 = vld [vmem:[#allocation49_spill] sm:$0xff] }
 0x3bd   :  { %v3748_v52 = vsel %vm3435_vm10, %v3741_v27, %v17886_v62  ;;  %v17892_v10 = vunpack.i.l.bf16 %v17891_v4  ;;  %v17893_v40 = vunpack.i.h.bf16 %v13226_v38  ;;  %v4640_v50 = vsel %vm3403_vm6, %v13749_v14, %v8872_v44  ;;  %v14044_v27 = vpop.permute.xlu0 %8834  ;;  %v17901_v14 = vld [vmem:[#allocation165_spill] sm:$0xff] }
 0x3be   :  { %v4663_v56 = vsel %vm3427_vm9, %v4656_v46, %v17888_v43  ;;  %v3763_v35 = vsel %vm3451_vm12, %v3756_v39, %v17890_v20  ;;  %17894 = vst [vmem:[#allocation97_spill] sm:$0xff] %v14044_v27  ;;  %v17896_v62 = vunpack.i.l.bf16 %v17895_v12  ;;  %v17897_v43 = vunpack.i.h.bf16 %v17791_v6 }
 0x3bf   :  { %v4678_v37 = vsel %vm3443_vm11, %v4671_v42, %v17892_v10  ;;  %v3750_v23 = vsel %vm3443_vm11, %v3743_v19, %v17893_v40  ;;  %v17898_v20 = vunpack.i.l.bf16 %v17793_v24  ;;  %v17899_v10 = vunpack.i.l.bf16 %v13262_v3  ;;  %v14058_v40 = vpop.permute.xlu1 %8884 }
 0x3c0   :  { %v4674_v46 = vsel %vm3443_vm11, %v4667_v61, %v17896_v62  ;;  %v4670_v39 = vsel %vm3435_vm10, %v4663_v56, %v17897_v43  ;;  %17900 = vst [vmem:[#allocation151_spill] sm:$0xff] %v14058_v40  ;;  %v17902_v44 = vunpack.i.l.bf16 %v17901_v14  ;;  %v17904_v61 = vunpack.i.h.bf16 %v17903_v25 }
 0x3c1   :  { %v3751_v42 = vsel %vm3443_vm11, %v3744_v13, %v17898_v20  ;;  %v4648_v19 = vsel %vm3411_vm7, %v4641_v57, %v17899_v10  ;;  %v17905_v56 = vunpack.i.l.bf16 %v13034_v30  ;;  %v17906_v13 = vunpack.i.h.bf16 %v17796_v48 }
 0x3c2   :  { %v4681_v27 = vsel %vm3451_vm12, %v4674_v46, %v17902_v44  ;;  %v4677_v62 = vsel %vm3443_vm11, %v4670_v39, %v17904_v61  ;;  %v17907_v57 = vunpack.i.l.bf16 %v17798_v8  ;;  %v17908_v10 = vunpack.i.h.bf16 %v17795_v16 }
 0x3c3   :  { %v3755_v24 = vsel %vm3443_vm11, %v3748_v52, %v17905_v56  ;;  %v8988_v43 = vpack.i.bf16 %v4681_v27, %v3763_v35  ;;  %v4684_v3 = vsel %vm3451_vm12, %v4677_v62, %v17906_v13  ;;  %v17909_v44 = vunpack.i.h.bf16 %v13197_v18 }
 0x3c4   :  { %v4685_v20 = vsel %vm3451_vm12, %v4678_v37, %v17907_v57  ;;  %v4672_v46 = vsel %vm3435_vm10, %v4665_v34, %v17908_v10  ;;  %v17910_v52 = vunpack.i.l.bf16 %v17865_v1  ;;  %v17911_v27 = vunpack.i.h.bf16 %v17805_v55  ;;  %v9491_v55 = vld [vmem:[%s16410_s3 + $0x48] ss:$0 sps:$4 sm:$0x77]  }
 0x3c5   :  { %v4647_v39 = vsel %vm3411_vm7, %v4640_v50, %v17909_v44  ;;  %v8963_v30 = vpack.i.bf16 %v4685_v20, %v4684_v3  ;;  %v5487_v37 = vsel %vm3419_vm8, %v13745_v31, %v8746_v26  ;;  %v17912_v16 = vunpack.i.l.bf16 %v17884_v41  ;;  %8989 = vrot.lane.b32.xlu1 %v8988_v43, %s9583_s23  ;;  %v14094_v50 = vpop.permute.xlu0 %8844  ;;  %v14107_v41 = vpop.permute.xlu1 %8889 }
 0x3c6   :  { %v3758_v35 = vsel %vm3451_vm12, %v3751_v42, %v17910_v52  ;;  %v3754_v61 = vsel %vm3443_vm11, %v3747_v2, %v17911_v27  ;;  %v8886_v18 = vunpack.i.l.bf16 %v14058_v40  ;;  %17913 = vst [vmem:[#allocation10_spill] sm:$0xff] %v14094_v50  ;;  %v17914_v1 = vunpack.i.l.bf16 %v17889_v54  ;;  %17916 = vst [vmem:[#allocation120_spill] sm:$0xff] %v14107_v41  ;;  %v17927_v52 = vld [vmem:[#allocation300_spill] sm:$0xff] }
 0x3c7   :  { %v4655_v34 = vsel %vm3419_vm8, %v4648_v19, %v17912_v16  ;;  %v8737_v31 = vunpack.i.h.bf16 %v17827_v63  ;;  %v17915_v2 = vunpack.i.l.bf16 %v17827_v63  ;;  %8964 = vrot.lane.b32.xlu0 %v8963_v30, %s9583_s23  ;;  %v17917_v19 = vunpack.i.h.bf16 %v17803_v15  ;;  %v18077_v40 = vld [vmem:[#allocation192_spill] sm:$0xff] }
 0x3c8   :  { %v3762_v42 = vsel %vm3451_vm12, %v3755_v24, %v17914_v1  ;;  %v17918_v62 = vunpack.i.h.bf16 %v17891_v4  ;;  %v17919_v24 = vld [vmem:[#allocation213_spill] sm:$0xff]  ;;  %v17920_v13 = vunpack.i.h.bf16 %v17868_v58  ;;  %v17922_v20 = vunpack.i.l.bf16 %v17887_v21  ;;  %v18082_v15 = vld [vmem:[#allocation264_spill] sm:$0xff] }
 0x3c9   :  { %v4673_v26 = vsel %vm3435_vm10, %v13860_v5, %v17915_v2  ;;  %v3757_v54 = vsel %vm3451_vm12, %v3750_v23, %v17917_v19  ;;  %v8716_v43 = vunpack.i.l.bf16 %v17919_v24  ;;  %v17921_v5 = vunpack.i.h.bf16 %v17853_v0  ;;  %v17933_v2 = vld [vmem:[#allocation305_spill] sm:$0xff] }
 0x3ca   :  { %v4679_v56 = vsel %vm3443_vm11, %v4672_v46, %v17918_v62  ;;  %v4654_v63 = vsel %vm3419_vm8, %v4647_v39, %v17920_v13  ;;  %v8998_v3 = vpack.i.bf16 %v3758_v35, %v3757_v54  ;;  %v4662_v10 = vsel %vm3427_vm9, %v4655_v34, %v17922_v20  ;;  %v14132_v39 = vpop.permute.xlu0 %8854  ;;  %v17934_v19 = vld [vmem:[#allocation269_spill] sm:$0xff] }
 0x3cb   :  { %v3761_v57 = vsel %vm3451_vm12, %v3754_v61, %v17921_v5  ;;  %v17923_v23 = vunpack.i.l.bf16 %v13275_v22  ;;  %v8891_v58 = vunpack.i.l.bf16 %v14107_v41  ;;  %17924 = vst [vmem:[#allocation62_spill] sm:$0xff] %v14132_v39  ;;  %v17925_v0 = vunpack.i.h.bf16 %v17798_v8  ;;  %v14150_v8 = vpop.permute.xlu1 %8904  ;;  %v17940_v5 = vld [vmem:[#allocation190_spill] sm:$0xff]  ;;  %v17942_v20 = vld [vmem:[#allocation29_spill] sm:$0xff] }
 0x3cc   :  { %v8968_v46 = vpack.i.bf16 %v3762_v42, %v3761_v57  ;;  %8999 = vrot.lane.b32.xlu1 %v8998_v3, %s9583_s23  ;;  %v14137_v30 = vsel %vm3904_vm13, %v9491_v55, 0  ;;  %v8592_v35 = vunpack.i.h.bf16 %v17927_v52  ;;  %v17928_v27 = vunpack.i.h.bf16 %v13049_v36  ;;  %17931 = vst [vmem:[#allocation5_spill] sm:$0xff] %v14150_v8  ;;  %v18040_v41 = vld [vmem:[#allocation218_spill] sm:$0xff] }
 0x3cd   :  { %v5494_v4 = vsel %vm3427_vm9, %v5487_v37, %v17923_v23  ;;  %v4686_v21 = vsel %vm3451_vm12, %v4679_v56, %v17925_v0  ;;  %17926 = vst [vmem:[#allocation98_spill] sm:$0xff] %v14137_v30  ;;  %v17929_v37 = vunpack.i.l.bf16 %v13184_v17  ;;  %v17930_v34 = vunpack.i.h.bf16 %v17871_v60  ;;  %3927 = vmatpush1.bf16.msra.mxu1 %v14137_v30  ;;  %v17943_v23 = vld [vmem:[#allocation118_spill] sm:$0xff]  ;;  %v18015_v30 = vld [vmem:[#allocation231_spill] sm:$0xff] }
 0x3ce   :  { %v5501_v44 = vsel %vm3435_vm10, %v5494_v4, %v8886_v18  ;;  %v5493_v61 = vsel %vm3427_vm9, %v13851_v11, %v17928_v27  ;;  %8969 = vrot.lane.b32.xlu0 %v8968_v46, %s9583_s23  ;;  %v8717_v36 = vunpack.i.h.bf16 %v17919_v24  ;;  %v17932_v42 = vunpack.i.l.bf16 %v17791_v6  ;;  %4743 = vmatprep.subr.bf16.mxu1 %v17773_v28  ;;  %v17937_v6 = vld [vmem:[#allocation244_spill] sm:$0xff]  ;;  %v17945_v46 = vld [vmem:[#allocation233_spill] sm:$0xff] }
 0x3cf   :  { %v4680_v16 = vsel %vm3443_vm11, %v4673_v26, %v17929_v37  ;;  %v4661_v18 = vsel %vm3427_vm9, %v4654_v63, %v17930_v34  ;;  %v5500_v1 = vsel %vm3435_vm10, %v5493_v61, %v8737_v31  ;;  %v8377_v60 = vunpack.i.h.bf16 %v13184_v17  ;;  %v14171_v63 = vpop.permute.xlu0 %8864  ;;  %v14187_v0 = vpop.permute.xlu1 %8909  ;;  %v17948_v37 = vld [vmem:[#allocation162_spill] sm:$0xff]  ;;  %v17950_v34 = vld [vmem:[#allocation205_spill] sm:$0xff] }
 0x3d0   :  { %v4687_v11 = vsel %vm3451_vm12, %v4680_v16, %v8716_v43  ;;  %v4669_v55 = vsel %vm3435_vm10, %v4662_v10, %v17932_v42  ;;  %v8651_v26 = vunpack.i.l.bf16 %v17933_v2  ;;  %v17935_v54 = vunpack.i.l.bf16 %v17934_v19  ;;  %9004 = vrot.lane.b32.xlu1 %v17937_v6, %s9568_s17  ;;  %17938 = vst [vmem:[#allocation166_spill] sm:$0xff] %v14171_v63  ;;  %17946 = vst [vmem:[#allocation123_spill] sm:$0xff] %v14187_v0  ;;  %v17951_v42 = vld [vmem:[#allocation172_spill] sm:$0xff]  ;;  %v18010_v31 = vld [vmem:[#allocation130_spill] sm:$0xff] }
 0x3d1   :  { %v8973_v56 = vpack.i.bf16 %v4687_v11, %v4686_v21  ;;  %v17939_v17 = vunpack.i.h.bf16 %v17880_v9  ;;  %v17941_v57 = vunpack.i.h.bf16 %v17940_v5  ;;  %v17944_v4 = vunpack.i.h.bf16 %v17943_v23  ;;  %v17955_v6 = vld [vmem:[#allocation292_spill] sm:$0xff]  ;;  %v18101_v0 = vld [vmem:[#allocation101_spill] sm:$0xff]  ;;  %v18130_v19 = vld [vmem:[#allocation11_spill] sm:$0xff] }
 0x3d2   :  { %v5508_v62 = vsel %vm3443_vm11, %v5501_v44, %v17935_v54  ;;  %v17947_v9 = vunpack.i.l.bf16 %v17903_v25  ;;  %v8191_v27 = vunpack.i.l.bf16 %v17796_v48  ;;  %v17949_v16 = vunpack.i.l.bf16 %v17948_v37  ;;  %v17956_v5 = vld [vmem:[#allocation72_spill] sm:$0xff] }
 0x3d3   :  { %v5515_v43 = vsel %vm3451_vm12, %v5508_v62, %v8891_v58  ;;  %v4668_v3 = vsel %vm3435_vm10, %v4661_v18, %v17939_v17  ;;  %v14180_v10 = vsel %vm3403_vm6, %v17942_v20, %v17941_v57  ;;  %v5481_v44 = vsel %vm3411_vm7, %v17945_v46, %v17944_v4  ;;  %8974 = vrot.lane.b32.xlu0 %v8973_v56, %s9583_s23  ;;  %v17953_v62 = vld [vmem:[#allocation197_spill] sm:$0xff]  ;;  %v18095_v4 = vld [vmem:[#allocation24_spill] sm:$0xff] }
 0x3d4   :  { %v5507_v58 = vsel %vm3443_vm11, %v5500_v1, %v8377_v60  ;;  %v4676_v21 = vsel %vm3443_vm11, %v4669_v55, %v17947_v9  ;;  %v5488_v61 = vsel %vm3419_vm8, %v5481_v44, %v8592_v35  ;;  %v5482_v18 = vsel %vm3411_vm7, %v17950_v34, %v17949_v16  ;;  %v17954_v56 = vld [vmem:[#allocation273_spill] sm:$0xff]  ;;  %v14218_v44 = vpop.permute.xlu1 %8914 }
 0x3d5   :  { %v5514_v11 = vsel %vm3451_vm12, %v5507_v58, %v8717_v36  ;;  %v5489_v1 = vsel %vm3419_vm8, %v5482_v18, %v8651_v26  ;;  %v8701_v60 = vunpack.i.l.bf16 %v17951_v42  ;;  %v17952_v25 = vunpack.i.h.bf16 %v17895_v12  ;;  %v17957_v57 = vld [vmem:[#allocation65_spill] sm:$0xff]  ;;  %v14212_v36 = vpop.permute.xlu0 %8894  ;;  %17962 = vst [vmem:[#allocation106_spill] sm:$0xff] %v14218_v44 }
 0x3d6   :  { %v8978_v54 = vpack.i.bf16 %v5515_v43, %v5514_v11  ;;  %v8141_v48 = vunpack.i.l.bf16 %v17953_v62  ;;  %v8427_v35 = vunpack.i.h.bf16 %v17954_v56  ;;  %v8556_v17 = vunpack.i.l.bf16 %v17955_v6  ;;  %17959 = vst [vmem:[#allocation177_spill] sm:$0xff] %v14212_v36  ;;  %v17964_v11 = vld [vmem:[#allocation15_spill] sm:$0xff] }
 0x3d7   :  { %v4675_v55 = vsel %vm3443_vm11, %v4668_v3, %v17952_v25  ;;  %v17958_v20 = vpack.i.bf16 %v17956_v5, %v17957_v57  ;;  %v4683_v26 = vsel %vm3451_vm12, %v4676_v21, %v8191_v27  ;;  %v8142_v43 = vunpack.i.h.bf16 %v17953_v62  ;;  %v17961_v3 = vld [vmem:[#allocation200_spill] sm:$0xff]  ;;  %v17965_v57 = vld [vmem:[#allocation55_spill] sm:$0xff] }
 0x3d8   :  { %v8101_v46 = vunpack.i.l.bf16 %v17961_v3  ;;  %v8897_v58 = vunpack.i.h.bf16 %v14212_v36  ;;  %8979 = vrot.lane.b32.xlu0 %v8978_v54, %s9583_s23  ;;  %v8102_v9 = vunpack.i.h.bf16 %v17961_v3  ;;  %v5496_v16 = vsel %vm3427_vm9, %v5489_v1, %v8556_v17  ;;  %v17966_v3 = vld [vmem:[#allocation285_spill] sm:$0xff]  ;;  %v17967_v17 = vld [vmem:[#allocation99_spill] sm:$0xff] }
 0x3d9   :  { %9014 = vrot.lane.b32.xlu1 %v17958_v20, %s9571_s20  ;;  %v5495_v34 = vsel %vm3427_vm9, %v5488_v61, %v8427_v35  ;;  %v17963_v21 = vunpack.i.h.bf16 %v17901_v14  ;;  %v5503_v18 = vsel %vm3435_vm10, %v5496_v16, %v8701_v60  ;;  %v8706_v25 = vunpack.i.l.bf16 %v17964_v11  ;;  %v14236_v35 = vpop.permute.xlu0 %8899  ;;  %v17969_v14 = vld [vmem:[#allocation34_spill] sm:$0xff]  ;;  %v17996_v20 = vld [vmem:[#allocation83_spill] sm:$0xff] }
 0x3da   :  { %v5502_v62 = vsel %vm3435_vm10, %v5495_v34, %v8897_v58  ;;  %v3400_v54 = vsel %vm17010_vm5, %v17965_v57, %v8141_v48  ;;  %v8487_v1 = vunpack.i.h.bf16 %v17966_v3  ;;  %v8561_v61 = vunpack.i.l.bf16 %v17967_v17  ;;  %17968 = vst [vmem:[#allocation27_spill] sm:$0xff] %v14236_v35 }
 0x3db   :  { %v4682_v27 = vsel %vm3451_vm12, %v4675_v55, %v17963_v21  ;;  %v3401_v55 = vsel %vm17010_vm5, %v17969_v14, %v8142_v43  ;;  %v17971_v21 = vld [vmem:[#allocation69_spill] sm:$0xff]  ;;  %v8902_v48 = vunpack.i.h.bf16 %v14236_v35  ;;  %v17974_v14 = vld [vmem:[#allocation104_spill] sm:$0xff]  ;;  %v18089_v28 = vunpack.i.h.bf16 %v18019_v47 }
 0x3dc   :  { %v8993_v5 = vpack.i.bf16 %v4683_v26, %v4682_v27  ;;  %v6254_v58 = vsel %vm17010_vm5, %v17971_v21, %v8101_v46  ;;  %v14243_v26 = vpop.permute.xlu1 %8924  ;;  %v17973_v27 = vld [vmem:[#allocation67_spill] sm:$0xff]  ;;  %v5510_v13 = vsel %vm3443_vm11, %v5503_v18, %v8561_v61  ;;  %v5509_v43 = vsel %vm3443_vm11, %v5502_v62, %v8487_v1  ;;  %v18025_v35 = vld [vmem:[#allocation109_spill] sm:$0xff] }
 0x3dd   :  { %17972 = vst [vmem:[#allocation182_spill] sm:$0xff] %v14243_v26  ;;  %v6255_v57 = vsel %vm17010_vm5, %v17973_v27, %v8102_v9  ;;  %v17975_v16 = vunpack.i.l.bf16 %v17974_v14  ;;  %v5517_v46 = vsel %vm3451_vm12, %v5510_v13, %v8706_v25  ;;  %v5516_v21 = vsel %vm3451_vm12, %v5509_v43, %v8902_v48  ;;  %v17981_v13 = vld [vmem:[#allocation214_spill] sm:$0xff]  ;;  %v17983_v27 = vld [vmem:[#allocation8_spill] sm:$0xff]  ;;  %v18009_v43 = vld [vmem:[#allocation253_spill] sm:$0xff] }
 0x3de   :  { %8994 = vrot.lane.b32.xlu0 %v8993_v5, %s9583_s23  ;;  %v17977_v5 = vld [vmem:[#allocation12_spill] sm:$0xff]  ;;  %v17979_v9 = vunpack.i.h.bf16 %v17974_v14  ;;  %v9023_v61 = vpack.i.bf16 %v5517_v46, %v5516_v21  ;;  %v8147_v25 = vunpack.i.h.bf16 %v17981_v13  ;;  %v14339_v7 = vpack.i.bf16 %v18010_v31, %v18009_v43  ;;  %v18014_v26 = vld [vmem:[#allocation143_spill] sm:$0xff]  ;;  %v18016_v43 = vld [vmem:[#allocation241_spill] sm:$0xff] }
 0x3df   :  { %v3408_v24 = vsel %vm3403_vm6, %v3400_v54, %v17975_v16  ;;  %v17978_v63 = vunpack.i.l.bf16 %v17977_v5  ;;  %v17980_v1 = vunpack.i.h.bf16 %v17977_v5  ;;  %v8146_v16 = vunpack.i.l.bf16 %v17981_v13 }
 0x3e0   :  { %v3409_v18 = vsel %vm3403_vm6, %v3401_v55, %v17979_v9  ;;  %v14270_v48 = vpop.permute.xlu1 %8929  ;;  %9024 = vrot.lane.b32.xlu1 %v9023_v61, %s9583_s23  ;;  %v17987_v9 = vld [vmem:[#allocation185_spill] sm:$0xff]  ;;  %18011 = vst [vmem:[#allocation165_spill] sm:$0xff] %v14339_v7  ;;  %v8171_v31 = vunpack.i.l.bf16 %v18015_v30  ;;  %v18100_v53 = vunpack.i.h.bf16 %v18095_v4  ;;  %vm17028_vm13 = vcmask 687104  }
 0x3e1   :  { %v6261_v34 = vsel %vm3403_vm6, %v6254_v58, %v17978_v63  ;;  %v6262_v54 = vsel %vm3403_vm6, %v6255_v57, %v17980_v1  ;;  %17982 = vst [vmem:[#allocation150_spill] sm:$0xff] %v14270_v48  ;;  %v17984_v63 = vld [vmem:[#allocation201_spill] sm:$0xff]  ;;  %v17988_v1 = vunpack.i.l.bf16 %v17987_v9  ;;  %v17990_v55 = vunpack.i.h.bf16 %v17987_v9  ;;  %v18000_v58 = vld [vmem:[#allocation226_spill] sm:$0xff]  ;;  %v18001_v48 = vld [vmem:[#allocation247_spill] sm:$0xff] }
 0x3e2   :  { %9009 = vrot.lane.b32.xlu0 %v17983_v27, %s9578_s28  ;;  %v17986_v57 = vld [vmem:[#allocation221_spill] sm:$0xff]  ;;  %v14299_v39 = vsel %vm3411_vm7, %v3409_v18, %v8147_v25  ;;  %v14314_v18 = vpack.i.bf16 %v17825_v29, %v17636_v59  ;;  %v17999_v25 = vld [vmem:[#allocation87_spill] sm:$0xff] }
 0x3e3   :  { %v8157_v21 = vunpack.i.h.bf16 %v17986_v57  ;;  %v8156_v5 = vunpack.i.l.bf16 %v17986_v57  ;;  %v14284_v13 = vsel %vm3411_vm7, %v6261_v34, %v17988_v1  ;;  %v14291_v14 = vsel %vm3411_vm7, %v6262_v54, %v17990_v55  ;;  %v17993_v1 = vld [vmem:[#allocation176_spill] sm:$0xff]  ;;  %v17994_v9 = vld [vmem:[#allocation265_spill] sm:$0xff]  ;;  %v17995_v54 = vld [vmem:[#allocation79_spill] sm:$0xff] }
 0x3e4   :  { %v14296_v57 = vsel %vm3411_vm7, %v3408_v24, %v8146_v16  ;;  %v14301_v34 = vpop.permute.xlu1 %8934  ;;  %9034 = vrot.lane.b32.xlu1 %v17994_v9, %s9573_s22  ;;  %17998 = vst [vmem:[#allocation154_spill] sm:$0xff] %v14314_v18  ;;  %v8166_v9 = vunpack.i.l.bf16 %v18000_v58 }
 0x3e5   :  { %17992 = vst [vmem:[#allocation136_spill] sm:$0xff] %v14301_v34  ;;  %v4364_v55 = vsel %vm3403_vm6, %v17995_v54, %v8156_v5  ;;  %v4365_v62 = vsel %vm3403_vm6, %v17996_v20, %v8157_v21  ;;  %v8167_v34 = vunpack.i.h.bf16 %v18000_v58  ;;  %v8301_v5 = vunpack.i.l.bf16 %v18001_v48  ;;  %v18003_v20 = vld [vmem:[#allocation93_spill] sm:$0xff]  ;;  %v18004_v21 = vld [vmem:[#allocation142_spill] sm:$0xff] }
 0x3e6   :  { %9019 = vrot.lane.b32.xlu0 %v17993_v1, %s9575_s25  ;;  %v18005_v24 = vunpack.i.l.bf16 %v18004_v21  ;;  %v18006_v29 = vunpack.i.h.bf16 %v18004_v21  ;;  %v18007_v1 = vld [vmem:[#allocation237_spill] sm:$0xff]  ;;  %v18013_v21 = vld [vmem:[#allocation108_spill] sm:$0xff] }
 0x3e7   :  { %v8262_v58 = vunpack.i.h.bf16 %v18007_v1 }
 0x3e8   :  { %v14322_v54 = vpop.permute.xlu1 %8939  ;;  %v4371_v59 = vsel %vm3411_vm7, %v4364_v55, %v18005_v24  ;;  %v4372_v16 = vsel %vm3411_vm7, %v4365_v62, %v18006_v29  ;;  %9044 = vrot.lane.b32.xlu1 %v14314_v18, %s9576_s26  ;;  %v18012_v62 = vld [vmem:[#allocation26_spill] sm:$0xff]  ;;  %v8711_v29 = vunpack.i.l.bf16 %v18013_v21  ;;  %v8172_v18 = vunpack.i.h.bf16 %v18015_v30 }
 0x3e9   :  { %18002 = vst [vmem:[#allocation49_spill] sm:$0xff] %v14322_v54  ;;  %v14342_v60 = vsel %vm3419_vm8, %v4371_v59, %v8166_v9  ;;  %v14345_v55 = vsel %vm3419_vm8, %v4372_v16, %v8167_v34  ;;  %v5477_v24 = vsel %vm3403_vm6, %v18012_v62, %v8301_v5  ;;  %v8201_v9 = vunpack.i.l.bf16 %v18016_v43  ;;  %v18017_v59 = vld [vmem:[#allocation248_spill] sm:$0xff]  ;;  %v18018_v34 = vld [vmem:[#allocation9_spill] sm:$0xff] }
 0x3ea   :  { %9029 = vrot.lane.b32.xlu0 %v18003_v20, %s9570_s19  ;;  %v8217_v61 = vunpack.i.h.bf16 %v18017_v59  ;;  %v5476_v16 = vsel %vm3403_vm6, %v18018_v34, %v8262_v58  ;;  %v8216_v5 = vunpack.i.l.bf16 %v18017_v59  ;;  %v8652_v62 = vunpack.i.h.bf16 %v17933_v2  ;;  %v18022_v43 = vld [vmem:[#allocation92_spill] sm:$0xff]  ;;  %v18026_v59 = vld [vmem:[#allocation71_spill] sm:$0xff] }
 0x3eb   :  { %v4361_v58 = vsel %vm3403_vm6, %v18025_v35, %v8201_v9  ;;  %v18027_v34 = vld [vmem:[#allocation68_spill] sm:$0xff]  ;;  %v8702_v54 = vunpack.i.h.bf16 %v17951_v42  ;;  %v18031_v9 = vld [vmem:[#allocation293_spill] sm:$0xff]  ;;  %v18035_v42 = vld [vmem:[#allocation186_spill] sm:$0xff] }
 0x3ec   :  { %v14350_v1 = vpop.permute.xlu1 %8949  ;;  %9054 = vrot.lane.b32.xlu1 %v14339_v7, %s9574_s24  ;;  %v6256_v2 = vsel %vm17010_vm5, %v18026_v59, %v8217_v61  ;;  %v8516_v50 = vunpack.i.l.bf16 %v18027_v34  ;;  %v8557_v61 = vunpack.i.h.bf16 %v17955_v6  ;;  %v8566_v59 = vunpack.i.l.bf16 %v18031_v9  ;;  %v18146_v34 = vld [vmem:[#allocation183_spill] sm:$0xff] }
 0x3ed   :  { %v18036_v7 = vunpack.i.h.bf16 %v18035_v42  ;;  %v18037_v6 = vunpack.i.l.bf16 %v18035_v42 }
 0x3ee   :  { %9039 = vrot.lane.b32.xlu0 %v18014_v26, %s9580_s30  ;;  %v18020_v26 = vunpack.i.l.bf16 %v18019_v47  ;;  %v18096_v47 = vunpack.i.l.bf16 %v18095_v4 }
 0x3f0   :  { %v5484_v20 = vsel %vm3411_vm7, %v5477_v24, %v18020_v26  ;;  %v14368_v12 = vpop.permute.xlu1 %8954  ;;  %v18028_v24 = vunpack.i.h.bf16 %v17948_v37  ;;  %v18030_v26 = vld [vmem:[#allocation36_spill] sm:$0xff] }
 0x3f1   :  { %v5491_v30 = vsel %vm3419_vm8, %v5484_v20, %v8711_v29  ;;  %18021 = vst [vmem:[#allocation13_spill] sm:$0xff] %v14368_v12  ;;  %v18029_v29 = vld [vmem:[#allocation272_spill] sm:$0xff]  ;;  %v8956_v35 = vunpack.i.l.bf16 %v14368_v12  ;;  %v6263_v12 = vsel %vm3403_vm6, %v6256_v2, %v18036_v7 }
 0x3f2   :  { %9049 = vrot.lane.b32.xlu0 %v18022_v43, %s9569_s18  ;;  %v5483_v20 = vsel %vm3411_vm7, %v5476_v16, %v18028_v24  ;;  %9064 = vrot.lane.b32.xlu1 %v18029_v29, %s9581_s12  ;;  %v4359_v43 = vsel %vm17010_vm5, %v18030_v26, %v8216_v5  ;;  %v5498_v37 = vsel %vm3427_vm9, %v5491_v30, %v8516_v50  ;;  %v8302_v16 = vunpack.i.h.bf16 %v18001_v48  ;;  %v18032_v29 = vld [vmem:[#allocation147_spill] sm:$0xff]  ;;  %v18075_v2 = vld [vmem:[#allocation216_spill] sm:$0xff] }
 0x3f3   :  { %v5490_v27 = vsel %vm3419_vm8, %v5483_v20, %v8652_v62  ;;  %v5505_v24 = vsel %vm3435_vm10, %v5498_v37, %v8956_v35  ;;  %v18033_v5 = vld [vmem:[#allocation127_spill] sm:$0xff]  ;;  %v18034_v62 = vld [vmem:[#allocation38_spill] sm:$0xff]  ;;  %v4366_v36 = vsel %vm3403_vm6, %v4359_v43, %v18037_v6  ;;  %v8707_v35 = vunpack.i.h.bf16 %v17964_v11 }
 0x3f4   :  { %v5657_v26 = vrot.slane %v18033_v5, 4  ;;  %v5497_v50 = vsel %vm3427_vm9, %v5490_v27, %v8557_v61  ;;  %v5512_v48 = vsel %vm3443_vm11, %v5505_v24, %v8566_v59  ;;  %v18038_v30 = vld [vmem:[#allocation291_spill] sm:$0xff]  ;;  %v9068_v7 = vpack.i.bf16 %v18033_v5, %v18040_v41  ;;  %v18047_v5 = vld [vmem:[#allocation90_spill] sm:$0xff] }
 0x3f5   :  { %v18039_v37 = vld [vmem:[#allocation311_spill] sm:$0xff]  ;;  %v8562_v43 = vunpack.i.h.bf16 %v17967_v17  ;;  %v18042_v27 = vunpack.i.l.bf16 %v17943_v23  ;;  %v14429_v17 = vsel %vm3411_vm7, %v4366_v36, %v8171_v31  ;;  %v14432_v23 = vsel %vm3411_vm7, %v6263_v12, %v8172_v18  ;;  %v18051_v36 = vld [vmem:[#allocation274_spill] sm:$0xff]  ;;  %v18052_v31 = vld [vmem:[#allocation17_spill] sm:$0xff] }
 0x3f6   :  { %9059 = vrot.lane.b32.xlu0 %v18032_v29, %s9572_s21  ;;  %9074 = vrot.lane.b32.xlu1 %v18038_v30, %s9568_s17  ;;  %v5504_v29 = vsel %vm3435_vm10, %v5497_v50, %v8702_v54  ;;  %v8751_v20 = vunpack.i.l.bf16 %v18039_v37  ;;  %v18043_v59 = vld [vmem:[#allocation119_spill] sm:$0xff]  ;;  %v18045_v54 = vld [vmem:[#allocation110_spill] sm:$0xff]  ;;  %v18046_v30 = vld [vmem:[#allocation73_spill] sm:$0xff] }
 0x3f7   :  { %v14418_v61 = vsel %vm3411_vm7, %v4361_v58, %v18042_v27  ;;  %v18044_v24 = vld [vmem:[#allocation215_spill] sm:$0xff]  ;;  %v4362_v11 = vsel %vm3403_vm6, %v18045_v54, %v8302_v16  ;;  %v5511_v58 = vsel %vm3443_vm11, %v5504_v29, %v8562_v43  ;;  %v18048_v27 = vld [vmem:[#allocation33_spill] sm:$0xff]  ;;  %v18050_v54 = vrot.slane %v18034_v62, 4  ;;  %v18053_v12 = vld [vmem:[#allocation224_spill] sm:$0xff] }
 0x3f8   :  { %v5519_v41 = vsel %vm3451_vm12, %v5512_v48, %v8751_v20  ;;  %v18049_v16 = vpack.i.bf16 %v18047_v5, %v18048_v27  ;;  %v5518_v20 = vsel %vm3451_vm12, %v5511_v58, %v8707_v35  ;;  %v9078_v48 = vpack.i.bf16 %v18052_v31, %v18051_v36  ;;  %v18054_v18 = vld [vmem:[#allocation230_spill] sm:$0xff]  ;;  %v18058_v35 = vld [vmem:[#allocation135_spill] sm:$0xff]  ;;  %v18059_v58 = vld [vmem:[#allocation44_spill] sm:$0xff] }
 0x3f9   :  { %v5659_v42 = vsel %vm17009_vm0, %v5657_v26, %v18050_v54  ;;  %v9088_v50 = vpack.i.bf16 %v18054_v18, %v18053_v12  ;;  %v9093_v5 = vpack.i.bf16 %v5519_v41, %v5518_v20  ;;  %v18056_v26 = vld [vmem:[#allocation126_spill] sm:$0xff]  ;;  %v18061_v12 = vld [vmem:[#allocation180_spill] sm:$0xff]  ;;  %v18062_v43 = vld [vmem:[#allocation255_spill] sm:$0xff]  ;;  %vm3792_vm0 = vcmask 785408  }
 0x3fa   :  { %9069 = vrot.lane.b32.xlu0 %v9068_v7, %s9567_s0  ;;  %9084 = vrot.lane.b32.xlu1 %v18049_v16, %s9571_s20  ;;  %v9113_v16 = vpack.i.bf16 %v5659_v42, %v18056_v26  ;;  %v18060_v31 = vld [vmem:[#allocation174_spill] sm:$0xff]  ;;  %v18070_v6 = vld [vmem:[#allocation259_spill] sm:$0xff]  ;;  %v18074_v54 = vld [vmem:[#allocation96_spill] sm:$0xff] }
 0x3fb   :  { %v18063_v37 = vld [vmem:[#allocation278_spill] sm:$0xff]  ;;  %v18103_v62 = vld [vmem:[#allocation281_spill] sm:$0xff] }
 0x3fc   :  { %v18065_v42 = vld [vmem:[#allocation262_spill] sm:$0xff] }
 0x3fd   :  { %v8397_v26 = vunpack.i.h.bf16 %v18065_v42  ;;  %v8396_v7 = vunpack.i.l.bf16 %v18065_v42  ;;  %v18071_v41 = vld [vmem:[#allocation266_spill] sm:$0xff]  ;;  %v18073_v42 = vld [vmem:[#allocation232_spill] sm:$0xff] }
 0x3fe   :  { %9079 = vrot.lane.b32.xlu0 %v9078_v48, %s9577_s27  ;;  %9094 = vrot.lane.b32.xlu1 %v9093_v5, %s9583_s23  ;;  %v18064_v48 = vld [vmem:[#allocation21_spill] sm:$0xff]  ;;  %v8267_v46 = vunpack.i.h.bf16 %v18071_v41  ;;  %v8266_v20 = vunpack.i.l.bf16 %v18071_v41  ;;  %v9128_v44 = vpack.i.bf16 %v18074_v54, %v18073_v42  ;;  %v18080_v18 = vld [vmem:[#allocation270_spill] sm:$0xff]  ;;  %v18081_v41 = vld [vmem:[#allocation228_spill] sm:$0xff] }
 0x3ff   :  { %v9098_v27 = vpack.i.bf16 %v18064_v48, %v18063_v37  ;;  %v18072_v37 = vld [vmem:[#allocation48_spill] sm:$0xff]  ;;  %v14485_v29 = vsel %vm17010_vm5, %v18077_v40, %v8396_v7  ;;  %v18083_v54 = vld [vmem:[#allocation102_spill] sm:$0xff]  ;;  %v18085_v42 = vld [vmem:[#allocation129_spill] sm:$0xff] }
 0x400   :  { %18078 = vst [vmem:[#allocation300_spill] sm:$0xff] %v14485_v29  ;;  %v4363_v40 = vsel %vm3403_vm6, %v18085_v42, %v8266_v20  ;;  %v18086_v7 = vld [vmem:[#allocation170_spill] sm:$0xff]  ;;  %v14510_v20 = vsel %vm3411_vm7, %v4362_v11, %v18089_v28  ;;  %v14524_v28 = vsel %vm3419_vm8, %v14296_v57, %v18096_v47  ;;  %v18097_v11 = vld [vmem:[#allocation212_spill] sm:$0xff]  ;;  %v18099_v42 = vld [vmem:[#allocation283_spill] sm:$0xff] }
 0x401   :  { %v5478_v36 = vsel %vm3403_vm6, %v18086_v7, %v8267_v46  ;;  %18090 = vst [vmem:[#allocation305_spill] sm:$0xff] %v14510_v20  ;;  %v18091_v46 = vld [vmem:[#allocation277_spill] sm:$0xff]  ;;  %v18094_v48 = vld [vmem:[#allocation282_spill] sm:$0xff]  ;;  %v8317_v7 = vunpack.i.h.bf16 %v18099_v42  ;;  %v8502_v20 = vunpack.i.h.bf16 %v18104_v32 }
 0x402   :  { %9089 = vrot.lane.b32.xlu0 %v9088_v50, %s9579_s29  ;;  %9104 = vrot.lane.b32.xlu1 %v18072_v37, %s9570_s19  ;;  %v14481_v50 = vsel %vm17010_vm5, %v18075_v2, %v8397_v26  ;;  %v18084_v2 = vld [vmem:[#allocation242_spill] sm:$0xff]  ;;  %v8456_v26 = vunpack.i.l.bf16 %v18094_v48  ;;  %v18106_v57 = vld [vmem:[#allocation105_spill] sm:$0xff] }
 0x403   :  { %18076 = vst [vmem:[#allocation213_spill] sm:$0xff] %v14481_v50  ;;  %v18087_v50 = vld [vmem:[#allocation268_spill] sm:$0xff]  ;;  %v18093_v37 = vld [vmem:[#allocation58_spill] sm:$0xff]  ;;  %v18114_v29 = vld [vmem:[#allocation121_spill] sm:$0xff] }
 0x404   :  { %v18102_v5 = vld [vmem:[#allocation286_spill] sm:$0xff] }
 0x405   :  { %v8326_v4 = vunpack.i.l.bf16 %v18102_v5 }
 0x406   :  { %9099 = vrot.lane.b32.xlu0 %v9098_v27, %s9578_s28  ;;  %9114 = vrot.lane.b32.xlu1 %v9113_v16, %s9575_s25  ;;  %v8457_v27 = vunpack.i.h.bf16 %v18094_v48  ;;  %v14535_v48 = vsel %vm3419_vm8, %v14299_v39, %v18100_v53  ;;  %v14549_v53 = vsel %vm3419_vm8, %v14429_v17, %v8456_v26  ;;  %v18107_v16 = vunpack.i.h.bf16 %v18106_v57  ;;  %v18112_v17 = vld [vmem:[#allocation88_spill] sm:$0xff] }
 0x408   :  { %v14553_v39 = vsel %vm3419_vm8, %v14432_v23, %v8457_v27  ;;  %v18120_v27 = vld [vmem:[#allocation210_spill] sm:$0xff]  ;;  %v18151_v23 = vld [vmem:[#allocation304_spill] sm:$0xff] }
 0x40a   :  { %9109 = vrot.lane.b32.xlu0 %v18093_v37, %s9580_s30  ;;  %9124 = vrot.lane.b32.xlu1 %v18097_v11, %s9569_s18  ;;  %v8316_v37 = vunpack.i.l.bf16 %v18099_v42  ;;  %v8327_v11 = vunpack.i.h.bf16 %v18102_v5  ;;  %v8501_v42 = vunpack.i.l.bf16 %v18104_v32  ;;  %v14560_v32 = vsel %vm3411_vm7, %v14180_v10, %v18107_v16  ;;  %v18109_v5 = vld [vmem:[#allocation267_spill] sm:$0xff]  ;;  %v18116_v16 = vld [vmem:[#allocation152_spill] sm:$0xff] }
 0x40b   :  { %18108 = vst [vmem:[#allocation244_spill] sm:$0xff] %v14560_v32 }
 0x40c   :  { %v14570_v26 = vsel %vm17010_vm5, %v18112_v17, %v8316_v37  ;;  %v14577_v10 = vsel %vm17010_vm5, %v18114_v29, %v8327_v11  ;;  %v14591_v17 = vsel %vm3419_vm8, %v14291_v14, %v8502_v20  ;;  %v14595_v29 = vsel %vm17010_vm5, %v18120_v27, %v8326_v4  ;;  %v18122_v11 = vld [vmem:[#allocation209_spill] sm:$0xff]  ;;  %v18126_v27 = vld [vmem:[#allocation168_spill] sm:$0xff] }
 0x40d   :  { %18115 = vst [vmem:[#allocation29_spill] sm:$0xff] %v14577_v10  ;;  %18121 = vst [vmem:[#allocation233_spill] sm:$0xff] %v14595_v29  ;;  %v18124_v14 = vpack.i.bf16 %v18044_v24, %v18043_v59  ;;  %v18132_v59 = vld [vmem:[#allocation211_spill] sm:$0xff]  ;;  %v18139_v24 = vld [vmem:[#allocation114_spill] sm:$0xff] }
 0x40e   :  { %9119 = vrot.lane.b32.xlu0 %v18105_v51, %s9573_s22  ;;  %9134 = vrot.lane.b32.xlu1 %v18109_v5, %s9572_s21  ;;  %v18110_v51 = vld [vmem:[#allocation91_spill] sm:$0xff]  ;;  %v18117_v5 = vunpack.i.l.bf16 %v18116_v16  ;;  %v18141_v4 = vunpack.i.h.bf16 %v18139_v24  ;;  %v18142_v29 = vld [vmem:[#allocation56_spill] sm:$0xff]  ;;  %v18144_v10 = vld [vmem:[#allocation54_spill] sm:$0xff] }
 0x40f   :  { %v14566_v47 = vsel %vm17010_vm5, %v18110_v51, %v8317_v7  ;;  %v18119_v7 = vunpack.i.h.bf16 %v18116_v16  ;;  %v6275_v51 = vsel %vm3419_vm8, %v14284_v13, %v8501_v42  ;;  %v18129_v16 = vunpack.i.h.bf16 %v18126_v27  ;;  %v18149_v13 = vld [vmem:[#allocation312_spill] sm:$0xff] }
 0x410   :  { %18111 = vst [vmem:[#allocation190_spill] sm:$0xff] %v14566_v47  ;;  %v14582_v32 = vsel %vm3411_vm7, %v4363_v40, %v18117_v5  ;;  %v18138_v40 = vld [vmem:[#allocation296_spill] sm:$0xff]  ;;  %v18140_v47 = vunpack.i.l.bf16 %v18139_v24 }
 0x411   :  { %18118 = vst [vmem:[#allocation118_spill] sm:$0xff] %v14582_v32  ;;  %v5485_v37 = vsel %vm3411_vm7, %v5478_v36, %v18119_v7  ;;  %v18127_v7 = vunpack.i.l.bf16 %v18126_v27  ;;  %v3415_v5 = vsel %vm3411_vm7, %v18130_v19, %v18129_v16  ;;  %v18136_v19 = vpack.i.bf16 %v18059_v58, %v18058_v35  ;;  %v18143_v27 = vld [vmem:[#allocation181_spill] sm:$0xff] }
 0x412   :  { %9129 = vrot.lane.b32.xlu0 %v9128_v44, %s9576_s26  ;;  %9144 = vrot.lane.b32.xlu1 %v18124_v14, %s9567_s0  ;;  %v18128_v44 = vld [vmem:[#allocation179_spill] sm:$0xff]  ;;  %v8436_v36 = vunpack.i.l.bf16 %v18138_v40  ;;  %v14639_v20 = vsel %vm3419_vm8, %v3415_v5, %v18141_v4  ;;  %v8636_v35 = vunpack.i.l.bf16 %v18143_v27  ;;  %v18145_v32 = vunpack.i.l.bf16 %v18144_v10  ;;  %v18147_v4 = vld [vmem:[#allocation164_spill] sm:$0xff] }
 0x413   :  { %v3414_v57 = vsel %vm3411_vm7, %v18128_v44, %v18127_v7  ;;  %v18133_v14 = vld [vmem:[#allocation23_spill] sm:$0xff]  ;;  %v8757_v24 = vunpack.i.h.bf16 %v18147_v4 }
 0x414   :  { %v8657_v42 = vunpack.i.h.bf16 %v18133_v14  ;;  %v18135_v7 = vld [vmem:[#allocation243_spill] sm:$0xff]  ;;  %v14634_v3 = vsel %vm3419_vm8, %v3414_v57, %v18140_v47  ;;  %v14650_v47 = vsel %vm3419_vm8, %v18146_v34, %v18145_v32  ;;  %v8637_v57 = vunpack.i.h.bf16 %v18143_v27  ;;  %v14665_v27 = vpop.permute.xlu0 %8919  ;;  %v18155_v14 = vld [vmem:[#allocation64_spill] sm:$0xff] }
 0x415   :  { %v8761_v44 = vunpack.i.l.bf16 %v18135_v7  ;;  %v8497_v34 = vunpack.i.h.bf16 %v18151_v23  ;;  %18152 = vst [vmem:[#allocation162_spill] sm:$0xff] %v14665_v27  ;;  %v4385_v16 = vsel %vm3427_vm9, %v14342_v60, %v8436_v36  ;;  %v8907_v36 = vunpack.i.h.bf16 %v14150_v8 }
 0x416   :  { %9139 = vrot.lane.b32.xlu0 %v18136_v19, %s9574_s24  ;;  %9154 = vrot.lane.b32.xlu1 %v18142_v29, %s9577_s27  ;;  %v8437_v19 = vunpack.i.h.bf16 %v18138_v40  ;;  %v5492_v5 = vsel %vm3419_vm8, %v5485_v37, %v8657_v42  ;;  %v18148_v29 = vunpack.i.h.bf16 %v18144_v10  ;;  %v18153_v37 = vpack.i.bf16 %v18084_v2, %v18083_v54 }
 0x417   :  { %v6282_v32 = vsel %vm3427_vm9, %v6275_v51, %v8761_v44  ;;  %v18156_v44 = vld [vmem:[#allocation297_spill] sm:$0xff]  ;;  %v4392_v2 = vsel %vm3435_vm10, %v4385_v16, %v8636_v35  ;;  %v18160_v35 = vld [vmem:[#allocation240_spill] sm:$0xff] }
 0x418   :  { %v14659_v58 = vsel %vm3419_vm8, %v18149_v13, %v18148_v29  ;;  %v18154_v13 = vld [vmem:[#allocation132_spill] sm:$0xff]  ;;  %v4386_v51 = vsel %vm3427_vm9, %v14345_v55, %v8437_v19  ;;  %v8441_v27 = vunpack.i.l.bf16 %v18156_v44  ;;  %v18157_v29 = vunpack.i.l.bf16 %v18101_v0  ;;  %v18159_v19 = vld [vmem:[#allocation306_spill] sm:$0xff]  ;;  %v8945_v8 = vpop.permute.xlu0 %8944 }
 0x419   :  { %v4393_v10 = vsel %vm3435_vm10, %v4386_v51, %v8637_v57  ;;  %v8442_v55 = vunpack.i.h.bf16 %v18156_v44  ;;  %v8507_v40 = vunpack.i.h.bf16 %v18159_v19  ;;  %v8721_v16 = vunpack.i.l.bf16 %v18160_v35  ;;  %v18163_v51 = vld [vmem:[#allocation18_spill] sm:$0xff] }
 0x41a   :  { %9149 = vrot.lane.b32.xlu0 %v18153_v37, %s9581_s12  ;;  %9164 = vrot.lane.b32.xlu1 %v18155_v14, %s9579_s29  ;;  %v5499_v37 = vsel %vm3427_vm9, %v5492_v5, %v8497_v34  ;;  %v6289_v60 = vsel %vm3435_vm10, %v6282_v32, %v18157_v29  ;;  %v18161_v57 = vpack.i.bf16 %v18081_v41, %v18080_v18  ;;  %v8591_v32 = vunpack.i.l.bf16 %v17927_v52  ;;  %v18164_v44 = vld [vmem:[#allocation302_spill] sm:$0xff]  ;;  %v18192_v14 = vld [vmem:[#allocation76_spill] sm:$0xff] }
 0x41b   :  { %v5506_v42 = vsel %vm3435_vm10, %v5499_v37, %v8757_v24  ;;  %v18162_v24 = vld [vmem:[#allocation295_spill] sm:$0xff]  ;;  %v4399_v29 = vsel %vm3443_vm11, %v4392_v2, %v8441_v27  ;;  %v8616_v37 = vunpack.i.l.bf16 %v18164_v44  ;;  %v4400_v54 = vsel %vm3443_vm11, %v4393_v10, %v8442_v55  ;;  %v18173_v2 = vld [vmem:[#allocation6_spill] sm:$0xff] }
 0x41c   :  { %v5513_v9 = vsel %vm3443_vm11, %v5506_v42, %v8507_v40  ;;  %v6296_v41 = vsel %vm3443_vm11, %v6289_v60, %v8721_v16  ;;  %v8617_v52 = vunpack.i.h.bf16 %v18164_v44  ;;  %v18166_v40 = vpack.i.bf16 %v17512_v49, %v17999_v25  ;;  %v18167_v16 = vld [vmem:[#allocation39_spill] sm:$0xff]  ;;  %v18170_v25 = vld [vmem:[#allocation301_spill] sm:$0xff] }
 0x41d   :  { %v5520_v27 = vsel %vm3451_vm12, %v5513_v9, %v8907_v36  ;;  %v4406_v10 = vsel %vm3451_vm12, %v4399_v29, %v8616_v37  ;;  %v8947_v60 = vunpack.i.h.bf16 %v8945_v8  ;;  %v8946_v55 = vunpack.i.l.bf16 %v8945_v8  ;;  %v18169_v29 = vld [vmem:[#allocation299_spill] sm:$0xff] }
 0x41e   :  { %9159 = vrot.lane.b32.xlu0 %v18161_v57, %s9568_s17  ;;  %9174 = vrot.lane.b32.xlu1 %v18163_v51, %s9578_s28  ;;  %v18165_v51 = vld [vmem:[#allocation298_spill] sm:$0xff]  ;;  %v4407_v42 = vsel %vm3451_vm12, %v4400_v54, %v8617_v52  ;;  %v18168_v9 = vunpack.i.l.bf16 %v18062_v43  ;;  %v4375_v44 = vsel %vm3419_vm8, %v14418_v61, %v8591_v32  ;;  %v18171_v8 = vunpack.i.h.bf16 %v18091_v46 }
 0x41f   :  { %v18174_v61 = vunpack.i.l.bf16 %v18122_v11  ;;  %v18183_v54 = vunpack.i.h.bf16 %v18103_v62  ;;  %v8676_v37 = vunpack.i.l.bf16 %v18192_v14 }
 0x420   :  { %v6303_v36 = vsel %vm3451_vm12, %v6296_v41, %v18168_v9  ;;  %v4413_v52 = vsel %vm3459_vm14, %v4406_v10, %v18171_v8  ;;  %v3428_v10 = vsel %vm3427_vm9, %v14650_v47, %v8946_v55  ;;  %v3429_v8 = vsel %vm3427_vm9, %v14659_v58, %v8947_v60  ;;  %v18176_v9 = vld [vmem:[#allocation128_spill] sm:$0xff]  ;;  %v18180_v58 = vld [vmem:[#allocation307_spill] sm:$0xff]  ;;  %v18185_v55 = vld [vmem:[#allocation313_spill] sm:$0xff] }
 0x421   :  { %v9178_v49 = vpack.i.bf16 %v6303_v36, %v5520_v27  ;;  %v4414_v32 = vsel %vm3459_vm14, %v4407_v42, %v18174_v61  ;;  %v18177_v41 = vunpack.i.h.bf16 %v17984_v63  ;;  %v18178_v61 = vld [vmem:[#allocation308_spill] sm:$0xff]  ;;  %v18179_v36 = vunpack.i.l.bf16 %v18087_v50 }
 0x422   :  { %9169 = vrot.lane.b32.xlu0 %v18166_v40, %s9571_s20  ;;  %9184 = vrot.lane.b32.xlu1 %v18167_v16, %s9575_s25  ;;  %v18172_v16 = vld [vmem:[#allocation61_spill] sm:$0xff]  ;;  %v8726_v34 = vunpack.i.l.bf16 %v18178_v61  ;;  %v8777_v60 = vunpack.i.h.bf16 %v18185_v55 }
 0x423   :  { %v8621_v18 = vunpack.i.l.bf16 %v18172_v16  ;;  %v8622_v27 = vunpack.i.h.bf16 %v18172_v16  ;;  %v14753_v42 = vsel %vm3467_vm15, %v4413_v52, %v18177_v41  ;;  %v14761_v47 = vsel %vm3467_vm15, %v4414_v32, %v18179_v36  ;;  %v18181_v41 = vld [vmem:[#allocation94_spill] sm:$0xff]  ;;  %v18184_v36 = vld [vmem:[#allocation309_spill] sm:$0xff] }
 0x424   :  { %v18182_v16 = vunpack.i.l.bf16 %v18103_v62  ;;  %v3437_v32 = vsel %vm3435_vm10, %v3429_v8, %v18183_v54  ;;  %v8627_v54 = vunpack.i.h.bf16 %v18181_v41  ;;  %v18189_v8 = vunpack.i.l.bf16 %v17954_v56 }
 0x425   :  { %v3433_v52 = vsel %vm3427_vm9, %v14535_v48, %v8622_v27  ;;  %v18187_v27 = vld [vmem:[#allocation258_spill] sm:$0xff] }
 0x426   :  { %9179 = vrot.lane.b32.xlu0 %v9178_v49, %s9583_s23  ;;  %9194 = vrot.lane.b32.xlu1 %v18176_v9, %s9570_s19  ;;  %v3432_v9 = vsel %vm3427_vm9, %v14524_v28, %v8621_v18  ;;  %v8626_v49 = vunpack.i.l.bf16 %v18181_v41  ;;  %v3436_v61 = vsel %vm3435_vm10, %v3428_v10, %v18182_v16  ;;  %v8776_v18 = vunpack.i.l.bf16 %v18185_v55  ;;  %v18186_v28 = vld [vmem:[#allocation257_spill] sm:$0xff]  ;;  %v18188_v16 = vld [vmem:[#allocation35_spill] sm:$0xff] }
 0x427   :  { %v8782_v40 = vunpack.i.h.bf16 %v18186_v28  ;;  %v8781_v48 = vunpack.i.l.bf16 %v18186_v28  ;;  %v3402_v62 = vsel %vm17010_vm5, %v18188_v16, %v8726_v34  ;;  %v18190_v55 = vunpack.i.l.bf16 %v18154_v13  ;;  %v18191_v28 = vld [vmem:[#allocation111_spill] sm:$0xff]  ;;  %v18193_v34 = vld [vmem:[#allocation220_spill] sm:$0xff] }
 0x428   :  { %v8771_v5 = vunpack.i.l.bf16 %v18191_v28  ;;  %v8606_v16 = vunpack.i.l.bf16 %v18193_v34  ;;  %v18194_v41 = vunpack.i.h.bf16 %v18154_v13  ;;  %vm17032_vm5 = vcmask 179200  }
 0x429   :  { %v3440_v57 = vsel %vm3435_vm10, %v3432_v9, %v18190_v55  ;;  %v3445_v10 = vsel %vm3443_vm11, %v3437_v32, %v8782_v40  ;;  %v3430_v9 = vsel %vm3427_vm9, %v14634_v3, %v8776_v18  ;;  %v8952_v40 = vunpack.i.h.bf16 %v14350_v1  ;;  %v18200_v55 = vld [vmem:[#allocation314_spill] sm:$0xff] }
 0x42a   :  { %9189 = vrot.lane.b32.xlu0 %v18184_v36, %s9580_s30  ;;  %9204 = vrot.lane.b32.xlu1 %v18187_v27, %s9573_s22  ;;  %v14791_v36 = vsel %vm3427_vm9, %v4375_v44, %v18189_v8  ;;  %v3444_v27 = vsel %vm3443_vm11, %v3436_v61, %v8781_v48  ;;  %v3441_v56 = vsel %vm3435_vm10, %v3433_v52, %v18194_v41  ;;  %v18195_v8 = vld [vmem:[#allocation169_spill] sm:$0xff]  ;;  %v8951_v32 = vunpack.i.l.bf16 %v14350_v1  ;;  %v18196_v48 = vld [vmem:[#allocation204_spill] sm:$0xff] }
 0x42b   :  { %v3448_v44 = vsel %vm3443_vm11, %v3440_v57, %v8626_v49  ;;  %v3431_v61 = vsel %vm3427_vm9, %v14639_v20, %v8777_v60  ;;  %v3449_v13 = vsel %vm3443_vm11, %v3441_v56, %v8627_v54  ;;  %v18197_v57 = vunpack.i.l.bf16 %v18046_v30  ;;  %v18202_v41 = vld [vmem:[#allocation28_spill] sm:$0xff] }
 0x42c   :  { %v18198_v52 = vunpack.i.l.bf16 %v18132_v59  ;;  %v18199_v20 = vunpack.i.h.bf16 %v18132_v59  ;;  %v8762_v18 = vunpack.i.h.bf16 %v18135_v7  ;;  %v8787_v28 = vunpack.i.h.bf16 %v18200_v55  ;;  %v18205_v7 = vld [vmem:[#allocation217_spill] sm:$0xff] }
 0x42d   :  { %v3410_v49 = vsel %vm3403_vm6, %v3402_v62, %v18197_v57  ;;  %v8786_v54 = vunpack.i.l.bf16 %v18200_v55  ;;  %v18201_v30 = vunpack.i.l.bf16 %v18162_v24  ;;  %v8642_v56 = vunpack.i.h.bf16 %v18202_v41 }
 0x42e   :  { %9199 = vrot.lane.b32.xlu0 %v18195_v8, %s9569_s18  ;;  %9214 = vrot.lane.b32.xlu1 %v18196_v48, %s9576_s26  ;;  %v3452_v3 = vsel %vm3451_vm12, %v3444_v27, %v18198_v52  ;;  %v3453_v60 = vsel %vm3451_vm12, %v3445_v10, %v18199_v20  ;;  %v3418_v1 = vsel %vm3411_vm7, %v3410_v49, %v8771_v5  ;;  %v18203_v27 = vunpack.i.l.bf16 %v18070_v6  ;;  %v18206_v49 = vld [vmem:[#allocation113_spill] sm:$0xff] }
 0x42f   :  { %v3456_v62 = vsel %vm3451_vm12, %v3448_v44, %v18201_v30  ;;  %v18204_v10 = vunpack.i.h.bf16 %v18070_v6  ;;  %v3460_v8 = vsel %vm3459_vm14, %v3452_v3, %v8786_v54  ;;  %v3461_v48 = vsel %vm3459_vm14, %v3453_v60, %v8787_v28 }
 0x430   :  { %v3438_v59 = vsel %vm3435_vm10, %v3430_v9, %v18203_v27  ;;  %v8607_v9 = vunpack.i.h.bf16 %v18193_v34  ;;  %v8712_v6 = vunpack.i.h.bf16 %v18013_v21  ;;  %v18208_v3 = vunpack.i.h.bf16 %v18162_v24  ;;  %v18209_v34 = vld [vmem:[#allocation59_spill] sm:$0xff] }
 0x431   :  { %v3439_v5 = vsel %vm3435_vm10, %v3431_v61, %v18204_v10  ;;  %v3446_v57 = vsel %vm3443_vm11, %v3438_v59, %v8951_v32  ;;  %v18207_v61 = vunpack.i.l.bf16 %v17843_v45  ;;  %v3464_v32 = vsel %vm3459_vm14, %v3456_v62, %v8606_v16  ;;  %v18216_v62 = vld [vmem:[#allocation235_spill] sm:$0xff]  ;;  %v18218_v59 = vld [vmem:[#allocation156_spill] sm:$0xff] }
 0x432   :  { %9209 = vrot.lane.b32.xlu0 %v18205_v7, %s9572_s21  ;;  %v3447_v44 = vsel %vm3443_vm11, %v3439_v5, %v8952_v40  ;;  %9224 = vrot.lane.b32.xlu1 %v18206_v49, %s9574_s24  ;;  %v3457_v20 = vsel %vm3451_vm12, %v3449_v13, %v18208_v3  ;;  %v8641_v40 = vunpack.i.l.bf16 %v18202_v41  ;;  %v6283_v60 = vsel %vm3427_vm9, %v14591_v17, %v8762_v18  ;;  %v18219_v5 = vld [vmem:[#allocation310_spill] sm:$0xff] }
 0x433   :  { %v3426_v52 = vsel %vm3419_vm8, %v3418_v1, %v18207_v61  ;;  %v18210_v55 = vunpack.i.l.bf16 %v18209_v34  ;;  %v18211_v45 = vunpack.i.h.bf16 %v18209_v34  ;;  %v18212_v24 = vunpack.i.l.bf16 %v18082_v15 }
 0x434   :  { %v18213_v16 = vunpack.i.h.bf16 %v18082_v15  ;;  %v18214_v17 = vpack.i.bf16 %v18061_v12, %v18060_v31  ;;  %v6284_v18 = vsel %vm3427_vm9, %v14553_v39, %v8642_v56  ;;  %v18215_v54 = vunpack.i.l.bf16 %v13219_v33  ;;  %v18217_v15 = vld [vmem:[#allocation245_spill] sm:$0xff] }
 0x435   :  { %v3468_v21 = vsel %vm3467_vm15, %v3460_v8, %v18210_v55  ;;  %v3469_v1 = vsel %vm3467_vm15, %v3461_v48, %v18211_v45  ;;  %v3454_v13 = vsel %vm3451_vm12, %v3446_v57, %v18212_v24  ;;  %v8792_v41 = vunpack.i.h.bf16 %v18216_v62  ;;  %v14892_v8 = vpop.permute.xlu1 %8984  ;;  %v18221_v48 = vld [vmem:[#allocation171_spill] sm:$0xff]  ;;  %v18227_v45 = vld [vmem:[#allocation37_spill] sm:$0xff]  ;;  %v18228_v24 = vld [vmem:[#allocation134_spill] sm:$0xff] }
 0x436   :  { %v3455_v28 = vsel %vm3451_vm12, %v3447_v44, %v18213_v16  ;;  %9219 = vrot.lane.b32.xlu0 %v18214_v17, %s9567_s0  ;;  %v3434_v30 = vsel %vm3427_vm9, %v3426_v52, %v18215_v54  ;;  %v8791_v27 = vunpack.i.l.bf16 %v18216_v62  ;;  %9234 = vrot.lane.b32.xlu1 %v18217_v15, %s9581_s12  ;;  %v8747_v10 = vunpack.i.h.bf16 %v18218_v59  ;;  %v14924_v54 = vpop.permute.xlu0 %8959 }
 0x437   :  { %v8647_v7 = vunpack.i.h.bf16 %v18219_v5  ;;  %v8722_v31 = vunpack.i.h.bf16 %v18160_v35  ;;  %v18220_v12 = vunpack.i.h.bf16 %v18101_v0  ;;  %v3463_v56 = vsel %vm3459_vm14, %v3455_v28, %v8792_v41  ;;  %v18224_v35 = vld [vmem:[#allocation305_spill] sm:$0xff]  ;;  %v18237_v41 = vld [vmem:[#allocation122_spill] sm:$0xff] }
 0x438   :  { %v3462_v33 = vsel %vm3459_vm14, %v3454_v13, %v8791_v27  ;;  %v18222_v57 = vunpack.i.l.bf16 %v18221_v48  ;;  %v18223_v49 = vunpack.i.h.bf16 %v18221_v48  ;;  %v14902_v0 = vsel %vm3419_vm8, %v18224_v35, %v8712_v6 }
 0x439   :  { %v6290_v39 = vsel %vm3435_vm10, %v6283_v60, %v18220_v12  ;;  %v4387_v52 = vsel %vm3427_vm9, %v14549_v53, %v8641_v40  ;;  %v8646_v3 = vunpack.i.l.bf16 %v18219_v5  ;;  %v18225_v60 = vld [vmem:[#allocation250_spill] sm:$0xff]  ;;  %v18230_v6 = vunpack.i.h.bf16 %v18170_v25  ;;  %v18231_v53 = vld [vmem:[#allocation187_spill] sm:$0xff]  ;;  %v18232_v40 = vld [vmem:[#allocation229_spill] sm:$0xff] }
 0x43a   :  { %v3476_v44 = vsel %vm17026_vm1, %v3468_v21, %v18222_v57  ;;  %v3477_v61 = vsel %vm17026_vm1, %v3469_v1, %v18223_v49  ;;  %v18226_v34 = vunpack.i.l.bf16 %v18225_v60  ;;  %9229 = vrot.lane.b32.xlu0 %v18227_v45, %s9577_s27  ;;  %v3465_v21 = vsel %vm3459_vm14, %v3457_v20, %v8607_v9  ;;  %v18240_v5 = vld [vmem:[#allocation244_spill] sm:$0xff] }
 0x43b   :  { %v18229_v1 = vunpack.i.l.bf16 %v18228_v24  ;;  %v6291_v16 = vsel %vm3435_vm10, %v6284_v18, %v18230_v6  ;;  %v18233_v28 = vpack.i.bf16 %v18231_v53, %v18232_v40  ;;  %v6297_v17 = vsel %vm3443_vm11, %v6290_v39, %v8722_v31  ;;  %v18248_v60 = vld [vmem:[#allocation160_spill] sm:$0xff] }
 0x43c   :  { %v3442_v55 = vsel %vm3435_vm10, %v3434_v30, %v18226_v34  ;;  %v18234_v30 = vld [vmem:[#allocation32_spill] sm:$0xff]  ;;  %v18238_v27 = vunpack.i.l.bf16 %v18237_v41  ;;  %v18239_v15 = vunpack.i.h.bf16 %v18237_v41  ;;  %v4374_v31 = vsel %vm3419_vm8, %v18240_v5, %v8747_v10  ;;  %v18245_v10 = vld [vmem:[#allocation70_spill] sm:$0xff] }
 0x43d   :  { %v3472_v13 = vsel %vm3467_vm15, %v3464_v32, %v18229_v1  ;;  %9244 = vrot.lane.b32.xlu1 %v18233_v28, %s9568_s17  ;;  %v18235_v62 = vunpack.i.l.bf16 %v18234_v30  ;;  %v18236_v20 = vunpack.i.h.bf16 %v18234_v30  ;;  %v18241_v12 = vunpack.i.l.bf16 %v18170_v25  ;;  %v14979_v30 = vpop.permute.xlu0 %8964 }
 0x43e   :  { %v3484_v18 = vsel %vm3483_vm2, %v3476_v44, %v18238_v27  ;;  %v3485_v59 = vsel %vm3483_vm2, %v3477_v61, %v18239_v15  ;;  %v18242_v48 = vunpack.i.l.bf16 %v13226_v38  ;;  %v18243_v57 = vunpack.i.h.bf16 %v18228_v24  ;;  %v18244_v61 = vld [vmem:[#allocation123_spill] sm:$0xff]  ;;  %9239 = vrot.lane.b32.xlu0 %v18245_v10, %s9579_s29 }
 0x43f   :  { %v3470_v9 = vsel %vm3467_vm15, %v3462_v33, %v18235_v62  ;;  %v3471_v32 = vsel %vm3467_vm15, %v3463_v56, %v18236_v20  ;;  %v4394_v39 = vsel %vm3435_vm10, %v4387_v52, %v18241_v12  ;;  %v6298_v33 = vsel %vm3443_vm11, %v6291_v16, %v8647_v7  ;;  %v14957_v7 = vpop.permute.xlu1 %8989  ;;  %v18247_v38 = vld [vmem:[#allocation7_spill] sm:$0xff]  ;;  %v18254_v16 = vld [vmem:[#allocation252_spill] sm:$0xff]  ;;  %v18263_v12 = vld [vmem:[#allocation66_spill] sm:$0xff] }
 0x440   :  { %v3450_v56 = vsel %vm3443_vm11, %v3442_v55, %v18242_v48  ;;  %v3473_v44 = vsel %vm3467_vm15, %v3465_v21, %v18243_v57  ;;  %v4401_v49 = vsel %vm3443_vm11, %v4394_v39, %v8646_v3  ;;  %v8911_v35 = vunpack.i.l.bf16 %v18244_v61  ;;  %v18251_v21 = vld [vmem:[#allocation199_spill] sm:$0xff] }
 0x441   :  { %v18246_v25 = vunpack.i.h.bf16 %v18062_v43  ;;  %9254 = vrot.lane.b32.xlu1 %v18247_v38, %s9571_s20  ;;  %v18249_v34 = vunpack.i.l.bf16 %v18248_v60  ;;  %v18250_v3 = vunpack.i.h.bf16 %v18248_v60  ;;  %v18252_v24 = vunpack.i.l.bf16 %v18251_v21  ;;  %v18266_v57 = vld [vmem:[#allocation151_spill] sm:$0xff] }
 0x442   :  { %v18253_v43 = vunpack.i.h.bf16 %v18251_v21  ;;  %v18255_v53 = vunpack.i.l.bf16 %v18254_v16  ;;  %v18256_v28 = vunpack.i.h.bf16 %v13275_v22  ;;  %v18257_v62 = vunpack.i.h.bf16 %v18173_v2  ;;  %v15007_v21 = vpop.permute.xlu0 %8969 }
 0x443   :  { %v6304_v52 = vsel %vm3451_vm12, %v6297_v17, %v18246_v25  ;;  %v3492_v55 = vsel %vm3491_vm3, %v3484_v18, %v18249_v34  ;;  %v3493_v45 = vsel %vm3491_vm3, %v3485_v59, %v18250_v3  ;;  %v3478_v1 = vsel %vm17026_vm1, %v3470_v9, %v18252_v24  ;;  %v18258_v9 = vld [vmem:[#allocation202_spill] sm:$0xff]  ;;  %v18259_v18 = vld [vmem:[#allocation107_spill] sm:$0xff]  ;;  %v9000_v60 = vpop.permute.xlu1 %8999 }
 0x444   :  { %v3479_v6 = vsel %vm17026_vm1, %v3471_v32, %v18253_v43  ;;  %v3458_v40 = vsel %vm3451_vm12, %v3450_v56, %v18255_v53  ;;  %v4381_v17 = vsel %vm3427_vm9, %v4374_v31, %v18256_v28  ;;  %v6305_v20 = vsel %vm3451_vm12, %v6298_v33, %v18257_v62  ;;  %v18262_v31 = vld [vmem:[#allocation81_spill] sm:$0xff]  ;;  %v18268_v43 = vld [vmem:[#allocation219_spill] sm:$0xff]  ;;  %v18271_v53 = vld [vmem:[#allocation284_spill] sm:$0xff] }
 0x445   :  { %v8882_v41 = vunpack.i.h.bf16 %v18258_v9  ;;  %v8881_v27 = vunpack.i.l.bf16 %v18258_v9  ;;  %v9263_v32 = vpack.i.bf16 %v6305_v20, %v6304_v52  ;;  %v18260_v15 = vunpack.i.l.bf16 %v18259_v18  ;;  %9249 = vrot.lane.b32.xlu0 %v18262_v31, %s9578_s28  ;;  %v18267_v52 = vld [vmem:[#allocation106_spill] sm:$0xff] }
 0x446   :  { %v18261_v22 = vunpack.i.h.bf16 %v18259_v18  ;;  %v18264_v39 = vunpack.i.l.bf16 %v18263_v12  ;;  %v18265_v48 = vunpack.i.h.bf16 %v18263_v12  ;;  %v8887_v10 = vunpack.i.h.bf16 %v18266_v57  ;;  %v18274_v18 = vld [vmem:[#allocation184_spill] sm:$0xff] }
 0x447   :  { %v3500_v59 = vsel %vm17028_vm13, %v3492_v55, %v18260_v15  ;;  %v6264_v25 = vsel %vm3403_vm6, %v14570_v26, %v8911_v35  ;;  %v8916_v38 = vunpack.i.l.bf16 %v18267_v52  ;;  %9264 = vrot.lane.b32.xlu1 %v9263_v32, %s9583_s23  ;;  %v8987_v34 = vunpack.i.h.bf16 %v14892_v8  ;;  %v18275_v15 = vld [vmem:[#allocation254_spill] sm:$0xff] }
 0x448   :  { %v3501_v5 = vsel %vm17028_vm13, %v3493_v45, %v18261_v22  ;;  %v3486_v33 = vsel %vm3483_vm2, %v3478_v1, %v18264_v39  ;;  %v3487_v56 = vsel %vm3483_vm2, %v3479_v6, %v18265_v48  ;;  %v8986_v55 = vunpack.i.l.bf16 %v14892_v8  ;;  %v15034_v39 = vpop.permute.xlu0 %8974 }
 0x449   :  { %v9002_v3 = vunpack.i.h.bf16 %v9000_v60  ;;  %v9001_v45 = vunpack.i.l.bf16 %v9000_v60  ;;  %v3508_v24 = vsel %vm3507_vm4, %v3500_v59, %v8881_v27  ;;  %v3509_v1 = vsel %vm3507_vm4, %v3501_v5, %v8882_v41  ;;  %v18273_v27 = vld [vmem:[#allocation80_spill] sm:$0xff]  ;;  %v18282_v60 = vld [vmem:[#allocation139_spill] sm:$0xff] }
 0x44a   :  { %v18269_v26 = vunpack.i.l.bf16 %v18268_v43  ;;  %v18270_v6 = vunpack.i.h.bf16 %v18268_v43  ;;  %v18272_v28 = vunpack.i.l.bf16 %v18271_v53  ;;  %9259 = vrot.lane.b32.xlu0 %v18273_v27, %s9575_s25  ;;  %v18276_v59 = vunpack.i.l.bf16 %v18275_v15 }
 0x44b   :  { %v3793_v62 = vsel %vm3792_vm0, %v3508_v24, %v9001_v45  ;;  %v3794_v20 = vsel %vm3792_vm0, %v3509_v1, %v9002_v3  ;;  %v3801_v9 = vpack.c.bf16 %v9002_v3, %v9001_v45  ;;  %5858 = vrot.lane.b32.xlu1 %v18274_v18, %s9573_s22  ;;  %v18277_v5 = vunpack.i.h.bf16 %v18275_v15 }
 0x44c   :  { %v3494_v35 = vsel %vm3491_vm3, %v3486_v33, %v18269_v26  ;;  %v3495_v16 = vsel %vm3491_vm3, %v3487_v56, %v18270_v6  ;;  %v6271_v8 = vsel %vm3411_vm7, %v6264_v25, %v18272_v28  ;;  %v3800_v32 = vpack.c.bf16 %v3794_v20, %v3793_v62  ;;  %v18278_v33 = vld [vmem:[#allocation89_spill] sm:$0xff]  ;;  %v18288_v6 = vld [vmem:[#allocation23_spill] sm:$0xff]  ;;  %v15069_v28 = vpop.permute.xlu1 %9004  ;;  %v18290_v62 = vld [vmem:[#allocation148_spill] sm:$0xff]  ;;  %v15081_v15 = vpop.permute.xlu0 %8979 }
 0x44d   :  { %v6278_v41 = vsel %vm3419_vm8, %v6271_v8, %v8916_v38  ;;  %v3480_v22 = vsel %vm17026_vm1, %v3472_v13, %v18276_v59  ;;  %v3481_v31 = vsel %vm17026_vm1, %v3473_v44, %v18277_v5  ;;  %v3803_v12 = vpack.c.bf16 %v8987_v34, %v8986_v55  ;;  %7288 = vmatprep.mubr.msk.bf16.mxu1 %vm17032_vm5, %v3801_v9  ;;  %v15055_v26 = vld [vmem:[%s16410_s3] sm:$0xff]   ;;  %v18291_v9 = vld [vmem:[#allocation31_spill] sm:$0xff] }
 0x44e   :  { %v18279_v48 = vunpack.i.l.bf16 %v18278_v33  ;;  %v18280_v57 = vunpack.i.h.bf16 %v18278_v33  ;;  %v18281_v38 = vunpack.i.l.bf16 %v18165_v51  ;;  %v8742_v3 = vunpack.i.h.bf16 %v18282_v60  ;;  %3941 = vmatmul.mubr.bf16.vlgmr.msra.gmra.mrb[32].mxu1 %v3800_v32  ;;  %18284 = vst [vmem:[#allocation205_spill] sm:$0xff] %v15055_v26  ;;  %5837 = vrot.lane.b32.xlu0 %v18290_v62, %s9570_s19  ;;  %v18293_v59 = vld [vmem:[#allocation193_spill] sm:$0xff]  ;;  %v18295_v33 = vld [vmem:[#allocation208_spill] sm:$0xff] }
 0x44f   :  { %v8741_v44 = vunpack.i.l.bf16 %v18282_v60  ;;  %v18283_v45 = vunpack.i.l.bf16 %v18173_v2  ;;  %v4388_v1 = vsel %vm3435_vm10, %v4381_v17, %v8887_v10  ;;  %v8677_v43 = vunpack.i.h.bf16 %v18192_v14  ;;  %4744 = vmatpush1.bf16.msra.mxu1 %v15055_v26  ;;  %7289 = vmatprep.mubr.msk.bf16.mxu1 %vm17032_vm5, %v3803_v12  ;;  %v18300_v60 = vld [vmem:[#allocation78_spill] sm:$0xff] }
 0x450   :  { %v3502_v56 = vsel %vm17028_vm13, %v3494_v35, %v18279_v48  ;;  %v3503_v25 = vsel %vm17028_vm13, %v3495_v16, %v18280_v57  ;;  %v3466_v13 = vsel %vm3459_vm14, %v3458_v40, %v18281_v38  ;;  %v6285_v2 = vsel %vm3427_vm9, %v6278_v41, %v8676_v37  ;;  %v18285_v40 = vld [vmem:[#allocation19_spill] sm:$0xff]  ;;  %5900 = vrot.lane.b32.xlu1 %v18293_v59, %s9574_s24  ;;  %v15122_v59 = vpop.permute.xlu0 %8994 }
 0x451   :  { %v4408_v24 = vsel %vm3451_vm12, %v4401_v49, %v18283_v45  ;;  %v18286_v49 = vunpack.i.l.bf16 %v18285_v40  ;;  %v18287_v10 = vunpack.i.h.bf16 %v18285_v40  ;;  %v8656_v16 = vunpack.i.l.bf16 %v18288_v6  ;;  %v18297_v57 = vld [vmem:[#allocation263_spill] sm:$0xff]  ;;  %v18303_v40 = vld [vmem:[#allocation68_spill] sm:$0xff] }
 0x452   :  { %v18289_v8 = vmov 0   ;;  %v3510_v20 = vsel %vm3507_vm4, %v3502_v56, %v8741_v44  ;;  %v3511_v37 = vsel %vm3507_vm4, %v3503_v25, %v8742_v3  ;;  %v18292_v27 = vunpack.i.l.bf16 %v18291_v9  ;;  %v18302_v44 = vld [vmem:[#allocation177_spill] sm:$0xff]  ;;  %v18307_v6 = vld [vmem:[#allocation280_spill] sm:$0xff] }
 0x453   :  { %v3488_v17 = vsel %vm3483_vm2, %v3480_v22, %v18286_v49  ;;  %v3489_v35 = vsel %vm3483_vm2, %v3481_v31, %v18287_v10  ;;  %4745 = vmatprep.subr.bf16.mxu1 %v18289_v8  ;;  %v8972_v32 = vunpack.i.h.bf16 %v15007_v21  ;;  %v8971_v18 = vunpack.i.l.bf16 %v15007_v21  ;;  %v18294_v31 = vld [vmem:[#allocation120_spill] sm:$0xff]  ;;  %5879 = vrot.lane.b32.xlu0 %v18307_v6, %s9576_s26 }
 0x454   :  { %v3474_v41 = vsel %vm3467_vm15, %v3466_v13, %v18292_v27  ;;  %v3795_v22 = vsel %vm3792_vm0, %v3510_v20, %v8986_v55  ;;  %v3796_v5 = vsel %vm3792_vm0, %v3511_v37, %v8987_v34  ;;  %v8892_v12 = vunpack.i.h.bf16 %v18294_v31  ;;  %v18310_v31 = vld [vmem:[#allocation188_spill] sm:$0xff] }
 0x455   :  { %v18296_v48 = vunpack.i.l.bf16 %v18295_v33  ;;  %v18298_v25 = vunpack.i.l.bf16 %v18297_v57  ;;  %v18299_v21 = vunpack.i.h.bf16 %v18297_v57  ;;  %v8681_v3 = vunpack.i.l.bf16 %v18300_v60  ;;  %5942 = vrot.lane.b32.xlu1 %v18310_v31, %s9568_s17  ;;  %v18311_v57 = vld [vmem:[#allocation158_spill] sm:$0xff] }
 0x456   :  { %v18301_v55 = vunpack.i.h.bf16 %v18122_v11  ;;  %v8896_v45 = vunpack.i.l.bf16 %v18302_v44  ;;  %v18304_v49 = vunpack.i.h.bf16 %v18303_v40  ;;  %v3802_v62 = vpack.c.bf16 %v3796_v5, %v3795_v22 }
 0x457   :  { %v6292_v56 = vsel %vm3435_vm10, %v6285_v2, %v18296_v48  ;;  %v3496_v38 = vsel %vm3491_vm3, %v3488_v17, %v18298_v25  ;;  %v3497_v13 = vsel %vm3491_vm3, %v3489_v35, %v18299_v21  ;;  %v15109_v17 = vld [vmem:[%s16410_s3 + $0x8] sm:$0xff]   ;;  %v3805_v27 = vpack.c.bf16 %v8972_v32, %v8971_v18 }
 0x458   :  { %v4415_v34 = vsel %vm3459_vm14, %v4408_v24, %v18301_v55  ;;  %v4383_v2 = vsel %vm3427_vm9, %v14902_v0, %v18304_v49  ;;  %4746 = vmatpush1.bf16.msra.mxu1 %v15109_v17  ;;  %v18305_v35 = vld [vmem:[#allocation269_spill] sm:$0xff]  ;;  %v18308_v0 = vld [vmem:[#allocation227_spill] sm:$0xff]  ;;  %v6299_v48 = vsel %vm3443_vm11, %v6292_v56, %v8681_v3  ;;  %v18313_v21 = vunpack.i.h.bf16 %v18311_v57  ;;  %v18315_v55 = vld [vmem:[#allocation118_spill] sm:$0xff]  ;;  %v15142_v3 = vpop.permute.xlu1 %9014 }
 0x459   :  { %v18306_v11 = vunpack.i.h.bf16 %v18305_v35  ;;  %4747 = vmatprep.subr.bf16.mxu1 %v18289_v8  ;;  %v18309_v20 = vunpack.i.l.bf16 %v18308_v0  ;;  %v18314_v5 = vunpack.i.h.bf16 %v18087_v50  ;;  %v4377_v44 = vsel %vm3419_vm8, %v18315_v55, %v8656_v16  ;;  %18316 = vst [vmem:[#allocation172_spill] sm:$0xff] %v15142_v3  ;;  %3949 = vmatmul.mubr.bf16.gmra.mrb[36].mxu1 %v3802_v62  ;;  %v18317_v49 = vld [vmem:[#allocation27_spill] sm:$0xff]  ;;  %v18318_v35 = vld [vmem:[#allocation13_spill] sm:$0xff] }
 0x45a   :  { %v3505_v22 = vsel %vm17028_vm13, %v3497_v13, %v18313_v21  ;;  %v8756_v40 = vunpack.i.l.bf16 %v18147_v4  ;;  %v8901_v13 = vunpack.i.l.bf16 %v18317_v49  ;;  %v8957_v50 = vunpack.i.h.bf16 %v18318_v35  ;;  %7290 = vmatprep.mubr.msk.bf16.mxu1 %vm17032_vm5, %v3805_v27  ;;  %v18319_v4 = vld [vmem:[#allocation25_spill] sm:$0xff]  ;;  %v15173_v21 = vpop.permute.xlu0 %9009  ;;  %v18327_v55 = vld [vmem:[#allocation311_spill] sm:$0xff] }
 0x45b   :  { %v4395_v24 = vsel %vm3443_vm11, %v4388_v1, %v18306_v11  ;;  %v3482_v37 = vsel %vm17026_vm1, %v3474_v41, %v18309_v20  ;;  %v18312_v1 = vunpack.i.l.bf16 %v18311_v57  ;;  %v15136_v41 = vsel %vm3467_vm15, %v4415_v34, %v18314_v5  ;;  %v15151_v34 = vld [vmem:[%s16410_s3 + $0x10] sm:$0xff]   ;;  %v18321_v11 = vld [vmem:[#allocation41_spill] sm:$0xff] }
 0x45c   :  { %v4402_v56 = vsel %vm3451_vm12, %v4395_v24, %v8892_v12  ;;  %4748 = vmatpush1.bf16.msra.mxu1 %v15151_v34  ;;  %v18320_v16 = vunpack.i.l.bf16 %v18319_v4  ;;  %v8766_v24 = vunpack.i.l.bf16 %v18321_v11  ;;  %v18325_v20 = vunpack.i.l.bf16 %v18180_v58  ;;  %v18329_v35 = vld [vmem:[#allocation285_spill] sm:$0xff] }
 0x45d   :  { %v3504_v25 = vsel %vm17028_vm13, %v3496_v38, %v18312_v1  ;;  %v4389_v38 = vsel %vm3435_vm10, %v14791_v36, %v8896_v45  ;;  %4749 = vmatprep.subr.bf16.mxu1 %v18289_v8  ;;  %v18322_v36 = vld [vmem:[#allocation203_spill] sm:$0xff]  ;;  %v18323_v45 = vld [vmem:[#allocation288_spill] sm:$0xff]  ;;  %v18326_v27 = vunpack.i.h.bf16 %v18180_v58  ;;  %v8991_v1 = vunpack.i.l.bf16 %v14957_v7 }
 0x45e   :  { %v3490_v12 = vsel %vm3483_vm2, %v3482_v37, %v18320_v16  ;;  %5921 = vrot.lane.b32.xlu0 %v18322_v36, %s9581_s12  ;;  %v18324_v6 = vunpack.i.l.bf16 %v18323_v45  ;;  %v3512_v31 = vsel %vm3507_vm4, %v3504_v25, %v18325_v20  ;;  %v8912_v37 = vunpack.i.h.bf16 %v18244_v61  ;;  %v15185_v16 = vpop.permute.xlu1 %9024  ;;  %v18332_v36 = vld [vmem:[#allocation251_spill] sm:$0xff] }
 0x45f   :  { %v3513_v57 = vsel %vm3507_vm4, %v3505_v22, %v18326_v27  ;;  %v3797_v5 = vsel %vm3792_vm0, %v3512_v31, %v8971_v18  ;;  %v8752_v49 = vunpack.i.h.bf16 %v18327_v55  ;;  %v18328_v25 = vunpack.i.l.bf16 %v18151_v23  ;;  %18331 = vst [vmem:[#allocation197_spill] sm:$0xff] %v15185_v16  ;;  %v18336_v27 = vld [vmem:[#allocation5_spill] sm:$0xff]  ;;  %v18339_v55 = vld [vmem:[#allocation190_spill] sm:$0xff] }
 0x460   :  { %v6306_v62 = vsel %vm3451_vm12, %v6299_v48, %v18324_v6  ;;  %v3798_v48 = vsel %vm3792_vm0, %v3513_v57, %v8972_v32  ;;  %v18330_v22 = vunpack.i.l.bf16 %v18329_v35  ;;  %v18333_v6 = vunpack.i.l.bf16 %v18332_v36  ;;  %v15212_v35 = vpop.permute.xlu0 %9019 }
 0x461   :  { %6323 = vrot.lane.b32.xlu1 %v6306_v62, %s9583_s23  ;;  %v4384_v58 = vsel %vm3427_vm9, %v4377_v44, %v18328_v25  ;;  %v8767_v32 = vunpack.i.h.bf16 %v18321_v11  ;;  %v4390_v23 = vsel %vm3435_vm10, %v4383_v2, %v8957_v50  ;;  %v15197_v44 = vld [vmem:[%s16410_s3 + $0x18] sm:$0xff]   ;;  %v8906_v11 = vunpack.i.l.bf16 %v18336_v27  ;;  %v18337_v2 = vld [vmem:[#allocation117_spill] sm:$0xff]  ;;  %v18338_v50 = vld [vmem:[#allocation22_spill] sm:$0xff]  ;;  %18340 = vst [vmem:[#allocation273_spill] sm:$0xff] %v15212_v35 }
 0x462   :  { %v4396_v61 = vsel %vm3443_vm11, %v4389_v38, %v18330_v22  ;;  %v3498_v62 = vsel %vm3491_vm3, %v3490_v12, %v18333_v6  ;;  %v4391_v18 = vsel %vm3435_vm10, %v4384_v58, %v8756_v40  ;;  %4750 = vmatpush1.bf16.msra.mxu1 %v15197_v44  ;;  %v18334_v38 = vld [vmem:[#allocation300_spill] sm:$0xff]  ;;  %v18335_v12 = vunpack.i.h.bf16 %v18165_v51  ;;  %5963 = vrot.lane.b32.xlu0 %v18337_v2, %s9571_s20  ;;  %v18341_v51 = vld [vmem:[#allocation239_spill] sm:$0xff]  ;;  %v18472_v35 = vld [vmem:[#allocation182_spill] sm:$0xff] }
 0x463   :  { %v4403_v20 = vsel %vm3451_vm12, %v4396_v61, %v8901_v13  ;;  %v5186_v31 = vsel %vm3403_vm6, %v18334_v38, %v8766_v24  ;;  %4751 = vmatprep.subr.bf16.mxu1 %v18289_v8  ;;  %v3804_v13 = vpack.c.bf16 %v3798_v48, %v3797_v5  ;;  %v8666_v57 = vunpack.i.l.bf16 %v18338_v50  ;;  %v18345_v48 = vld [vmem:[#allocation289_spill] sm:$0xff] }
 0x464   :  { %v4409_v40 = vsel %vm3459_vm14, %v4402_v56, %v18335_v12  ;;  %v5183_v25 = vsel %vm3403_vm6, %v18339_v55, %v8912_v37  ;;  %v3807_v58 = vpack.c.bf16 %v8991_v1, %v8991_v1  ;;  %v18342_v56 = vld [vmem:[#allocation163_spill] sm:$0xff]  ;;  %v18344_v61 = vunpack.i.l.bf16 %v18159_v19  ;;  %v18347_v12 = vld [vmem:[#allocation293_spill] sm:$0xff]  ;;  %v15229_v55 = vpop.permute.xlu1 %9034 }
 0x465   :  { %9274 = vrot.lane.b32.xlu1 %v18341_v51, %s9569_s18  ;;  %v18343_v24 = vunpack.i.l.bf16 %v18342_v56  ;;  %v8917_v5 = vunpack.i.h.bf16 %v18267_v52  ;;  %v18346_v38 = vunpack.i.l.bf16 %v18345_v48  ;;  %v18348_v27 = vunpack.i.h.bf16 %v18347_v12  ;;  %3957 = vmatmul.mubr.bf16.gmra.mrb[40].mxu1 %v3804_v13  ;;  %18349 = vst [vmem:[#allocation292_spill] sm:$0xff] %v15229_v55  ;;  %v18350_v51 = vld [vmem:[#allocation213_spill] sm:$0xff]  ;;  %v18354_v13 = vld [vmem:[#allocation260_spill] sm:$0xff] }
 0x466   :  { %v4398_v6 = vsel %vm3443_vm11, %v4391_v18, %v18344_v61  ;;  %v18351_v19 = vunpack.i.h.bf16 %v18291_v9  ;;  %v18352_v52 = vunpack.i.l.bf16 %v18169_v29  ;;  %7291 = vmatprep.mubr.msk.bf16.mxu1 %vm17032_vm5, %v3807_v58  ;;  %9269 = vrot.lane.b32.xlu0 %v18354_v13, %s9580_s30  ;;  %v18393_v9 = vld [vmem:[#allocation82_spill] sm:$0xff] }
 0x467   :  { %v3506_v22 = vsel %vm17028_vm13, %v3498_v62, %v18343_v24  ;;  %v4410_v37 = vsel %vm3459_vm14, %v4403_v20, %v18346_v38  ;;  %v4397_v2 = vsel %vm3443_vm11, %v4390_v23, %v18348_v27  ;;  %v5187_v62 = vsel %vm3403_vm6, %v18350_v51, %v8767_v32  ;;  %v15245_v23 = vld [vmem:[%s16410_s3 + $0x20] sm:$0xff]  }
 0x468   :  { %v4416_v18 = vsel %vm3467_vm15, %v4409_v40, %v18351_v19  ;;  %v15239_v24 = vsel %vm3411_vm7, %v5186_v31, %v18352_v52  ;;  %v8961_v20 = vunpack.i.l.bf16 %v14924_v54  ;;  %4752 = vmatpush1.bf16.msra.mxu1 %v15245_v23  ;;  %v4405_v32 = vsel %vm3451_vm12, %v4398_v6, %v8906_v11  ;;  %v18355_v38 = vld [vmem:[#allocation100_spill] sm:$0xff]  ;;  %v15263_v11 = vpop.permute.xlu0 %9029  ;;  %v18361_v52 = vld [vmem:[#allocation238_spill] sm:$0xff]  ;;  %v15280_v13 = vpop.permute.xlu1 %9044 }
 0x469   :  { %v18353_v40 = vunpack.i.h.bf16 %v18271_v53  ;;  %4753 = vmatprep.subr.bf16.mxu1 %v18289_v8  ;;  %v3514_v61 = vsel %vm3507_vm4, %v3506_v22, %v8666_v57  ;;  %v18356_v12 = vunpack.i.l.bf16 %v18355_v38  ;;  %v4404_v58 = vsel %vm3451_vm12, %v4397_v2, %v8752_v49  ;;  %18357 = vst [vmem:[#allocation72_spill] sm:$0xff] %v15263_v11  ;;  %v18358_v53 = vld [vmem:[#allocation42_spill] sm:$0xff]  ;;  %18364 = vst [vmem:[#allocation65_spill] sm:$0xff] %v15280_v13 }
 0x46a   :  { %v17012_v51 = vunpack.i.l.bf16 %v15122_v59  ;;  %v3799_v19 = vsel %vm3792_vm0, %v3514_v61, %v8991_v1  ;;  %v18362_v57 = vunpack.i.h.bf16 %v18308_v0  ;;  %v18363_v49 = vunpack.i.h.bf16 %v18169_v29  ;;  %v18366_v61 = vld [vmem:[#allocation233_spill] sm:$0xff] }
 0x46b   :  { %v5190_v31 = vsel %vm3411_vm7, %v5183_v25, %v18353_v40  ;;  %v4417_v27 = vsel %vm3467_vm15, %v4410_v37, %v18356_v12  ;;  %v18359_v25 = vld [vmem:[#allocation178_spill] sm:$0xff]  ;;  %v5184_v0 = vsel %vm3403_vm6, %v18366_v61, %v8961_v20  ;;  %v18371_v20 = vld [vmem:[#allocation256_spill] sm:$0xff]  ;;  %v18372_v61 = vunpack.i.h.bf16 %v18319_v4 }
 0x46c   :  { %v18360_v6 = vpack.i.bf16 %v18358_v53, %v18359_v25  ;;  %v4423_v22 = vsel %vm17026_vm1, %v4416_v18, %v18362_v57  ;;  %v5197_v37 = vsel %vm3419_vm8, %v5190_v31, %v8917_v5  ;;  %v15278_v2 = vsel %vm3411_vm7, %v5187_v62, %v18363_v49  ;;  %v15292_v29 = vld [vmem:[%s16410_s3 + $0x28] sm:$0xff]   ;;  %v18368_v31 = vld [vmem:[#allocation63_spill] sm:$0xff]  ;;  %9279 = vrot.lane.b32.xlu0 %v18371_v20, %s9572_s21  ;;  %v15328_v20 = vpop.permute.xlu1 %9054 }
 0x46d   :  { %v18365_v53 = vunpack.i.l.bf16 %v18091_v46  ;;  %v17011_v18 = vunpack.i.h.bf16 %v14957_v7  ;;  %4754 = vmatpush1.bf16.msra.mxu1 %v15292_v29  ;;  %v18367_v5 = vld [vmem:[#allocation249_spill] sm:$0xff]  ;;  %v18369_v25 = vunpack.i.l.bf16 %v18368_v31  ;;  %v3806_v57 = vpack.c.bf16 %v3799_v19, %v3799_v19  ;;  %18378 = vst [vmem:[#allocation200_spill] sm:$0xff] %v15328_v20 }
 0x46e   :  { %9284 = vrot.lane.b32.xlu1 %v18360_v6, %s9567_s0  ;;  %4755 = vmatprep.subr.bf16.mxu1 %v18289_v8  ;;  %v5204_v49 = vsel %vm3427_vm9, %v5197_v37, %v8677_v43  ;;  %v18374_v19 = vld [vmem:[#allocation261_spill] sm:$0xff]  ;;  %v18376_v37 = vld [vmem:[#allocation290_spill] sm:$0xff]  ;;  %v18382_v43 = vld [vmem:[#allocation196_spill] sm:$0xff] }
 0x46f   :  { %v4412_v1 = vsel %vm3459_vm14, %v4405_v32, %v18365_v53  ;;  %v4424_v46 = vsel %vm17026_vm1, %v4417_v27, %v18369_v25  ;;  %v18370_v32 = vunpack.i.h.bf16 %v18345_v48  ;;  %v8962_v53 = vunpack.i.h.bf16 %v14924_v54  ;;  %v18373_v25 = vld [vmem:[#allocation50_spill] sm:$0xff]  ;;  %3965 = vmatmul.mubr.bf16.gmra.mrb[44].mxu1 %v3806_v57  ;;  %v18380_v62 = vld [vmem:[#allocation49_spill] sm:$0xff]  ;;  %v18384_v57 = vld [vmem:[#allocation315_spill] sm:$0xff] }
 0x470   :  { %v4430_v27 = vsel %vm3483_vm2, %v4423_v22, %v18372_v61  ;;  %v4724_v48 = vpack.c.bf16 %v17012_v51, %v17011_v18  ;;  %v18375_v54 = vunpack.i.l.bf16 %v17984_v63  ;;  %v18377_v22 = vunpack.i.l.bf16 %v18376_v37  ;;  %v18379_v61 = vld [vmem:[#allocation162_spill] sm:$0xff]  ;;  %v15372_v20 = vpop.permute.xlu1 %9064 }
 0x471   :  { %v4411_v6 = vsel %vm3459_vm14, %v4404_v58, %v18370_v32  ;;  %v15316_v58 = vpop.permute.xlu0 %9039  ;;  %v8921_v40 = vunpack.i.l.bf16 %v18379_v61  ;;  %v8941_v12 = vunpack.i.l.bf16 %v18380_v62  ;;  %v18383_v18 = vunpack.i.l.bf16 %v18382_v43  ;;  %18395 = vst [vmem:[#allocation15_spill] sm:$0xff] %v15372_v20 }
 0x472   :  { %9294 = vrot.lane.b32.xlu1 %v18373_v25, %s9579_s29  ;;  %v4419_v4 = vsel %vm3467_vm15, %v4412_v1, %v18375_v54  ;;  %v5191_v32 = vsel %vm3411_vm7, %v5184_v0, %v18377_v22  ;;  %v18381_v25 = vunpack.i.h.bf16 %v18355_v38  ;;  %v15341_v1 = vld [vmem:[%s16410_s3 + $0x30] sm:$0xff]   ;;  %7292 = vmatprep.mubr.msk.bf16.mxu1 %vm17032_vm5, %v4724_v48  ;;  %v18385_v38 = vunpack.i.h.bf16 %v18295_v33  ;;  %v18388_v48 = vld [vmem:[#allocation16_spill] sm:$0xff]  ;;  %v18390_v54 = vld [vmem:[#allocation29_spill] sm:$0xff] }
 0x473   :  { %v4431_v63 = vsel %vm3483_vm2, %v4424_v46, %v18383_v18  ;;  %4756 = vmatpush1.bf16.msra.mxu1 %v15341_v1  ;;  %v18386_v22 = vunpack.i.h.bf16 %v18332_v36  ;;  %v18387_v46 = vld [vmem:[#allocation159_spill] sm:$0xff]  ;;  %v18389_v51 = vunpack.i.l.bf16 %v18388_v48  ;;  %v5185_v33 = vsel %vm3403_vm6, %v18390_v54, %v8962_v53  ;;  %v18391_v36 = vld [vmem:[#allocation93_spill] sm:$0xff] }
 0x474   :  { %v4418_v14 = vsel %vm3467_vm15, %v4411_v6, %v18381_v25  ;;  %v5211_v6 = vsel %vm3435_vm10, %v5204_v49, %v18385_v38  ;;  %4757 = vmatprep.subr.bf16.mxu1 %v18289_v8  ;;  %9289 = vrot.lane.b32.xlu0 %v18387_v46, %s9577_s27  ;;  %v5198_v49 = vsel %vm3419_vm8, %v5191_v32, %v8921_v40  ;;  %v18394_v25 = vunpack.i.l.bf16 %v18393_v9 }
 0x475   :  { %v4437_v18 = vsel %vm3491_vm3, %v4430_v27, %v18386_v22  ;;  %v4426_v0 = vsel %vm17026_vm1, %v4419_v4, %v18389_v51  ;;  %v15363_v38 = vpop.permute.xlu0 %9049  ;;  %v18392_v27 = vld [vmem:[#allocation77_spill] sm:$0xff]  ;;  %v18396_v51 = vunpack.i.h.bf16 %v18368_v31  ;;  %v18398_v32 = vunpack.i.h.bf16 %v18300_v60 }
 0x476   :  { %9304 = vrot.lane.b32.xlu1 %v18391_v36, %s9575_s25  ;;  %v4438_v10 = vsel %vm3491_vm3, %v4431_v63, %v18394_v25  ;;  %v5200_v36 = vsel %vm3419_vm8, %v15239_v24, %v8941_v12  ;;  %v18399_v46 = vunpack.i.h.bf16 %v18342_v56  ;;  %v15389_v63 = vld [vmem:[%s16410_s3 + $0x38] sm:$0xff]   ;;  %v18401_v60 = vunpack.i.h.bf16 %v18376_v37  ;;  %v18413_v4 = vld [vmem:[#allocation145_spill] sm:$0xff] }
 0x477   :  { %v4425_v53 = vsel %vm17026_vm1, %v4418_v14, %v18396_v51  ;;  %v5218_v54 = vsel %vm3443_vm11, %v5211_v6, %v18398_v32  ;;  %18400 = vst [vmem:[#allocation55_spill] sm:$0xff] %v15389_v63  ;;  %4758 = vmatpush1.bf16.msra.mxu1 %v15389_v63  ;;  %v18402_v6 = vld [vmem:[#allocation124_spill] sm:$0xff]  ;;  %v18404_v56 = vld [vmem:[#allocation167_spill] sm:$0xff]  ;;  %v8922_v51 = vunpack.i.h.bf16 %v18379_v61  ;;  %v18407_v32 = vld [vmem:[#allocation198_spill] sm:$0xff]  ;;  %v18414_v20 = vunpack.i.l.bf16 %v18413_v4 }
 0x478   :  { %v4444_v22 = vsel %vm17028_vm13, %v4437_v18, %v18399_v46  ;;  %v5192_v14 = vsel %vm3411_vm7, %v5185_v33, %v18401_v60  ;;  %v18403_v25 = vunpack.i.l.bf16 %v18402_v6  ;;  %4759 = vmatprep.subr.bf16.mxu1 %v18289_v8  ;;  %9299 = vrot.lane.b32.xlu0 %v18404_v56, %s9578_s28  ;;  %v18405_v12 = vld [vmem:[#allocation223_spill] sm:$0xff]  ;;  %v18408_v31 = vunpack.i.l.bf16 %v18407_v32  ;;  %v18409_v60 = vld [vmem:[#allocation154_spill] sm:$0xff] }
 0x479   :  { %v18406_v18 = vunpack.i.l.bf16 %v18405_v12  ;;  %v15409_v33 = vpop.permute.xlu0 %9059  ;;  %v18411_v56 = vunpack.i.h.bf16 %v18388_v48 }
 0x47a   :  { %v5205_v24 = vsel %vm3427_vm9, %v5198_v49, %v18403_v25  ;;  %v4445_v37 = vsel %vm17028_vm13, %v4438_v10, %v18408_v31  ;;  %9314 = vrot.lane.b32.xlu1 %v18409_v60, %s9573_s22  ;;  %v18410_v49 = vunpack.i.h.bf16 %v18382_v43  ;;  %v5207_v10 = vsel %vm3427_vm9, %v5200_v36, %v18414_v20  ;;  %v15427_v60 = vpop.permute.xlu1 %9074  ;;  %v18417_v43 = vld [vmem:[#allocation131_spill] sm:$0xff] }
 0x47b   :  { %v4433_v46 = vsel %vm3483_vm2, %v4426_v0, %v18406_v18  ;;  %v4427_v0 = vsel %vm17026_vm1, %v14753_v42, %v18411_v56  ;;  %v18412_v18 = vld [vmem:[#allocation236_spill] sm:$0xff]  ;;  %v18415_v31 = vunpack.i.h.bf16 %v18338_v50  ;;  %18416 = vst [vmem:[#allocation99_spill] sm:$0xff] %v15427_v60  ;;  %v18418_v55 = vunpack.i.l.bf16 %v18417_v43  ;;  %v18420_v56 = vld [vmem:[#allocation194_spill] sm:$0xff] }
 0x47c   :  { %v4432_v25 = vsel %vm3483_vm2, %v4425_v53, %v18410_v49  ;;  %v8806_v61 = vunpack.i.l.bf16 %v18412_v18  ;;  %v18419_v53 = vunpack.i.h.bf16 %v18323_v45  ;;  %v5199_v49 = vsel %vm3419_vm8, %v5192_v14, %v8922_v51  ;;  %v15443_v50 = vld [vmem:[%s16410_s3 + $0x40] sm:$0xff]   ;;  %v18425_v45 = vld [vmem:[#allocation191_spill] sm:$0xff] }
 0x47d   :  { %v4451_v13 = vsel %vm3507_vm4, %v4444_v22, %v18415_v31  ;;  %v4428_v48 = vsel %vm17026_vm1, %v14761_v47, %v18418_v55  ;;  %v18421_v16 = vunpack.i.l.bf16 %v18420_v56  ;;  %18422 = vst [vmem:[#allocation34_spill] sm:$0xff] %v15443_v50  ;;  %4760 = vmatpush1.bf16.msra.mxu1 %v15443_v50  ;;  %v18423_v22 = vld [vmem:[#allocation85_spill] sm:$0xff]  ;;  %v18432_v50 = vunpack.i.h.bf16 %v18405_v12 }
 0x47e   :  { %v5225_v42 = vsel %vm3451_vm12, %v5218_v54, %v18419_v53  ;;  %v18424_v36 = vunpack.i.l.bf16 %v18423_v22  ;;  %v18426_v54 = vld [vmem:[#allocation303_spill] sm:$0xff]  ;;  %4761 = vmatprep.subr.bf16.mxu1 %v18289_v8  ;;  %v18431_v53 = vunpack.i.h.bf16 %v18393_v9  ;;  %v18436_v9 = vld [vmem:[#allocation272_spill] sm:$0xff] }
 0x47f   :  { %v5212_v20 = vsel %vm3435_vm10, %v5205_v24, %v18421_v16  ;;  %v18427_v31 = vunpack.i.l.bf16 %v18426_v54  ;;  %v18428_v16 = vld [vmem:[#allocation141_spill] sm:$0xff]  ;;  %9324 = vrot.lane.b32.xlu1 %v18436_v9, %s9574_s24  ;;  %v18445_v9 = vld [vmem:[#allocation246_spill] sm:$0xff] }
 0x480   :  { %v4440_v47 = vsel %vm3491_vm3, %v4433_v46, %v18424_v36  ;;  %v18429_v24 = vld [vmem:[#allocation149_spill] sm:$0xff]  ;;  %v4439_v60 = vsel %vm3491_vm3, %v4432_v25, %v18431_v53  ;;  %v4434_v46 = vsel %vm3483_vm2, %v4427_v0, %v18432_v50  ;;  %v18433_v36 = vld [vmem:[#allocation206_spill] sm:$0xff]  ;;  %v18437_v25 = vld [vmem:[#allocation271_spill] sm:$0xff]  ;;  %v18446_v63 = vunpack.i.l.bf16 %v18445_v9 }
 0x481   :  { %v4452_v14 = vsel %vm3507_vm4, %v4445_v37, %v18427_v31  ;;  %v18430_v51 = vpack.i.bf16 %v18428_v16, %v18429_v24  ;;  %v18434_v55 = vunpack.i.l.bf16 %v18433_v36  ;;  %v8997_v37 = vunpack.i.h.bf16 %v15122_v59  ;;  %v15471_v16 = vpop.permute.xlu0 %9069  ;;  %v18439_v0 = vld [vmem:[#allocation112_spill] sm:$0xff] }
 0x482   :  { %v18435_v31 = vunpack.i.l.bf16 %v15122_v59  ;;  %v18438_v24 = vunpack.i.l.bf16 %v18437_v25  ;;  %v18440_v50 = vunpack.i.l.bf16 %v18439_v0  ;;  %v4447_v11 = vsel %vm17028_vm13, %v4440_v47, %v18446_v63  ;;  %v18452_v47 = vld [vmem:[#allocation146_spill] sm:$0xff] }
 0x483   :  { %9309 = vrot.lane.b32.xlu0 %v18430_v51, %s9570_s19  ;;  %v5214_v3 = vsel %vm3435_vm10, %v5207_v10, %v18434_v55  ;;  %v18441_v10 = vunpack.i.h.bf16 %v18402_v6  ;;  %v18442_v55 = vld [vmem:[#allocation14_spill] sm:$0xff]  ;;  %v18449_v6 = vunpack.i.h.bf16 %v18407_v32 }
 0x484   :  { %v4717_v40 = vsel %vm3792_vm0, %v4452_v14, %v18435_v31  ;;  %v4435_v12 = vsel %vm3483_vm2, %v4428_v48, %v18438_v24  ;;  %v15481_v51 = vsel %vm3459_vm14, %v5225_v42, %v18440_v50  ;;  %v18443_v14 = vunpack.i.l.bf16 %v18442_v55  ;;  %v15489_v31 = vpop.permute.xlu1 %9084  ;;  %v18448_v50 = vld [vmem:[#allocation98_spill] sm:$0xff] }
 0x485   :  { %v5206_v59 = vsel %vm3427_vm9, %v5199_v49, %v18441_v10  ;;  %18444 = vst [vmem:[#allocation69_spill] sm:$0xff] %v15489_v31  ;;  %v18447_v48 = vunpack.i.h.bf16 %v14957_v7  ;;  %v8966_v42 = vunpack.i.l.bf16 %v14979_v30  ;;  %4762 = vmatpush1.bf16.msra.mxu1 %v18448_v50  ;;  %v4446_v49 = vsel %vm17028_vm13, %v4439_v60, %v18449_v6 }
 0x486   :  { %v5219_v53 = vsel %vm3443_vm11, %v5212_v20, %v18443_v14  ;;  %v18450_v20 = vunpack.i.h.bf16 %v18423_v22  ;;  %v15507_v63 = vsel %vm3443_vm11, %v5214_v3, %v8806_v61  ;;  %5576 = vmatprep.subr.bf16.mxu1 %v18289_v8  ;;  %v18454_v60 = vunpack.i.h.bf16 %v18420_v56  ;;  %v9080_v61 = vpop.permute.xlu0 %9079 }
 0x487   :  { %v4716_v24 = vsel %vm3792_vm0, %v4451_v13, %v18447_v48  ;;  %v18451_v13 = vld [vmem:[#allocation165_spill] sm:$0xff]  ;;  %v18453_v48 = vunpack.i.l.bf16 %v18452_v47  ;;  %v9041_v56 = vunpack.i.l.bf16 %v15316_v58  ;;  %v9082_v31 = vunpack.i.h.bf16 %v9080_v61 }
 0x488   :  { %v4441_v10 = vsel %vm3491_vm3, %v4434_v46, %v18450_v20  ;;  %v4723_v7 = vpack.c.bf16 %v4717_v40, %v4716_v24  ;;  %9319 = vrot.lane.b32.xlu0 %v18451_v13, %s9576_s26  ;;  %v15518_v22 = vsel %vm3435_vm10, %v5206_v59, %v18454_v60  ;;  %v18455_v46 = vld [vmem:[#allocation173_spill] sm:$0xff]  ;;  %v4726_v40 = vpack.c.bf16 %v8966_v42, %v8997_v37  ;;  %v18457_v24 = vld [vmem:[#allocation276_spill] sm:$0xff]  ;;  %v18458_v20 = vld [vmem:[#allocation279_spill] sm:$0xff]  ;;  %v15532_v59 = vpop.permute.xlu1 %9094 }
 0x489   :  { %v4442_v32 = vsel %vm3491_vm3, %v4435_v12, %v18453_v48  ;;  %v18456_v6 = vunpack.i.l.bf16 %v18455_v46  ;;  %9334 = vrot.lane.b32.xlu1 %v18457_v24, %s9568_s17  ;;  %v18459_v13 = vunpack.i.l.bf16 %v18458_v20  ;;  %v9042_v12 = vunpack.i.h.bf16 %v15316_v58  ;;  %18460 = vst [vmem:[#allocation67_spill] sm:$0xff] %v15532_v59  ;;  %v18463_v58 = vld [vmem:[#allocation275_spill] sm:$0xff]  ;;  %v18470_v59 = vld [vmem:[#allocation52_spill] sm:$0xff] }
 0x48a   :  { %4776 = vmatmul.mubr.bf16.vlgmr.msra.gmra.mrb[48].mxu1 %v4723_v7  ;;  %v18461_v48 = vunpack.i.h.bf16 %v18426_v54  ;;  %v18462_v60 = vunpack.i.h.bf16 %v18445_v9  ;;  %v9052_v24 = vunpack.i.h.bf16 %v15363_v38  ;;  %v18464_v7 = vunpack.i.l.bf16 %v18463_v58 }
 0x48b   :  { %v15523_v3 = vsel %vm3451_vm12, %v5219_v53, %v18456_v6  ;;  %v4454_v14 = vsel %vm3507_vm4, %v4447_v11, %v18459_v13  ;;  %v9051_v11 = vunpack.i.l.bf16 %v15363_v38  ;;  %7293 = vmatprep.mubr.msk.bf16.mxu1 %vm17032_vm5, %v4726_v40  ;;  %5577 = vmatpush1.bf16.msra.mxu1 %v15055_v26  ;;  %v18465_v54 = vunpack.i.h.bf16 %v18417_v43  ;;  %v18466_v38 = vld [vmem:[#allocation291_spill] sm:$0xff] }
 0x48c   :  { %v4453_v53 = vsel %vm3507_vm4, %v4446_v49, %v18461_v48  ;;  %v15540_v6 = vsel %vm17028_vm13, %v4441_v10, %v18462_v60  ;;  %v4449_v13 = vsel %vm17028_vm13, %v4442_v32, %v18464_v7  ;;  %v9062_v10 = vunpack.i.h.bf16 %v15409_v33  ;;  %5578 = vmatprep.subr.bf16.mxu1 %v18289_v8  ;;  %9329 = vrot.lane.b32.xlu0 %v18466_v38, %s9581_s12  ;;  %v18467_v7 = vld [vmem:[#allocation140_spill] sm:$0xff] }
 0x48d   :  { %v4429_v9 = vsel %vm17026_vm1, %v15136_v41, %v18465_v54  ;;  %v9061_v48 = vunpack.i.l.bf16 %v15409_v33  ;;  %v4719_v40 = vsel %vm3792_vm0, %v4454_v14, %v8966_v42  ;;  %v8976_v32 = vunpack.i.l.bf16 %v15034_v39  ;;  %v9090_v41 = vpop.permute.xlu0 %9089  ;;  %6095 = vrot.lane.b32.xlu1 %v18467_v7, %s9580_s30  ;;  %v18468_v33 = vld [vmem:[#allocation95_spill] sm:$0xff]  ;;  %v15570_v14 = vpop.permute.xlu1 %9104 }
 0x48e   :  { %v9072_v43 = vunpack.i.h.bf16 %v15471_v16  ;;  %v9071_v60 = vunpack.i.l.bf16 %v15471_v16  ;;  %v4718_v54 = vsel %vm3792_vm0, %v4453_v53, %v8997_v37  ;;  %vm18469_vm1 = vcmask 48128  }
 0x48f   :  { %v6259_v49 = vsel %vm18469_vm1, %v18468_v33, %v9042_v12  ;;  %vm18471_vm13 = vmmov %vm18469_vm1  ;;  %v9081_v42 = vunpack.i.l.bf16 %v9080_v61  ;;  %5579 = vmatpush1.bf16.msra.mxu1 %v15109_v17  ;;  %v9092_v50 = vunpack.i.h.bf16 %v9090_v41  ;;  %v9091_v7 = vunpack.i.l.bf16 %v9090_v41  ;;  %v18473_v61 = vld [vmem:[#allocation138_spill] sm:$0xff]  ;;  %v18475_v41 = vld [vmem:[#allocation47_spill] sm:$0xff] }
 0x490   :  { %v6258_v38 = vsel %vm18471_vm13, %v18470_v59, %v9041_v56  ;;  %v6266_v16 = vsel %vm3403_vm6, %v6259_v49, %v9052_v24  ;;  %v8926_v37 = vunpack.i.l.bf16 %v18472_v35  ;;  %v4725_v33 = vpack.c.bf16 %v4719_v40, %v4718_v54  ;;  %5580 = vmatprep.subr.bf16.mxu1 %v18289_v8  ;;  %9339 = vrot.lane.b32.xlu0 %v18473_v61, %s9571_s20  ;;  %vm18488_vm13 = vmmov %vm18469_vm1 }
 0x491   :  { %v6265_v26 = vsel %vm3403_vm6, %v6258_v38, %v9051_v11  ;;  %v6273_v12 = vsel %vm3411_vm7, %v6266_v16, %v9062_v10  ;;  %v18474_v56 = vunpack.i.h.bf16 %v14979_v30  ;;  %v9100_v49 = vpop.permute.xlu0 %9099  ;;  %6116 = vrot.lane.b32.xlu1 %v18475_v41, %s9569_s18  ;;  %v9115_v16 = vpop.permute.xlu1 %9114  ;;  %v8977_v61 = vunpack.i.h.bf16 %v15034_v39 }
 0x492   :  { %v6272_v53 = vsel %vm3411_vm7, %v6265_v26, %v9061_v48  ;;  %v6280_v11 = vsel %vm3419_vm8, %v6273_v12, %v9072_v43  ;;  %v18476_v26 = vunpack.i.h.bf16 %v18437_v25  ;;  %4784 = vmatmul.mubr.bf16.gmra.mrb[52].mxu1 %v4725_v33  ;;  %v9102_v54 = vunpack.i.h.bf16 %v9100_v49 }
 0x493   :  { %v4728_v59 = vpack.c.bf16 %v8976_v32, %v18474_v56  ;;  %v6279_v24 = vsel %vm3419_vm8, %v6272_v53, %v9071_v60  ;;  %v6287_v40 = vsel %vm3427_vm9, %v6280_v11, %v9082_v31  ;;  %v9101_v38 = vunpack.i.l.bf16 %v9100_v49  ;;  %5581 = vmatpush1.bf16.msra.mxu1 %v15151_v34 }
 0x494   :  { %v4436_v10 = vsel %vm3483_vm2, %v4429_v9, %v18476_v26  ;;  %v6286_v48 = vsel %vm3427_vm9, %v6279_v24, %v9081_v42  ;;  %v6294_v43 = vsel %vm3435_vm10, %v6287_v40, %v9092_v50  ;;  %v9117_v53 = vunpack.i.h.bf16 %v9115_v16  ;;  %5582 = vmatprep.subr.bf16.mxu1 %v18289_v8 }
 0x495   :  { %v6293_v60 = vsel %vm3435_vm10, %v6286_v48, %v9091_v7  ;;  %7294 = vmatprep.mubr.msk.bf16.mxu1 %vm17032_vm5, %v4728_v59  ;;  %v9116_v25 = vunpack.i.l.bf16 %v9115_v16  ;;  %v18477_v9 = vunpack.i.h.bf16 %v18442_v55  ;;  %v6301_v12 = vsel %vm3443_vm11, %v6294_v43, %v9102_v54  ;;  %v18478_v7 = vld [vmem:[#allocation294_spill] sm:$0xff]  ;;  %v15609_v55 = vpop.permute.xlu0 %9109  ;;  %v15622_v26 = vpop.permute.xlu1 %9124 }
 0x496   :  { %v6300_v31 = vsel %vm3443_vm11, %v6293_v60, %v9101_v38  ;;  %v18479_v33 = vunpack.i.l.bf16 %v18478_v7  ;;  %v6308_v56 = vsel %vm3451_vm12, %v6301_v12, %v9117_v53  ;;  %v18481_v11 = vunpack.i.h.bf16 %v18439_v0 }
 0x497   :  { %v5220_v42 = vsel %vm3443_vm11, %v15518_v22, %v18477_v9  ;;  %v6307_v59 = vsel %vm3451_vm12, %v6300_v31, %v9116_v25  ;;  %v18480_v22 = vld [vmem:[#allocation38_spill] sm:$0xff]  ;;  %v18483_v48 = vunpack.i.h.bf16 %v18452_v47  ;;  %v18484_v54 = vunpack.i.h.bf16 %v18425_v45  ;;  %5583 = vmatpush1.bf16.msra.mxu1 %v15197_v44  ;;  %v18495_v31 = vld [vmem:[#allocation116_spill] sm:$0xff] }
 0x498   :  { %v4456_v50 = vsel %vm3507_vm4, %v4449_v13, %v18479_v33  ;;  %6158 = vrot.lane.b32.xlu1 %v18480_v22, %s9567_s0  ;;  %v5233_v49 = vsel %vm3459_vm14, %v15523_v3, %v18481_v11  ;;  %v9343_v41 = vpack.i.bf16 %v6308_v56, %v6307_v59  ;;  %v18482_v13 = vunpack.i.h.bf16 %v18458_v20  ;;  %v18487_v3 = vld [vmem:[#allocation86_spill] sm:$0xff]  ;;  %5584 = vmatprep.subr.bf16.mxu1 %v18289_v8 }
 0x499   :  { %v4721_v24 = vsel %vm3792_vm0, %v4456_v50, %v8976_v32  ;;  %v4443_v40 = vsel %vm3491_vm3, %v4436_v10, %v18483_v48  ;;  %v18485_v32 = vld [vmem:[#allocation103_spill] sm:$0xff]  ;;  %v18486_v38 = vunpack.i.l.bf16 %v18425_v45  ;;  %v8927_v20 = vunpack.i.h.bf16 %v18472_v35  ;;  %v18496_v50 = vld [vmem:[#allocation97_spill] sm:$0xff]  ;;  %v15664_v56 = vpop.permute.xlu1 %9134  ;;  %v18497_v59 = vld [vmem:[#allocation10_spill] sm:$0xff] }
 0x49a   :  { %v4455_v39 = vsel %vm3507_vm4, %v15540_v6, %v18482_v13  ;;  %v5182_v0 = vsel %vm18469_vm1, %v18485_v32, %v18484_v54  ;;  %v18489_v6 = vunpack.i.h.bf16 %v14979_v30  ;;  %v5239_v10 = vsel %vm3467_vm15, %v15481_v51, %v8926_v37  ;;  %9344 = vrot.lane.b32.xlu0 %v9343_v41, %s9583_s23  ;;  %v15653_v51 = vpop.permute.xlu0 %9119  ;;  %v18498_v11 = vld [vmem:[#allocation150_spill] sm:$0xff]  ;;  %v18499_v41 = vld [vmem:[#allocation207_spill] sm:$0xff] }
 0x49b   :  { %v5181_v16 = vsel %vm18488_vm13, %v18487_v3, %v18486_v38  ;;  %v8942_v60 = vunpack.i.h.bf16 %v18380_v62  ;;  %v18490_v43 = vunpack.i.l.bf16 %v18361_v52  ;;  %v18491_v35 = vunpack.i.h.bf16 %v18455_v46  ;;  %v18492_v62 = vld [vmem:[#allocation225_spill] sm:$0xff]  ;;  %5585 = vmatpush1.bf16.msra.mxu1 %v15245_v23 }
 0x49c   :  { %v4720_v47 = vsel %vm3792_vm0, %v4455_v39, %v18489_v6  ;;  %v4730_v25 = vpack.c.bf16 %v8977_v61, %v8977_v61  ;;  %v5240_v9 = vsel %vm3467_vm15, %v5233_v49, %v8927_v20  ;;  %6200 = vrot.lane.b32.xlu1 %v18492_v62, %s9579_s29  ;;  %v18493_v37 = vunpack.i.h.bf16 %v18463_v58  ;;  %5586 = vmatprep.subr.bf16.mxu1 %v18289_v8  ;;  %v18506_v20 = vld [vmem:[#allocation144_spill] sm:$0xff] }
 0x49d   :  { %v5228_v45 = vsel %vm3451_vm12, %v15507_v63, %v18490_v43  ;;  %v4727_v53 = vpack.c.bf16 %v4721_v24, %v4720_v47  ;;  %v5227_v30 = vsel %vm3451_vm12, %v5220_v42, %v18491_v35  ;;  %vm18494_vm1 = vcmask 687104  }
 0x49e   :  { %v4450_v63 = vsel %vm18494_vm1, %v4443_v40, %v18493_v37  ;;  %v8827_v12 = vunpack.i.h.bf16 %v18495_v31  ;;  %v8826_v33 = vunpack.i.l.bf16 %v18495_v31  ;;  %v8837_v46 = vunpack.i.h.bf16 %v18496_v50  ;;  %6137 = vrot.lane.b32.xlu0 %v18506_v20, %s9572_s21  ;;  %v18510_v37 = vld [vmem:[#allocation62_spill] sm:$0xff]  ;;  %v18512_v31 = vld [vmem:[#allocation136_spill] sm:$0xff] }
 0x49f   :  { %v8836_v42 = vunpack.i.l.bf16 %v18496_v50  ;;  %4792 = vmatmul.mubr.bf16.gmra.mrb[56].mxu1 %v4727_v53  ;;  %v8846_v24 = vunpack.i.l.bf16 %v18497_v59  ;;  %v8932_v49 = vunpack.i.h.bf16 %v18498_v11  ;;  %v18500_v13 = vunpack.i.l.bf16 %v18499_v41 }
 0x4a0   :  { %vm18501_vm13 = vcmask 539648   ;;  %v18502_v39 = vunpack.i.h.bf16 %v18367_v5  ;;  %7295 = vmatprep.mubr.msk.bf16.mxu1 %vm17032_vm5, %v4730_v25  ;;  %v8931_v40 = vunpack.i.l.bf16 %v18498_v11  ;;  %v18503_v54 = vunpack.i.l.bf16 %v18367_v5  ;;  %5587 = vmatpush1.bf16.msra.mxu1 %v15292_v29 }
 0x4a1   :  { %v5246_v58 = vsel %vm18501_vm13, %v5239_v10, %v18500_v13  ;;  %v18504_v38 = vunpack.i.h.bf16 %v18499_v41  ;;  %vm18505_vm1 = vmmov %vm18501_vm13  ;;  %v18507_v6 = vunpack.i.h.bf16 %v18478_v7  ;;  %v5201_v10 = vsel %vm3419_vm8, %v15278_v2, %v8942_v60  ;;  %5588 = vmatprep.subr.bf16.mxu1 %v18289_v8 }
 0x4a2   :  { %v5235_v48 = vsel %vm3459_vm14, %v5228_v45, %v18502_v39  ;;  %v5234_v32 = vsel %vm3459_vm14, %v5227_v30, %v18503_v54  ;;  %v8982_v5 = vunpack.i.h.bf16 %v15081_v15  ;;  %v8981_v43 = vunpack.i.l.bf16 %v15081_v15  ;;  %v15693_v45 = vpop.permute.xlu0 %9129  ;;  %vm18516_vm13 = vmmov %vm18505_vm1  ;;  %v18547_v15 = vld [vmem:[#allocation46_spill] sm:$0xff] }
 0x4a3   :  { %v5247_v3 = vsel %vm18505_vm1, %v5240_v9, %v18504_v38  ;;  %v4457_v47 = vsel %vm3507_vm4, %v4450_v63, %v18507_v6  ;;  %v18508_v53 = vrot.slane %v18480_v22, 4  ;;  %v5188_v30 = vsel %vm3403_vm6, %v5181_v16, %v8826_v33  ;;  %v15705_v9 = vpop.permute.xlu1 %9144 }
 0x4a4   :  { %v4722_v35 = vsel %vm3792_vm0, %v4457_v47, %v8977_v61  ;;  %v5189_v7 = vsel %vm3403_vm6, %v5182_v0, %v8827_v12  ;;  %v8847_v25 = vunpack.i.h.bf16 %v18497_v59  ;;  %v18509_v2 = vunpack.i.h.bf16 %v18374_v19  ;;  %5589 = vmatpush1.bf16.msra.mxu1 %v15341_v1 }
 0x4a5   :  { %6245 = vrot.lane.b32.xlu1 %v18508_v53, %s9575_s25  ;;  %v5195_v62 = vsel %vm3411_vm7, %v5188_v30, %v8836_v42  ;;  %v8856_v63 = vunpack.i.l.bf16 %v18510_v37  ;;  %v18511_v22 = vunpack.i.l.bf16 %v18374_v19  ;;  %v5254_v16 = vsel %vm3483_vm2, %v5247_v3, %v8932_v49  ;;  %v18514_v42 = vld [vmem:[#allocation30_spill] sm:$0xff]  ;;  %5590 = vmatprep.subr.bf16.mxu1 %v18289_v8 }
 0x4a6   :  { %v5242_v60 = vsel %vm3467_vm15, %v5235_v48, %v18509_v2  ;;  %v5253_v0 = vsel %vm3483_vm2, %v5246_v58, %v8931_v40  ;;  %v8936_v12 = vunpack.i.l.bf16 %v18512_v31  ;;  %v18513_v33 = vunpack.i.h.bf16 %v18413_v4  ;;  %6179 = vrot.lane.b32.xlu0 %v18514_v42, %s9577_s27  ;;  %v15731_v13 = vpop.permute.xlu0 %9139  ;;  %v18517_v58 = vld [vmem:[#allocation157_spill] sm:$0xff]  ;;  %v18519_v40 = vld [vmem:[#allocation74_spill] sm:$0xff] }
 0x4a7   :  { %v5241_v61 = vsel %vm3467_vm15, %v5234_v32, %v18511_v22  ;;  %v4729_v59 = vpack.c.bf16 %v4722_v35, %v4722_v35  ;;  %v5196_v19 = vsel %vm3411_vm7, %v5189_v7, %v8837_v46  ;;  %v5202_v11 = vsel %vm3419_vm8, %v5195_v62, %v8846_v24  ;;  %v15743_v38 = vpop.permute.xlu1 %9154  ;;  %v18521_v3 = vld [vmem:[#allocation166_spill] sm:$0xff] }
 0x4a8   :  { %v5208_v50 = vsel %vm3427_vm9, %v5201_v10, %v18513_v33  ;;  %v18515_v49 = vunpack.i.h.bf16 %v18384_v57  ;;  %v5557_v4 = vpack.c.bf16 %v8982_v5, %v8981_v43  ;;  %v5203_v39 = vsel %vm3419_vm8, %v5196_v19, %v8847_v25 }
 0x4a9   :  { %5696 = vrot.lane.b32.xlu1 %v18517_v58, %s9569_s18  ;;  %v8857_v46 = vunpack.i.h.bf16 %v18510_v37  ;;  %v18518_v24 = vunpack.i.l.bf16 %v18384_v57  ;;  %v18520_v54 = vunpack.i.h.bf16 %v18519_v40  ;;  %4800 = vmatmul.mubr.bf16.gmra.mrb[60].mxu1 %v4729_v59  ;;  %v8866_v20 = vunpack.i.l.bf16 %v18521_v3  ;;  %v18531_v59 = vld [vmem:[#allocation115_spill] sm:$0xff]  ;;  %v18535_v58 = vld [vmem:[#allocation40_spill] sm:$0xff] }
 0x4aa   :  { %v5249_v41 = vsel %vm18516_vm13, %v5242_v60, %v18515_v49  ;;  %v8937_v6 = vunpack.i.h.bf16 %v18512_v31  ;;  %v18522_v47 = vunpack.i.l.bf16 %v18519_v40  ;;  %v18523_v53 = vunpack.i.h.bf16 %v18433_v36  ;;  %7296 = vmatprep.mubr.msk.bf16.mxu1 %vm17032_vm5, %v5557_v4  ;;  %v18526_v36 = vld [vmem:[#allocation20_spill] sm:$0xff]  ;;  %v15770_v22 = vpop.permute.xlu0 %9149  ;;  %v18530_v31 = vld [vmem:[#allocation273_spill] sm:$0xff]  ;;  %v18534_v4 = vld [vmem:[#allocation55_spill] sm:$0xff] }
 0x4ab   :  { %v5248_v48 = vsel %vm18505_vm1, %v5241_v61, %v18518_v24  ;;  %v5261_v32 = vsel %vm3491_vm3, %v5254_v16, %v18520_v54  ;;  %v8807_v35 = vunpack.i.h.bf16 %v18412_v18  ;;  %v5209_v30 = vsel %vm3427_vm9, %v5202_v11, %v8856_v63  ;;  %6221 = vrot.lane.b32.xlu0 %v18526_v36, %s9578_s28  ;;  %v18529_v61 = vld [vmem:[#allocation125_spill] sm:$0xff]  ;;  %v15780_v33 = vpop.permute.xlu1 %9164  ;;  %v18533_v11 = vld [vmem:[#allocation72_spill] sm:$0xff]  ;;  %5591 = vmatpush1.bf16.msra.mxu1 %v18534_v4 }
 0x4ac   :  { %v5260_v10 = vsel %vm3491_vm3, %v5253_v0, %v18522_v47  ;;  %v5215_v57 = vsel %vm3435_vm10, %v5208_v50, %v18523_v53  ;;  %vm18524_vm13 = vcmask 687104   ;;  %v18525_v25 = vunpack.i.h.bf16 %v18392_v27  ;;  %5592 = vmatprep.subr.bf16.mxu1 %v18289_v8 }
 0x4ad   :  { %v5267_v7 = vsel %vm18524_vm13, %v5260_v10, %v8936_v12  ;;  %v9007_v60 = vunpack.i.h.bf16 %v15069_v28  ;;  %v18527_v62 = vunpack.i.l.bf16 %v18392_v27  ;;  %vm18528_vm1 = vmmov %vm18524_vm13  ;;  %v9011_v63 = vunpack.i.l.bf16 %v15173_v21  ;;  %5738 = vrot.lane.b32.xlu1 %v18529_v61, %s9567_s0  ;;  %v18545_v61 = vld [vmem:[#allocation197_spill] sm:$0xff] }
 0x4ae   :  { %v5256_v2 = vsel %vm3483_vm2, %v5249_v41, %v18525_v25  ;;  %v5268_v18 = vsel %vm18528_vm1, %v5261_v32, %v8937_v6  ;;  %v15775_v16 = vsel %vm3427_vm9, %v5203_v39, %v8857_v46  ;;  %v9006_v0 = vunpack.i.l.bf16 %v15069_v28  ;;  %v18539_v32 = vld [vmem:[#allocation75_spill] sm:$0xff]  ;;  %vm18540_vm13 = vmmov %vm18528_vm1  ;;  %v18541_v6 = vld [vmem:[#allocation172_spill] sm:$0xff] }
 0x4af   :  { %v5255_v37 = vsel %vm3483_vm2, %v5248_v48, %v18527_v62  ;;  %v9021_v12 = vunpack.i.l.bf16 %v18530_v31  ;;  %v5222_v27 = vsel %vm3443_vm11, %v5215_v57, %v8807_v35  ;;  %v5216_v50 = vsel %vm3435_vm10, %v5209_v30, %v8866_v20  ;;  %5675 = vrot.lane.b32.xlu0 %v18539_v32, %s9580_s30  ;;  %v15808_v35 = vpop.permute.xlu0 %9159  ;;  %v18543_v30 = vld [vmem:[#allocation45_spill] sm:$0xff]  ;;  %s9586_s30 = smov 64  }
 0x4b0   :  { %v18532_v42 = vunpack.i.l.bf16 %v18531_v59  ;;  %v9032_v49 = vunpack.i.h.bf16 %v18533_v11  ;;  %v9031_v41 = vunpack.i.l.bf16 %v18533_v11  ;;  %v8867_v28 = vunpack.i.h.bf16 %v18521_v3 }
 0x4b1   :  { %v18536_v39 = vunpack.i.h.bf16 %v18535_v58  ;;  %v18537_v24 = vunpack.i.l.bf16 %v18535_v58  ;;  %v18538_v40 = vunpack.i.h.bf16 %v18531_v59  ;;  %v9016_v47 = vunpack.i.l.bf16 %v18541_v6  ;;  %5780 = vrot.lane.b32.xlu1 %v18543_v30, %s9579_s29  ;;  %v18553_v30 = vld [vmem:[#allocation133_spill] sm:$0xff] }
 0x4b2   :  { %v5274_v19 = vsel %vm3507_vm4, %v5267_v7, %v18532_v42  ;;  %v5223_v10 = vsel %vm3443_vm11, %v5216_v50, %v9011_v63  ;;  %v18542_v53 = vunpack.i.h.bf16 %v18361_v52  ;;  %v9017_v25 = vunpack.i.h.bf16 %v18541_v6  ;;  %v18544_v63 = vld [vmem:[#allocation34_spill] sm:$0xff] }
 0x4b3   :  { %v5263_v46 = vsel %vm3491_vm3, %v5256_v2, %v18536_v39  ;;  %v5262_v48 = vsel %vm3491_vm3, %v5255_v37, %v18537_v24  ;;  %v5275_v54 = vsel %vm3507_vm4, %v5268_v18, %v18538_v40  ;;  %v5230_v2 = vsel %vm3451_vm12, %v5223_v10, %v9021_v12  ;;  %5593 = vmatpush1.bf16.msra.mxu1 %v18544_v63  ;;  %v15837_v11 = vpop.permute.xlu0 %9169  ;;  %v18552_v10 = vld [vmem:[#allocation98_spill] sm:$0xff] }
 0x4b4   :  { %v5270_v20 = vsel %vm18540_vm13, %v5263_v46, %v9007_v60  ;;  %v5229_v57 = vsel %vm3451_vm12, %v5222_v27, %v18542_v53  ;;  %v5269_v7 = vsel %vm18528_vm1, %v5262_v48, %v9006_v0  ;;  %v9111_v36 = vunpack.i.l.bf16 %v15609_v55  ;;  %v15816_v60 = vpop.permute.xlu1 %9174  ;;  %v18546_v27 = vld [vmem:[#allocation292_spill] sm:$0xff]  ;;  %5594 = vmatprep.subr.bf16.mxu1 %v18289_v8  ;;  %5717 = vrot.lane.b32.xlu0 %v18547_v15, %s9572_s21  ;;  %v18550_v46 = vld [vmem:[#allocation189_spill] sm:$0xff] }
 0x4b5   :  { %v5549_v52 = vsel %vm3792_vm0, %v5274_v19, %v8981_v43  ;;  %v5550_v62 = vsel %vm3792_vm0, %v5275_v54, %v8982_v5  ;;  %v5236_v37 = vsel %vm3459_vm14, %v5229_v57, %v9031_v41  ;;  %v5237_v18 = vsel %vm3459_vm14, %v5230_v2, %v9032_v49  ;;  %v18548_v5 = vld [vmem:[#allocation65_spill] sm:$0xff]  ;;  %v18549_v49 = vld [vmem:[#allocation84_spill] sm:$0xff] }
 0x4b6   :  { %v9027_v0 = vunpack.i.h.bf16 %v18545_v61  ;;  %v9026_v12 = vunpack.i.l.bf16 %v18545_v61  ;;  %v9037_v50 = vunpack.i.h.bf16 %v18546_v27  ;;  %v9036_v59 = vunpack.i.l.bf16 %v18546_v27  ;;  %5822 = vrot.lane.b32.xlu1 %v18549_v49, %s9575_s25  ;;  %v18560_v49 = vld [vmem:[#allocation99_spill] sm:$0xff] }
 0x4b7   :  { %v9047_v43 = vunpack.i.h.bf16 %v18548_v5  ;;  %v9046_v42 = vunpack.i.l.bf16 %v18548_v5  ;;  %v9126_v19 = vunpack.i.l.bf16 %v15622_v26  ;;  %v5276_v41 = vsel %vm3507_vm4, %v5269_v7, %v9016_v47  ;;  %5595 = vmatpush1.bf16.msra.mxu1 %v18552_v10 }
 0x4b8   :  { %v5243_v58 = vsel %vm3467_vm15, %v5236_v37, %v9036_v59  ;;  %v5244_v39 = vsel %vm3467_vm15, %v5237_v18, %v9037_v50  ;;  %vm18551_vm13 = vcmask 48128   ;;  %v9136_v48 = vunpack.i.l.bf16 %v15664_v56  ;;  %v15847_v40 = vpop.permute.xlu1 %9184  ;;  %6365 = vmatprep.subr.bf16.mxu1 %v18289_v8  ;;  %5759 = vrot.lane.b32.xlu0 %v18553_v30, %s9577_s27  ;;  %v18556_v37 = vld [vmem:[#allocation232_spill] sm:$0xff]  ;;  %v18558_v59 = vld [vmem:[#allocation15_spill] sm:$0xff] }
 0x4b9   :  { %v5978_v24 = vsel %vm18551_vm13, %v18550_v46, %v9111_v36  ;;  %v5556_v54 = vpack.c.bf16 %v5550_v62, %v5549_v52  ;;  %v9012_v32 = vunpack.i.h.bf16 %v15173_v21  ;;  %v9146_v6 = vunpack.i.l.bf16 %v15705_v9  ;;  %v18557_v18 = vld [vmem:[#allocation200_spill] sm:$0xff]  ;;  %v18571_v21 = vld [vmem:[#allocation135_spill] sm:$0xff] }
 0x4ba   :  { %v5277_v47 = vsel %vm3507_vm4, %v5270_v20, %v9017_v25  ;;  %v5559_v53 = vpack.c.bf16 %v9027_v0, %v9026_v12  ;;  %v9156_v57 = vunpack.i.l.bf16 %v15743_v38  ;;  %v5551_v7 = vsel %vm3792_vm0, %v5276_v41, %v9026_v12  ;;  %v15863_v25 = vpop.permute.xlu0 %9179  ;;  %5864 = vrot.lane.b32.xlu1 %v18556_v37, %s9573_s22  ;;  %v18564_v37 = vld [vmem:[#allocation102_spill] sm:$0xff]  ;;  %s9584_s22 = smov 32  }
 0x4bb   :  { %v5552_v2 = vsel %vm3792_vm0, %v5277_v47, %v9027_v0  ;;  %vm18554_vm1 = vcmask 539648   ;;  %v5985_v62 = vsel %vm3403_vm6, %v5978_v24, %v9126_v19  ;;  %v9166_v20 = vunpack.i.l.bf16 %v15780_v33  ;;  %5609 = vmatmul.mubr.bf16.vlgmr.msra.gmra.mrb[64].mxu1 %v5556_v54  ;;  %v18559_v19 = vld [vmem:[#allocation205_spill] sm:$0xff] }
 0x4bc   :  { %v5250_v36 = vsel %vm18554_vm1, %v5243_v58, %v9046_v42  ;;  %vm18555_vm13 = vmmov %vm18554_vm1  ;;  %v9057_v61 = vunpack.i.h.bf16 %v18557_v18  ;;  %v9056_v27 = vunpack.i.l.bf16 %v18557_v18  ;;  %v5992_v12 = vsel %vm3411_vm7, %v5985_v62, %v9136_v48  ;;  %v15871_v50 = vpop.permute.xlu1 %9194  ;;  %7297 = vmatprep.mubr.msk.bf16.mxu1 %vm17032_vm5, %v5559_v53  ;;  %6366 = vmatpush1.bf16.msra.mxu1 %v18559_v19  ;;  %v18562_v48 = vld [vmem:[#allocation51_spill] sm:$0xff] }
 0x4bd   :  { %v5251_v52 = vsel %vm18555_vm13, %v5244_v39, %v9047_v43  ;;  %v9176_v0 = vunpack.i.l.bf16 %v15816_v60  ;;  %v9067_v15 = vunpack.i.h.bf16 %v18558_v59  ;;  %v9066_v5 = vunpack.i.l.bf16 %v18558_v59  ;;  %v18561_v39 = vld [vmem:[#allocation69_spill] sm:$0xff]  ;;  %6367 = vmatprep.subr.bf16.mxu1 %v18289_v8  ;;  %5801 = vrot.lane.b32.xlu0 %v18562_v48, %s9578_s28  ;;  %v18569_v48 = vld [vmem:[#allocation175_spill] sm:$0xff] }
 0x4be   :  { %v5999_v43 = vsel %vm3419_vm8, %v5992_v12, %v9146_v6  ;;  %v9186_v42 = vunpack.i.l.bf16 %v15847_v40  ;;  %v9077_v41 = vunpack.i.h.bf16 %v18560_v49  ;;  %v9076_v58 = vunpack.i.l.bf16 %v18560_v49  ;;  %v18563_v6 = vld [vmem:[#allocation67_spill] sm:$0xff]  ;;  %v15890_v62 = vpop.permute.xlu0 %9189  ;;  %5906 = vrot.lane.b32.xlu1 %v18564_v37, %s9574_s24  ;;  %s9585_s24 = smov 16  }
 0x4bf   :  { %v9087_v46 = vunpack.i.h.bf16 %v18561_v39  ;;  %v6006_v24 = vsel %vm3427_vm9, %v5999_v43, %v9156_v57  ;;  %v9086_v54 = vunpack.i.l.bf16 %v18561_v39  ;;  %v9097_v47 = vunpack.i.h.bf16 %v18563_v6 }
 0x4c0   :  { %v9096_v53 = vunpack.i.l.bf16 %v18563_v6  ;;  %v6013_v30 = vsel %vm3435_vm10, %v6006_v24, %v9166_v20  ;;  %v9022_v57 = vunpack.i.h.bf16 %v18530_v31  ;;  %v5257_v18 = vsel %vm3483_vm2, %v5250_v36, %v9056_v27  ;;  %v15898_v43 = vpop.permute.xlu1 %9204  ;;  %6368 = vmatpush1.bf16.msra.mxu1 %v15109_v17 }
 0x4c1   :  { %v5258_v12 = vsel %vm3483_vm2, %v5251_v52, %v9057_v61  ;;  %v6020_v59 = vsel %vm3443_vm11, %v6013_v30, %v9176_v0  ;;  %v5264_v19 = vsel %vm3491_vm3, %v5257_v18, %v9066_v5  ;;  %v5558_v39 = vpack.c.bf16 %v5552_v2, %v5551_v7  ;;  %6369 = vmatprep.subr.bf16.mxu1 %v18289_v8  ;;  %v18567_v61 = vld [vmem:[#allocation60_spill] sm:$0xff]  ;;  %v18568_v2 = vld [vmem:[#allocation222_spill] sm:$0xff] }
 0x4c2   :  { %v5265_v49 = vsel %vm3491_vm3, %v5258_v12, %v9067_v15  ;;  %v6027_v20 = vsel %vm3451_vm12, %v6020_v59, %v9186_v42  ;;  %vm18565_vm1 = vcmask 687104   ;;  %v9107_v36 = vunpack.i.h.bf16 %v15570_v14  ;;  %5843 = vrot.lane.b32.xlu0 %v18567_v61, %s9570_s19  ;;  %v15915_v7 = vpop.permute.xlu0 %9199  ;;  %5948 = vrot.lane.b32.xlu1 %v18568_v2, %s9568_s17 }
 0x4c3   :  { %v5271_v24 = vsel %vm18565_vm1, %v5264_v19, %v9076_v58  ;;  %vm18566_vm13 = vmmov %vm18565_vm1  ;;  %v9112_v52 = vunpack.i.h.bf16 %v15609_v55  ;;  %v5217_v27 = vsel %vm3435_vm10, %v15775_v16, %v8867_v28  ;;  %v5561_v17 = vpack.c.bf16 %v9097_v47, %v9096_v53  ;;  %5617 = vmatmul.mubr.bf16.gmra.mrb[68].mxu1 %v5558_v39 }
 0x4c4   :  { %v5272_v31 = vsel %vm18566_vm13, %v5265_v49, %v9077_v41  ;;  %v5278_v0 = vsel %vm3507_vm4, %v5271_v24, %v9086_v54  ;;  %v9106_v15 = vunpack.i.l.bf16 %v15570_v14  ;;  %v6034_v5 = vsel %vm3459_vm14, %v6027_v20, %v9107_v36  ;;  %v15923_v42 = vpop.permute.xlu1 %9214  ;;  %6370 = vmatpush1.bf16.msra.mxu1 %v15151_v34  ;;  %v18574_v24 = vld [vmem:[#allocation270_spill] sm:$0xff] }
 0x4c5   :  { %v5279_v55 = vsel %vm3507_vm4, %v5272_v31, %v9087_v46  ;;  %v5553_v3 = vsel %vm3792_vm0, %v5278_v0, %v9096_v53  ;;  %v5224_v28 = vsel %vm3443_vm11, %v5217_v27, %v9012_v32  ;;  %v9127_v41 = vunpack.i.h.bf16 %v15622_v26  ;;  %7298 = vmatprep.mubr.msk.bf16.mxu1 %vm17032_vm5, %v5561_v17  ;;  %6371 = vmatprep.subr.bf16.mxu1 %v18289_v8 }
 0x4c6   :  { %v5554_v16 = vsel %vm3792_vm0, %v5279_v55, %v9097_v47  ;;  %v9122_v58 = vunpack.i.h.bf16 %v15653_v51  ;;  %v9121_v46 = vunpack.i.l.bf16 %v15653_v51  ;;  %v5231_v14 = vsel %vm3451_vm12, %v5224_v28, %v9022_v57  ;;  %5885 = vrot.lane.b32.xlu0 %v18571_v21, %s9576_s26  ;;  %v15945_v47 = vpop.permute.xlu0 %9209 }
 0x4c7   :  { %vm18570_vm1 = vcmask 48128   ;;  %v9131_v6 = vunpack.i.l.bf16 %v15693_v45  ;;  %v9141_v26 = vunpack.i.l.bf16 %v15731_v13  ;;  %v9181_v32 = vunpack.i.l.bf16 %v15863_v25 }
 0x4c8   :  { %v5979_v54 = vsel %vm18570_vm1, %v18569_v48, %v9112_v52  ;;  %v6041_v51 = vsel %vm3467_vm15, %v6034_v5, %v9122_v58  ;;  %v5560_v34 = vpack.c.bf16 %v5554_v16, %v5553_v3  ;;  %v5238_v53 = vsel %vm3459_vm14, %v5231_v14, %v9106_v15  ;;  %v15951_v18 = vpop.permute.xlu1 %9224  ;;  %6372 = vmatpush1.bf16.msra.mxu1 %v15197_v44  ;;  %v18576_v3 = vld [vmem:[#allocation57_spill] sm:$0xff] }
 0x4c9   :  { %v9137_v30 = vunpack.i.h.bf16 %v15664_v56  ;;  %v9132_v37 = vunpack.i.h.bf16 %v15693_v45  ;;  %v9151_v57 = vunpack.i.l.bf16 %v15770_v22  ;;  %v5986_v12 = vsel %vm3403_vm6, %v5979_v54, %v9127_v41  ;;  %6373 = vmatprep.subr.bf16.mxu1 %v18289_v8 }
 0x4ca   :  { %v5245_v59 = vsel %vm3467_vm15, %v5238_v53, %v9121_v46  ;;  %v9147_v19 = vunpack.i.h.bf16 %v15705_v9  ;;  %v9161_v49 = vunpack.i.l.bf16 %v15808_v35  ;;  %vm18572_vm13 = vcmask 539648   ;;  %5927 = vrot.lane.b32.xlu0 %v18574_v24, %s9581_s12  ;;  %v15968_v52 = vpop.permute.xlu0 %9219  ;;  %s9587_s12 = smov 80  }
 0x4cb   :  { %v5252_v20 = vsel %vm18572_vm13, %v5245_v59, %v9131_v6  ;;  %v9157_v56 = vunpack.i.h.bf16 %v15743_v38  ;;  %v9171_v45 = vunpack.i.l.bf16 %v15837_v11  ;;  %vm18573_vm1 = vmmov %vm18572_vm13  ;;  %v9142_v31 = vunpack.i.h.bf16 %v15731_v13  ;;  %5625 = vmatmul.mubr.bf16.gmra.mrb[72].mxu1 %v5560_v34 }
 0x4cc   :  { %v6048_v39 = vsel %vm18573_vm1, %v6041_v51, %v9132_v37  ;;  %v5259_v9 = vsel %vm3483_vm2, %v5252_v20, %v9141_v26  ;;  %v9167_v36 = vunpack.i.h.bf16 %v15780_v33  ;;  %v5563_v44 = vpack.c.bf16 %v9181_v32, %v9181_v32  ;;  %v15972_v27 = vpop.permute.xlu1 %9234  ;;  %6374 = vmatpush1.bf16.msra.mxu1 %v15245_v23 }
 0x4cd   :  { %v5993_v38 = vsel %vm3411_vm7, %v5986_v12, %v9137_v30  ;;  %v5266_v61 = vsel %vm3491_vm3, %v5259_v9, %v9151_v57  ;;  %vm18575_vm13 = vcmask 687104   ;;  %v9177_v13 = vunpack.i.h.bf16 %v15816_v60  ;;  %6375 = vmatprep.subr.bf16.mxu1 %v18289_v8  ;;  %v18578_v30 = vld [vmem:[#allocation155_spill] sm:$0xff] }
 0x4ce   :  { %v6000_v17 = vsel %vm3419_vm8, %v5993_v38, %v9147_v19  ;;  %v5273_v2 = vsel %vm18575_vm13, %v5266_v61, %v9161_v49  ;;  %v6055_v0 = vsel %vm3483_vm2, %v6048_v39, %v9142_v31  ;;  %7299 = vmatprep.mubr.msk.bf16.mxu1 %vm17032_vm5, %v5563_v44  ;;  %v9152_v55 = vunpack.i.h.bf16 %v15770_v22  ;;  %5969 = vrot.lane.b32.xlu0 %v18576_v3, %s9571_s20  ;;  %v9230_v28 = vpop.permute.xlu0 %9229  ;;  %vm18577_vm1 = vmmov %vm18575_vm13 }
 0x4cf   :  { %v6007_v33 = vsel %vm3427_vm9, %v6000_v17, %v9157_v56  ;;  %v5280_v15 = vsel %vm3507_vm4, %v5273_v2, %v9171_v45  ;;  %v9187_v5 = vunpack.i.h.bf16 %v15847_v40  ;;  %v9196_v16 = vunpack.i.l.bf16 %v15871_v50 }
 0x4d0   :  { %v6014_v60 = vsel %vm3435_vm10, %v6007_v33, %v9167_v36  ;;  %v5555_v23 = vsel %vm3792_vm0, %v5280_v15, %v9181_v32  ;;  %v9162_v41 = vunpack.i.h.bf16 %v15808_v35  ;;  %v6062_v22 = vsel %vm3491_vm3, %v6055_v0, %v9152_v55  ;;  %v15994_v46 = vpop.permute.xlu1 %9244  ;;  %6376 = vmatpush1.bf16.msra.mxu1 %v15292_v29 }
 0x4d1   :  { %v9192_v58 = vunpack.i.h.bf16 %v15890_v62  ;;  %v9191_v40 = vunpack.i.l.bf16 %v15890_v62  ;;  %v6021_v14 = vsel %vm3443_vm11, %v6014_v60, %v9177_v13  ;;  %v9206_v48 = vunpack.i.l.bf16 %v15898_v43  ;;  %6377 = vmatprep.subr.bf16.mxu1 %v18289_v8 }
 0x4d2   :  { %v9202_v54 = vunpack.i.h.bf16 %v15915_v7  ;;  %v9201_v6 = vunpack.i.l.bf16 %v15915_v7  ;;  %v9172_v35 = vunpack.i.h.bf16 %v15837_v11  ;;  %v6028_v21 = vsel %vm3451_vm12, %v6021_v14, %v9187_v5  ;;  %v9240_v7 = vpop.permute.xlu0 %9239  ;;  %v18580_v11 = vld [vmem:[#allocation161_spill] sm:$0xff] }
 0x4d3   :  { %v9216_v26 = vunpack.i.l.bf16 %v15923_v42  ;;  %v5562_v51 = vpack.c.bf16 %v5555_v23, %v5555_v23  ;;  %v9182_v62 = vunpack.i.h.bf16 %v15863_v25  ;;  %v6069_v32 = vsel %vm18577_vm1, %v6062_v22, %v9162_v41 }
 0x4d4   :  { %v6035_v34 = vsel %vm3459_vm14, %v6028_v21, %v9196_v16  ;;  %v9211_v53 = vunpack.i.l.bf16 %v15945_v47  ;;  %vm18579_vm13 = vcmask 48128   ;;  %v9212_v57 = vunpack.i.h.bf16 %v15945_v47  ;;  %v16015_v59 = vpop.permute.xlu1 %9254  ;;  %6378 = vmatpush1.bf16.msra.mxu1 %v15341_v1 }
 0x4d5   :  { %v5981_v29 = vsel %vm18579_vm13, %v18578_v30, %v9192_v58  ;;  %vm18581_vm5 = vmmov %vm18579_vm13  ;;  %v9226_v12 = vunpack.i.l.bf16 %v15951_v18  ;;  %5633 = vmatmul.mubr.bf16.gmra.mrb[76].mxu1 %v5562_v51  ;;  %v6042_v25 = vsel %vm3467_vm15, %v6035_v34, %v9206_v48  ;;  %v9221_v20 = vunpack.i.l.bf16 %v15968_v52  ;;  %6379 = vmatprep.subr.bf16.mxu1 %v18289_v8 }
 0x4d6   :  { %v5980_v37 = vsel %vm18581_vm5, %v18580_v11, %v9191_v40  ;;  %v5988_v49 = vsel %vm3403_vm6, %v5981_v29, %v9202_v54  ;;  %vm18582_vm1 = vcmask 539648   ;;  %v9222_v45 = vunpack.i.h.bf16 %v15968_v52  ;;  %v9250_v44 = vpop.permute.xlu0 %9249 }
 0x4d7   :  { %v5987_v19 = vsel %vm3403_vm6, %v5980_v37, %v9201_v6  ;;  %v6049_v56 = vsel %vm18582_vm1, %v6042_v25, %v9216_v26  ;;  %v9236_v47 = vunpack.i.l.bf16 %v15972_v27  ;;  %v9231_v39 = vunpack.i.l.bf16 %v9230_v28 }
 0x4d8   :  { %v5994_v24 = vsel %vm3411_vm7, %v5987_v19, %v9211_v53  ;;  %v9232_v31 = vunpack.i.h.bf16 %v9230_v28  ;;  %v9246_v9 = vunpack.i.l.bf16 %v15994_v46  ;;  %v9241_v36 = vunpack.i.l.bf16 %v9240_v7  ;;  %v16031_v52 = vpop.permute.xlu1 %9264  ;;  %6380 = vmatpush1.bf16.msra.mxu1 %v18534_v4 }
 0x4d9   :  { %v5995_v38 = vsel %vm3411_vm7, %v5988_v49, %v9212_v57  ;;  %v6056_v1 = vsel %vm3483_vm2, %v6049_v56, %v9226_v12  ;;  %v9242_v61 = vunpack.i.h.bf16 %v9240_v7  ;;  %v9256_v17 = vunpack.i.l.bf16 %v16015_v59  ;;  %6381 = vmatprep.subr.bf16.mxu1 %v18289_v8 }
 0x4da   :  { %v6001_v2 = vsel %vm3419_vm8, %v5994_v24, %v9221_v20  ;;  %v9252_v13 = vunpack.i.h.bf16 %v9250_v44  ;;  %v9251_v0 = vunpack.i.l.bf16 %v9250_v44  ;;  %v9266_v33 = vunpack.i.l.bf16 %v16031_v52  ;;  %v9260_v23 = vpop.permute.xlu0 %9259 }
 0x4db   :  { %v6076_v55 = vsel %vm3507_vm4, %v6069_v32, %v9172_v35  ;;  %v6002_v15 = vsel %vm3419_vm8, %v5995_v38, %v9222_v45  ;;  %v6063_v5 = vsel %vm3491_vm3, %v6056_v1, %v9236_v47  ;;  %v6008_v3 = vsel %vm3427_vm9, %v6001_v2, %v9231_v39 }
 0x4dc   :  { %v6009_v60 = vsel %vm3427_vm9, %v6002_v15, %v9232_v31  ;;  %vm18583_vm5 = vcmask 687104   ;;  %v6015_v4 = vsel %vm3435_vm10, %v6008_v3, %v9241_v36  ;;  %v6346_v28 = vpack.c.bf16 %v9266_v33, %v9182_v62  ;;  %v5859_v14 = vpop.permute.xlu1 %5858  ;;  %6382 = vmatpush1.bf16.msra.mxu1 %v18544_v63 }
 0x4dd   :  { %v6070_v16 = vsel %vm18583_vm5, %v6063_v5, %v9246_v9  ;;  %v6016_v41 = vsel %vm3435_vm10, %v6009_v60, %v9242_v61  ;;  %v9262_v58 = vunpack.i.h.bf16 %v9260_v23  ;;  %v9261_v40 = vunpack.i.l.bf16 %v9260_v23  ;;  %6383 = vmatprep.subr.bf16.mxu1 %v18289_v8  ;;  %vm18585_vm5 = vmmov %vm18582_vm1  ;;  %v18591_v5 = vld [vmem:[#allocation43_spill] sm:$0xff] }
 0x4de   :  { %v6077_v22 = vsel %vm3507_vm4, %v6070_v16, %v9256_v17  ;;  %v9197_v48 = vunpack.i.h.bf16 %v15871_v50  ;;  %v6022_v54 = vsel %vm3443_vm11, %v6015_v4, %v9251_v0  ;;  %vm18584_vm13 = vcmask 179200   ;;  %v5838_v30 = vpop.permute.xlu0 %5837 }
 0x4df   :  { %v6339_v6 = vsel %vm3792_vm0, %v6077_v22, %v9266_v33  ;;  %7300 = vmatprep.mubr.msk.bf16.mxu1 %vm18584_vm13, %v6346_v28  ;;  %v6023_v35 = vsel %vm3443_vm11, %v6016_v41, %v9252_v13  ;;  %v9207_v21 = vunpack.i.h.bf16 %v15898_v43  ;;  %v6029_v26 = vsel %vm3451_vm12, %v6022_v54, %v9261_v40 }
 0x4e0   :  { %v6030_v51 = vsel %vm3451_vm12, %v6023_v35, %v9262_v58  ;;  %v6338_v50 = vsel %vm3792_vm0, %v6076_v55, %v9182_v62  ;;  %v9217_v32 = vunpack.i.h.bf16 %v15923_v42  ;;  %v6036_v34 = vsel %vm3459_vm14, %v6029_v26, %v9197_v48  ;;  %6384 = vmatpush1.bf16.msra.mxu1 %v18552_v10  ;;  %v5901_v11 = vpop.permute.xlu1 %5900  ;;  %v18589_v55 = vld [vmem:[#allocation234_spill] sm:$0xff] }
 0x4e1   :  { %v9227_v63 = vunpack.i.h.bf16 %v15951_v18  ;;  %v6345_v53 = vpack.c.bf16 %v6339_v6, %v6338_v50  ;;  %v6043_v7 = vsel %vm3467_vm15, %v6036_v34, %v9207_v21  ;;  %v6037_v29 = vsel %vm3459_vm14, %v6030_v51, %v5838_v30 }
 0x4e2   :  { %v6050_v43 = vsel %vm18582_vm1, %v6043_v7, %v9217_v32  ;;  %v9237_v62 = vunpack.i.h.bf16 %v15972_v27  ;;  %v5880_v42 = vpop.permute.xlu0 %5879  ;;  %v6044_v57 = vsel %vm3467_vm15, %v6037_v29, %v5859_v14  ;;  %v9247_v19 = vunpack.i.h.bf16 %v15994_v46 }
 0x4e3   :  { %v6057_v37 = vsel %vm3483_vm2, %v6050_v43, %v9227_v63  ;;  %6398 = vmatmul.mubr.bf16.vlgmr.msra.gmra.mrb[80].mxu1 %v6345_v53  ;;  %v6051_v18 = vsel %vm18585_vm5, %v6044_v57, %v5880_v42  ;;  %v9267_v10 = vunpack.i.h.bf16 %v16031_v52  ;;  %vm18586_vm13 = vcmask 687104  }
 0x4e4   :  { %v5943_v12 = vpop.permute.xlu1 %5942  ;;  %v6064_v25 = vsel %vm3491_vm3, %v6057_v37, %v9237_v62  ;;  %v6058_v20 = vsel %vm3483_vm2, %v6051_v18, %v5901_v11  ;;  %v9257_v27 = vunpack.i.h.bf16 %v16015_v59  ;;  %vm18587_vm1 = vmmov %vm18586_vm13  ;;  %vm18588_vm5 = vcmask 179200  }
 0x4e5   :  { %v6071_v56 = vsel %vm18586_vm13, %v6064_v25, %v9247_v19  ;;  %vm18590_vm13 = vcmask 48128  }
 0x4e6   :  { %v5922_v49 = vpop.permute.xlu0 %5921  ;;  %v6078_v24 = vsel %vm3507_vm4, %v6071_v56, %v9257_v27 }
 0x4e7   :  { %v6065_v45 = vsel %vm3491_vm3, %v6058_v20, %v5922_v49  ;;  %v6340_v38 = vsel %vm3792_vm0, %v6078_v24, %v9267_v10 }
 0x4e8   :  { %v6324_v47 = vpop.permute.xlu1 %6323  ;;  %v6072_v9 = vsel %vm18587_vm1, %v6065_v45, %v5943_v12  ;;  %vm18592_vm1 = vmmov %vm18590_vm13 }
 0x4e9   :  { %v6348_v39 = vpack.c.bf16 %v6324_v47, %v9267_v10 }
 0x4ea   :  { %v5964_v31 = vpop.permute.xlu0 %5963 }
 0x4eb   :  { %7301 = vmatprep.mubr.msk.bf16.mxu1 %vm18588_vm5, %v6348_v39  ;;  %v6079_v46 = vsel %vm3507_vm4, %v6072_v9, %v5964_v31  ;;  %vm18593_vm5 = vcmask 539648  }
 0x4ec   :  { %v9275_v36 = vpop.permute.xlu1 %9274  ;;  %v6341_v44 = vsel %vm3792_vm0, %v6079_v46, %v6324_v47 }
 0x4ed   :  { %v6347_v1 = vpack.c.bf16 %v6341_v44, %v6340_v38  ;;  %v9277_v4 = vunpack.i.h.bf16 %v9275_v36  ;;  %v9276_v28 = vunpack.i.l.bf16 %v9275_v36 }
 0x4ee   :  { %v9270_v59 = vpop.permute.xlu0 %9269 }
 0x4ef   :  { %6406 = vmatmul.mubr.bf16.gmra.mrb[84].mxu1 %v6347_v1  ;;  %v9272_v2 = vunpack.i.h.bf16 %v9270_v59  ;;  %v9271_v13 = vunpack.i.l.bf16 %v9270_v59 }
 0x4f0   :  { %v9285_v61 = vpop.permute.xlu1 %9284 }
 0x4f1   :  { %v5983_v15 = vsel %vm18590_vm13, %v18589_v55, %v9272_v2  ;;  %v5982_v3 = vsel %vm18592_vm1, %v18591_v5, %v9271_v13  ;;  %v9287_v6 = vunpack.i.h.bf16 %v9285_v61  ;;  %v9286_v35 = vunpack.i.l.bf16 %v9285_v61  ;;  %vm18594_vm13 = vmmov %vm18593_vm5 }
 0x4f2   :  { %v9280_v17 = vpop.permute.xlu0 %9279  ;;  %v5989_v41 = vsel %vm3403_vm6, %v5982_v3, %v9276_v28  ;;  %v5990_v22 = vsel %vm3403_vm6, %v5983_v15, %v9277_v4  ;;  %vm18595_vm1 = vcmask 687104  }
 0x4f3   :  { %v9282_v60 = vunpack.i.h.bf16 %v9280_v17  ;;  %v9281_v16 = vunpack.i.l.bf16 %v9280_v17 }
 0x4f4   :  { %v9295_v52 = vpop.permute.xlu1 %9294 }
 0x4f5   :  { %v5996_v40 = vsel %vm3411_vm7, %v5989_v41, %v9281_v16  ;;  %v5997_v14 = vsel %vm3411_vm7, %v5990_v22, %v9282_v60  ;;  %v9297_v7 = vunpack.i.h.bf16 %v9295_v52  ;;  %v9296_v30 = vunpack.i.l.bf16 %v9295_v52 }
 0x4f6   :  { %v9290_v0 = vpop.permute.xlu0 %9289  ;;  %v6003_v26 = vsel %vm3419_vm8, %v5996_v40, %v9286_v35  ;;  %v6004_v51 = vsel %vm3419_vm8, %v5997_v14, %v9287_v6 }
 0x4f7   :  { %v9292_v48 = vunpack.i.h.bf16 %v9290_v0  ;;  %v9291_v54 = vunpack.i.l.bf16 %v9290_v0 }
 0x4f8   :  { %v9305_v33 = vpop.permute.xlu1 %9304 }
 0x4f9   :  { %v6010_v32 = vsel %vm3427_vm9, %v6003_v26, %v9291_v54  ;;  %v6011_v34 = vsel %vm3427_vm9, %v6004_v51, %v9292_v48  ;;  %v9307_v12 = vunpack.i.h.bf16 %v9305_v33  ;;  %v9306_v25 = vunpack.i.l.bf16 %v9305_v33 }
 0x4fa   :  { %v9300_v23 = vpop.permute.xlu0 %9299  ;;  %v6017_v29 = vsel %vm3435_vm10, %v6010_v32, %v9296_v30  ;;  %v6018_v11 = vsel %vm3435_vm10, %v6011_v34, %v9297_v7 }
 0x4fb   :  { %v9302_v63 = vunpack.i.h.bf16 %v9300_v23  ;;  %v9301_v53 = vunpack.i.l.bf16 %v9300_v23 }
 0x4fc   :  { %v9315_v58 = vpop.permute.xlu1 %9314 }
 0x4fd   :  { %v6024_v62 = vsel %vm3443_vm11, %v6017_v29, %v9301_v53  ;;  %v6025_v42 = vsel %vm3443_vm11, %v6018_v11, %v9302_v63  ;;  %v9317_v39 = vunpack.i.h.bf16 %v9315_v58  ;;  %v9316_v24 = vunpack.i.l.bf16 %v9315_v58  ;;  %v18597_v58 = vld [vmem:[#allocation53_spill] sm:$0xff] }
 0x4fe   :  { %v9310_v21 = vpop.permute.xlu0 %9309  ;;  %v6031_v19 = vsel %vm3451_vm12, %v6024_v62, %v9306_v25  ;;  %v6032_v10 = vsel %vm3451_vm12, %v6025_v42, %v9307_v12 }
 0x4ff   :  { %v9312_v57 = vunpack.i.h.bf16 %v9310_v21  ;;  %v9311_v18 = vunpack.i.l.bf16 %v9310_v21 }
 0x500   :  { %v9325_v50 = vpop.permute.xlu1 %9324 }
 0x501   :  { %v6038_v56 = vsel %vm3459_vm14, %v6031_v19, %v9311_v18  ;;  %v6039_v27 = vsel %vm3459_vm14, %v6032_v10, %v9312_v57  ;;  %v9327_v1 = vunpack.i.h.bf16 %v9325_v50  ;;  %v9326_v59 = vunpack.i.l.bf16 %v9325_v50 }
 0x502   :  { %v9320_v43 = vpop.permute.xlu0 %9319  ;;  %v6045_v31 = vsel %vm3467_vm15, %v6038_v56, %v9316_v24  ;;  %v6046_v9 = vsel %vm3467_vm15, %v6039_v27, %v9317_v39 }
 0x503   :  { %v9322_v45 = vunpack.i.h.bf16 %v9320_v43  ;;  %v9321_v47 = vunpack.i.l.bf16 %v9320_v43 }
 0x504   :  { %v9335_v37 = vpop.permute.xlu1 %9334 }
 0x505   :  { %v6052_v46 = vsel %vm18593_vm5, %v6045_v31, %v9321_v47  ;;  %v6053_v36 = vsel %vm18594_vm13, %v6046_v9, %v9322_v45  ;;  %v9337_v15 = vunpack.i.h.bf16 %v9335_v37  ;;  %v9336_v5 = vunpack.i.l.bf16 %v9335_v37  ;;  %vm18596_vm5 = vmmov %vm18595_vm1  ;;  %v16129_v47 = vld [vmem:[%s16411_s4] ss:$0 sm:$0xff] }
 0x506   :  { %v9330_v49 = vpop.permute.xlu0 %9329  ;;  %v6059_v52 = vsel %vm3483_vm2, %v6052_v46, %v9326_v59  ;;  %v6060_v2 = vsel %vm3483_vm2, %v6053_v36, %v9327_v1  ;;  %vm18598_vm13 = vcmask 48128  }
 0x507   :  { %v9332_v44 = vunpack.i.h.bf16 %v9330_v49  ;;  %v9331_v38 = vunpack.i.l.bf16 %v9330_v49 }
 0x508   :  { %v6096_v20 = vpop.permute.xlu1 %6095 }
 0x509   :  { %v6066_v13 = vsel %vm3491_vm3, %v6059_v52, %v9331_v38  ;;  %v6067_v0 = vsel %vm3491_vm3, %v6060_v2, %v9332_v44  ;;  %v6260_v40 = vsel %vm18598_vm13, %v18597_v58, %v6096_v20 }
 0x50a   :  { %v9340_v61 = vpop.permute.xlu0 %9339  ;;  %v6073_v60 = vsel %vm18595_vm1, %v6066_v13, %v9336_v5  ;;  %v6074_v16 = vsel %vm18596_vm5, %v6067_v0, %v9337_v15  ;;  %vm18599_vm1 = vcmask 179200   ;;  %vm18601_vm5 = vmmov %vm18598_vm13  ;;  %vm7063_vm13 = vcmask 74752  }
 0x50b   :  { %v9342_v33 = vunpack.i.h.bf16 %v9340_v61  ;;  %v9341_v55 = vunpack.i.l.bf16 %v9340_v61 }
 0x50c   :  { %v6117_v17 = vpop.permute.xlu1 %6116 }
 0x50d   :  { %v6080_v41 = vsel %vm3507_vm4, %v6073_v60, %v9341_v55  ;;  %v6081_v22 = vsel %vm3507_vm4, %v6074_v16, %v9342_v33  ;;  %v6267_v6 = vsel %vm3403_vm6, %v6260_v40, %v6117_v17 }
 0x50e   :  { %v9345_v3 = vpop.permute.xlu0 %9344 }
 0x50f   :  { %v9347_v28 = vunpack.i.h.bf16 %v9345_v3  ;;  %v9346_v23 = vunpack.i.l.bf16 %v9345_v3 }
 0x510   :  { %v6159_v4 = vpop.permute.xlu1 %6158 }
 0x511   :  { %v6350_v14 = vpack.c.bf16 %v9347_v28, %v9346_v23  ;;  %v6342_v48 = vsel %vm3792_vm0, %v6080_v41, %v9346_v23  ;;  %v6343_v54 = vsel %vm3792_vm0, %v6081_v22, %v9347_v28 }
 0x512   :  { %v6138_v35 = vpop.permute.xlu0 %6137  ;;  %v6349_v21 = vpack.c.bf16 %v6343_v54, %v6342_v48 }
 0x513   :  { %v6274_v26 = vsel %vm3411_vm7, %v6267_v6, %v6138_v35  ;;  %7302 = vmatprep.mubr.msk.bf16.mxu1 %vm18599_vm1, %v6350_v14 }
 0x514   :  { %6414 = vmatmul.mubr.bf16.gmra.mrb[88].mxu1 %v6349_v21  ;;  %v6201_v51 = vpop.permute.xlu1 %6200  ;;  %v6281_v50 = vsel %vm3419_vm8, %v6274_v26, %v6159_v4 }
 0x518   :  { %v6180_v32 = vpop.permute.xlu0 %6179  ;;  %v6246_v7 = vpop.permute.xlu1 %6245 }
 0x519   :  { %v6288_v34 = vsel %vm3427_vm9, %v6281_v50, %v6180_v32  ;;  %v18600_v32 = vld [vmem:[#allocation153_spill] sm:$0xff] }
 0x51a   :  { %v6295_v63 = vsel %vm3435_vm10, %v6288_v34, %v6201_v51 }
 0x51c   :  { %v5697_v13 = vpop.permute.xlu1 %5696 }
 0x51d   :  { %v6222_v53 = vpop.permute.xlu0 %6221 }
 0x51e   :  { %v6302_v30 = vsel %vm3443_vm11, %v6295_v63, %v6222_v53 }
 0x51f   :  { %v6309_v43 = vsel %vm3451_vm12, %v6302_v30, %v6246_v7 }
 0x520   :  { %6329 = vrot.lane.b32.xlu1 %v6309_v43, %s9583_s23  ;;  %v5739_v22 = vpop.permute.xlu1 %5738 }
 0x521   :  { %v3942_v29 = vpop.f32.mrb[32].mxu1  ;;  %v5676_v31 = vpop.permute.xlu0 %5675 }
 0x522   :  { %v3944_v11 = vpop.f32.mrb[33].mxu1  ;;  %v3943_v39 = vadd.f32 %v16129_v47, %v3942_v29  ;;  %v5984_v34 = vsel %vm18601_vm5, %v18600_v32, %v5676_v31 }
 0x523   :  { %v3945_v37 = vpop.f32.mrb[34].mxu1  ;;  %v5991_v11 = vsel %vm3403_vm6, %v5984_v34, %v5697_v13  ;;  %vm18602_vm6 = vcmask 539648  }
 0x524   :  { %v3947_v62 = vpop.f32.mrb[35].mxu1  ;;  %v3946_v9 = vadd.f32 %v16129_v47, %v3945_v37  ;;  %v3972_v38 = vmax.f32 %v3943_v39, 0.0  ;;  %v5781_v50 = vpop.permute.xlu1 %5780 }
 0x526   :  { %v3973_v17 = vmax.f32 %v3946_v9, 0.0  ;;  %v5718_v0 = vpop.permute.xlu0 %5717 }
 0x52a   :  { %v5760_v58 = vpop.permute.xlu0 %5759 }
 0x52c   :  { %v3950_v42 = vpop.f32.mrb[36].mxu1 }
 0x52d   :  { %v3952_v57 = vpop.f32.mrb[37].mxu1  ;;  %v3951_v33 = vadd.f32 %v16129_v47, %v3950_v42 }
 0x52e   :  { %v3953_v18 = vpop.f32.mrb[38].mxu1  ;;  %v5998_v57 = vsel %vm3411_vm7, %v5991_v11, %v5718_v0  ;;  %vm18603_vm7 = vcmask 687104  }
 0x52f   :  { %v3955_v12 = vpop.f32.mrb[39].mxu1  ;;  %v3954_v5 = vadd.f32 %v16129_v47, %v3953_v18  ;;  %v3974_v4 = vmax.f32 %v3951_v33, 0.0  ;;  %v5802_v53 = vpop.permute.xlu0 %5801  ;;  %v9497_v33 = vld [vmem:[%s16412_s5 + $0x10] sm:$0xff]  }
 0x531   :  { %v3975_v40 = vmax.f32 %v3954_v5, 0.0 }
 0x538   :  { %v3958_v25 = vpop.f32.mrb[40].mxu1 }
 0x539   :  { %v3960_v19 = vpop.f32.mrb[41].mxu1  ;;  %v3959_v54 = vadd.f32 %v16129_v47, %v3958_v25  ;;  %v5823_v25 = vpop.permute.xlu1 %5822 }
 0x53a   :  { %v3961_v10 = vpop.f32.mrb[42].mxu1 }
 0x53b   :  { %v3963_v49 = vpop.f32.mrb[43].mxu1  ;;  %v3962_v21 = vadd.f32 %v16129_v47, %v3961_v10  ;;  %v3976_v7 = vmax.f32 %v3959_v54, 0.0  ;;  %v6005_v10 = vsel %vm3419_vm8, %v5998_v57, %v5739_v22  ;;  %vm18604_vm8 = vmmov %vm18599_vm1 }
 0x53c   :  { %v5844_v49 = vpop.permute.xlu0 %5843 }
 0x53d   :  { %v3977_v37 = vmax.f32 %v3962_v21, 0.0 }
 0x542   :  { %v3966_v20 = vpop.f32.mrb[44].mxu1 }
 0x543   :  { %v3968_v56 = vpop.f32.mrb[45].mxu1  ;;  %v3967_v18 = vadd.f32 %v16129_v47, %v3966_v20  ;;  %v9492_v20 = vld [vmem:[%s16412_s5 + $0x40] sm:$0xff]  }
 0x544   :  { %v3969_v27 = vpop.f32.mrb[46].mxu1  ;;  %7448 = vmatprep.subr.bf16.mxu1 %v9492_v20 }
 0x545   :  { %v3970_v45 = vpop.f32.mrb[47].mxu1 }
 0x546   :  { %v6012_v45 = vsel %vm3427_vm9, %v6005_v10, %v5760_v58  ;;  %vm6503_vm9 = vcmask 261120  }
 0x55d   :  { %v4777_v24 = vpop.f32.mrb[48].mxu1 }
 0x55e   :  { %v4778_v46 = vadd.f32 %v16129_v47, %v4777_v24  ;;  %v4779_v36 = vpop.f32.mrb[49].mxu1  ;;  %v3978_v24 = vmax.f32 %v3967_v18, 0.0 }
 0x55f   :  { %v4780_v44 = vpop.f32.mrb[50].mxu1  ;;  %v9494_v36 = vld [vmem:[%s16412_s5 + $0x48] sm:$0xff]  }
 0x560   :  { %v4807_v1 = vmax.f32 %v4778_v46, 0.0  ;;  %v4781_v59 = vadd.f32 %v16129_v47, %v4780_v44  ;;  %v4782_v61 = vpop.f32.mrb[51].mxu1  ;;  %v9493_v46 = vld [vmem:[%s16412_s5] sm:$0xff]   ;;  %v6019_v44 = vsel %vm3435_vm10, %v6012_v45, %v5781_v50  ;;  %vm6506_vm10 = vcmask 523264  }
 0x561   :  { %7449 = vmatpush3.bf16.msra.mxu1 %v9493_v46  ;;  %v9495_v61 = vld [vmem:[%s16412_s5 + $0x8] sm:$0xff]  }
 0x562   :  { %v16135_v52 = vmax.f32 %v3972_v38, %v4807_v1  ;;  %v4808_v2 = vmax.f32 %v4781_v59, 0.0  ;;  %v5865_v1 = vpop.permute.xlu1 %5864  ;;  %v6026_v59 = vsel %vm3443_vm11, %v6019_v44, %v5802_v53  ;;  %7450 = vmatprep.subr.bf16.mxu1 %v9494_v36  ;;  %vm6508_vm11 = vcmask 654336  }
 0x563   :  { %v6033_v13 = vsel %vm3451_vm12, %v6026_v59, %v5823_v25 }
 0x564   :  { %v16138_v55 = vmax.f32 %v3973_v17, %v4808_v2  ;;  %v5886_v17 = vpop.permute.xlu0 %5885  ;;  %v9496_v2 = vld [vmem:[%s16412_s5 + $0x50] sm:$0xff]   ;;  %v6040_v0 = vsel %vm3459_vm14, %v6033_v13, %v5844_v49  ;;  %vm6511_vm14 = vcmask 916480  }
 0x565   :  { %v4785_v15 = vpop.f32.mrb[52].mxu1  ;;  %7451 = vmatpush3.bf16.msra.mxu1 %v9495_v61 }
 0x566   :  { %v4786_v3 = vadd.f32 %v16129_v47, %v4785_v15  ;;  %v4787_v60 = vpop.f32.mrb[53].mxu1  ;;  %7452 = vmatprep.subr.bf16.mxu1 %v9496_v2  ;;  %v9498_v15 = vld [vmem:[%s16412_s5 + $0x58] sm:$0xff]   ;;  %v5907_v5 = vpop.permute.xlu1 %5906 }
 0x567   :  { %v4788_v16 = vpop.f32.mrb[54].mxu1 }
 0x568   :  { %v4809_v28 = vmax.f32 %v4786_v3, 0.0  ;;  %v4789_v23 = vadd.f32 %v16129_v47, %v4788_v16  ;;  %v4790_v41 = vpop.f32.mrb[55].mxu1  ;;  %v6047_v3 = vsel %vm3467_vm15, %v6040_v0, %v5865_v1  ;;  %v5928_v60 = vpop.permute.xlu0 %5927  ;;  %vm6918_vm15 = vcmask 982016  }
 0x569   :  { %v6054_v16 = vsel %vm18602_vm6, %v6047_v3, %v5886_v17  ;;  %7453 = vmatpush3.bf16.msra.mxu1 %v9497_v33 }
 0x56a   :  { %v16143_v14 = vmax.f32 %v3974_v4, %v4809_v28  ;;  %v4810_v48 = vmax.f32 %v4789_v23, 0.0  ;;  %v9499_v4 = vld [vmem:[%s16412_s5 + $0x18] sm:$0xff]   ;;  %7454 = vmatprep.subr.bf16.mxu1 %v9498_v15  ;;  %v6061_v23 = vsel %vm3483_vm2, %v6054_v16, %v5907_v5  ;;  %v5949_v58 = vpop.permute.xlu1 %5948  ;;  %vm18606_vm2 = vcmask 1041408  }
 0x56c   :  { %v16146_v6 = vmax.f32 %v3975_v40, %v4810_v48  ;;  %v6068_v40 = vsel %vm3491_vm3, %v6061_v23, %v5928_v60  ;;  %v5970_v54 = vpop.permute.xlu0 %5969  ;;  %v9500_v60 = vld [vmem:[%s16412_s5 + $0x60] sm:$0xff]   ;;  %vm18607_vm3 = vmmov %vm18603_vm7 }
 0x56d   :  { %7455 = vmatpush3.bf16.msra.mxu1 %v9499_v4 }
 0x56e   :  { %7456 = vmatprep.subr.bf16.mxu1 %v9500_v60 }
 0x572   :  { %v4793_v35 = vpop.f32.mrb[56].mxu1 }
 0x573   :  { %v4794_v26 = vadd.f32 %v16129_v47, %v4793_v35  ;;  %v4795_v51 = vpop.f32.mrb[57].mxu1 }
 0x574   :  { %v4796_v63 = vpop.f32.mrb[58].mxu1  ;;  %v6075_v51 = vsel %vm18603_vm7, %v6068_v40, %v5949_v58  ;;  %v9502_v58 = vld [vmem:[%s16412_s5 + $0x68] sm:$0xff]  }
 0x575   :  { %v4811_v30 = vmax.f32 %v4794_v26, 0.0  ;;  %v4797_v43 = vadd.f32 %v16129_v47, %v4796_v63  ;;  %v4798_v29 = vpop.f32.mrb[59].mxu1  ;;  %v6082_v34 = vsel %vm3507_vm4, %v6075_v51, %v5970_v54  ;;  %v9503_v40 = vld [vmem:[%s16412_s5 + $0x28] sm:$0xff]   ;;  %vm6501_vm4 = vcmask 130048  }
 0x577   :  { %v16154_v62 = vmax.f32 %v3976_v7, %v4811_v30  ;;  %v4812_v42 = vmax.f32 %v4797_v43, 0.0 }
 0x579   :  { %v16158_v12 = vmax.f32 %v3977_v37, %v4812_v42 }
 0x57c   :  { %v4801_v19 = vpop.f32.mrb[60].mxu1 }
 0x57d   :  { %v4802_v56 = vadd.f32 %v16129_v47, %v4801_v19  ;;  %v4803_v27 = vpop.f32.mrb[61].mxu1 }
 0x57e   :  { %v4804_v39 = vpop.f32.mrb[62].mxu1 }
 0x57f   :  { %v4813_v31 = vmax.f32 %v4802_v56, 0.0  ;;  %v4805_v9 = vpop.f32.mrb[63].mxu1 }
 0x581   :  { %v16173_v38 = vmax.f32 %v3978_v24, %v4813_v31 }
 0x58e   :  { %v5610_v28 = vpop.f32.mrb[64].mxu1 }
 0x58f   :  { %v5611_v41 = vadd.f32 %v16129_v47, %v5610_v28  ;;  %v5612_v22 = vpop.f32.mrb[65].mxu1 }
 0x590   :  { %v5613_v48 = vpop.f32.mrb[66].mxu1 }
 0x591   :  { %v5640_v35 = vmax.f32 %v5611_v41, 0.0  ;;  %v5614_v21 = vadd.f32 %v16129_v47, %v5613_v48  ;;  %v5615_v26 = vpop.f32.mrb[67].mxu1 }
 0x592   :  { %v6330_v63 = vpop.permute.xlu1 %6329 }
 0x593   :  { %v5647_v50 = vmax.f32 %v16135_v52, %v5640_v35  ;;  %v5641_v32 = vmax.f32 %v5614_v21, 0.0  ;;  %v6344_v7 = vsel %vm3792_vm0, %v6082_v34, %v6330_v63  ;;  %v6352_v30 = vpack.c.bf16 %v6330_v63, %v6330_v63  ;;  %v9504_v63 = vld [vmem:[%s16412_s5 + $0x70] sm:$0xff]  }
 0x594   :  { %v6351_v29 = vpack.c.bf16 %v6344_v7, %v6344_v7 }
 0x595   :  { %v5648_v53 = vmax.f32 %v16138_v55, %v5641_v32  ;;  %7303 = vmatprep.mubr.msk.bf16.mxu1 %vm18604_vm8, %v6352_v30 }
 0x596   :  { %v5618_v43 = vpop.f32.mrb[68].mxu1  ;;  %6422 = vmatmul.mubr.bf16.gmra.mrb[92].mxu1 %v6351_v29 }
 0x597   :  { %v5619_v11 = vadd.f32 %v16129_v47, %v5618_v43  ;;  %v5620_v37 = vpop.f32.mrb[69].mxu1 }
 0x598   :  { %v5621_v42 = vpop.f32.mrb[70].mxu1 }
 0x599   :  { %v5642_v57 = vmax.f32 %v5619_v11, 0.0  ;;  %v5622_v52 = vadd.f32 %v16129_v47, %v5621_v42  ;;  %v5623_v18 = vpop.f32.mrb[71].mxu1 }
 0x59b   :  { %v5649_v25 = vmax.f32 %v16143_v14, %v5642_v57  ;;  %v5643_v19 = vmax.f32 %v5622_v52, 0.0 }
 0x59d   :  { %v5650_v55 = vmax.f32 %v16146_v6, %v5643_v19 }
 0x59e   :  { %v5626_v10 = vpop.f32.mrb[72].mxu1 }
 0x59f   :  { %v5627_v49 = vadd.f32 %v16129_v47, %v5626_v10  ;;  %v5628_v56 = vpop.f32.mrb[73].mxu1  ;;  %v9506_v10 = vld [vmem:[%s16412_s5 + $0x78] sm:$0xff]  }
 0x5a0   :  { %v5629_v27 = vpop.f32.mrb[74].mxu1 }
 0x5a1   :  { %v5644_v45 = vmax.f32 %v5627_v49, 0.0  ;;  %v5630_v39 = vadd.f32 %v16129_v47, %v5629_v27  ;;  %v5631_v24 = vpop.f32.mrb[75].mxu1  ;;  %v9507_v49 = vld [vmem:[%s16412_s5 + $0x38] sm:$0xff]  }
 0x5a3   :  { %v16212_v31 = vmax.f32 %v16154_v62, %v5644_v45  ;;  %v5645_v9 = vmax.f32 %v5630_v39, 0.0 }
 0x5a5   :  { %v16215_v20 = vmax.f32 %v16158_v12, %v5645_v9 }
 0x5a8   :  { %v5634_v14 = vpop.f32.mrb[76].mxu1 }
 0x5a9   :  { %v5635_v46 = vadd.f32 %v16129_v47, %v5634_v14  ;;  %v5636_v6 = vpop.f32.mrb[77].mxu1 }
 0x5aa   :  { %v5637_v36 = vpop.f32.mrb[78].mxu1 }
 0x5ab   :  { %v5646_v44 = vmax.f32 %v5635_v46, 0.0  ;;  %v5638_v1 = vpop.f32.mrb[79].mxu1 }
 0x5ad   :  { %v16219_v59 = vmax.f32 %v16173_v38, %v5646_v44  ;;  %v9501_v38 = vld [vmem:[%s16412_s5 + $0x20] sm:$0xff]  }
 0x5ae   :  { %7457 = vmatpush3.bf16.msra.mxu1 %v9501_v38 }
 0x5af   :  { %7458 = vmatprep.subr.bf16.mxu1 %v9502_v58 }
 0x5b2   :  { %7459 = vmatpush3.bf16.msra.mxu1 %v9503_v40 }
 0x5b3   :  { %7460 = vmatprep.subr.bf16.mxu1 %v9504_v63 }
 0x5b6   :  { %v6399_v61 = vpop.f32.mrb[80].mxu1 }
 0x5b7   :  { %v6400_v17 = vadd.f32 %v16129_v47, %v6399_v61  ;;  %v6401_v2 = vpop.f32.mrb[81].mxu1 }
 0x5b8   :  { %v6402_v62 = vpop.f32.mrb[82].mxu1 }
 0x5b9   :  { %v6429_v13 = vmax.f32 %v6400_v17, 0.0  ;;  %v6403_v0 = vadd.f32 %v16129_v47, %v6402_v62  ;;  %v6404_v12 = vpop.f32.mrb[83].mxu1 }
 0x5bb   :  { %v16223_v33 = vmax.f32 %v5647_v50, %v6429_v13  ;;  %v6430_v15 = vmax.f32 %v6403_v0, 0.0 }
 0x5bd   :  { %v6437_v5 = vmax.f32 %v5648_v53, %v6430_v15  ;;  %v6448_v35 = vrot.slane %v16223_v33, 4  ;;  %v6444_v51 = vrot.slane %v16223_v33, 2  ;;  %v9505_v53 = vld [vmem:[%s16412_s5 + $0x30] sm:$0xff]   ;;  %v6452_v52 = vrot.slane %v16223_v33, 6 }
 0x5be   :  { %7461 = vmatpush3.bf16.msra.mxu1 %v9505_v53 }
 0x5bf   :  { %v6464_v32 = vrot.slane %v6437_v5, 4  ;;  %v6460_v34 = vrot.slane %v6437_v5, 2  ;;  %v6468_v42 = vrot.slane %v6437_v5, 6  ;;  %7462 = vmatprep.subr.bf16.mxu1 %v9506_v10 }
 0x5c2   :  { %v6407_v3 = vpop.f32.mrb[84].mxu1  ;;  %7463 = vmatpush3.bf16.msra.mxu1 %v9507_v49 }
 0x5c3   :  { %v6408_v16 = vadd.f32 %v16129_v47, %v6407_v3  ;;  %v6409_v4 = vpop.f32.mrb[85].mxu1  ;;  %6810 = vmatprep.subr.bf16.mxu1 %v18289_v8 }
 0x5c4   :  { %v6410_v28 = vpop.f32.mrb[86].mxu1 }
 0x5c5   :  { %v6431_v23 = vmax.f32 %v6408_v16, 0.0  ;;  %v6411_v41 = vadd.f32 %v16129_v47, %v6410_v28  ;;  %v6412_v22 = vpop.f32.mrb[87].mxu1 }
 0x5c7   :  { %v16239_v48 = vmax.f32 %v5649_v25, %v6431_v23  ;;  %v6432_v54 = vmax.f32 %v6411_v41, 0.0 }
 0x5c9   :  { %v6439_v21 = vmax.f32 %v5650_v55, %v6432_v54  ;;  %v6477_v26 = vrot.slane %v16239_v48, 4  ;;  %v6473_v50 = vrot.slane %v16239_v48, 2  ;;  %v6481_v29 = vrot.slane %v16239_v48, 6 }
 0x5cb   :  { %v9353_v7 = vpack.i.bf16 %v6448_v35, %v6477_v26  ;;  %v9348_v30 = vpack.i.bf16 %v6444_v51, %v6473_v50  ;;  %v9363_v43 = vpack.i.bf16 %v6437_v5, %v6439_v21  ;;  %v6493_v11 = vrot.slane %v6439_v21, 4 }
 0x5cc   :  { %v6489_v37 = vrot.slane %v6439_v21, 2  ;;  %v6497_v57 = vrot.slane %v6439_v21, 6  ;;  %v9358_v55 = vpack.i.bf16 %v6452_v52, %v6481_v29  ;;  %v9509_v52 = vld [vmem:[%s16412_s5 + $0x88] sm:$0xff]  }
 0x5cd   :  { %9354 = vrot.lane.b32.xlu1 %v9353_v7, %s9584_s22  ;;  %9349 = vrot.lane.b32.xlu0 %v9348_v30, %s9585_s24  ;;  %v9373_v18 = vpack.i.bf16 %v6464_v32, %v6493_v11 }
 0x5ce   :  { %v9368_v25 = vpack.i.bf16 %v6460_v34, %v6489_v37  ;;  %v9378_v19 = vpack.i.bf16 %v6468_v42, %v6497_v57  ;;  %v9508_v57 = vld [vmem:[%s16412_s5 + $0x80] sm:$0xff]  }
 0x5d1   :  { %9364 = vrot.lane.b32.xlu1 %v9363_v43, %s9586_s30  ;;  %9359 = vrot.lane.b32.xlu0 %v9358_v55, %s9575_s25  ;;  %v9513_v55 = vld [vmem:[%s16412_s5 + $0xa8] sm:$0xff]  }
 0x5d5   :  { %9374 = vrot.lane.b32.xlu1 %v9373_v18, %s9583_s23  ;;  %9369 = vrot.lane.b32.xlu0 %v9368_v25, %s9587_s12  ;;  %v9510_v18 = vld [vmem:[%s16412_s5 + $0x90] sm:$0xff]   ;;  %v9511_v25 = vld [vmem:[%s16412_s5 + $0x98] sm:$0xff]  }
 0x5d9   :  { %9379 = vrot.lane.b32.xlu0 %v9378_v19, %s9588_s2  ;;  %v9512_v19 = vld [vmem:[%s16412_s5 + $0xa0] sm:$0xff]  }
 0x5e7   :  { %v6415_v56 = vpop.f32.mrb[88].mxu1 }
 0x5e8   :  { %v6416_v27 = vadd.f32 %v16129_v47, %v6415_v56  ;;  %v6417_v45 = vpop.f32.mrb[89].mxu1 }
 0x5e9   :  { %v6418_v39 = vpop.f32.mrb[90].mxu1 }
 0x5ea   :  { %v6433_v24 = vmax.f32 %v6416_v27, 0.0  ;;  %v6419_v9 = vadd.f32 %v16129_v47, %v6418_v39  ;;  %v6420_v14 = vpop.f32.mrb[91].mxu1  ;;  %v9514_v27 = vld [vmem:[%s16412_s5 + $0xb0] sm:$0xff]  }
 0x5ec   :  { %v16267_v46 = vmax.f32 %v16212_v31, %v6433_v24  ;;  %v6434_v6 = vmax.f32 %v6419_v9, 0.0 }
 0x5ee   :  { %v6441_v36 = vmax.f32 %v16215_v20, %v6434_v6  ;;  %v6521_v44 = vrot.slane %v16267_v46, 2  ;;  %v6525_v1 = vrot.slane %v16267_v46, 4  ;;  %v6529_v61 = vrot.slane %v16267_v46, 6 }
 0x5f0   :  { %6522 = vrot.lane.b32.xlu1 %v6521_v44, %s9585_s24  ;;  %6526 = vrot.lane.b32.xlu0 %v6525_v1, %s9584_s22  ;;  %v6537_v17 = vrot.slane %v6441_v36, 2  ;;  %v6541_v2 = vrot.slane %v6441_v36, 4  ;;  %v6545_v31 = vrot.slane %v6441_v36, 6 }
 0x5f4   :  { %6530 = vrot.lane.b32.xlu1 %v6529_v61, %s9575_s25  ;;  %6534 = vrot.lane.b32.xlu0 %v6441_v36, %s9586_s30 }
 0x5f8   :  { %6538 = vrot.lane.b32.xlu1 %v6537_v17, %s9587_s12  ;;  %6542 = vrot.lane.b32.xlu0 %v6541_v2, %s9583_s23 }
 0x5fc   :  { %6546 = vrot.lane.b32.xlu1 %v6545_v31, %s9588_s2 }
 0x63f   :  { %v9355_v20 = vpop.permute.xlu1 %9354  ;;  %v9350_v62 = vpop.permute.xlu0 %9349 }
 0x640   :  { %v9352_v13 = vunpack.i.h.bf16 %v9350_v62  ;;  %v9351_v0 = vunpack.i.l.bf16 %v9350_v62  ;;  %v9357_v12 = vunpack.i.h.bf16 %v9355_v20  ;;  %v9356_v15 = vunpack.i.l.bf16 %v9355_v20  ;;  %v9516_v62 = vld [vmem:[%s16412_s5 + $0xc0] sm:$0xff]  }
 0x642   :  { %v6502_v5 = vsel %vm6501_vm4, %v16223_v33, %v9352_v13  ;;  %v6513_v3 = vsel %vm6501_vm4, %v16239_v48, %v9351_v0 }
 0x643   :  { %v9365_v60 = vpop.permute.xlu1 %9364  ;;  %v9360_v38 = vpop.permute.xlu0 %9359  ;;  %v6504_v41 = vsel %vm6503_vm9, %v6502_v5, %v9357_v12  ;;  %v6514_v22 = vsel %vm6503_vm9, %v6513_v3, %v9356_v15  ;;  %v9517_v5 = vld [vmem:[%s16414_s7] sm:$0xff]   ;;  %v9589_v3 = vmov 0.0  }
 0x644   :  { %v9362_v16 = vunpack.i.h.bf16 %v9360_v38  ;;  %v9361_v4 = vunpack.i.l.bf16 %v9360_v38  ;;  %v9367_v28 = vunpack.i.h.bf16 %v9365_v60  ;;  %v9366_v23 = vunpack.i.l.bf16 %v9365_v60  ;;  %v9519_v60 = vld [vmem:[%s16414_s7 + $0x10] sm:$0xff]   ;;  %v9520_v38 = vld [vmem:[%s16414_s7 + $0x18] sm:$0xff]  }
 0x646   :  { %v6505_v58 = vsel %vm3451_vm12, %v6504_v41, %v9362_v16  ;;  %v6515_v40 = vsel %vm3451_vm12, %v6514_v22, %v9361_v4  ;;  %v9521_v16 = vld [vmem:[%s16414_s7 + $0x20] sm:$0xff]   ;;  %v9522_v4 = vld [vmem:[%s16414_s7 + $0x28] sm:$0xff]  }
 0x647   :  { %v9375_v33 = vpop.permute.xlu1 %9374  ;;  %v9370_v54 = vpop.permute.xlu0 %9369  ;;  %v6507_v51 = vsel %vm6506_vm10, %v6505_v58, %v9367_v28  ;;  %v6516_v50 = vsel %vm6506_vm10, %v6515_v40, %v9366_v23  ;;  %v9523_v28 = vld [vmem:[%s16414_s7 + $0x30] sm:$0xff]   ;;  %v9524_v23 = vld [vmem:[%s16414_s7 + $0x38] ss:$0 sps:$4 sm:$0xff]  }
 0x648   :  { %v9372_v48 = vunpack.i.h.bf16 %v9370_v54  ;;  %v9371_v35 = vunpack.i.l.bf16 %v9370_v54  ;;  %v9377_v21 = vunpack.i.h.bf16 %v9375_v33  ;;  %v9376_v26 = vunpack.i.l.bf16 %v9375_v33 }
 0x64a   :  { %v6509_v32 = vsel %vm6508_vm11, %v6507_v51, %v9372_v48  ;;  %v6517_v34 = vsel %vm6508_vm11, %v6516_v50, %v9371_v35  ;;  %v7304_v48 = vld [vmem:[%s16413_s6] ss:$0 sm:$0xff] }
 0x64b   :  { %v9380_v63 = vpop.permute.xlu0 %9379  ;;  %v6510_v30 = vsel %vm3792_vm0, %v6509_v32, %v9377_v21  ;;  %v6518_v43 = vsel %vm3792_vm0, %v6517_v34, %v9376_v26  ;;  %v9525_v32 = vld [vmem:[%s16416_s9] sm:$0xff]  }
 0x64c   :  { %v9382_v53 = vunpack.i.h.bf16 %v9380_v63  ;;  %v9381_v7 = vunpack.i.l.bf16 %v9380_v63 }
 0x64e   :  { %v6512_v29 = vsel %vm6511_vm14, %v6510_v30, %v9382_v53  ;;  %v6519_v11 = vsel %vm6511_vm14, %v6518_v43, %v9381_v7  ;;  %v9526_v53 = vld [vmem:[%s16416_s9 + $0x8] sm:$0xff]   ;;  %v9527_v7 = vld [vmem:[%s16416_s9 + $0x10] sm:$0xff]   ;;  %v9528_v30 = vld [vmem:[%s16416_s9 + $0x18] sm:$0xff]  }
 0x64f   :  { %v6556_v37 = vpack.c.bf16 %v6512_v29, %v6512_v29  ;;  %v6557_v42 = vpack.c.bf16 %v6519_v11, %v6519_v11  ;;  %v9529_v43 = vld [vmem:[%s16416_s9 + $0x20] sm:$0xff]   ;;  %v9530_v29 = vld [vmem:[%s16416_s9 + $0x28] ss:$0 sps:$4 sm:$0x33]   ;;  %s9591_s9 = smov [#allocation2]  }
 0x650   :  { %v7021_v11 = vsel %vm18606_vm2, %v9530_v29, 0  ;;  %s7071_s25 = sshll.u32 %s9591_s9, 4  ;;  %s7072_s25 = int_to_ptr.vmem [resolvable:$true] %s7071_s25 }
 0x651   :  { %6802 = vmatprep.mubr.bf16.mxu1 %v6557_v42  ;;  %p9547_p1 = scmp.lt.s32.totalorder %s7072_s25, %s7072_s25 }
 0x652   :  { %6803 = vmatmul.mubr.bf16.vlgmr.msra.gmra.mrb[96].mxu1 %v6556_v37  ;;  %v7331_v37 = vld [vmem:[%s16415_s8] ss:$0 sm:$0xff]  ;;  %s9542_s8 = scalar_lea.vmem %s7072_s25, 32 }
 0x653   :  { %6811 = vmatpush1.bf16.msra.mxu1 %v9508_v57  ;;  %p9543_p0 = scmp.ne.s32.totalorder %s7072_s25, %s9542_s8  ;;  %p9548_p2 = scmp.lt.s32.totalorder %s9542_s8, %s9542_s8 }
 0x654   :  { %6812 = vmatprep.subr.bf16.mxu1 %v18289_v8 }
 0x655   :  { %p9549_p3 = por %p9548_p2, %p9547_p1 }
 0x657   :  { %6813 = vmatpush1.bf16.msra.mxu1 %v9509_v52  ;;  %p9550_p4 = pnand %p9549_p3, %p9543_p0 }
 0x658   :  { %6814 = vmatprep.subr.bf16.mxu1 %v18289_v8 }
 0x65b   :  { %6815 = vmatpush1.bf16.msra.mxu1 %v9510_v18 }
 0x65c   :  { %6816 = vmatprep.subr.bf16.mxu1 %v18289_v8 }
 0x65f   :  { %6817 = vmatpush1.bf16.msra.mxu1 %v9511_v25 }
 0x660   :  { %6818 = vmatprep.subr.bf16.mxu1 %v18289_v8 }
 0x662   :  { %v6523_v10 = vpop.permute.xlu1 %6522  ;;  %v6527_v49 = vpop.permute.xlu0 %6526 }
 0x663   :  { %6819 = vmatpush1.bf16.msra.mxu1 %v9512_v19  ;;  %v6549_v56 = vsel %vm6501_vm4, %v16267_v46, %v6523_v10  ;;  %v9515_v46 = vld [vmem:[%s16412_s5 + $0xb8] sm:$0xff]  }
 0x664   :  { %6820 = vmatprep.subr.bf16.mxu1 %v18289_v8  ;;  %v6550_v45 = vsel %vm6503_vm9, %v6549_v56, %v6527_v49 }
 0x666   :  { %v6531_v24 = vpop.permute.xlu1 %6530  ;;  %v6535_v6 = vpop.permute.xlu0 %6534 }
 0x667   :  { %6821 = vmatpush1.bf16.msra.mxu1 %v9513_v55  ;;  %v6551_v14 = vsel %vm3451_vm12, %v6550_v45, %v6531_v24  ;;  %vm18605_vm12 = vcmask 1043456   ;;  %v7341_v55 = vld [vmem:[%s16417_s10] ss:$0 sm:$0xff] }
 0x668   :  { %6822 = vmatprep.subr.bf16.mxu1 %v18289_v8  ;;  %v6552_v17 = vsel %vm6506_vm10, %v6551_v14, %v6535_v6  ;;  %v6923_v41 = vsel %vm18605_vm12, %v9524_v23, 0 }
 0x669   :  { %v6423_v39 = vpop.f32.mrb[92].mxu1 }
 0x66a   :  { %v6424_v9 = vadd.f32 %v16129_v47, %v6423_v39  ;;  %v6425_v36 = vpop.f32.mrb[93].mxu1  ;;  %v6539_v2 = vpop.permute.xlu1 %6538 }
 0x66b   :  { %6823 = vmatpush1.bf16.msra.mxu1 %v9514_v27  ;;  %v6426_v44 = vpop.f32.mrb[94].mxu1  ;;  %v6553_v47 = vsel %vm6508_vm11, %v6552_v17, %v6539_v2  ;;  %v6543_v20 = vpop.permute.xlu0 %6542 }
 0x66c   :  { %6824 = vmatprep.subr.bf16.mxu1 %v18289_v8  ;;  %v6435_v1 = vmax.f32 %v6424_v9, 0.0  ;;  %v6427_v61 = vpop.f32.mrb[95].mxu1  ;;  %v6554_v0 = vsel %vm3792_vm0, %v6553_v47, %v6543_v20  ;;  %vm9590_vm0 = vmmov 0  }
 0x66e   :  { %v6442_v31 = vmax.f32 %v16219_v59, %v6435_v1  ;;  %v6547_v12 = vpop.permute.xlu1 %6546 }
 0x66f   :  { %6825 = vmatpush1.bf16.msra.mxu1 %v9515_v46  ;;  %v6555_v15 = vsel %vm6511_vm14, %v6554_v0, %v6547_v12 }
 0x670   :  { %6826 = vmatprep.subr.bf16.mxu1 %v18289_v8  ;;  %v6559_v13 = vpack.c.bf16 %v6442_v31, %v6442_v31  ;;  %v6558_v59 = vpack.c.bf16 %v6555_v15, %v6555_v15  ;;  %v9518_v8 = vld [vmem:[%s16414_s7 + $0x8] sm:$0xff]  }
 0x672   :  { %7330 = vmatprep.mubr.msk.bf16.mxu1 %vm6501_vm4, %v6559_v13 }
 0x673   :  { %6827 = vmatpush1.bf16.msra.mxu1 %v9516_v62 }
 0x674   :  { %7684 = vmatprep.subr.bf16.mxu1 %v9589_v3 }
 0x676   :  { %6843 = vmatmul.mubr.bf16.vlgmr.msra.gmra.mrb[100].mxu1 %v6558_v59 }
 0x677   :  { %7685 = vmatpush3.bf16.msra.mxu1 %v9517_v5  ;;  %7700 = vmatprep.mubr.msk.bf16.mxu1 %vm9590_vm0, %v9589_v3 }
 0x678   :  { %7686 = vmatprep.subr.bf16.mxu1 %v9589_v3 }
 0x67b   :  { %7687 = vmatpush3.bf16.msra.mxu1 %v9518_v8 }
 0x67c   :  { %7688 = vmatprep.subr.bf16.mxu1 %v9589_v3 }
 0x67f   :  { %7689 = vmatpush3.bf16.msra.mxu1 %v9519_v60 }
 0x680   :  { %7690 = vmatprep.subr.bf16.mxu1 %v9589_v3 }
 0x683   :  { %7691 = vmatpush3.bf16.msra.mxu1 %v9520_v38 }
 0x684   :  { %7692 = vmatprep.subr.bf16.mxu1 %v9589_v3 }
 0x687   :  { %7693 = vmatpush3.bf16.msra.mxu1 %v9521_v16 }
 0x688   :  { %7694 = vmatprep.subr.bf16.mxu1 %v9589_v3 }
 0x68b   :  { %7695 = vmatpush3.bf16.msra.mxu1 %v9522_v4 }
 0x68c   :  { %7696 = vmatprep.subr.bf16.mxu1 %v9589_v3 }
 0x68f   :  { %7697 = vmatpush3.bf16.msra.mxu1 %v9523_v28 }
 0x690   :  { %7698 = vmatprep.subr.bf16.mxu1 %v9589_v3 }
 0x693   :  { %7699 = vmatpush3.bf16.msra.mxu1 %v6923_v41 }
 0x694   :  { %7704 = vmatprep.subr.bf16.mxu1 %v9589_v3 }
 0x725   :  { %v7464_v22 = vpop.f32.mrb[96].mxu1 }
 0x726   :  { %v7465_v58 = vpop.f32.mrb[97].mxu1 }
 0x727   :  { %v7466_v40 = vadd.f32 %v7465_v58, %v7464_v22  ;;  %v7467_v33 = vpop.f32.mrb[98].mxu1 }
 0x728   :  { %v7468_v54 = vpop.f32.mrb[99].mxu1 }
 0x729   :  { %v6805_v35 = vadd.f32 %v7466_v40, %v7304_v48 }
 0x749   :  { %v6844_v21 = vpop.f32.mrb[100].mxu1 }
 0x74a   :  { %v6845_v26 = vadd.f32 %v6844_v21, %v6805_v35  ;;  %v6846_v51 = vpop.f32.mrb[101].mxu1 }
 0x74b   :  { %v6847_v50 = vpop.f32.mrb[102].mxu1 }
 0x74c   :  { %v6850_v34 = vpack.c.bf16 %v6845_v26, %v6845_v26  ;;  %v6848_v63 = vpop.f32.mrb[103].mxu1 }
 0x74e   :  { %7701 = vmatmul.mubr.msk.bf16.vlgmr.msra.gmra.mrb[104].mxu1 %vm6918_vm15, %v6850_v34 }
 0x74f   :  { %7705 = vmatpush3.bf16.msra.mxu1 %v9525_v32  ;;  %7716 = vmatprep.mubr.msk.bf16.mxu1 %vm9590_vm0, %v9589_v3 }
 0x750   :  { %7706 = vmatprep.subr.bf16.mxu1 %v9589_v3 }
 0x753   :  { %7707 = vmatpush3.bf16.msra.mxu1 %v9526_v53 }
 0x754   :  { %7708 = vmatprep.subr.bf16.mxu1 %v9589_v3 }
 0x757   :  { %7709 = vmatpush3.bf16.msra.mxu1 %v9527_v7 }
 0x758   :  { %7710 = vmatprep.subr.bf16.mxu1 %v9589_v3 }
 0x75b   :  { %7711 = vmatpush3.bf16.msra.mxu1 %v9528_v30 }
 0x75c   :  { %7712 = vmatprep.subr.bf16.mxu1 %v9589_v3 }
 0x75f   :  { %7713 = vmatpush3.bf16.msra.mxu1 %v9529_v43 }
 0x760   :  { %7714 = vmatprep.subr.bf16.mxu1 %v9589_v3 }
 0x763   :  { %7715 = vmatpush3.bf16.msra.mxu1 %v7021_v11 }
 0x821   :  { %v6959_v42 = vpop.f32.mrb[104].mxu1 }
 0x822   :  { %v6960_v57 = vadd.f32 %v7331_v37, %v6959_v42  ;;  %v7702_v52 = vpop.f32.mrb[105].mxu1 }
 0x823   :  { %v6962_v18 = vpop.f32.mrb[106].mxu1 }
 0x824   :  { %v6965_v25 = vpack.c.bf16 %v6960_v57, %v6960_v57  ;;  %v7703_v19 = vpop.f32.mrb[107].mxu1 }
 0x826   :  { %7717 = vmatmul.mubr.msk.bf16.vlgmr.msra.gmra.mrb[108].mxu1 %vm18607_vm3, %v6965_v25 }
 0x8f9   :  { %v7057_v10 = vpop.f32.mrb[108].mxu1 }
 0x8fa   :  { %v7058_v49 = vadd.f32 %v7341_v55, %v7057_v10  ;;  %v7718_v56 = vpop.f32.mrb[109].mxu1 }
 0x8fb   :  { %v7060_v27 = vpop.f32.mrb[110].mxu1 }
 0x8fc   :  { %v7719_v45 = vpop.f32.mrb[111].mxu1  ;;  %7064 = vst.msk [vmem:[#allocation2] sm:$0x3] %vm7063_vm13, %v7058_v49 }
 0x8fd   :  { %9553 = shalt.err (!%p9550_p4)
}
 0x8fe   :  { %s9554_s10 = scalar_lea.hbm %s16418_s11, 32 }
 0x8ff   :  { %p9555_p5 = scmp.ne.s32.totalorder %s16418_s11, %s9554_s10  ;;  %p9558_p6 = scmp.lt.u32.totalorder %s9554_s10, %s16418_s11 }
 0x901   :  { %p9560_p7 = pnand %p9558_p6, %p9555_p5 }
 0x903   :  { %9563 = shalt.err (!%p9560_p7)
}
 0x904   :  { %7074 = dma.vmem_to_hbm [thread:$0]  %s7072_s25, 32, %s16418_s11, [#allocation3]  }
 0x905   :  { %9564 = dma.done.wait [#allocation3], 32  }
 0x906   :  { %9565 = vsyncadd [#allocation3], 4294967264 }
 0x907   :  { %7078 = vsyncpa [#allocation3], 1 }

</bundles_post_ra>
